<compile_context>
chip_gen: v7x
topology: tpu7x:2x2x1
jax: 0.10.0
libtpu: 0.0.40
codegen_flags: <defaults>
</compile_context>

<pallas_src>
import functools

import jax
import jax.numpy as jnp
from jax.experimental import pallas as pl
from jax.experimental.pallas import tpu as pltpu

K = 4
OBJ_SIZE = 0.4
HALF = OBJ_SIZE / 2.0
Z_DIM = 32
ENC_DIM = 64
GRID_RES = 4                    # decoder voxel grid -> V = GRID_RES**3
NUM_ROT = 8                     # rotation grid: NUM_ROT about z + NUM_ROT about x
BIG = 1e30                      # single sentinel for all masked min/max reductions

SDS = jax.ShapeDtypeStruct


# ----------------------------------------------------------------------------
# Pallas kernels
# ----------------------------------------------------------------------------
def _pose_kernel(p_ref, m_ref, a_ref, w_ref, c_ref, mn_ref, mx_ref):
    # Fused per-batch pose-from-attention:
    #   centre  = masked mean of pcd per slot (soft mask)             -> (K, 3)
    #   mn/mx   = masked bbox of pcd under every grid rotation         -> (K, R*3)
    # rotations are one MXU matmul: rotated[n, r*3+e] = sum_d p[n,d]*rotW[d,r*3+e] (== R^T p)
    p = p_ref[0]                                          # (N2, 3)
    m = m_ref[0]                                          # (K, N2) soft mask
    a = a_ref[0]                                          # (K, N2) hard attention (0/1)
    num = jnp.sum(p[None, :, :] * m[:, :, None], axis=1)  # (K, 3)
    den = jnp.sum(m, axis=1, keepdims=True) + 1e-8        # (K, 1)
    c_ref[0] = num / den
    rot = jnp.dot(p, w_ref[...], preferred_element_type=jnp.float32)   # (N2, R*3)
    valid = a[:, :, None] > 0.0                                         # (K, N2, 1)
    rot_b = rot[None, :, :]                                             # (1, N2, R*3)
    mn_ref[0] = jnp.min(jnp.where(valid, rot_b, BIG), axis=1)           # (K, R*3)
    mx_ref[0] = jnp.max(jnp.where(valid, rot_b, -BIG), axis=1)


def _encoder_kernel(p_ref, f_ref, t_ref, r_ref, wp_ref, wf_ref, b_ref, o_ref, *, scale):
    # Fused transform-to-box + synthetic PointNet encoder (replaces the standalone
    # transform kernel + pointnet kernel pair):
    #   pb   = R^T (p - t) * scale ;  in-box mask from |pb| <= 1
    #   h    = relu(f @ Wf  +  pb·Wp  + b)   (one MXU GEMM; 3-wide position part on VPU)
    #   enc  = masked max-pool over points
    p = p_ref[0]                                          # (N2, 3)
    f = f_ref[0]                                          # (K, N2, Fp)
    t = t_ref[0]                                          # (K, 3)
    r = r_ref[0]                                          # (K, 3, 3)
    wp = wp_ref[...]                                      # (3, E)
    kk, nn, fp = f.shape

    sh = p[None, :, :] - t[:, None, :]                                   # (K, N2, 3)
    pb = (sh[:, :, 0:1] * r[:, 0, :][:, None, :]
          + sh[:, :, 1:2] * r[:, 1, :][:, None, :]
          + sh[:, :, 2:3] * r[:, 2, :][:, None, :]) * scale              # (K, N2, 3)
    ind = jnp.logical_and(pb <= 1.0, pb >= -1.0).astype(jnp.float32)
    msk = jnp.min(ind, axis=-1, keepdims=True)                           # (K, N2, 1)

    fdot = jnp.dot(f.reshape(kk * nn, fp), wf_ref[...],
                   preferred_element_type=jnp.float32).reshape(kk, nn, -1)   # (K, N2, E)
    pos = (pb[:, :, 0:1] * wp[0][None, None, :]
           + pb[:, :, 1:2] * wp[1][None, None, :]
           + pb[:, :, 2:3] * wp[2][None, None, :])                       # (K, N2, E)
    h = jnp.maximum(fdot + pos + b_ref[...], 0.0)                        # (K, N2, E)
    pooled = jnp.max(jnp.where(msk > 0.0, h, -BIG), axis=1)              # (K, E)
    has = jnp.sum(msk, axis=1) > 0.0                                     # (K, 1)
    o_ref[0] = jnp.where(has, pooled, 0.0)


def _eval_transform_kernel(p_ref, t_ref, r_ref, hw_ref, sc_ref, o_ref, m_ref):
    # Transform ALL evaluation point sets (surface | air | ray, concatenated along the
    # lane axis) into every slot's box frame in ONE call; channel-first lane-dense output.
    #   p_box = R^T (p - hw * t) * sc ;  mask = all(|p_box| <= 1)
    p = p_ref[0]                                          # (3, M)
    t = t_ref[0]                                          # (K, 3)
    r = r_ref[0]                                          # (K, 3, 3)
    hw = hw_ref[...]                                      # (1, M)   1 for points, 0 for rays
    sc = sc_ref[...]                                      # (1, M)   1/HALF for points, 1 for rays
    sh = p[None, :, :] - hw[None, :, :] * t[:, :, None]                  # (K, 3, M)
    pb = (r[:, 0, :][:, :, None] * sh[:, 0:1, :]
          + r[:, 1, :][:, :, None] * sh[:, 1:2, :]
          + r[:, 2, :][:, :, None] * sh[:, 2:3, :])                      # (K, 3, M)
    ps = pb * sc[None, :, :]
    o_ref[0] = ps
    ind = jnp.logical_and(ps <= 1.0, ps >= -1.0).astype(jnp.float32)
    m_ref[0] = ind[:, 0, :] * ind[:, 1, :] * ind[:, 2, :]                # (K, M)


def _decoder_kernel(pe_ref, me_ref, z_ref, t_ref, r_ref, idle_ref, g_ref,
                    wp_ref, wz_ref, bh_ref,
                    rgb_ref, ls_ref, la_ref, pvw_ref, occ_ref, air_ref,
                    mn_ref, mx_ref, cnt_ref, *, n_pts, half_size):
    # Fused synthetic decoder heads + pose-target min/max + idle gating (per batch).
    # Heads are linear in [point ; z_what]; weights packed as columns
    #   [rgb(3) | logit_surface | logit_air | occupancy | air_voxel].
    pe = pe_ref[0]                                        # (K, 3, 3N)  box pts: surf|air|ray
    me = me_ref[0]                                        # (K, 3N)     in-box masks
    z = z_ref[0]                                          # (K, Dz)
    t = t_ref[0]                                          # (K, 3)
    r = r_ref[0]                                          # (K, 3, 3)   rot (box->world is R)
    idle = idle_ref[0]                                    # (K, 1)
    g = g_ref[...]                                        # (3, V) voxel grid, box frame
    wp = wp_ref[...]                                      # (3, 7)
    bh = bh_ref[...]                                      # (1, 7)

    n = n_pts
    ps = pe[:, :, 0:n]                                    # (K, 3, N) surface points
    pa = pe[:, :, n:2 * n]                                # (K, 3, N) air points
    ms = me[:, 0:n]                                       # (K, N)
    ma = me[:, n:2 * n]                                   # (K, N)

    zc = jnp.dot(z, wz_ref[...], preferred_element_type=jnp.float32) + bh   # (K, 7)

    # surface heads (rgb + surface logit), lane-dense (K, C, N)
    wps = wp[:, 0:4]                                                      # (3, 4)
    fs = (wps[0][None, :, None] * ps[:, 0:1, :]
          + wps[1][None, :, None] * ps[:, 1:2, :]
          + wps[2][None, :, None] * ps[:, 2:3, :]
          + zc[:, 0:4, None])                                             # (K, 4, N)
    rgb = jax.nn.sigmoid(fs[:, 0:3, :])                                   # (K, 3, N)
    ls = fs[:, 3, :]                                                      # (K, N)
    # air-point head
    wpa = wp[:, 4:5]                                                      # (3, 1)
    la = (wpa[0][None, :, None] * pa[:, 0:1, :]
          + wpa[1][None, :, None] * pa[:, 1:2, :]
          + wpa[2][None, :, None] * pa[:, 2:3, :]
          + zc[:, 4:5, None])[:, 0, :]                                    # (K, N)

    # voxel centres in world frame: p_world = R @ (g * half) + t
    gl = g * half_size                                                    # (3, V)
    pvw = (r[:, :, 0][:, :, None] * gl[0][None, None, :]
           + r[:, :, 1][:, :, None] * gl[1][None, None, :]
           + r[:, :, 2][:, :, None] * gl[2][None, None, :]
           + t[:, :, None])                                               # (K, 3, V)
    pvw_ref[0] = pvw
    # occupancy / air-voxel heads (grid part shared across slots, computed once)
    wv = wp[:, 5:7]                                                       # (3, 2)
    base = (wv[0][:, None] * g[0][None, :]
            + wv[1][:, None] * g[1][None, :]
            + wv[2][:, None] * g[2][None, :])                             # (2, V)
    occ = base[0][None, :] + zc[:, 5:6]                                   # (K, V)
    airv = base[1][None, :] + zc[:, 6:7]                                  # (K, V)
    occ_ref[0] = occ
    air_ref[0] = airv

    # pose-target ingredients (masked min / max / count over voxels)
    posi = jnp.logical_and(jax.nn.sigmoid(occ) > 0.5,
                           jnp.logical_not(jax.nn.sigmoid(airv) > 0.5))   # (K, V)
    vb = posi[:, None, :]                                                 # (K, 1, V)
    mn_ref[0] = jnp.min(jnp.where(vb, pvw, BIG), axis=-1)                 # (K, 3)
    mx_ref[0] = jnp.max(jnp.where(vb, pvw, -BIG), axis=-1)                # (K, 3)
    cnt_ref[0] = jnp.sum(posi.astype(jnp.float32), axis=-1, keepdims=True)  # (K, 1)

    # scatter-back (padded layout) + idle gating
    keep = 1.0 - idle                                                     # (K, 1)
    rgb_ref[0] = rgb * ms[:, None, :] * keep[:, :, None]
    ls_ref[0] = jnp.where(ms > 0.0, ls * keep + idle * (-1e8), -1000.0)
    la_ref[0] = jnp.where(ma > 0.0, la * keep + idle * (-1e8), -1000.0)


# ----------------------------------------------------------------------------
# pallas_call helpers
# ----------------------------------------------------------------------------
def _fspec(shape):
    nd = len(shape)
    return pl.BlockSpec(tuple(shape), lambda b, nd=nd: (0,) * nd)


def _bspec(shape):
    nd = len(shape)
    blk = (1,) + tuple(shape[1:])
    return pl.BlockSpec(blk, lambda b, nd=nd: (b,) + (0,) * (nd - 1))


def _batch_call(kernel, out_shapes, batched_args, shared_args, batch):
    # grid=(B,): each grid step handles one batch element (all K slots in-kernel).
    # "parallel" lets v7x split the batch across its two TensorCores (no-op on v5e/v6e).
    # TODO(synk): for realistic point counts, add an "arbitrary" N-tiling grid axis and
    # set vmem_limit_bytes explicitly (v7x has 64 MiB VMEM); at N=128 full-N blocks fit.
    single = not isinstance(out_shapes, (list, tuple))
    outs = (out_shapes,) if single else tuple(out_shapes)
    res = pl.pallas_call(
        kernel,
        out_shape=outs,
        grid=(batch,),
        in_specs=[_bspec(a.shape) for a in batched_args]
        + [_fspec(a.shape) for a in shared_args],
        out_specs=tuple(_bspec(s.shape) for s in outs),
        compiler_params=pltpu.CompilerParams(dimension_semantics=("parallel",)),
    )(*batched_args, *shared_args)
    return res[0] if single else res


# ----------------------------------------------------------------------------
# plain-XLA helpers (tiny 8-row GEMMs / KL: a pallas_call here is pure launch overhead)
# ----------------------------------------------------------------------------
def _mlp(x, w1, b1, w2, b2):
    h = jnp.maximum(jnp.dot(x, w1) + b1, 0.0)
    return jnp.dot(h, w2) + b2


def _kl(mu, sg, idle3):
    kl = 0.5 * (mu * mu + sg * sg - 1.0) - jnp.log(sg)
    return jnp.sum(kl * (1.0 - idle3), axis=(1, 2))


# ----------------------------------------------------------------------------
# Parameters / constants
# ----------------------------------------------------------------------------
def _round_up(x, m):
    return ((x + m - 1) // m) * m


def make_rot_grid(num=NUM_ROT):
    # TODO(synk): original loads constants/rot_grid.pt; replaced by an analytic grid of
    # rotations about z and x.
    ang = jnp.linspace(0.0, jnp.pi / 2.0, num, endpoint=False)
    c, s = jnp.cos(ang), jnp.sin(ang)
    z = jnp.zeros_like(c)
    o = jnp.ones_like(c)
    rz = jnp.stack([jnp.stack([c, -s, z], -1),
                    jnp.stack([s, c, z], -1),
                    jnp.stack([z, z, o], -1)], axis=1)
    rx = jnp.stack([jnp.stack([o, z, z], -1),
                    jnp.stack([z, c, -s], -1),
                    jnp.stack([z, s, c], -1)], axis=1)
    return jnp.concatenate([rz, rx], axis=0).astype(jnp.float32)


def init_params(key, feat_dim):
    fp = _round_up(feat_dim, 8)          # pad MXU contraction dim to a multiple of 8

    def nrm(k, shape, scale=0.1):
        return scale * jax.random.normal(k, shape, dtype=jnp.float32)

    ks = iter(jax.random.split(key, 64))
    p = {}
    # where / what encoders (synthetic PointNet replacing ClusterEncoderKPConv / what_encoder)
    for name in ("where", "what"):
        p[f"{name}_wp"] = nrm(next(ks), (3, ENC_DIM))
        wf = nrm(next(ks), (fp, ENC_DIM))
        if fp > feat_dim:
            wf = wf.at[feat_dim:].set(0.0)        # padded feature columns are inert
        p[f"{name}_wf"] = wf
        p[f"{name}_b"] = nrm(next(ks), (1, ENC_DIM))
    # q_z_where_net: MLP(64, 32, 64)
    p["qwhere_w1"] = nrm(next(ks), (ENC_DIM, 32)); p["qwhere_b1"] = nrm(next(ks), (1, 32))
    p["qwhere_w2"] = nrm(next(ks), (32, 2 * Z_DIM)); p["qwhere_b2"] = nrm(next(ks), (1, 2 * Z_DIM))
    # trans_net: MLP(32, 256, 3)
    p["trans_w1"] = nrm(next(ks), (Z_DIM, 256)); p["trans_b1"] = nrm(next(ks), (1, 256))
    p["trans_w2"] = nrm(next(ks), (256, 3)); p["trans_b2"] = nrm(next(ks), (1, 3))
    # q_z_what_net: MLP(64, 128, 64)
    p["qwhat_w1"] = nrm(next(ks), (ENC_DIM, 128)); p["qwhat_b1"] = nrm(next(ks), (1, 128))
    p["qwhat_w2"] = nrm(next(ks), (128, 2 * Z_DIM)); p["qwhat_b2"] = nrm(next(ks), (1, 2 * Z_DIM))
    # synthetic decoder heads, packed: columns = [rgb(3) | logit_s | logit_a | occ | air]
    p["dec_wp"] = nrm(next(ks), (3, 7))
    p["dec_wz"] = nrm(next(ks), (Z_DIM, 7))
    p["dec_b"] = nrm(next(ks), (1, 7))
    # constants
    rot_grid = make_rot_grid()
    p["rot_grid"] = rot_grid
    p["rot_w"] = jnp.transpose(rot_grid, (1, 0, 2)).reshape(3, -1)        # (3, R*3)
    lin = jnp.linspace(-1.0, 1.0, GRID_RES)
    gx, gy, gz = jnp.meshgrid(lin, lin, lin, indexing="ij")
    p["grid_t"] = jnp.stack([gx.ravel(), gy.ravel(), gz.ravel()], axis=0).astype(jnp.float32)
    return p


# ----------------------------------------------------------------------------
# Forward pass
# ----------------------------------------------------------------------------
def object_module_forward(params, rng, pcd, p_eval_surface, p_eval_air, ray, feature,
                          mask, depth, bg_rob_obj_prob, idle_states, cam_proj_homo):
    B, N, _ = p_eval_surface.shape
    N2 = pcd.shape[1]
    F = feature.shape[-1]
    Fp = params["where_wf"].shape[0]
    rot_grid = params["rot_grid"]
    R = rot_grid.shape[0]
    idle3 = idle_states[:, :, None]
    rng_where, rng_what = jax.random.split(rng)

    # pad features once for the MXU-aligned encoder GEMM (zero columns are inert)
    feature_p = (jnp.pad(feature, ((0, 0), (0, 0), (0, 0), (0, Fp - F)))
                 if Fp > F else feature)

    # ---------- get_pose_trans_from_att (single fused pallas_call, K handled in-kernel) ----------
    mask_full = jnp.concatenate(
        [mask[..., 0], jnp.transpose(bg_rob_obj_prob, (0, 2, 1))[:, :1]], axis=1)   # (B,K+1,N2)
    att_f = (jnp.argmax(mask_full, axis=1)[:, None, :]
             == jnp.arange(K)[None, :, None]).astype(jnp.float32)                   # (B,K,N2)
    att_count = jnp.sum(att_f, axis=-1)                                             # (B,K)

    prev_trans, mn_r, mx_r = _batch_call(
        _pose_kernel,
        (SDS((B, K, 3), jnp.float32), SDS((B, K, R * 3), jnp.float32),
         SDS((B, K, R * 3), jnp.float32)),
        [pcd, mask[..., 0], att_f], [params["rot_w"]], B)

    minv = mn_r.reshape(B, K, R, 3)
    maxv = mx_r.reshape(B, K, R, 3)
    vol = jnp.prod(maxv - minv, axis=-1)                                  # (B,K,R)
    min_vol = jnp.min(vol, axis=-1, keepdims=True)
    within = vol <= min_vol * 1.01
    trace = rot_grid[:, 0, 0] + rot_grid[:, 1, 1] + rot_grid[:, 2, 2]
    ang = jnp.arccos(jnp.clip((trace - 1.0) / 2.0, -1.0, 1.0))
    ang_m = jnp.where(within, ang[None, None, :], jnp.inf)
    rot_sel = rot_grid[jnp.argmin(ang_m, axis=-1)]                        # (B,K,3,3)
    eye = jnp.broadcast_to(jnp.eye(3, dtype=jnp.float32), (B, K, 3, 3))
    rot_matrix = jnp.where((att_count > 10)[:, :, None, None], rot_sel, eye)

    # ---------- where branch (fused transform + PointNet encoder) ----------
    # TODO(synk): original compacts in-box points to the front of an N_max buffer
    # (data-dependent gather); a padded layout + pooling mask replaces it.
    enc_kernel = functools.partial(_encoder_kernel, scale=1.0 / HALF)
    where_enc = _batch_call(
        enc_kernel, SDS((B, K, ENC_DIM), jnp.float32),
        [pcd, feature_p, prev_trans, eye],
        [params["where_wp"], params["where_wf"], params["where_b"]], B)

    q_where = _mlp(where_enc.reshape(B * K, ENC_DIM),
                   params["qwhere_w1"], params["qwhere_b1"],
                   params["qwhere_w2"], params["qwhere_b2"]).reshape(B, K, 2 * Z_DIM)
    mu_where = q_where[..., :Z_DIM]
    sg_where = jax.nn.softplus(q_where[..., Z_DIM:]) + 1e-4
    z_where = mu_where + sg_where * jax.random.normal(rng_where, mu_where.shape)
    kl_where = _kl(mu_where, sg_where, idle3)

    delta_trans = jnp.tanh(_mlp(z_where.reshape(B * K, Z_DIM),
                                params["trans_w1"], params["trans_b1"],
                                params["trans_w2"], params["trans_b2"]
                                ).reshape(B, K, 3)) * 0.1
    trans = prev_trans + delta_trans
    trans_d = jax.lax.stop_gradient(trans)
    rot_d = jax.lax.stop_gradient(rot_matrix)

    # ---------- what branch (fused transform + PointNet encoder) ----------
    what_enc = _batch_call(
        enc_kernel, SDS((B, K, ENC_DIM), jnp.float32),
        [pcd, feature_p, trans_d, rot_d],
        [params["what_wp"], params["what_wf"], params["what_b"]], B)
    q_what = _mlp(what_enc.reshape(B * K, ENC_DIM),
                  params["qwhat_w1"], params["qwhat_b1"],
                  params["qwhat_w2"], params["qwhat_b2"]).reshape(B, K, 2 * Z_DIM)
    mu_what = q_what[..., :Z_DIM]
    sg_what = jax.nn.softplus(q_what[..., Z_DIM:]) + 1e-4
    z_what = mu_what + sg_what * jax.random.normal(rng_what, mu_what.shape)
    kl_what = _kl(mu_what, sg_what, idle3)

    # ---------- get_evaluation_points: one fused transform for surface | air | ray ----------
    M = 3 * N
    pts_cat_t = jnp.transpose(
        jnp.concatenate([p_eval_surface, p_eval_air, ray], axis=1), (0, 2, 1))   # (B,3,3N)
    hw = jnp.concatenate([jnp.ones((1, 2 * N), jnp.float32),
                          jnp.zeros((1, N), jnp.float32)], axis=1)    # rays are directions (w=0)
    sc = jnp.concatenate([jnp.full((1, 2 * N), 1.0 / HALF, jnp.float32),
                          jnp.ones((1, N), jnp.float32)], axis=1)     # rays stay unscaled
    p_box_t, mask_box = _batch_call(
        _eval_transform_kernel,
        (SDS((B, K, 3, M), jnp.float32), SDS((B, K, M), jnp.float32)),
        [pts_cat_t, trans_d, rot_d], [hw, sc], B)
    # TODO(synk): variable-length compaction of valid eval points across B*K is skipped;
    # padded per-(b,k) layout + validity masks are carried instead.

    # ---------- synthetic decoder + pose-target + idle gating (single fused call) ----------
    # TODO(synk): real decoder conditions on depth + cam_proj_homo (camera projection /
    # NeRF-style decoding); the synthetic decoder ignores them.
    V = params["grid_t"].shape[-1]
    (rgb_t, ls_n, la_n, pvw_t, occ_logit, air_logit, mn, mx, cnt) = _batch_call(
        functools.partial(_decoder_kernel, n_pts=N, half_size=HALF),
        (SDS((B, K, 3, N), jnp.float32), SDS((B, K, N), jnp.float32),
         SDS((B, K, N), jnp.float32), SDS((B, K, 3, V), jnp.float32),
         SDS((B, K, V), jnp.float32), SDS((B, K, V), jnp.float32),
         SDS((B, K, 3), jnp.float32), SDS((B, K, 3), jnp.float32),
         SDS((B, K, 1), jnp.float32)),
        [p_box_t, mask_box, z_what, trans_d, rot_d, idle3],
        [params["grid_t"], params["dec_wp"], params["dec_wz"], params["dec_b"]], B)

    prob_occup = jax.nn.sigmoid(occ_logit)                                # (B,K,V)
    posi_map = prob_occup > 0.5
    mask_air_vox = jax.nn.sigmoid(air_logit) > 0.5

    trans_target = jax.lax.stop_gradient(jnp.where(cnt > 10.0, (mn + mx) * 0.5, 0.0))
    posi_mask = cnt[..., 0] > 10.0
    trans_loss = (jnp.sum((trans - trans_target) ** 2, axis=2)
                  * (1.0 - idle_states) * posi_mask.astype(jnp.float32))
    # NOTE: matches the PyTorch reference, which means over the batch and then divides
    # by B again in the output dict.
    trans_loss = jnp.mean(jnp.sum(trans_loss, axis=1))

    # back to the reference (B,K,N,·) layout (kernels used lane-dense channel-first)
    rgb_out = jnp.transpose(rgb_t, (0, 1, 3, 2))                          # (B,K,N,3)
    logits_surface_out = ls_n[..., None]                                  # (B,K,N,1)
    logits_air_out = la_n[..., None]                                      # (B,K,N,1)
    p_voxel_world = jnp.transpose(pvw_t, (0, 1, 3, 2))                    # (B,K,V,3)
    ray_in_box = jnp.transpose(p_box_t[:, :, :, 2 * N:3 * N], (0, 1, 3, 2))

    return dict(
        rgb=rgb_out, logits_surface=logits_surface_out, logits_air=logits_air_out,
        z_what=z_what, z_where=z_where, kl_what=kl_what, kl_where=kl_where * 0.001,
        prev_trans=prev_trans, trans=trans, trans_target=trans_target,
        rot_matrix=rot_matrix, trans_loss=trans_loss / B,
        p_voxel_world=p_voxel_world, prob_occup=prob_occup,
        posi_map=posi_map, mask_air=mask_air_vox, ray_in_box=ray_in_box)


# ----------------------------------------------------------------------------
if __name__ == "__main__":
    B, N2, N, F = 2, 128, 128, 8
    key = jax.random.PRNGKey(0)
    ks = jax.random.split(key, 10)
    pcd = jax.random.uniform(ks[0], (B, N2, 3), minval=-0.5, maxval=0.5)
    p_eval_surface = jax.random.uniform(ks[1], (B, N, 3), minval=-0.5, maxval=0.5)
    p_eval_air = jax.random.uniform(ks[2], (B, N, 3), minval=-0.5, maxval=0.5)
    ray = jax.random.normal(ks[3], (B, N, 3))
    feature = jax.random.normal(ks[4], (B, K, N2, F))
    mask = jax.nn.softmax(jax.random.normal(ks[5], (B, K, N2, 1)), axis=1)
    depth = jax.random.uniform(ks[6], (B, 16, 16))
    bg_rob_obj_prob = jax.nn.softmax(jax.random.normal(ks[7], (B, N2, 3)), axis=-1)
    idle_states = (jax.random.uniform(ks[8], (B, K)) > 0.8).astype(jnp.float32)
    cam_proj_homo = jnp.tile(jnp.eye(4, dtype=jnp.float32)[None], (B, 1, 1))

    params = init_params(jax.random.PRNGKey(123), F)
    fwd = jax.jit(object_module_forward)
    out = fwd(params, ks[9], pcd, p_eval_surface, p_eval_air, ray, feature,
              mask, depth, bg_rob_obj_prob, idle_states, cam_proj_homo)
    jax.block_until_ready(out)
    print("KERNEL_OK")
</pallas_src>

<mosaic_0001>
module attributes {stable_mosaic.version = 11 : i64} {
  func.func @_encoder_kernel(%arg0: i32, %arg1: memref<1x128x3xf32, #tpu.memory_space<vmem>>, %arg2: memref<1x4x128x8xf32, #tpu.memory_space<vmem>>, %arg3: memref<1x4x3xf32, #tpu.memory_space<vmem>>, %arg4: memref<1x4x3x3xf32, #tpu.memory_space<vmem>>, %arg5: memref<3x64xf32, #tpu.memory_space<vmem>>, %arg6: memref<8x64xf32, #tpu.memory_space<vmem>>, %arg7: memref<1x64xf32, #tpu.memory_space<vmem>>, %arg8: memref<1x4x64xf32, #tpu.memory_space<vmem>>) attributes {dimension_semantics = [#tpu.dimension_semantics<parallel>], iteration_bounds = array<i64: 2>, scalar_prefetch = 0 : i64, scratch_operands = 0 : i64, tpu.core_type = #tpu.core_type<tc>, window_params = [{transform_indices = @transform_0, window_bounds = array<i64: 1, 128, 3>}, {transform_indices = @transform_1, window_bounds = array<i64: 1, 4, 128, 8>}, {transform_indices = @transform_2, window_bounds = array<i64: 1, 4, 3>}, {transform_indices = @transform_3, window_bounds = array<i64: 1, 4, 3, 3>}, {pipeline_mode = #tpu.pipeline_mode<synchronous>, transform_indices = @transform_4, window_bounds = array<i64: 3, 64>}, {pipeline_mode = #tpu.pipeline_mode<synchronous>, transform_indices = @transform_5, window_bounds = array<i64: 8, 64>}, {pipeline_mode = #tpu.pipeline_mode<synchronous>, transform_indices = @transform_6, window_bounds = array<i64: 1, 64>}, {transform_indices = @transform_7, window_bounds = array<i64: 1, 4, 64>}]} {
    %c0 = arith.constant 0 : index
    %c0_0 = arith.constant 0 : index
    %c0_1 = arith.constant 0 : index
    %0 = vector.load %arg1[%c0, %c0_0, %c0_1] : memref<1x128x3xf32, #tpu.memory_space<vmem>>, vector<1x128x3xf32>
    %1 = vector.shape_cast %0 : vector<1x128x3xf32> to vector<128x3xf32>
    %c0_2 = arith.constant 0 : index
    %c0_3 = arith.constant 0 : index
    %c0_4 = arith.constant 0 : index
    %c0_5 = arith.constant 0 : index
    %2 = vector.load %arg2[%c0_2, %c0_3, %c0_4, %c0_5] : memref<1x4x128x8xf32, #tpu.memory_space<vmem>>, vector<1x4x128x8xf32>
    %3 = vector.shape_cast %2 : vector<1x4x128x8xf32> to vector<4x128x8xf32>
    %c0_6 = arith.constant 0 : index
    %c0_7 = arith.constant 0 : index
    %c0_8 = arith.constant 0 : index
    %4 = vector.load %arg3[%c0_6, %c0_7, %c0_8] : memref<1x4x3xf32, #tpu.memory_space<vmem>>, vector<1x4x3xf32>
    %5 = vector.shape_cast %4 : vector<1x4x3xf32> to vector<4x3xf32>
    %c0_9 = arith.constant 0 : index
    %c0_10 = arith.constant 0 : index
    %c0_11 = arith.constant 0 : index
    %c0_12 = arith.constant 0 : index
    %6 = vector.load %arg4[%c0_9, %c0_10, %c0_11, %c0_12] : memref<1x4x3x3xf32, #tpu.memory_space<vmem>>, vector<1x4x3x3xf32>
    %7 = vector.shape_cast %6 : vector<1x4x3x3xf32> to vector<4x3x3xf32>
    %c0_13 = arith.constant 0 : index
    %c0_14 = arith.constant 0 : index
    %8 = vector.load %arg5[%c0_13, %c0_14] : memref<3x64xf32, #tpu.memory_space<vmem>>, vector<3x64xf32>
    %9 = vector.shape_cast %1 : vector<128x3xf32> to vector<1x128x3xf32>
    %10 = vector.shape_cast %5 : vector<4x3xf32> to vector<4x1x3xf32>
    %11 = vector.broadcast %9 : vector<1x128x3xf32> to vector<4x128x3xf32>
    %12 = vector.broadcast %10 : vector<4x1x3xf32> to vector<4x128x3xf32>
    %13 = arith.subf %11, %12 : vector<4x128x3xf32>
    %14 = vector.extract_strided_slice %13 {offsets = [0, 0, 0], sizes = [4, 128, 1], strides = [1, 1, 1]} : vector<4x128x3xf32> to vector<4x128x1xf32>
    %15 = vector.extract_strided_slice %7 {offsets = [0, 0, 0], sizes = [4, 1, 3], strides = [1, 1, 1]} : vector<4x3x3xf32> to vector<4x1x3xf32>
    %16 = vector.shape_cast %15 : vector<4x1x3xf32> to vector<4x3xf32>
    %17 = vector.shape_cast %16 : vector<4x3xf32> to vector<4x1x3xf32>
    %18 = vector.broadcast %14 : vector<4x128x1xf32> to vector<4x128x3xf32>
    %19 = vector.broadcast %17 : vector<4x1x3xf32> to vector<4x128x3xf32>
    %20 = arith.mulf %18, %19 : vector<4x128x3xf32>
    %21 = vector.extract_strided_slice %13 {offsets = [0, 0, 1], sizes = [4, 128, 1], strides = [1, 1, 1]} : vector<4x128x3xf32> to vector<4x128x1xf32>
    %22 = vector.extract_strided_slice %7 {offsets = [0, 1, 0], sizes = [4, 1, 3], strides = [1, 1, 1]} : vector<4x3x3xf32> to vector<4x1x3xf32>
    %23 = vector.shape_cast %22 : vector<4x1x3xf32> to vector<4x3xf32>
    %24 = vector.shape_cast %23 : vector<4x3xf32> to vector<4x1x3xf32>
    %25 = vector.broadcast %21 : vector<4x128x1xf32> to vector<4x128x3xf32>
    %26 = vector.broadcast %24 : vector<4x1x3xf32> to vector<4x128x3xf32>
    %27 = arith.mulf %25, %26 : vector<4x128x3xf32>
    %28 = arith.addf %20, %27 : vector<4x128x3xf32>
    %29 = vector.extract_strided_slice %13 {offsets = [0, 0, 2], sizes = [4, 128, 1], strides = [1, 1, 1]} : vector<4x128x3xf32> to vector<4x128x1xf32>
    %30 = vector.extract_strided_slice %7 {offsets = [0, 2, 0], sizes = [4, 1, 3], strides = [1, 1, 1]} : vector<4x3x3xf32> to vector<4x1x3xf32>
    %31 = vector.shape_cast %30 : vector<4x1x3xf32> to vector<4x3xf32>
    %32 = vector.shape_cast %31 : vector<4x3xf32> to vector<4x1x3xf32>
    %33 = vector.broadcast %29 : vector<4x128x1xf32> to vector<4x128x3xf32>
    %34 = vector.broadcast %32 : vector<4x1x3xf32> to vector<4x128x3xf32>
    %35 = arith.mulf %33, %34 : vector<4x128x3xf32>
    %36 = arith.addf %28, %35 : vector<4x128x3xf32>
    %cst = arith.constant 5.000000e+00 : f32
    %37 = vector.broadcast %cst : f32 to vector<4x128x3xf32>
    %38 = arith.mulf %36, %37 : vector<4x128x3xf32>
    %cst_15 = arith.constant 1.000000e+00 : f32
    %39 = vector.broadcast %cst_15 : f32 to vector<4x128x3xf32>
    %40 = arith.cmpf ole, %38, %39 : vector<4x128x3xf32>
    %cst_16 = arith.constant -1.000000e+00 : f32
    %41 = vector.broadcast %cst_16 : f32 to vector<4x128x3xf32>
    %42 = arith.cmpf oge, %38, %41 : vector<4x128x3xf32>
    %43 = arith.andi %40, %42 : vector<4x128x3xi1>
    %44 = arith.extui %43 : vector<4x128x3xi1> to vector<4x128x3xi32>
    %45 = arith.sitofp %44 : vector<4x128x3xi32> to vector<4x128x3xf32>
    %cst_17 = arith.constant dense<0x7F800000> : vector<4x128xf32>
    %46 = vector.multi_reduction <minimumf>, %45, %cst_17 [2] : vector<4x128x3xf32> to vector<4x128xf32>
    %47 = vector.shape_cast %46 : vector<4x128xf32> to vector<4x128x1xf32>
    %48 = vector.shape_cast %3 : vector<4x128x8xf32> to vector<512x8xf32>
    %c0_18 = arith.constant 0 : index
    %c0_19 = arith.constant 0 : index
    %49 = vector.load %arg6[%c0_18, %c0_19] : memref<8x64xf32, #tpu.memory_space<vmem>>, vector<8x64xf32>
    %cst_20 = arith.constant dense<0.000000e+00> : vector<512x64xf32>
    %50 = tpu.matmul %48, %49, %cst_20 {dimension_numbers = #tpu.dot_dimension_numbers<[1], [0], [0], [1], [0, 0, 1, 1], [], []>} : vector<512x8xf32>, vector<8x64xf32>, vector<512x64xf32> -> vector<512x64xf32>
    %51 = vector.shape_cast %50 : vector<512x64xf32> to vector<4x128x64xf32>
    %52 = vector.extract_strided_slice %38 {offsets = [0, 0, 0], sizes = [4, 128, 1], strides = [1, 1, 1]} : vector<4x128x3xf32> to vector<4x128x1xf32>
    %53 = vector.extract_strided_slice %8 {offsets = [0, 0], sizes = [1, 64], strides = [1, 1]} : vector<3x64xf32> to vector<1x64xf32>
    %54 = vector.shape_cast %53 : vector<1x64xf32> to vector<64xf32>
    %55 = vector.shape_cast %54 : vector<64xf32> to vector<1x1x64xf32>
    %56 = vector.broadcast %52 : vector<4x128x1xf32> to vector<4x128x64xf32>
    %57 = vector.broadcast %55 : vector<1x1x64xf32> to vector<4x128x64xf32>
    %58 = arith.mulf %56, %57 : vector<4x128x64xf32>
    %59 = vector.extract_strided_slice %38 {offsets = [0, 0, 1], sizes = [4, 128, 1], strides = [1, 1, 1]} : vector<4x128x3xf32> to vector<4x128x1xf32>
    %60 = vector.extract_strided_slice %8 {offsets = [1, 0], sizes = [1, 64], strides = [1, 1]} : vector<3x64xf32> to vector<1x64xf32>
    %61 = vector.shape_cast %60 : vector<1x64xf32> to vector<64xf32>
    %62 = vector.shape_cast %61 : vector<64xf32> to vector<1x1x64xf32>
    %63 = vector.broadcast %59 : vector<4x128x1xf32> to vector<4x128x64xf32>
    %64 = vector.broadcast %62 : vector<1x1x64xf32> to vector<4x128x64xf32>
    %65 = arith.mulf %63, %64 : vector<4x128x64xf32>
    %66 = arith.addf %58, %65 : vector<4x128x64xf32>
    %67 = vector.extract_strided_slice %38 {offsets = [0, 0, 2], sizes = [4, 128, 1], strides = [1, 1, 1]} : vector<4x128x3xf32> to vector<4x128x1xf32>
    %68 = vector.extract_strided_slice %8 {offsets = [2, 0], sizes = [1, 64], strides = [1, 1]} : vector<3x64xf32> to vector<1x64xf32>
    %69 = vector.shape_cast %68 : vector<1x64xf32> to vector<64xf32>
    %70 = vector.shape_cast %69 : vector<64xf32> to vector<1x1x64xf32>
    %71 = vector.broadcast %67 : vector<4x128x1xf32> to vector<4x128x64xf32>
    %72 = vector.broadcast %70 : vector<1x1x64xf32> to vector<4x128x64xf32>
    %73 = arith.mulf %71, %72 : vector<4x128x64xf32>
    %74 = arith.addf %66, %73 : vector<4x128x64xf32>
    %75 = arith.addf %51, %74 : vector<4x128x64xf32>
    %c0_21 = arith.constant 0 : index
    %c0_22 = arith.constant 0 : index
    %76 = vector.load %arg7[%c0_21, %c0_22] : memref<1x64xf32, #tpu.memory_space<vmem>>, vector<1x64xf32>
    %77 = vector.shape_cast %76 : vector<1x64xf32> to vector<1x1x64xf32>
    %78 = vector.broadcast %77 : vector<1x1x64xf32> to vector<4x128x64xf32>
    %79 = arith.addf %75, %78 : vector<4x128x64xf32>
    %cst_23 = arith.constant 0.000000e+00 : f32
    %80 = vector.broadcast %cst_23 : f32 to vector<4x128x64xf32>
    %81 = arith.maximumf %79, %80 : vector<4x128x64xf32>
    %cst_24 = arith.constant 0.000000e+00 : f32
    %82 = vector.broadcast %cst_24 : f32 to vector<4x128x1xf32>
    %83 = arith.cmpf ogt, %47, %82 : vector<4x128x1xf32>
    %cst_25 = arith.constant -1.000000e+30 : f32
    %84 = vector.shape_cast %83 : vector<4x128x1xi1> to vector<4x128x1xi1>
    %85 = vector.broadcast %84 : vector<4x128x1xi1> to vector<4x128x64xi1>
    %86 = vector.broadcast %cst_25 : f32 to vector<4x128x64xf32>
    %87 = arith.select %85, %81, %86 : vector<4x128x64xi1>, vector<4x128x64xf32>
    %cst_26 = arith.constant dense<0xFF800000> : vector<4x64xf32>
    %88 = vector.multi_reduction <maximumf>, %87, %cst_26 [1] : vector<4x128x64xf32> to vector<4x64xf32>
    %cst_27 = arith.constant dense<0.000000e+00> : vector<4x1xf32>
    %89 = vector.multi_reduction <add>, %47, %cst_27 [1] : vector<4x128x1xf32> to vector<4x1xf32>
    %cst_28 = arith.constant 0.000000e+00 : f32
    %90 = vector.broadcast %cst_28 : f32 to vector<4x1xf32>
    %91 = arith.cmpf ogt, %89, %90 : vector<4x1xf32>
    %cst_29 = arith.constant 0.000000e+00 : f32
    %92 = vector.shape_cast %91 : vector<4x1xi1> to vector<4x1xi1>
    %93 = vector.broadcast %92 : vector<4x1xi1> to vector<4x64xi1>
    %94 = vector.broadcast %cst_29 : f32 to vector<4x64xf32>
    %95 = arith.select %93, %88, %94 : vector<4x64xi1>, vector<4x64xf32>
    %c0_30 = arith.constant 0 : index
    %c0_31 = arith.constant 0 : index
    %c0_32 = arith.constant 0 : index
    %96 = vector.load %arg8[%c0_30, %c0_31, %c0_32] : memref<1x4x64xf32, #tpu.memory_space<vmem>>, vector<1x4x64xf32>
    %97 = vector.shape_cast %96 : vector<1x4x64xf32> to vector<4x64xf32>
    %98 = vector.shape_cast %95 : vector<4x64xf32> to vector<1x4x64xf32>
    tpu.vector_store %arg8[%c0_30, %c0_31, %c0_32], %98 {strides = array<i32>} : memref<1x4x64xf32, #tpu.memory_space<vmem>>, vector<1x4x64xf32>,
    return
  }
  func.func @transform_0(%arg0: i32) -> (i32, i32, i32) {
    %c0_i32 = arith.constant 0 : i32
    %c0_i32_0 = arith.constant 0 : i32
    %c0_i32_1 = arith.constant 0 : i32
    return %arg0, %c0_i32, %c0_i32_0 : i32, i32, i32
  }
  func.func @transform_1(%arg0: i32) -> (i32, i32, i32, i32) {
    %c0_i32 = arith.constant 0 : i32
    %c0_i32_0 = arith.constant 0 : i32
    %c0_i32_1 = arith.constant 0 : i32
    %c0_i32_2 = arith.constant 0 : i32
    return %arg0, %c0_i32, %c0_i32_0, %c0_i32_1 : i32, i32, i32, i32
  }
  func.func @transform_2(%arg0: i32) -> (i32, i32, i32) {
    %c0_i32 = arith.constant 0 : i32
    %c0_i32_0 = arith.constant 0 : i32
    %c0_i32_1 = arith.constant 0 : i32
    return %arg0, %c0_i32, %c0_i32_0 : i32, i32, i32
  }
  func.func @transform_3(%arg0: i32) -> (i32, i32, i32, i32) {
    %c0_i32 = arith.constant 0 : i32
    %c0_i32_0 = arith.constant 0 : i32
    %c0_i32_1 = arith.constant 0 : i32
    %c0_i32_2 = arith.constant 0 : i32
    return %arg0, %c0_i32, %c0_i32_0, %c0_i32_1 : i32, i32, i32, i32
  }
  func.func @transform_4(%arg0: i32) -> (i32, i32) {
    %c0_i32 = arith.constant 0 : i32
    %c0_i32_0 = arith.constant 0 : i32
    %c0_i32_1 = arith.constant 0 : i32
    return %c0_i32, %c0_i32_0 : i32, i32
  }
  func.func @transform_5(%arg0: i32) -> (i32, i32) {
    %c0_i32 = arith.constant 0 : i32
    %c0_i32_0 = arith.constant 0 : i32
    %c0_i32_1 = arith.constant 0 : i32
    return %c0_i32, %c0_i32_0 : i32, i32
  }
  func.func @transform_6(%arg0: i32) -> (i32, i32) {
    %c0_i32 = arith.constant 0 : i32
    %c0_i32_0 = arith.constant 0 : i32
    %c0_i32_1 = arith.constant 0 : i32
    return %c0_i32, %c0_i32_0 : i32, i32
  }
  func.func @transform_7(%arg0: i32) -> (i32, i32, i32) {
    %c0_i32 = arith.constant 0 : i32
    %c0_i32_0 = arith.constant 0 : i32
    %c0_i32_1 = arith.constant 0 : i32
    return %arg0, %c0_i32, %c0_i32_0 : i32, i32, i32
  }
}

module attributes {stable_mosaic.version = 11 : i64} {
  func.func @_pose_kernel(%arg0: i32, %arg1: memref<1x128x3xf32, #tpu.memory_space<vmem>>, %arg2: memref<1x4x128xf32, #tpu.memory_space<vmem>>, %arg3: memref<1x4x128xf32, #tpu.memory_space<vmem>>, %arg4: memref<3x48xf32, #tpu.memory_space<vmem>>, %arg5: memref<1x4x3xf32, #tpu.memory_space<vmem>>, %arg6: memref<1x4x48xf32, #tpu.memory_space<vmem>>, %arg7: memref<1x4x48xf32, #tpu.memory_space<vmem>>) attributes {dimension_semantics = [#tpu.dimension_semantics<parallel>], iteration_bounds = array<i64: 2>, scalar_prefetch = 0 : i64, scratch_operands = 0 : i64, tpu.core_type = #tpu.core_type<tc>, window_params = [{transform_indices = @transform_0, window_bounds = array<i64: 1, 128, 3>}, {transform_indices = @transform_1, window_bounds = array<i64: 1, 4, 128>}, {transform_indices = @transform_2, window_bounds = array<i64: 1, 4, 128>}, {pipeline_mode = #tpu.pipeline_mode<synchronous>, transform_indices = @transform_3, window_bounds = array<i64: 3, 48>}, {transform_indices = @transform_4, window_bounds = array<i64: 1, 4, 3>}, {transform_indices = @transform_5, window_bounds = array<i64: 1, 4, 48>}, {transform_indices = @transform_6, window_bounds = array<i64: 1, 4, 48>}]} {
    %c0 = arith.constant 0 : index
    %c0_0 = arith.constant 0 : index
    %c0_1 = arith.constant 0 : index
    %0 = vector.load %arg1[%c0, %c0_0, %c0_1] : memref<1x128x3xf32, #tpu.memory_space<vmem>>, vector<1x128x3xf32>
    %1 = vector.shape_cast %0 : vector<1x128x3xf32> to vector<128x3xf32>
    %c0_2 = arith.constant 0 : index
    %c0_3 = arith.constant 0 : index
    %c0_4 = arith.constant 0 : index
    %2 = vector.load %arg2[%c0_2, %c0_3, %c0_4] : memref<1x4x128xf32, #tpu.memory_space<vmem>>, vector<1x4x128xf32>
    %3 = vector.shape_cast %2 : vector<1x4x128xf32> to vector<4x128xf32>
    %c0_5 = arith.constant 0 : index
    %c0_6 = arith.constant 0 : index
    %c0_7 = arith.constant 0 : index
    %4 = vector.load %arg3[%c0_5, %c0_6, %c0_7] : memref<1x4x128xf32, #tpu.memory_space<vmem>>, vector<1x4x128xf32>
    %5 = vector.shape_cast %4 : vector<1x4x128xf32> to vector<4x128xf32>
    %6 = vector.shape_cast %1 : vector<128x3xf32> to vector<1x128x3xf32>
    %7 = vector.shape_cast %3 : vector<4x128xf32> to vector<4x128x1xf32>
    %8 = vector.broadcast %6 : vector<1x128x3xf32> to vector<4x128x3xf32>
    %9 = vector.broadcast %7 : vector<4x128x1xf32> to vector<4x128x3xf32>
    %10 = arith.mulf %8, %9 : vector<4x128x3xf32>
    %cst = arith.constant dense<0.000000e+00> : vector<4x3xf32>
    %11 = vector.multi_reduction <add>, %10, %cst [1] : vector<4x128x3xf32> to vector<4x3xf32>
    %cst_8 = arith.constant dense<0.000000e+00> : vector<4xf32>
    %12 = vector.multi_reduction <add>, %3, %cst_8 [1] : vector<4x128xf32> to vector<4xf32>
    %13 = vector.shape_cast %12 : vector<4xf32> to vector<4x1xf32>
    %cst_9 = arith.constant 9.99999993E-9 : f32
    %14 = vector.broadcast %cst_9 : f32 to vector<4x1xf32>
    %15 = arith.addf %13, %14 : vector<4x1xf32>
    %16 = vector.broadcast %15 : vector<4x1xf32> to vector<4x3xf32>
    %17 = arith.divf %11, %16 : vector<4x3xf32>
    %c0_10 = arith.constant 0 : index
    %c0_11 = arith.constant 0 : index
    %c0_12 = arith.constant 0 : index
    %18 = vector.load %arg5[%c0_10, %c0_11, %c0_12] : memref<1x4x3xf32, #tpu.memory_space<vmem>>, vector<1x4x3xf32>
    %19 = vector.shape_cast %18 : vector<1x4x3xf32> to vector<4x3xf32>
    %20 = vector.shape_cast %17 : vector<4x3xf32> to vector<1x4x3xf32>
    tpu.vector_store %arg5[%c0_10, %c0_11, %c0_12], %20 {strides = array<i32>} : memref<1x4x3xf32, #tpu.memory_space<vmem>>, vector<1x4x3xf32>,
    %c0_13 = arith.constant 0 : index
    %c0_14 = arith.constant 0 : index
    %21 = vector.load %arg4[%c0_13, %c0_14] : memref<3x48xf32, #tpu.memory_space<vmem>>, vector<3x48xf32>
    %cst_15 = arith.constant dense<0.000000e+00> : vector<128x48xf32>
    %22 = tpu.matmul %1, %21, %cst_15 {dimension_numbers = #tpu.dot_dimension_numbers<[1], [0], [0], [1], [0, 0, 1, 1], [], []>} : vector<128x3xf32>, vector<3x48xf32>, vector<128x48xf32> -> vector<128x48xf32>
    %23 = vector.shape_cast %5 : vector<4x128xf32> to vector<4x128x1xf32>
    %cst_16 = arith.constant 0.000000e+00 : f32
    %24 = vector.broadcast %cst_16 : f32 to vector<4x128x1xf32>
    %25 = arith.cmpf ogt, %23, %24 : vector<4x128x1xf32>
    %26 = vector.shape_cast %22 : vector<128x48xf32> to vector<1x128x48xf32>
    %cst_17 = arith.constant 1.000000e+30 : f32
    %27 = vector.shape_cast %25 : vector<4x128x1xi1> to vector<4x128x1xi1>
    %28 = vector.broadcast %27 : vector<4x128x1xi1> to vector<4x128x48xi1>
    %29 = vector.shape_cast %26 : vector<1x128x48xf32> to vector<1x128x48xf32>
    %30 = vector.broadcast %29 : vector<1x128x48xf32> to vector<4x128x48xf32>
    %31 = vector.broadcast %cst_17 : f32 to vector<4x128x48xf32>
    %32 = arith.select %28, %30, %31 : vector<4x128x48xi1>, vector<4x128x48xf32>
    %cst_18 = arith.constant dense<0x7F800000> : vector<4x48xf32>
    %33 = vector.multi_reduction <minimumf>, %32, %cst_18 [1] : vector<4x128x48xf32> to vector<4x48xf32>
    %c0_19 = arith.constant 0 : index
    %c0_20 = arith.constant 0 : index
    %c0_21 = arith.constant 0 : index
    %34 = vector.load %arg6[%c0_19, %c0_20, %c0_21] : memref<1x4x48xf32, #tpu.memory_space<vmem>>, vector<1x4x48xf32>
    %35 = vector.shape_cast %34 : vector<1x4x48xf32> to vector<4x48xf32>
    %36 = vector.shape_cast %33 : vector<4x48xf32> to vector<1x4x48xf32>
    tpu.vector_store %arg6[%c0_19, %c0_20, %c0_21], %36 {strides = array<i32>} : memref<1x4x48xf32, #tpu.memory_space<vmem>>, vector<1x4x48xf32>,
    %cst_22 = arith.constant -1.000000e+30 : f32
    %37 = vector.shape_cast %25 : vector<4x128x1xi1> to vector<4x128x1xi1>
    %38 = vector.broadcast %37 : vector<4x128x1xi1> to vector<4x128x48xi1>
    %39 = vector.shape_cast %26 : vector<1x128x48xf32> to vector<1x128x48xf32>
    %40 = vector.broadcast %39 : vector<1x128x48xf32> to vector<4x128x48xf32>
    %41 = vector.broadcast %cst_22 : f32 to vector<4x128x48xf32>
    %42 = arith.select %38, %40, %41 : vector<4x128x48xi1>, vector<4x128x48xf32>
    %cst_23 = arith.constant dense<0xFF800000> : vector<4x48xf32>
    %43 = vector.multi_reduction <maximumf>, %42, %cst_23 [1] : vector<4x128x48xf32> to vector<4x48xf32>
    %c0_24 = arith.constant 0 : index
    %c0_25 = arith.constant 0 : index
    %c0_26 = arith.constant 0 : index
    %44 = vector.load %arg7[%c0_24, %c0_25, %c0_26] : memref<1x4x48xf32, #tpu.memory_space<vmem>>, vector<1x4x48xf32>
    %45 = vector.shape_cast %44 : vector<1x4x48xf32> to vector<4x48xf32>
    %46 = vector.shape_cast %43 : vector<4x48xf32> to vector<1x4x48xf32>
    tpu.vector_store %arg7[%c0_24, %c0_25, %c0_26], %46 {strides = array<i32>} : memref<1x4x48xf32, #tpu.memory_space<vmem>>, vector<1x4x48xf32>,
    return
  }
  func.func @transform_0(%arg0: i32) -> (i32, i32, i32) {
    %c0_i32 = arith.constant 0 : i32
    %c0_i32_0 = arith.constant 0 : i32
    %c0_i32_1 = arith.constant 0 : i32
    return %arg0, %c0_i32, %c0_i32_0 : i32, i32, i32
  }
  func.func @transform_1(%arg0: i32) -> (i32, i32, i32) {
    %c0_i32 = arith.constant 0 : i32
    %c0_i32_0 = arith.constant 0 : i32
    %c0_i32_1 = arith.constant 0 : i32
    return %arg0, %c0_i32, %c0_i32_0 : i32, i32, i32
  }
  func.func @transform_2(%arg0: i32) -> (i32, i32, i32) {
    %c0_i32 = arith.constant 0 : i32
    %c0_i32_0 = arith.constant 0 : i32
    %c0_i32_1 = arith.constant 0 : i32
    return %arg0, %c0_i32, %c0_i32_0 : i32, i32, i32
  }
  func.func @transform_3(%arg0: i32) -> (i32, i32) {
    %c0_i32 = arith.constant 0 : i32
    %c0_i32_0 = arith.constant 0 : i32
    %c0_i32_1 = arith.constant 0 : i32
    return %c0_i32, %c0_i32_0 : i32, i32
  }
  func.func @transform_4(%arg0: i32) -> (i32, i32, i32) {
    %c0_i32 = arith.constant 0 : i32
    %c0_i32_0 = arith.constant 0 : i32
    %c0_i32_1 = arith.constant 0 : i32
    return %arg0, %c0_i32, %c0_i32_0 : i32, i32, i32
  }
  func.func @transform_5(%arg0: i32) -> (i32, i32, i32) {
    %c0_i32 = arith.constant 0 : i32
    %c0_i32_0 = arith.constant 0 : i32
    %c0_i32_1 = arith.constant 0 : i32
    return %arg0, %c0_i32, %c0_i32_0 : i32, i32, i32
  }
  func.func @transform_6(%arg0: i32) -> (i32, i32, i32) {
    %c0_i32 = arith.constant 0 : i32
    %c0_i32_0 = arith.constant 0 : i32
    %c0_i32_1 = arith.constant 0 : i32
    return %arg0, %c0_i32, %c0_i32_0 : i32, i32, i32
  }
}

module attributes {stable_mosaic.version = 11 : i64} {
  func.func @_eval_transform_kernel(%arg0: i32, %arg1: memref<1x3x384xf32, #tpu.memory_space<vmem>>, %arg2: memref<1x4x3xf32, #tpu.memory_space<vmem>>, %arg3: memref<1x4x3x3xf32, #tpu.memory_space<vmem>>, %arg4: memref<1x384xf32, #tpu.memory_space<vmem>>, %arg5: memref<1x384xf32, #tpu.memory_space<vmem>>, %arg6: memref<1x4x3x384xf32, #tpu.memory_space<vmem>>, %arg7: memref<1x4x384xf32, #tpu.memory_space<vmem>>) attributes {dimension_semantics = [#tpu.dimension_semantics<parallel>], iteration_bounds = array<i64: 2>, scalar_prefetch = 0 : i64, scratch_operands = 0 : i64, tpu.core_type = #tpu.core_type<tc>, window_params = [{transform_indices = @transform_0, window_bounds = array<i64: 1, 3, 384>}, {transform_indices = @transform_1, window_bounds = array<i64: 1, 4, 3>}, {transform_indices = @transform_2, window_bounds = array<i64: 1, 4, 3, 3>}, {pipeline_mode = #tpu.pipeline_mode<synchronous>, transform_indices = @transform_3, window_bounds = array<i64: 1, 384>}, {pipeline_mode = #tpu.pipeline_mode<synchronous>, transform_indices = @transform_4, window_bounds = array<i64: 1, 384>}, {transform_indices = @transform_5, window_bounds = array<i64: 1, 4, 3, 384>}, {transform_indices = @transform_6, window_bounds = array<i64: 1, 4, 384>}]} {
    %c0 = arith.constant 0 : index
    %c0_0 = arith.constant 0 : index
    %c0_1 = arith.constant 0 : index
    %0 = vector.load %arg1[%c0, %c0_0, %c0_1] : memref<1x3x384xf32, #tpu.memory_space<vmem>>, vector<1x3x384xf32>
    %1 = vector.shape_cast %0 : vector<1x3x384xf32> to vector<3x384xf32>
    %c0_2 = arith.constant 0 : index
    %c0_3 = arith.constant 0 : index
    %c0_4 = arith.constant 0 : index
    %2 = vector.load %arg2[%c0_2, %c0_3, %c0_4] : memref<1x4x3xf32, #tpu.memory_space<vmem>>, vector<1x4x3xf32>
    %3 = vector.shape_cast %2 : vector<1x4x3xf32> to vector<4x3xf32>
    %c0_5 = arith.constant 0 : index
    %c0_6 = arith.constant 0 : index
    %c0_7 = arith.constant 0 : index
    %c0_8 = arith.constant 0 : index
    %4 = vector.load %arg3[%c0_5, %c0_6, %c0_7, %c0_8] : memref<1x4x3x3xf32, #tpu.memory_space<vmem>>, vector<1x4x3x3xf32>
    %5 = vector.shape_cast %4 : vector<1x4x3x3xf32> to vector<4x3x3xf32>
    %c0_9 = arith.constant 0 : index
    %c0_10 = arith.constant 0 : index
    %6 = vector.load %arg4[%c0_9, %c0_10] : memref<1x384xf32, #tpu.memory_space<vmem>>, vector<1x384xf32>
    %c0_11 = arith.constant 0 : index
    %c0_12 = arith.constant 0 : index
    %7 = vector.load %arg5[%c0_11, %c0_12] : memref<1x384xf32, #tpu.memory_space<vmem>>, vector<1x384xf32>
    %8 = vector.shape_cast %1 : vector<3x384xf32> to vector<1x3x384xf32>
    %9 = vector.shape_cast %6 : vector<1x384xf32> to vector<1x1x384xf32>
    %10 = vector.shape_cast %3 : vector<4x3xf32> to vector<4x3x1xf32>
    %11 = vector.broadcast %9 : vector<1x1x384xf32> to vector<4x3x384xf32>
    %12 = vector.broadcast %10 : vector<4x3x1xf32> to vector<4x3x384xf32>
    %13 = arith.mulf %11, %12 : vector<4x3x384xf32>
    %14 = vector.broadcast %8 : vector<1x3x384xf32> to vector<4x3x384xf32>
    %15 = arith.subf %14, %13 : vector<4x3x384xf32>
    %16 = vector.extract_strided_slice %5 {offsets = [0, 0, 0], sizes = [4, 1, 3], strides = [1, 1, 1]} : vector<4x3x3xf32> to vector<4x1x3xf32>
    %17 = vector.shape_cast %16 : vector<4x1x3xf32> to vector<4x3xf32>
    %18 = vector.shape_cast %17 : vector<4x3xf32> to vector<4x3x1xf32>
    %19 = vector.extract_strided_slice %15 {offsets = [0, 0, 0], sizes = [4, 1, 384], strides = [1, 1, 1]} : vector<4x3x384xf32> to vector<4x1x384xf32>
    %20 = vector.broadcast %18 : vector<4x3x1xf32> to vector<4x3x384xf32>
    %21 = vector.broadcast %19 : vector<4x1x384xf32> to vector<4x3x384xf32>
    %22 = arith.mulf %20, %21 : vector<4x3x384xf32>
    %23 = vector.extract_strided_slice %5 {offsets = [0, 1, 0], sizes = [4, 1, 3], strides = [1, 1, 1]} : vector<4x3x3xf32> to vector<4x1x3xf32>
    %24 = vector.shape_cast %23 : vector<4x1x3xf32> to vector<4x3xf32>
    %25 = vector.shape_cast %24 : vector<4x3xf32> to vector<4x3x1xf32>
    %26 = vector.extract_strided_slice %15 {offsets = [0, 1, 0], sizes = [4, 1, 384], strides = [1, 1, 1]} : vector<4x3x384xf32> to vector<4x1x384xf32>
    %27 = vector.broadcast %25 : vector<4x3x1xf32> to vector<4x3x384xf32>
    %28 = vector.broadcast %26 : vector<4x1x384xf32> to vector<4x3x384xf32>
    %29 = arith.mulf %27, %28 : vector<4x3x384xf32>
    %30 = arith.addf %22, %29 : vector<4x3x384xf32>
    %31 = vector.extract_strided_slice %5 {offsets = [0, 2, 0], sizes = [4, 1, 3], strides = [1, 1, 1]} : vector<4x3x3xf32> to vector<4x1x3xf32>
    %32 = vector.shape_cast %31 : vector<4x1x3xf32> to vector<4x3xf32>
    %33 = vector.shape_cast %32 : vector<4x3xf32> to vector<4x3x1xf32>
    %34 = vector.extract_strided_slice %15 {offsets = [0, 2, 0], sizes = [4, 1, 384], strides = [1, 1, 1]} : vector<4x3x384xf32> to vector<4x1x384xf32>
    %35 = vector.broadcast %33 : vector<4x3x1xf32> to vector<4x3x384xf32>
    %36 = vector.broadcast %34 : vector<4x1x384xf32> to vector<4x3x384xf32>
    %37 = arith.mulf %35, %36 : vector<4x3x384xf32>
    %38 = arith.addf %30, %37 : vector<4x3x384xf32>
    %39 = vector.shape_cast %7 : vector<1x384xf32> to vector<1x1x384xf32>
    %40 = vector.broadcast %39 : vector<1x1x384xf32> to vector<4x3x384xf32>
    %41 = arith.mulf %38, %40 : vector<4x3x384xf32>
    %c0_13 = arith.constant 0 : index
    %c0_14 = arith.constant 0 : index
    %c0_15 = arith.constant 0 : index
    %c0_16 = arith.constant 0 : index
    %42 = vector.load %arg6[%c0_13, %c0_14, %c0_15, %c0_16] : memref<1x4x3x384xf32, #tpu.memory_space<vmem>>, vector<1x4x3x384xf32>
    %43 = vector.shape_cast %42 : vector<1x4x3x384xf32> to vector<4x3x384xf32>
    %44 = vector.shape_cast %41 : vector<4x3x384xf32> to vector<1x4x3x384xf32>
    tpu.vector_store %arg6[%c0_13, %c0_14, %c0_15, %c0_16], %44 {strides = array<i32>} : memref<1x4x3x384xf32, #tpu.memory_space<vmem>>, vector<1x4x3x384xf32>,
    %cst = arith.constant 1.000000e+00 : f32
    %45 = vector.broadcast %cst : f32 to vector<4x3x384xf32>
    %46 = arith.cmpf ole, %41, %45 : vector<4x3x384xf32>
    %cst_17 = arith.constant -1.000000e+00 : f32
    %47 = vector.broadcast %cst_17 : f32 to vector<4x3x384xf32>
    %48 = arith.cmpf oge, %41, %47 : vector<4x3x384xf32>
    %49 = arith.andi %46, %48 : vector<4x3x384xi1>
    %50 = arith.extui %49 : vector<4x3x384xi1> to vector<4x3x384xi32>
    %51 = arith.sitofp %50 : vector<4x3x384xi32> to vector<4x3x384xf32>
    %52 = vector.extract_strided_slice %51 {offsets = [0, 0, 0], sizes = [4, 1, 384], strides = [1, 1, 1]} : vector<4x3x384xf32> to vector<4x1x384xf32>
    %53 = vector.shape_cast %52 : vector<4x1x384xf32> to vector<4x384xf32>
    %54 = vector.extract_strided_slice %51 {offsets = [0, 1, 0], sizes = [4, 1, 384], strides = [1, 1, 1]} : vector<4x3x384xf32> to vector<4x1x384xf32>
    %55 = vector.shape_cast %54 : vector<4x1x384xf32> to vector<4x384xf32>
    %56 = arith.mulf %53, %55 : vector<4x384xf32>
    %57 = vector.extract_strided_slice %51 {offsets = [0, 2, 0], sizes = [4, 1, 384], strides = [1, 1, 1]} : vector<4x3x384xf32> to vector<4x1x384xf32>
    %58 = vector.shape_cast %57 : vector<4x1x384xf32> to vector<4x384xf32>
    %59 = arith.mulf %56, %58 : vector<4x384xf32>
    %c0_18 = arith.constant 0 : index
    %c0_19 = arith.constant 0 : index
    %c0_20 = arith.constant 0 : index
    %60 = vector.load %arg7[%c0_18, %c0_19, %c0_20] : memref<1x4x384xf32, #tpu.memory_space<vmem>>, vector<1x4x384xf32>
    %61 = vector.shape_cast %60 : vector<1x4x384xf32> to vector<4x384xf32>
    %62 = vector.shape_cast %59 : vector<4x384xf32> to vector<1x4x384xf32>
    tpu.vector_store %arg7[%c0_18, %c0_19, %c0_20], %62 {strides = array<i32>} : memref<1x4x384xf32, #tpu.memory_space<vmem>>, vector<1x4x384xf32>,
    return
  }
  func.func @transform_0(%arg0: i32) -> (i32, i32, i32) {
    %c0_i32 = arith.constant 0 : i32
    %c0_i32_0 = arith.constant 0 : i32
    %c0_i32_1 = arith.constant 0 : i32
    return %arg0, %c0_i32, %c0_i32_0 : i32, i32, i32
  }
  func.func @transform_1(%arg0: i32) -> (i32, i32, i32) {
    %c0_i32 = arith.constant 0 : i32
    %c0_i32_0 = arith.constant 0 : i32
    %c0_i32_1 = arith.constant 0 : i32
    return %arg0, %c0_i32, %c0_i32_0 : i32, i32, i32
  }
  func.func @transform_2(%arg0: i32) -> (i32, i32, i32, i32) {
    %c0_i32 = arith.constant 0 : i32
    %c0_i32_0 = arith.constant 0 : i32
    %c0_i32_1 = arith.constant 0 : i32
    %c0_i32_2 = arith.constant 0 : i32
    return %arg0, %c0_i32, %c0_i32_0, %c0_i32_1 : i32, i32, i32, i32
  }
  func.func @transform_3(%arg0: i32) -> (i32, i32) {
    %c0_i32 = arith.constant 0 : i32
    %c0_i32_0 = arith.constant 0 : i32
    %c0_i32_1 = arith.constant 0 : i32
    return %c0_i32, %c0_i32_0 : i32, i32
  }
  func.func @transform_4(%arg0: i32) -> (i32, i32) {
    %c0_i32 = arith.constant 0 : i32
    %c0_i32_0 = arith.constant 0 : i32
    %c0_i32_1 = arith.constant 0 : i32
    return %c0_i32, %c0_i32_0 : i32, i32
  }
  func.func @transform_5(%arg0: i32) -> (i32, i32, i32, i32) {
    %c0_i32 = arith.constant 0 : i32
    %c0_i32_0 = arith.constant 0 : i32
    %c0_i32_1 = arith.constant 0 : i32
    %c0_i32_2 = arith.constant 0 : i32
    return %arg0, %c0_i32, %c0_i32_0, %c0_i32_1 : i32, i32, i32, i32
  }
  func.func @transform_6(%arg0: i32) -> (i32, i32, i32) {
    %c0_i32 = arith.constant 0 : i32
    %c0_i32_0 = arith.constant 0 : i32
    %c0_i32_1 = arith.constant 0 : i32
    return %arg0, %c0_i32, %c0_i32_0 : i32, i32, i32
  }
}

module attributes {stable_mosaic.version = 11 : i64} {
  func.func @_decoder_kernel(%arg0: i32, %arg1: memref<1x4x3x384xf32, #tpu.memory_space<vmem>>, %arg2: memref<1x4x384xf32, #tpu.memory_space<vmem>>, %arg3: memref<1x4x32xf32, #tpu.memory_space<vmem>>, %arg4: memref<1x4x3xf32, #tpu.memory_space<vmem>>, %arg5: memref<1x4x3x3xf32, #tpu.memory_space<vmem>>, %arg6: memref<1x4x1xf32, #tpu.memory_space<vmem>>, %arg7: memref<3x64xf32, #tpu.memory_space<vmem>>, %arg8: memref<3x7xf32, #tpu.memory_space<vmem>>, %arg9: memref<32x7xf32, #tpu.memory_space<vmem>>, %arg10: memref<1x7xf32, #tpu.memory_space<vmem>>, %arg11: memref<1x4x3x128xf32, #tpu.memory_space<vmem>>, %arg12: memref<1x4x128xf32, #tpu.memory_space<vmem>>, %arg13: memref<1x4x128xf32, #tpu.memory_space<vmem>>, %arg14: memref<1x4x3x64xf32, #tpu.memory_space<vmem>>, %arg15: memref<1x4x64xf32, #tpu.memory_space<vmem>>, %arg16: memref<1x4x64xf32, #tpu.memory_space<vmem>>, %arg17: memref<1x4x3xf32, #tpu.memory_space<vmem>>, %arg18: memref<1x4x3xf32, #tpu.memory_space<vmem>>, %arg19: memref<1x4x1xf32, #tpu.memory_space<vmem>>) attributes {dimension_semantics = [#tpu.dimension_semantics<parallel>], iteration_bounds = array<i64: 2>, scalar_prefetch = 0 : i64, scratch_operands = 0 : i64, tpu.core_type = #tpu.core_type<tc>, window_params = [{transform_indices = @transform_0, window_bounds = array<i64: 1, 4, 3, 384>}, {transform_indices = @transform_1, window_bounds = array<i64: 1, 4, 384>}, {transform_indices = @transform_2, window_bounds = array<i64: 1, 4, 32>}, {transform_indices = @transform_3, window_bounds = array<i64: 1, 4, 3>}, {transform_indices = @transform_4, window_bounds = array<i64: 1, 4, 3, 3>}, {transform_indices = @transform_5, window_bounds = array<i64: 1, 4, 1>}, {pipeline_mode = #tpu.pipeline_mode<synchronous>, transform_indices = @transform_6, window_bounds = array<i64: 3, 64>}, {pipeline_mode = #tpu.pipeline_mode<synchronous>, transform_indices = @transform_7, window_bounds = array<i64: 3, 7>}, {pipeline_mode = #tpu.pipeline_mode<synchronous>, transform_indices = @transform_8, window_bounds = array<i64: 32, 7>}, {pipeline_mode = #tpu.pipeline_mode<synchronous>, transform_indices = @transform_9, window_bounds = array<i64: 1, 7>}, {transform_indices = @transform_10, window_bounds = array<i64: 1, 4, 3, 128>}, {transform_indices = @transform_11, window_bounds = array<i64: 1, 4, 128>}, {transform_indices = @transform_12, window_bounds = array<i64: 1, 4, 128>}, {transform_indices = @transform_13, window_bounds = array<i64: 1, 4, 3, 64>}, {transform_indices = @transform_14, window_bounds = array<i64: 1, 4, 64>}, {transform_indices = @transform_15, window_bounds = array<i64: 1, 4, 64>}, {transform_indices = @transform_16, window_bounds = array<i64: 1, 4, 3>}, {transform_indices = @transform_17, window_bounds = array<i64: 1, 4, 3>}, {transform_indices = @transform_18, window_bounds = array<i64: 1, 4, 1>}]} {
    %c0 = arith.constant 0 : index
    %c0_0 = arith.constant 0 : index
    %c0_1 = arith.constant 0 : index
    %c0_2 = arith.constant 0 : index
    %0 = vector.load %arg1[%c0, %c0_0, %c0_1, %c0_2] : memref<1x4x3x384xf32, #tpu.memory_space<vmem>>, vector<1x4x3x384xf32>
    %1 = vector.shape_cast %0 : vector<1x4x3x384xf32> to vector<4x3x384xf32>
    %c0_3 = arith.constant 0 : index
    %c0_4 = arith.constant 0 : index
    %c0_5 = arith.constant 0 : index
    %2 = vector.load %arg2[%c0_3, %c0_4, %c0_5] : memref<1x4x384xf32, #tpu.memory_space<vmem>>, vector<1x4x384xf32>
    %3 = vector.shape_cast %2 : vector<1x4x384xf32> to vector<4x384xf32>
    %c0_6 = arith.constant 0 : index
    %c0_7 = arith.constant 0 : index
    %c0_8 = arith.constant 0 : index
    %4 = vector.load %arg3[%c0_6, %c0_7, %c0_8] : memref<1x4x32xf32, #tpu.memory_space<vmem>>, vector<1x4x32xf32>
    %5 = vector.shape_cast %4 : vector<1x4x32xf32> to vector<4x32xf32>
    %c0_9 = arith.constant 0 : index
    %c0_10 = arith.constant 0 : index
    %c0_11 = arith.constant 0 : index
    %6 = vector.load %arg4[%c0_9, %c0_10, %c0_11] : memref<1x4x3xf32, #tpu.memory_space<vmem>>, vector<1x4x3xf32>
    %7 = vector.shape_cast %6 : vector<1x4x3xf32> to vector<4x3xf32>
    %c0_12 = arith.constant 0 : index
    %c0_13 = arith.constant 0 : index
    %c0_14 = arith.constant 0 : index
    %c0_15 = arith.constant 0 : index
    %8 = vector.load %arg5[%c0_12, %c0_13, %c0_14, %c0_15] : memref<1x4x3x3xf32, #tpu.memory_space<vmem>>, vector<1x4x3x3xf32>
    %9 = vector.shape_cast %8 : vector<1x4x3x3xf32> to vector<4x3x3xf32>
    %c0_16 = arith.constant 0 : index
    %c0_17 = arith.constant 0 : index
    %c0_18 = arith.constant 0 : index
    %10 = vector.load %arg6[%c0_16, %c0_17, %c0_18] : memref<1x4x1xf32, #tpu.memory_space<vmem>>, vector<1x4x1xf32>
    %11 = vector.shape_cast %10 : vector<1x4x1xf32> to vector<4x1xf32>
    %c0_19 = arith.constant 0 : index
    %c0_20 = arith.constant 0 : index
    %12 = vector.load %arg7[%c0_19, %c0_20] : memref<3x64xf32, #tpu.memory_space<vmem>>, vector<3x64xf32>
    %c0_21 = arith.constant 0 : index
    %c0_22 = arith.constant 0 : index
    %13 = vector.load %arg8[%c0_21, %c0_22] : memref<3x7xf32, #tpu.memory_space<vmem>>, vector<3x7xf32>
    %c0_23 = arith.constant 0 : index
    %c0_24 = arith.constant 0 : index
    %14 = vector.load %arg10[%c0_23, %c0_24] : memref<1x7xf32, #tpu.memory_space<vmem>>, vector<1x7xf32>
    %15 = vector.extract_strided_slice %1 {offsets = [0, 0, 0], sizes = [4, 3, 128], strides = [1, 1, 1]} : vector<4x3x384xf32> to vector<4x3x128xf32>
    %16 = vector.extract_strided_slice %1 {offsets = [0, 0, 128], sizes = [4, 3, 128], strides = [1, 1, 1]} : vector<4x3x384xf32> to vector<4x3x128xf32>
    %17 = vector.extract_strided_slice %3 {offsets = [0, 0], sizes = [4, 128], strides = [1, 1]} : vector<4x384xf32> to vector<4x128xf32>
    %18 = vector.extract_strided_slice %3 {offsets = [0, 128], sizes = [4, 128], strides = [1, 1]} : vector<4x384xf32> to vector<4x128xf32>
    %c0_25 = arith.constant 0 : index
    %c0_26 = arith.constant 0 : index
    %19 = vector.load %arg9[%c0_25, %c0_26] : memref<32x7xf32, #tpu.memory_space<vmem>>, vector<32x7xf32>
    %cst = arith.constant dense<0.000000e+00> : vector<4x7xf32>
    %20 = tpu.matmul %5, %19, %cst {dimension_numbers = #tpu.dot_dimension_numbers<[1], [0], [0], [1], [0, 0, 1, 1], [], []>} : vector<4x32xf32>, vector<32x7xf32>, vector<4x7xf32> -> vector<4x7xf32>
    %21 = vector.broadcast %14 : vector<1x7xf32> to vector<4x7xf32>
    %22 = arith.addf %20, %21 : vector<4x7xf32>
    %23 = vector.extract_strided_slice %13 {offsets = [0, 0], sizes = [3, 4], strides = [1, 1]} : vector<3x7xf32> to vector<3x4xf32>
    %24 = vector.extract_strided_slice %23 {offsets = [0, 0], sizes = [1, 4], strides = [1, 1]} : vector<3x4xf32> to vector<1x4xf32>
    %25 = vector.shape_cast %24 : vector<1x4xf32> to vector<4xf32>
    %26 = vector.shape_cast %25 : vector<4xf32> to vector<1x4x1xf32>
    %27 = vector.extract_strided_slice %15 {offsets = [0, 0, 0], sizes = [4, 1, 128], strides = [1, 1, 1]} : vector<4x3x128xf32> to vector<4x1x128xf32>
    %28 = vector.broadcast %26 : vector<1x4x1xf32> to vector<4x4x128xf32>
    %29 = vector.broadcast %27 : vector<4x1x128xf32> to vector<4x4x128xf32>
    %30 = arith.mulf %28, %29 : vector<4x4x128xf32>
    %31 = vector.extract_strided_slice %23 {offsets = [1, 0], sizes = [1, 4], strides = [1, 1]} : vector<3x4xf32> to vector<1x4xf32>
    %32 = vector.shape_cast %31 : vector<1x4xf32> to vector<4xf32>
    %33 = vector.shape_cast %32 : vector<4xf32> to vector<1x4x1xf32>
    %34 = vector.extract_strided_slice %15 {offsets = [0, 1, 0], sizes = [4, 1, 128], strides = [1, 1, 1]} : vector<4x3x128xf32> to vector<4x1x128xf32>
    %35 = vector.broadcast %33 : vector<1x4x1xf32> to vector<4x4x128xf32>
    %36 = vector.broadcast %34 : vector<4x1x128xf32> to vector<4x4x128xf32>
    %37 = arith.mulf %35, %36 : vector<4x4x128xf32>
    %38 = arith.addf %30, %37 : vector<4x4x128xf32>
    %39 = vector.extract_strided_slice %23 {offsets = [2, 0], sizes = [1, 4], strides = [1, 1]} : vector<3x4xf32> to vector<1x4xf32>
    %40 = vector.shape_cast %39 : vector<1x4xf32> to vector<4xf32>
    %41 = vector.shape_cast %40 : vector<4xf32> to vector<1x4x1xf32>
    %42 = vector.extract_strided_slice %15 {offsets = [0, 2, 0], sizes = [4, 1, 128], strides = [1, 1, 1]} : vector<4x3x128xf32> to vector<4x1x128xf32>
    %43 = vector.broadcast %41 : vector<1x4x1xf32> to vector<4x4x128xf32>
    %44 = vector.broadcast %42 : vector<4x1x128xf32> to vector<4x4x128xf32>
    %45 = arith.mulf %43, %44 : vector<4x4x128xf32>
    %46 = arith.addf %38, %45 : vector<4x4x128xf32>
    %47 = vector.extract_strided_slice %22 {offsets = [0, 0], sizes = [4, 4], strides = [1, 1]} : vector<4x7xf32> to vector<4x4xf32>
    %48 = vector.shape_cast %47 : vector<4x4xf32> to vector<4x4x1xf32>
    %49 = vector.broadcast %48 : vector<4x4x1xf32> to vector<4x4x128xf32>
    %50 = arith.addf %46, %49 : vector<4x4x128xf32>
    %51 = vector.extract_strided_slice %50 {offsets = [0, 0, 0], sizes = [4, 3, 128], strides = [1, 1, 1]} : vector<4x4x128xf32> to vector<4x3x128xf32>
    %52 = arith.negf %51 : vector<4x3x128xf32>
    %53 = math.exp %52 : vector<4x3x128xf32>
    %cst_27 = arith.constant 1.000000e+00 : f32
    %54 = vector.broadcast %cst_27 : f32 to vector<4x3x128xf32>
    %55 = arith.addf %54, %53 : vector<4x3x128xf32>
    %56 = arith.divf %54, %55 : vector<4x3x128xf32>
    %57 = vector.extract_strided_slice %50 {offsets = [0, 3, 0], sizes = [4, 1, 128], strides = [1, 1, 1]} : vector<4x4x128xf32> to vector<4x1x128xf32>
    %58 = vector.shape_cast %57 : vector<4x1x128xf32> to vector<4x128xf32>
    %59 = vector.extract_strided_slice %13 {offsets = [0, 4], sizes = [3, 1], strides = [1, 1]} : vector<3x7xf32> to vector<3x1xf32>
    %60 = vector.extract_strided_slice %59 {offsets = [0, 0], sizes = [1, 1], strides = [1, 1]} : vector<3x1xf32> to vector<1x1xf32>
    %61 = vector.shape_cast %60 : vector<1x1xf32> to vector<1xf32>
    %62 = vector.shape_cast %61 : vector<1xf32> to vector<1x1x1xf32>
    %63 = vector.extract_strided_slice %16 {offsets = [0, 0, 0], sizes = [4, 1, 128], strides = [1, 1, 1]} : vector<4x3x128xf32> to vector<4x1x128xf32>
    %64 = vector.broadcast %62 : vector<1x1x1xf32> to vector<4x1x128xf32>
    %65 = arith.mulf %64, %63 : vector<4x1x128xf32>
    %66 = vector.extract_strided_slice %59 {offsets = [1, 0], sizes = [1, 1], strides = [1, 1]} : vector<3x1xf32> to vector<1x1xf32>
    %67 = vector.shape_cast %66 : vector<1x1xf32> to vector<1xf32>
    %68 = vector.shape_cast %67 : vector<1xf32> to vector<1x1x1xf32>
    %69 = vector.extract_strided_slice %16 {offsets = [0, 1, 0], sizes = [4, 1, 128], strides = [1, 1, 1]} : vector<4x3x128xf32> to vector<4x1x128xf32>
    %70 = vector.broadcast %68 : vector<1x1x1xf32> to vector<4x1x128xf32>
    %71 = arith.mulf %70, %69 : vector<4x1x128xf32>
    %72 = arith.addf %65, %71 : vector<4x1x128xf32>
    %73 = vector.extract_strided_slice %59 {offsets = [2, 0], sizes = [1, 1], strides = [1, 1]} : vector<3x1xf32> to vector<1x1xf32>
    %74 = vector.shape_cast %73 : vector<1x1xf32> to vector<1xf32>
    %75 = vector.shape_cast %74 : vector<1xf32> to vector<1x1x1xf32>
    %76 = vector.extract_strided_slice %16 {offsets = [0, 2, 0], sizes = [4, 1, 128], strides = [1, 1, 1]} : vector<4x3x128xf32> to vector<4x1x128xf32>
    %77 = vector.broadcast %75 : vector<1x1x1xf32> to vector<4x1x128xf32>
    %78 = arith.mulf %77, %76 : vector<4x1x128xf32>
    %79 = arith.addf %72, %78 : vector<4x1x128xf32>
    %80 = vector.extract_strided_slice %22 {offsets = [0, 4], sizes = [4, 1], strides = [1, 1]} : vector<4x7xf32> to vector<4x1xf32>
    %81 = vector.shape_cast %80 : vector<4x1xf32> to vector<4x1x1xf32>
    %82 = vector.broadcast %81 : vector<4x1x1xf32> to vector<4x1x128xf32>
    %83 = arith.addf %79, %82 : vector<4x1x128xf32>
    %84 = vector.shape_cast %83 : vector<4x1x128xf32> to vector<4x128xf32>
    %cst_28 = arith.constant 2.000000e-01 : f32
    %85 = vector.broadcast %cst_28 : f32 to vector<3x64xf32>
    %86 = arith.mulf %12, %85 : vector<3x64xf32>
    %87 = vector.extract_strided_slice %9 {offsets = [0, 0, 0], sizes = [4, 3, 1], strides = [1, 1, 1]} : vector<4x3x3xf32> to vector<4x3x1xf32>
    %88 = vector.shape_cast %87 : vector<4x3x1xf32> to vector<4x3xf32>
    %89 = vector.shape_cast %88 : vector<4x3xf32> to vector<4x3x1xf32>
    %90 = vector.extract_strided_slice %86 {offsets = [0, 0], sizes = [1, 64], strides = [1, 1]} : vector<3x64xf32> to vector<1x64xf32>
    %91 = vector.shape_cast %90 : vector<1x64xf32> to vector<64xf32>
    %92 = vector.shape_cast %91 : vector<64xf32> to vector<1x1x64xf32>
    %93 = vector.broadcast %89 : vector<4x3x1xf32> to vector<4x3x64xf32>
    %94 = vector.broadcast %92 : vector<1x1x64xf32> to vector<4x3x64xf32>
    %95 = arith.mulf %93, %94 : vector<4x3x64xf32>
    %96 = vector.extract_strided_slice %9 {offsets = [0, 0, 1], sizes = [4, 3, 1], strides = [1, 1, 1]} : vector<4x3x3xf32> to vector<4x3x1xf32>
    %97 = vector.shape_cast %96 : vector<4x3x1xf32> to vector<4x3xf32>
    %98 = vector.shape_cast %97 : vector<4x3xf32> to vector<4x3x1xf32>
    %99 = vector.extract_strided_slice %86 {offsets = [1, 0], sizes = [1, 64], strides = [1, 1]} : vector<3x64xf32> to vector<1x64xf32>
    %100 = vector.shape_cast %99 : vector<1x64xf32> to vector<64xf32>
    %101 = vector.shape_cast %100 : vector<64xf32> to vector<1x1x64xf32>
    %102 = vector.broadcast %98 : vector<4x3x1xf32> to vector<4x3x64xf32>
    %103 = vector.broadcast %101 : vector<1x1x64xf32> to vector<4x3x64xf32>
    %104 = arith.mulf %102, %103 : vector<4x3x64xf32>
    %105 = arith.addf %95, %104 : vector<4x3x64xf32>
    %106 = vector.extract_strided_slice %9 {offsets = [0, 0, 2], sizes = [4, 3, 1], strides = [1, 1, 1]} : vector<4x3x3xf32> to vector<4x3x1xf32>
    %107 = vector.shape_cast %106 : vector<4x3x1xf32> to vector<4x3xf32>
    %108 = vector.shape_cast %107 : vector<4x3xf32> to vector<4x3x1xf32>
    %109 = vector.extract_strided_slice %86 {offsets = [2, 0], sizes = [1, 64], strides = [1, 1]} : vector<3x64xf32> to vector<1x64xf32>
    %110 = vector.shape_cast %109 : vector<1x64xf32> to vector<64xf32>
    %111 = vector.shape_cast %110 : vector<64xf32> to vector<1x1x64xf32>
    %112 = vector.broadcast %108 : vector<4x3x1xf32> to vector<4x3x64xf32>
    %113 = vector.broadcast %111 : vector<1x1x64xf32> to vector<4x3x64xf32>
    %114 = arith.mulf %112, %113 : vector<4x3x64xf32>
    %115 = arith.addf %105, %114 : vector<4x3x64xf32>
    %116 = vector.shape_cast %7 : vector<4x3xf32> to vector<4x3x1xf32>
    %117 = vector.broadcast %116 : vector<4x3x1xf32> to vector<4x3x64xf32>
    %118 = arith.addf %115, %117 : vector<4x3x64xf32>
    %c0_29 = arith.constant 0 : index
    %c0_30 = arith.constant 0 : index
    %c0_31 = arith.constant 0 : index
    %c0_32 = arith.constant 0 : index
    %119 = vector.load %arg14[%c0_29, %c0_30, %c0_31, %c0_32] : memref<1x4x3x64xf32, #tpu.memory_space<vmem>>, vector<1x4x3x64xf32>
    %120 = vector.shape_cast %119 : vector<1x4x3x64xf32> to vector<4x3x64xf32>
    %121 = vector.shape_cast %118 : vector<4x3x64xf32> to vector<1x4x3x64xf32>
    tpu.vector_store %arg14[%c0_29, %c0_30, %c0_31, %c0_32], %121 {strides = array<i32>} : memref<1x4x3x64xf32, #tpu.memory_space<vmem>>, vector<1x4x3x64xf32>,
    %122 = vector.extract_strided_slice %13 {offsets = [0, 5], sizes = [3, 2], strides = [1, 1]} : vector<3x7xf32> to vector<3x2xf32>
    %123 = vector.extract_strided_slice %122 {offsets = [0, 0], sizes = [1, 2], strides = [1, 1]} : vector<3x2xf32> to vector<1x2xf32>
    %124 = vector.shape_cast %123 : vector<1x2xf32> to vector<2xf32>
    %125 = vector.shape_cast %124 : vector<2xf32> to vector<2x1xf32>
    %126 = vector.extract_strided_slice %12 {offsets = [0, 0], sizes = [1, 64], strides = [1, 1]} : vector<3x64xf32> to vector<1x64xf32>
    %127 = vector.shape_cast %126 : vector<1x64xf32> to vector<64xf32>
    %128 = vector.shape_cast %127 : vector<64xf32> to vector<1x64xf32>
    %129 = vector.broadcast %125 : vector<2x1xf32> to vector<2x64xf32>
    %130 = vector.broadcast %128 : vector<1x64xf32> to vector<2x64xf32>
    %131 = arith.mulf %129, %130 : vector<2x64xf32>
    %132 = vector.extract_strided_slice %122 {offsets = [1, 0], sizes = [1, 2], strides = [1, 1]} : vector<3x2xf32> to vector<1x2xf32>
    %133 = vector.shape_cast %132 : vector<1x2xf32> to vector<2xf32>
    %134 = vector.shape_cast %133 : vector<2xf32> to vector<2x1xf32>
    %135 = vector.extract_strided_slice %12 {offsets = [1, 0], sizes = [1, 64], strides = [1, 1]} : vector<3x64xf32> to vector<1x64xf32>
    %136 = vector.shape_cast %135 : vector<1x64xf32> to vector<64xf32>
    %137 = vector.shape_cast %136 : vector<64xf32> to vector<1x64xf32>
    %138 = vector.broadcast %134 : vector<2x1xf32> to vector<2x64xf32>
    %139 = vector.broadcast %137 : vector<1x64xf32> to vector<2x64xf32>
    %140 = arith.mulf %138, %139 : vector<2x64xf32>
    %141 = arith.addf %131, %140 : vector<2x64xf32>
    %142 = vector.extract_strided_slice %122 {offsets = [2, 0], sizes = [1, 2], strides = [1, 1]} : vector<3x2xf32> to vector<1x2xf32>
    %143 = vector.shape_cast %142 : vector<1x2xf32> to vector<2xf32>
    %144 = vector.shape_cast %143 : vector<2xf32> to vector<2x1xf32>
    %145 = vector.extract_strided_slice %12 {offsets = [2, 0], sizes = [1, 64], strides = [1, 1]} : vector<3x64xf32> to vector<1x64xf32>
    %146 = vector.shape_cast %145 : vector<1x64xf32> to vector<64xf32>
    %147 = vector.shape_cast %146 : vector<64xf32> to vector<1x64xf32>
    %148 = vector.broadcast %144 : vector<2x1xf32> to vector<2x64xf32>
    %149 = vector.broadcast %147 : vector<1x64xf32> to vector<2x64xf32>
    %150 = arith.mulf %148, %149 : vector<2x64xf32>
    %151 = arith.addf %141, %150 : vector<2x64xf32>
    %152 = vector.extract_strided_slice %151 {offsets = [0, 0], sizes = [1, 64], strides = [1, 1]} : vector<2x64xf32> to vector<1x64xf32>
    %153 = vector.shape_cast %152 : vector<1x64xf32> to vector<64xf32>
    %154 = vector.shape_cast %153 : vector<64xf32> to vector<1x64xf32>
    %155 = vector.extract_strided_slice %22 {offsets = [0, 5], sizes = [4, 1], strides = [1, 1]} : vector<4x7xf32> to vector<4x1xf32>
    %156 = vector.broadcast %154 : vector<1x64xf32> to vector<4x64xf32>
    %157 = vector.broadcast %155 : vector<4x1xf32> to vector<4x64xf32>
    %158 = arith.addf %156, %157 : vector<4x64xf32>
    %159 = vector.extract_strided_slice %151 {offsets = [1, 0], sizes = [1, 64], strides = [1, 1]} : vector<2x64xf32> to vector<1x64xf32>
    %160 = vector.shape_cast %159 : vector<1x64xf32> to vector<64xf32>
    %161 = vector.shape_cast %160 : vector<64xf32> to vector<1x64xf32>
    %162 = vector.extract_strided_slice %22 {offsets = [0, 6], sizes = [4, 1], strides = [1, 1]} : vector<4x7xf32> to vector<4x1xf32>
    %163 = vector.broadcast %161 : vector<1x64xf32> to vector<4x64xf32>
    %164 = vector.broadcast %162 : vector<4x1xf32> to vector<4x64xf32>
    %165 = arith.addf %163, %164 : vector<4x64xf32>
    %c0_33 = arith.constant 0 : index
    %c0_34 = arith.constant 0 : index
    %c0_35 = arith.constant 0 : index
    %166 = vector.load %arg15[%c0_33, %c0_34, %c0_35] : memref<1x4x64xf32, #tpu.memory_space<vmem>>, vector<1x4x64xf32>
    %167 = vector.shape_cast %166 : vector<1x4x64xf32> to vector<4x64xf32>
    %168 = vector.shape_cast %158 : vector<4x64xf32> to vector<1x4x64xf32>
    tpu.vector_store %arg15[%c0_33, %c0_34, %c0_35], %168 {strides = array<i32>} : memref<1x4x64xf32, #tpu.memory_space<vmem>>, vector<1x4x64xf32>,
    %c0_36 = arith.constant 0 : index
    %c0_37 = arith.constant 0 : index
    %c0_38 = arith.constant 0 : index
    %169 = vector.load %arg16[%c0_36, %c0_37, %c0_38] : memref<1x4x64xf32, #tpu.memory_space<vmem>>, vector<1x4x64xf32>
    %170 = vector.shape_cast %169 : vector<1x4x64xf32> to vector<4x64xf32>
    %171 = vector.shape_cast %165 : vector<4x64xf32> to vector<1x4x64xf32>
    tpu.vector_store %arg16[%c0_36, %c0_37, %c0_38], %171 {strides = array<i32>} : memref<1x4x64xf32, #tpu.memory_space<vmem>>, vector<1x4x64xf32>,
    %172 = arith.negf %158 : vector<4x64xf32>
    %173 = math.exp %172 : vector<4x64xf32>
    %cst_39 = arith.constant 1.000000e+00 : f32
    %174 = vector.broadcast %cst_39 : f32 to vector<4x64xf32>
    %175 = arith.addf %174, %173 : vector<4x64xf32>
    %176 = arith.divf %174, %175 : vector<4x64xf32>
    %cst_40 = arith.constant 5.000000e-01 : f32
    %177 = vector.broadcast %cst_40 : f32 to vector<4x64xf32>
    %178 = arith.cmpf ogt, %176, %177 : vector<4x64xf32>
    %179 = arith.negf %165 : vector<4x64xf32>
    %180 = math.exp %179 : vector<4x64xf32>
    %cst_41 = arith.constant 1.000000e+00 : f32
    %181 = vector.broadcast %cst_41 : f32 to vector<4x64xf32>
    %182 = arith.addf %181, %180 : vector<4x64xf32>
    %183 = arith.divf %181, %182 : vector<4x64xf32>
    %cst_42 = arith.constant 5.000000e-01 : f32
    %184 = vector.broadcast %cst_42 : f32 to vector<4x64xf32>
    %185 = arith.cmpf ogt, %183, %184 : vector<4x64xf32>
    %cst_43 = arith.constant dense<true> : vector<4x64xi1>
    %186 = arith.xori %185, %cst_43 : vector<4x64xi1>
    %187 = arith.andi %178, %186 : vector<4x64xi1>
    %188 = vector.shape_cast %187 : vector<4x64xi1> to vector<4x1x64xi1>
    %cst_44 = arith.constant 1.000000e+30 : f32
    %189 = vector.shape_cast %188 : vector<4x1x64xi1> to vector<4x1x64xi1>
    %190 = vector.broadcast %189 : vector<4x1x64xi1> to vector<4x3x64xi1>
    %191 = vector.broadcast %cst_44 : f32 to vector<4x3x64xf32>
    %192 = arith.select %190, %118, %191 : vector<4x3x64xi1>, vector<4x3x64xf32>
    %cst_45 = arith.constant dense<0x7F800000> : vector<4x3xf32>
    %193 = vector.multi_reduction <minimumf>, %192, %cst_45 [2] : vector<4x3x64xf32> to vector<4x3xf32>
    %c0_46 = arith.constant 0 : index
    %c0_47 = arith.constant 0 : index
    %c0_48 = arith.constant 0 : index
    %194 = vector.load %arg17[%c0_46, %c0_47, %c0_48] : memref<1x4x3xf32, #tpu.memory_space<vmem>>, vector<1x4x3xf32>
    %195 = vector.shape_cast %194 : vector<1x4x3xf32> to vector<4x3xf32>
    %196 = vector.shape_cast %193 : vector<4x3xf32> to vector<1x4x3xf32>
    tpu.vector_store %arg17[%c0_46, %c0_47, %c0_48], %196 {strides = array<i32>} : memref<1x4x3xf32, #tpu.memory_space<vmem>>, vector<1x4x3xf32>,
    %cst_49 = arith.constant -1.000000e+30 : f32
    %197 = vector.shape_cast %188 : vector<4x1x64xi1> to vector<4x1x64xi1>
    %198 = vector.broadcast %197 : vector<4x1x64xi1> to vector<4x3x64xi1>
    %199 = vector.broadcast %cst_49 : f32 to vector<4x3x64xf32>
    %200 = arith.select %198, %118, %199 : vector<4x3x64xi1>, vector<4x3x64xf32>
    %cst_50 = arith.constant dense<0xFF800000> : vector<4x3xf32>
    %201 = vector.multi_reduction <maximumf>, %200, %cst_50 [2] : vector<4x3x64xf32> to vector<4x3xf32>
    %c0_51 = arith.constant 0 : index
    %c0_52 = arith.constant 0 : index
    %c0_53 = arith.constant 0 : index
    %202 = vector.load %arg18[%c0_51, %c0_52, %c0_53] : memref<1x4x3xf32, #tpu.memory_space<vmem>>, vector<1x4x3xf32>
    %203 = vector.shape_cast %202 : vector<1x4x3xf32> to vector<4x3xf32>
    %204 = vector.shape_cast %201 : vector<4x3xf32> to vector<1x4x3xf32>
    tpu.vector_store %arg18[%c0_51, %c0_52, %c0_53], %204 {strides = array<i32>} : memref<1x4x3xf32, #tpu.memory_space<vmem>>, vector<1x4x3xf32>,
    %205 = arith.extui %187 : vector<4x64xi1> to vector<4x64xi32>
    %206 = arith.sitofp %205 : vector<4x64xi32> to vector<4x64xf32>
    %cst_54 = arith.constant dense<0.000000e+00> : vector<4xf32>
    %207 = vector.multi_reduction <add>, %206, %cst_54 [1] : vector<4x64xf32> to vector<4xf32>
    %208 = vector.shape_cast %207 : vector<4xf32> to vector<4x1xf32>
    %c0_55 = arith.constant 0 : index
    %c0_56 = arith.constant 0 : index
    %c0_57 = arith.constant 0 : index
    %209 = vector.load %arg19[%c0_55, %c0_56, %c0_57] : memref<1x4x1xf32, #tpu.memory_space<vmem>>, vector<1x4x1xf32>
    %210 = vector.shape_cast %209 : vector<1x4x1xf32> to vector<4x1xf32>
    %211 = vector.shape_cast %208 : vector<4x1xf32> to vector<1x4x1xf32>
    tpu.vector_store %arg19[%c0_55, %c0_56, %c0_57], %211 {strides = array<i32>} : memref<1x4x1xf32, #tpu.memory_space<vmem>>, vector<1x4x1xf32>,
    %cst_58 = arith.constant 1.000000e+00 : f32
    %212 = vector.broadcast %cst_58 : f32 to vector<4x1xf32>
    %213 = arith.subf %212, %11 : vector<4x1xf32>
    %214 = vector.shape_cast %17 : vector<4x128xf32> to vector<4x1x128xf32>
    %215 = vector.broadcast %214 : vector<4x1x128xf32> to vector<4x3x128xf32>
    %216 = arith.mulf %56, %215 : vector<4x3x128xf32>
    %217 = vector.shape_cast %213 : vector<4x1xf32> to vector<4x1x1xf32>
    %218 = vector.broadcast %217 : vector<4x1x1xf32> to vector<4x3x128xf32>
    %219 = arith.mulf %216, %218 : vector<4x3x128xf32>
    %c0_59 = arith.constant 0 : index
    %c0_60 = arith.constant 0 : index
    %c0_61 = arith.constant 0 : index
    %c0_62 = arith.constant 0 : index
    %220 = vector.load %arg11[%c0_59, %c0_60, %c0_61, %c0_62] : memref<1x4x3x128xf32, #tpu.memory_space<vmem>>, vector<1x4x3x128xf32>
    %221 = vector.shape_cast %220 : vector<1x4x3x128xf32> to vector<4x3x128xf32>
    %222 = vector.shape_cast %219 : vector<4x3x128xf32> to vector<1x4x3x128xf32>
    tpu.vector_store %arg11[%c0_59, %c0_60, %c0_61, %c0_62], %222 {strides = array<i32>} : memref<1x4x3x128xf32, #tpu.memory_space<vmem>>, vector<1x4x3x128xf32>,
    %cst_63 = arith.constant 0.000000e+00 : f32
    %223 = vector.broadcast %cst_63 : f32 to vector<4x128xf32>
    %224 = arith.cmpf ogt, %17, %223 : vector<4x128xf32>
    %225 = vector.broadcast %213 : vector<4x1xf32> to vector<4x128xf32>
    %226 = arith.mulf %58, %225 : vector<4x128xf32>
    %cst_64 = arith.constant -1.000000e+08 : f32
    %227 = vector.broadcast %cst_64 : f32 to vector<4x1xf32>
    %228 = arith.mulf %11, %227 : vector<4x1xf32>
    %229 = vector.broadcast %228 : vector<4x1xf32> to vector<4x128xf32>
    %230 = arith.addf %226, %229 : vector<4x128xf32>
    %cst_65 = arith.constant -1.000000e+03 : f32
    %231 = vector.broadcast %cst_65 : f32 to vector<4x128xf32>
    %232 = arith.select %224, %230, %231 : vector<4x128xi1>, vector<4x128xf32>
    %c0_66 = arith.constant 0 : index
    %c0_67 = arith.constant 0 : index
    %c0_68 = arith.constant 0 : index
    %233 = vector.load %arg12[%c0_66, %c0_67, %c0_68] : memref<1x4x128xf32, #tpu.memory_space<vmem>>, vector<1x4x128xf32>
    %234 = vector.shape_cast %233 : vector<1x4x128xf32> to vector<4x128xf32>
    %235 = vector.shape_cast %232 : vector<4x128xf32> to vector<1x4x128xf32>
    tpu.vector_store %arg12[%c0_66, %c0_67, %c0_68], %235 {strides = array<i32>} : memref<1x4x128xf32, #tpu.memory_space<vmem>>, vector<1x4x128xf32>,
    %cst_69 = arith.constant 0.000000e+00 : f32
    %236 = vector.broadcast %cst_69 : f32 to vector<4x128xf32>
    %237 = arith.cmpf ogt, %18, %236 : vector<4x128xf32>
    %238 = vector.broadcast %213 : vector<4x1xf32> to vector<4x128xf32>
    %239 = arith.mulf %84, %238 : vector<4x128xf32>
    %cst_70 = arith.constant -1.000000e+08 : f32
    %240 = vector.broadcast %cst_70 : f32 to vector<4x1xf32>
    %241 = arith.mulf %11, %240 : vector<4x1xf32>
    %242 = vector.broadcast %241 : vector<4x1xf32> to vector<4x128xf32>
    %243 = arith.addf %239, %242 : vector<4x128xf32>
    %cst_71 = arith.constant -1.000000e+03 : f32
    %244 = vector.broadcast %cst_71 : f32 to vector<4x128xf32>
    %245 = arith.select %237, %243, %244 : vector<4x128xi1>, vector<4x128xf32>
    %c0_72 = arith.constant 0 : index
    %c0_73 = arith.constant 0 : index
    %c0_74 = arith.constant 0 : index
    %246 = vector.load %arg13[%c0_72, %c0_73, %c0_74] : memref<1x4x128xf32, #tpu.memory_space<vmem>>, vector<1x4x128xf32>
    %247 = vector.shape_cast %246 : vector<1x4x128xf32> to vector<4x128xf32>
    %248 = vector.shape_cast %245 : vector<4x128xf32> to vector<1x4x128xf32>
    tpu.vector_store %arg13[%c0_72, %c0_73, %c0_74], %248 {strides = array<i32>} : memref<1x4x128xf32, #tpu.memory_space<vmem>>, vector<1x4x128xf32>,
    return
  }
  func.func @transform_0(%arg0: i32) -> (i32, i32, i32, i32) {
    %c0_i32 = arith.constant 0 : i32
    %c0_i32_0 = arith.constant 0 : i32
    %c0_i32_1 = arith.constant 0 : i32
    %c0_i32_2 = arith.constant 0 : i32
    return %arg0, %c0_i32, %c0_i32_0, %c0_i32_1 : i32, i32, i32, i32
  }
  func.func @transform_1(%arg0: i32) -> (i32, i32, i32) {
    %c0_i32 = arith.constant 0 : i32
    %c0_i32_0 = arith.constant 0 : i32
    %c0_i32_1 = arith.constant 0 : i32
    return %arg0, %c0_i32, %c0_i32_0 : i32, i32, i32
  }
  func.func @transform_2(%arg0: i32) -> (i32, i32, i32) {
    %c0_i32 = arith.constant 0 : i32
    %c0_i32_0 = arith.constant 0 : i32
    %c0_i32_1 = arith.constant 0 : i32
    return %arg0, %c0_i32, %c0_i32_0 : i32, i32, i32
  }
  func.func @transform_3(%arg0: i32) -> (i32, i32, i32) {
    %c0_i32 = arith.constant 0 : i32
    %c0_i32_0 = arith.constant 0 : i32
    %c0_i32_1 = arith.constant 0 : i32
    return %arg0, %c0_i32, %c0_i32_0 : i32, i32, i32
  }
  func.func @transform_4(%arg0: i32) -> (i32, i32, i32, i32) {
    %c0_i32 = arith.constant 0 : i32
    %c0_i32_0 = arith.constant 0 : i32
    %c0_i32_1 = arith.constant 0 : i32
    %c0_i32_2 = arith.constant 0 : i32
    return %arg0, %c0_i32, %c0_i32_0, %c0_i32_1 : i32, i32, i32, i32
  }
  func.func @transform_5(%arg0: i32) -> (i32, i32, i32) {
    %c0_i32 = arith.constant 0 : i32
    %c0_i32_0 = arith.constant 0 : i32
    %c0_i32_1 = arith.constant 0 : i32
    return %arg0, %c0_i32, %c0_i32_0 : i32, i32, i32
  }
  func.func @transform_6(%arg0: i32) -> (i32, i32) {
    %c0_i32 = arith.constant 0 : i32
    %c0_i32_0 = arith.constant 0 : i32
    %c0_i32_1 = arith.constant 0 : i32
    return %c0_i32, %c0_i32_0 : i32, i32
  }
  func.func @transform_7(%arg0: i32) -> (i32, i32) {
    %c0_i32 = arith.constant 0 : i32
    %c0_i32_0 = arith.constant 0 : i32
    %c0_i32_1 = arith.constant 0 : i32
    return %c0_i32, %c0_i32_0 : i32, i32
  }
  func.func @transform_8(%arg0: i32) -> (i32, i32) {
    %c0_i32 = arith.constant 0 : i32
    %c0_i32_0 = arith.constant 0 : i32
    %c0_i32_1 = arith.constant 0 : i32
    return %c0_i32, %c0_i32_0 : i32, i32
  }
  func.func @transform_9(%arg0: i32) -> (i32, i32) {
    %c0_i32 = arith.constant 0 : i32
    %c0_i32_0 = arith.constant 0 : i32
    %c0_i32_1 = arith.constant 0 : i32
    return %c0_i32, %c0_i32_0 : i32, i32
  }
  func.func @transform_10(%arg0: i32) -> (i32, i32, i32, i32) {
    %c0_i32 = arith.constant 0 : i32
    %c0_i32_0 = arith.constant 0 : i32
    %c0_i32_1 = arith.constant 0 : i32
    %c0_i32_2 = arith.constant 0 : i32
    return %arg0, %c0_i32, %c0_i32_0, %c0_i32_1 : i32, i32, i32, i32
  }
  func.func @transform_11(%arg0: i32) -> (i32, i32, i32) {
    %c0_i32 = arith.constant 0 : i32
    %c0_i32_0 = arith.constant 0 : i32
    %c0_i32_1 = arith.constant 0 : i32
    return %arg0, %c0_i32, %c0_i32_0 : i32, i32, i32
  }
  func.func @transform_12(%arg0: i32) -> (i32, i32, i32) {
    %c0_i32 = arith.constant 0 : i32
    %c0_i32_0 = arith.constant 0 : i32
    %c0_i32_1 = arith.constant 0 : i32
    return %arg0, %c0_i32, %c0_i32_0 : i32, i32, i32
  }
  func.func @transform_13(%arg0: i32) -> (i32, i32, i32, i32) {
    %c0_i32 = arith.constant 0 : i32
    %c0_i32_0 = arith.constant 0 : i32
    %c0_i32_1 = arith.constant 0 : i32
    %c0_i32_2 = arith.constant 0 : i32
    return %arg0, %c0_i32, %c0_i32_0, %c0_i32_1 : i32, i32, i32, i32
  }
  func.func @transform_14(%arg0: i32) -> (i32, i32, i32) {
    %c0_i32 = arith.constant 0 : i32
    %c0_i32_0 = arith.constant 0 : i32
    %c0_i32_1 = arith.constant 0 : i32
    return %arg0, %c0_i32, %c0_i32_0 : i32, i32, i32
  }
  func.func @transform_15(%arg0: i32) -> (i32, i32, i32) {
    %c0_i32 = arith.constant 0 : i32
    %c0_i32_0 = arith.constant 0 : i32
    %c0_i32_1 = arith.constant 0 : i32
    return %arg0, %c0_i32, %c0_i32_0 : i32, i32, i32
  }
  func.func @transform_16(%arg0: i32) -> (i32, i32, i32) {
    %c0_i32 = arith.constant 0 : i32
    %c0_i32_0 = arith.constant 0 : i32
    %c0_i32_1 = arith.constant 0 : i32
    return %arg0, %c0_i32, %c0_i32_0 : i32, i32, i32
  }
  func.func @transform_17(%arg0: i32) -> (i32, i32, i32) {
    %c0_i32 = arith.constant 0 : i32
    %c0_i32_0 = arith.constant 0 : i32
    %c0_i32_1 = arith.constant 0 : i32
    return %arg0, %c0_i32, %c0_i32_0 : i32, i32, i32
  }
  func.func @transform_18(%arg0: i32) -> (i32, i32, i32) {
    %c0_i32 = arith.constant 0 : i32
    %c0_i32_0 = arith.constant 0 : i32
    %c0_i32_1 = arith.constant 0 : i32
    return %arg0, %c0_i32, %c0_i32_0 : i32, i32, i32
  }
}

</mosaic_0001>

<bundles_post_ra>
// kernel: sub.1
= control target key start
LH: loop header
LB: loop body
LE: loop exit
PB: predicated region body
PF: predicated region fallthrough
CT: control target
= control target key end

     0   :  { %s56_s0 = inlined_call_operand.vmem [shape: f32[2,4,48], index: 0, kind: input, shape index: {}]   ;;  %s57_s1 = inlined_call_operand.vmem [shape: f32[2,4,48], index: 1, kind: input, shape index: {}]   ;;  %s58_s2 = inlined_call_operand.vmem [shape: f32[2,4,48], index: 2, kind: output, shape index: {}]  }
   0x1   :  { %v3_v0 = vld [vmem:[%s56_s0] sm:$0xf]  ;;  %v20_v2 = vld [vmem:[%s56_s0 + $0x4] sm:$0xf] }
   0x2   :  { %v4_v1 = vld [vmem:[%s57_s1] sm:$0xf]  ;;  %v21_v4 = vld [vmem:[%s57_s1 + $0x4] sm:$0xf] }
   0x3   :  { %v7_v3 = vsub.f32 %v3_v0, %v4_v1  ;;  %v16_v5 = vsub.f32 %v20_v2, %v21_v4 }
   0x5   :  { %9 = vst [vmem:[%s58_s2] sm:$0xf] %v7_v3  ;;  %22 = vst [vmem:[%s58_s2 + $0x4] sm:$0xf] %v16_v5 }

// kernel: object_module_forward.10
= control target key start
LH: loop header
LB: loop body
LE: loop exit
PB: predicated region body
PF: predicated region fallthrough
CT: control target
= control target key end

     0   :  { %s1300_s21 = smov 0   ;;  %s1593_s0 = inlined_call_operand.vmem [shape: f32[2,3,384], index: 0, kind: input, shape index: {}]   ;;  %s1594_s1 = inlined_call_operand.vmem [shape: f32[2,4,3], index: 1, kind: input, shape index: {}]   ;;  %s1595_s2 = inlined_call_operand.vmem [shape: f32[2,4,3,3], index: 2, kind: input, shape index: {}]   ;;  %s1596_s3 = inlined_call_operand.vmem [shape: f32[1,384], index: 3, kind: input, shape index: {}]   ;;  %s1597_s4 = inlined_call_operand.vmem [shape: f32[1,384], index: 4, kind: input, shape index: {}]   ;;  %s1598_s5 = inlined_call_operand.vmem [shape: f32[2,4,3,384], index: 5, kind: output, shape index: {0}]   ;;  %s1599_s6 = inlined_call_operand.vmem [shape: f32[2,4,384], index: 6, kind: output, shape index: {1}]  }
   0x1 LB: > { %s1219_s22 = sadd.s32 4294967295, %s1262_s21   ;;  %p1223_p0 = scmp.ge.s32.totalorder %s1262_s21, 1  ;;  %s1262_s21 = sphi %s1300_s21, %s17_s21  }
   0x2   : > { %p234_p1 = scmp.lt.s32.totalorder %s1262_s21, 3 }
   0x4   : > { %p235_p2 = pnand %p1223_p0, %p234_p1 }
   0x5   : > { %p278_p3 = scmp.lt.s32.totalorder (!%p235_p2), %s1219_s22, 1  ;;  %v311_v0 = vlaneseq (!%p235_p2)  ;;  %v309_v27 = vld [vmem:[%s1596_s3] sm:$0x7] (!%p235_p2) }
   0x6   : > { %238 = sbr.rel (%p235_p2) target bundleno = 214 (0xd6), region = 40 }
   0x7   : > { %v1310_v1 = vshrl.u32 (!%p235_p2), %v311_v0, 7 }
   0x9   : > { %v1314_v2 = vsub.s32 (!%p235_p2), 2, %v1310_v1  ;;  %v1317_v3 = vsub.s32 (!%p235_p2), 1, %v1310_v1  ;;  %v334_v4 = vsub.s32 (!%p235_p2), 3, %v1310_v1  ;;  %v1324_v5 = vsub.s32 (!%p235_p2), 0, %v1310_v1 }
   0xa   : > { %v1360_v46 = vsub.s32 (!%p235_p2), 5, %v1310_v1  ;;  %v1363_v47 = vsub.s32 (!%p235_p2), 4, %v1310_v1  ;;  %v1366_v48 = vsub.s32 (!%p235_p2), 6, %v1310_v1 }
   0xb   : > { %v343_v28 = vrot.slane (!%p235_p2), %v309_v27, %v1324_v5  ;;  %v347_v29 = vrot.slane (!%p235_p2), %v309_v27, %v1317_v3  ;;  %v351_v30 = vrot.slane (!%p235_p2), %v309_v27, %v1314_v2 }
   0xd   : > { %s1601_s22 = smov (!%p278_p3, %s1219_s22), 1 }
   0xe   : > { %s1225_s23 = sshll.u32 %s1601_s22, 2  ;;  %s1244_s27 = sshll.u32 %s1601_s22, 4 }
   0xf   : > { %s286_s26 = scalar_lea.vmem %s1594_s1, %s1225_s23  ;;  %s291_s30 = scalar_lea.vmem %s1595_s2, %s1244_s27 }
  0x10   : > { %v304_v6 = vld [vmem:[%s286_s26] sm:$0xf]  ;;  %v306_v11 = vld [vmem:[%s291_s30 + $0x4] sm:$0x7]  ;;  %v307_v14 = vld [vmem:[%s291_s30 + $0x8] sm:$0x7] }
  0x11   : > { %v328_v7 = vrot.slane %v304_v6, %v1314_v2  ;;  %v321_v8 = vrot.slane %v304_v6, %v1317_v3  ;;  %v335_v9 = vrot.slane %v304_v6, %v334_v4  ;;  %v314_v10 = vrot.slane %v304_v6, %v1324_v5  ;;  %v305_v15 = vld [vmem:[%s291_s30] sm:$0x7]  ;;  %v308_v20 = vld [vmem:[%s291_s30 + $0xc] sm:$0x7]  ;;  %s1245_s9 = smul.u32 12, %s1601_s22 }
  0x12   : > { %v557_v12 = vrot.slane %v306_v11, %v1317_v3  ;;  %v401_v13 = vrot.slane %v306_v11, %v1324_v5  ;;  %v408_v16 = vrot.slane %v307_v14, %v1324_v5  ;;  %v394_v17 = vrot.slane %v305_v15, %v1324_v5  ;;  %s1246_s15 = smul.u32 48, %s1601_s22 }
  0x13   : > { %330 = vbcast.lane.b32.xlu1 %v328_v7, 256  ;;  %323 = vbcast.lane.b32.xlu0 %v321_v8, 256  ;;  %v564_v18 = vrot.slane %v307_v14, %v1317_v3  ;;  %v550_v19 = vrot.slane %v305_v15, %v1317_v3  ;;  %v415_v21 = vrot.slane %v308_v20, %v1324_v5  ;;  %s282_s12 = scalar_lea.vmem %s1593_s0, %s1245_s9  ;;  %s301_s23 = scalar_lea.vmem %s1599_s6, %s1245_s9 }
  0x14   : > { %v717_v22 = vrot.slane %v306_v11, %v1314_v2  ;;  %v710_v23 = vrot.slane %v305_v15, %v1314_v2  ;;  %v571_v24 = vrot.slane %v308_v20, %v1317_v3  ;;  %v731_v25 = vrot.slane %v308_v20, %v1314_v2  ;;  %v303_v33 = vld [vmem:[%s282_s12 + $0x8] sm:$0x7]  ;;  %v302_v40 = vld [vmem:[%s282_s12] sm:$0x77]  ;;  %s1495_s18 = scalar_lea.vmem %s1598_s5, %s1246_s15 }
  0x15   : > { %v724_v26 = vrot.slane %v307_v14, %v1314_v2 }
  0x17   : > { %337 = vbcast.lane.b32.xlu1 %v335_v9, 256  ;;  %316 = vbcast.lane.b32.xlu0 %v314_v10, 256 }
  0x1b   : > { %559 = vbcast.lane.b32.xlu1 %v557_v12, 256  ;;  %403 = vbcast.lane.b32.xlu0 %v401_v13, 256 }
  0x1f   : > { %410 = vbcast.lane.b32.xlu1 %v408_v16, 256  ;;  %396 = vbcast.lane.b32.xlu0 %v394_v17, 256 }
  0x23   : > { %566 = vbcast.lane.b32.xlu1 %v564_v18, 256  ;;  %552 = vbcast.lane.b32.xlu0 %v550_v19, 256  ;;  %v310_v18 = vld [vmem:[%s1597_s4] sm:$0x7] }
  0x27   : > { %417 = vbcast.lane.b32.xlu1 %v415_v21, 256  ;;  %719 = vbcast.lane.b32.xlu0 %v717_v22, 256 }
  0x2b   : > { %712 = vbcast.lane.b32.xlu1 %v710_v23, 256  ;;  %573 = vbcast.lane.b32.xlu0 %v571_v24, 256 }
  0x2f   : > { %733 = vbcast.lane.b32.xlu1 %v731_v25, 256  ;;  %726 = vbcast.lane.b32.xlu0 %v724_v26, 256 }
  0x85   : > { %v331_v31 = vpop.permute.xlu1 %330  ;;  %v324_v32 = vpop.permute.xlu0 %323 }
  0x86   : > { %v361_v34 = vmul.f32 %v343_v28, %v331_v31  ;;  %v362_v35 = vmul.f32 %v347_v29, %v331_v31  ;;  %v358_v36 = vmul.f32 %v343_v28, %v324_v32  ;;  %v363_v37 = vmul.f32 %v351_v30, %v331_v31 }
  0x87   : > { %v359_v38 = vmul.f32 %v347_v29, %v324_v32  ;;  %v360_v39 = vmul.f32 %v351_v30, %v324_v32  ;;  %v1415_v31 = vrot.slane %v310_v18, %v1317_v3 }
  0x88   : > { %v377_v41 = vcombine.low %v361_v34, %v362_v35  ;;  %v1368_v49 = vsub.f32 %v303_v33, %v363_v37  ;;  %v1423_v37 = vrot.slane %v310_v18, %v1314_v2 }
  0x89   : > { %v376_v42 = vcombine.low %v358_v36, %v359_v38  ;;  %v1357_v43 = vsub.f32 %v303_v33, %v360_v39  ;;  %v338_v44 = vpop.permute.xlu1 %337  ;;  %v317_v45 = vpop.permute.xlu0 %316 }
  0x8a   : > { %v355_v51 = vmul.f32 %v343_v28, %v317_v45  ;;  %v356_v52 = vmul.f32 %v347_v29, %v317_v45  ;;  %v1372_v53 = vsub.f32 %v302_v40, %v377_v41  ;;  %v364_v54 = vmul.f32 %v343_v28, %v338_v44 }
  0x8b   : > { %v1370_v50 = vsub.f32 %v302_v40, %v376_v42  ;;  %v598_v55 = vrot.slane %v1357_v43, %v1317_v3  ;;  %v450_v56 = vrot.slane %v1357_v43, %v1324_v5  ;;  %v357_v57 = vmul.f32 %v351_v30, %v317_v45 }
  0x8c   : > { %v375_v58 = vcombine.low %v355_v51, %v356_v52  ;;  %v365_v63 = vmul.f32 %v347_v29, %v338_v44  ;;  %v366_v10 = vmul.f32 %v351_v30, %v338_v44  ;;  %v454_v16 = vrot.slane %v1372_v53, %v1324_v5 }
  0x8d   : > { %v560_v59 = vpop.permute.xlu1 %559  ;;  %v590_v60 = vrot.slane %v1370_v50, %v1317_v3  ;;  %v594_v61 = vrot.slane %v1370_v50, %v1360_v46  ;;  %v404_v62 = vpop.permute.xlu0 %403  ;;  %v658_v0 = vrot.slane %v598_v55, %v1317_v3  ;;  %v442_v1 = vrot.slane %v1370_v50, %v1324_v5 }
  0x8e   : > { %v446_v4 = vrot.slane %v1370_v50, %v1363_v47  ;;  %v1387_v6 = vsub.f32 %v302_v40, %v375_v58  ;;  %v510_v9 = vrot.slane %v450_v56, %v1324_v5  ;;  %v1394_v13 = vsub.f32 %v303_v33, %v357_v57 }
  0x8f   : > { %v650_v7 = vrot.slane %v590_v60, %v1317_v3  ;;  %v654_v8 = vrot.slane %v594_v61, %v1317_v3  ;;  %v502_v11 = vrot.slane %v442_v1, %v1324_v5  ;;  %v458_v17 = vrot.slane %v1372_v53, %v1363_v47 }
  0x90   : > { %v506_v12 = vrot.slane %v446_v4, %v1324_v5  ;;  %v378_v19 = vcombine.low %v364_v54, %v365_v63  ;;  %v688_v21 = vmul.f32 %v658_v0, %v560_v59  ;;  %v540_v24 = vmul.f32 %v510_v9, %v404_v62 }
  0x91   : > { %v687_v14 = vmul.f32 %v654_v8, %v560_v59  ;;  %v411_v15 = vpop.permute.xlu1 %410  ;;  %v686_v20 = vmul.f32 %v650_v7, %v560_v59  ;;  %v538_v23 = vmul.f32 %v502_v11, %v404_v62  ;;  %v462_v25 = vrot.slane %v1368_v49, %v1324_v5  ;;  %v397_v26 = vpop.permute.xlu0 %396 }
  0x92   : > { %v539_v22 = vmul.f32 %v506_v12, %v404_v62  ;;  %v434_v27 = vrot.slane %v1387_v6, %v1363_v47  ;;  %v430_v29 = vrot.slane %v1387_v6, %v1324_v5  ;;  %v1412_v30 = vrot.slane %v310_v18, %v1324_v5 }
  0x93   : > { %v1417_v32 = vsub.f32 %v303_v33, %v366_v10  ;;  %v514_v34 = vrot.slane %v454_v16, %v1324_v5  ;;  %v438_v35 = vrot.slane %v1394_v13, %v1324_v5  ;;  %v1425_v38 = vsub.f32 %v302_v40, %v378_v19 }
  0x94   : > { %v1407_v28 = vadd.f32 %v687_v14, %v539_v22  ;;  %v518_v39 = vrot.slane %v458_v17, %v1324_v5  ;;  %v602_v41 = vrot.slane %v1372_v53, %v1317_v3  ;;  %v606_v33 = vrot.slane %v1372_v53, %v1360_v46 }
  0x95   : > { %v567_v36 = vpop.permute.xlu1 %566  ;;  %v698_v42 = vadd.f32 %v686_v20, %v538_v23  ;;  %v700_v44 = vadd.f32 %v688_v21, %v540_v24  ;;  %v522_v45 = vrot.slane %v462_v25, %v1324_v5  ;;  %v578_v51 = vrot.slane %v1387_v6, %v1317_v3  ;;  %v553_v60 = vpop.permute.xlu0 %552 }
  0x96   : > { %v490_v52 = vrot.slane %v430_v29, %v1324_v5  ;;  %v494_v40 = vrot.slane %v434_v27, %v1324_v5  ;;  %v666_v54 = vrot.slane %v606_v33, %v1317_v3  ;;  %v582_v55 = vrot.slane %v1387_v6, %v1360_v46 }
  0x97   : > { %v541_v56 = vmul.f32 %v514_v34, %v411_v15  ;;  %v498_v57 = vrot.slane %v438_v35, %v1324_v5  ;;  %v610_v58 = vrot.slane %v1368_v49, %v1317_v3  ;;  %v662_v59 = vrot.slane %v602_v41, %v1317_v3 }
  0x98   : > { %v542_v61 = vmul.f32 %v518_v39, %v411_v15  ;;  %v690_v62 = vmul.f32 %v666_v54, %v567_v36  ;;  %v586_v63 = vrot.slane %v1394_v13, %v1317_v3  ;;  %v642_v0 = vrot.slane %v582_v55, %v1317_v3 }
  0x99   : > { %v1447_v1 = vmul.f32 %v522_v45, %v411_v15  ;;  %v689_v4 = vmul.f32 %v662_v59, %v567_v36  ;;  %v638_v7 = vrot.slane %v578_v51, %v1317_v3  ;;  %v1450_v8 = vpop.permute.xlu1 %417  ;;  %v470_v9 = vrot.slane %v1425_v38, %v1363_v47  ;;  %v720_v25 = vpop.permute.xlu0 %719 }
  0x9a   : > { %v535_v10 = vmul.f32 %v490_v52, %v397_v26  ;;  %v536_v11 = vmul.f32 %v494_v40, %v397_v26  ;;  %v1454_v12 = vadd.f32 %v690_v62, %v542_v61  ;;  %v684_v14 = vmul.f32 %v642_v0, %v553_v60 }
  0x9b   : > { %v537_v16 = vmul.f32 %v498_v57, %v397_v26  ;;  %v670_v17 = vrot.slane %v610_v58, %v1317_v3  ;;  %v683_v18 = vmul.f32 %v638_v7, %v553_v60  ;;  %v466_v15 = vrot.slane %v1425_v38, %v1324_v5 }
  0x9c   : > { %v646_v19 = vrot.slane %v586_v63, %v1317_v3  ;;  %v696_v20 = vadd.f32 %v684_v14, %v536_v11  ;;  %v750_v21 = vrot.slane %v1370_v50, %v1314_v2  ;;  %v754_v47 = vrot.slane %v1370_v50, %v1366_v48 }
  0x9d   : > { %v1464_v22 = vmul.f32 %v670_v17, %v567_v36  ;;  %v1466_v23 = vadd.f32 %v689_v4, %v541_v56  ;;  %v474_v24 = vrot.slane %v1417_v32, %v1324_v5  ;;  %v758_v26 = vrot.slane %v1357_v43, %v1314_v2  ;;  %v713_v39 = vpop.permute.xlu1 %712 }
  0x9e   : > { %v685_v27 = vmul.f32 %v646_v19, %v553_v60  ;;  %v810_v29 = vrot.slane %v750_v21, %v1314_v2  ;;  %v814_v34 = vrot.slane %v754_v47, %v1314_v2  ;;  %v738_v35 = vrot.slane %v1387_v6, %v1314_v2 }
  0x9f   : > { %v695_v50 = vadd.f32 %v683_v18, %v535_v10  ;;  %v818_v36 = vrot.slane %v758_v26, %v1314_v2  ;;  %v742_v41 = vrot.slane %v1387_v6, %v1366_v48  ;;  %v746_v33 = vrot.slane %v1394_v13, %v1314_v2  ;;  %v574_v10 = vpop.permute.xlu0 %573 }
  0xa0   : > { %v846_v43 = vmul.f32 %v810_v29, %v720_v25  ;;  %v847_v45 = vmul.f32 %v814_v34, %v720_v25  ;;  %v798_v51 = vrot.slane %v738_v35, %v1314_v2  ;;  %v618_v52 = vrot.slane %v1425_v38, %v1360_v46 }
  0xa1   : > { %v1486_v40 = vrot.slane %v466_v15, %v1324_v5  ;;  %v848_v54 = vmul.f32 %v818_v36, %v720_v25  ;;  %v802_v55 = vrot.slane %v742_v41, %v1314_v2  ;;  %v806_v56 = vrot.slane %v746_v33, %v1314_v2 }
  0xa2   : > { %v530_v6 = vrot.slane %v470_v9, %v1324_v5  ;;  %v858_v57 = vadd.f32 %v846_v43, %v698_v42  ;;  %v859_v13 = vadd.f32 %v847_v45, %v1407_v28  ;;  %v843_v58 = vmul.f32 %v798_v51, %v713_v39 }
  0xa3   : > { %v697_v59 = vadd.f32 %v685_v27, %v537_v16  ;;  %v860_v60 = vadd.f32 %v848_v54, %v700_v44  ;;  %v844_v61 = vmul.f32 %v802_v55, %v713_v39  ;;  %v845_v62 = vmul.f32 %v806_v56, %v713_v39 }
  0xa4   : > { %v534_v46 = vrot.slane %v474_v24, %v1324_v5  ;;  %v886_v63 = vmul.f32 %v1412_v30, %v858_v57  ;;  %v887_v0 = vmul.f32 %v1415_v31, %v859_v13  ;;  %v855_v42 = vadd.f32 %v843_v58, %v695_v50 }
  0xa5   : > { %v888_v28 = vmul.f32 %v1423_v37, %v860_v60  ;;  %v856_v4 = vadd.f32 %v844_v61, %v696_v20  ;;  %v857_v44 = vadd.f32 %v845_v62, %v697_v59  ;;  %v614_v7 = vrot.slane %v1425_v38, %v1317_v3  ;;  %v734_v62 = vpop.permute.xlu1 %733 }
  0xa6   : > { %v904_v9 = vcombine.low %v886_v63, %v887_v0  ;;  %vm922_vm0 = vcmp.le.f32.partialorder %v886_v63, 1.0  ;;  %vm923_vm1 = vcmp.le.f32.partialorder %v887_v0, 1.0  ;;  %vm934_vm2 = vcmp.ge.f32.partialorder %v886_v63, -1.0 }
  0xa7   : > { %914 = vst [vmem:[%s1495_s18 + $0x14] sm:$0x7] %v888_v28  ;;  %vm924_vm3 = vcmp.le.f32.partialorder %v888_v28, 1.0  ;;  %vm935_vm4 = vcmp.ge.f32.partialorder %v887_v0, -1.0  ;;  %vm946_vm5 = vmand %vm922_vm0, %vm934_vm2  ;;  %v883_v5 = vmul.f32 %v1412_v30, %v855_v42  ;;  %v678_v11 = vrot.slane %v618_v52, %v1317_v3 }
  0xa8   : > { %913 = vst [vmem:[%s1495_s18 + $0xc] sm:$0x77] %v904_v9  ;;  %vm936_vm6 = vcmp.ge.f32.partialorder %v888_v28, -1.0  ;;  %vm947_vm7 = vmand %vm923_vm1, %vm935_vm4  ;;  %v1264_v14 = vmov 0.0   ;;  %v884_v17 = vmul.f32 %v1415_v31, %v856_v4  ;;  %v885_v18 = vmul.f32 %v1423_v37, %v857_v44 }
  0xa9   : > { %v1233_v16 = vsel %vm946_vm5, 1.0, %v1264_v14  ;;  %v545_v15 = vmul.f32 %v530_v6, %v1450_v8  ;;  %v1234_v19 = vsel %vm947_vm7, 1.0, %v1264_v14  ;;  %v622_v21 = vrot.slane %v1417_v32, %v1317_v3  ;;  %vm948_vm9 = vmand %vm924_vm3, %vm936_vm6 }
  0xaa   : > { %v994_v20 = vrot.slane %v1233_v16, 1  ;;  %v995_v47 = vrot.slane %v1234_v19, 1  ;;  %v903_v24 = vcombine.low %v883_v5, %v884_v17  ;;  %912 = vst [vmem:[%s1495_s18 + $0x8] sm:$0x7] %v885_v18  ;;  %vm919_vm8 = vcmp.le.f32.partialorder %v883_v5, 1.0 }
  0xab   : > { %v693_v25 = vmul.f32 %v678_v11, %v574_v10  ;;  %v1030_v27 = vrot.slane %v1233_v16, 2  ;;  %vm920_vm10 = vcmp.le.f32.partialorder %v884_v17, 1.0  ;;  %v674_v29 = vrot.slane %v614_v7, %v1317_v3 }
  0xac   : > { %v1018_v26 = vmul.f32 %v1233_v16, %v994_v20  ;;  %v1019_v34 = vmul.f32 %v1234_v19, %v995_v47  ;;  %v1031_v35 = vrot.slane %v1234_v19, 2  ;;  %911 = vst [vmem:[%s1495_s18] sm:$0x77] %v903_v24  ;;  %vm931_vm11 = vcmp.ge.f32.partialorder %v883_v5, -1.0  ;;  %v727_v5 = vpop.permute.xlu0 %726 }
  0xad   : > { %vm932_vm12 = vcmp.ge.f32.partialorder %v884_v17, -1.0  ;;  %vm921_vm13 = vcmp.le.f32.partialorder %v885_v18, 1.0  ;;  %vm933_vm14 = vcmp.ge.f32.partialorder %v885_v18, -1.0  ;;  %vm943_vm15 = vmand %vm919_vm8, %vm931_vm11  ;;  %v692_v36 = vmul.f32 %v674_v29, %v574_v10 }
  0xae   : > { %v1054_v50 = vmul.f32 %v1030_v27, %v1018_v26  ;;  %v1521_v39 = vsel %vm948_vm9, 1.0, %v1264_v14  ;;  %v1055_v41 = vmul.f32 %v1031_v35, %v1019_v34  ;;  %vm944_vm0 = vmand %vm920_vm10, %vm932_vm12  ;;  %v1230_v33 = vsel %vm943_vm15, 1.0, %v1264_v14 }
  0xaf   : > { %v705_v43 = vadd.f32 %v693_v25, %v545_v15  ;;  %v703_v45 = vadd.f32 %v1464_v22, %v1447_v1  ;;  %vm1080_vm1 = vcmask 1041409   ;;  %v1231_v51 = vsel %vm944_vm0, 1.0, %v1264_v14  ;;  %vm945_vm2 = vmand %vm921_vm13, %vm933_vm14 }
  0xb0   : > { %v991_v52 = vrot.slane %v1230_v33, 1  ;;  %v682_v54 = vrot.slane %v622_v21, %v1317_v3  ;;  %v544_v55 = vmul.f32 %v1486_v40, %v1450_v8  ;;  %v546_v56 = vmul.f32 %v534_v46, %v1450_v8 }
  0xb1   : > { %v1076_v6 = vcombine.low %v1054_v50, %v1055_v41  ;;  %v992_v57 = vrot.slane %v1231_v51, 1  ;;  %vm1082_vm3 = vcmask 1045509   ;;  %v996_v13 = vrot.slane %v1521_v39, 1 }
  0xb2   : > { %v1015_v1 = vmul.f32 %v1230_v33, %v991_v52  ;;  %v1027_v22 = vrot.slane %v1230_v33, 2  ;;  %v694_v58 = vmul.f32 %v682_v54, %v574_v10  ;;  %v1028_v60 = vrot.slane %v1231_v51, 2 }
  0xb3   : > { %v1016_v59 = vmul.f32 %v1231_v51, %v992_v57  ;;  %v704_v61 = vadd.f32 %v692_v36, %v544_v55  ;;  %v774_v3 = vrot.slane %v1425_v38, %v1314_v2  ;;  %v1537_v40 = vsel %vm945_vm2, 1.0, %v1264_v14 }
  0xb4   : > { %v1051_v8 = vmul.f32 %v1027_v22, %v1015_v1  ;;  %v778_v46 = vrot.slane %v1425_v38, %v1366_v48  ;;  %v782_v63 = vrot.slane %v1417_v32, %v1314_v2  ;;  %v762_v28 = vrot.slane %v1372_v53, %v1314_v2 }
  0xb5   : > { %v1052_v0 = vmul.f32 %v1028_v60, %v1016_v59  ;;  %v834_v42 = vrot.slane %v774_v3, %v1314_v2  ;;  %v766_v4 = vrot.slane %v1372_v53, %v1366_v48  ;;  %v1079_v44 = vrot.slane %v1076_v6, 7 }
  0xb6   : > { %v838_v7 = vrot.slane %v778_v46, %v1314_v2  ;;  %v842_v9 = vrot.slane %v782_v63, %v1314_v2  ;;  %v770_v38 = vrot.slane %v1368_v49, %v1314_v2  ;;  %v822_v11 = vrot.slane %v762_v28, %v1314_v2 }
  0xb7   : > { %v1075_v10 = vcombine.low %v1051_v8, %v1052_v0  ;;  %v852_v32 = vmul.f32 %v834_v42, %v734_v62  ;;  %v826_v16 = vrot.slane %v766_v4, %v1314_v2  ;;  %v706_v17 = vadd.f32 %v694_v58, %v546_v56 }
  0xb8   : > { %v853_v18 = vmul.f32 %v838_v7, %v734_v62  ;;  %v854_v15 = vmul.f32 %v842_v9, %v734_v62  ;;  %v830_v48 = vrot.slane %v770_v38, %v1314_v2  ;;  %v849_v20 = vmul.f32 %v822_v11, %v727_v5 }
  0xb9   : > { %v1081_v53 = vsel %vm1080_vm1, %v1079_v44, %v1075_v10  ;;  %v864_v19 = vadd.f32 %v852_v32, %v704_v61  ;;  %v850_v21 = vmul.f32 %v826_v16, %v727_v5  ;;  %v1032_v26 = vrot.slane %v1521_v39, 2 }
  0xba   : > { %v865_v47 = vadd.f32 %v853_v18, %v705_v43  ;;  %v866_v24 = vadd.f32 %v854_v15, %v706_v17  ;;  %v851_v49 = vmul.f32 %v830_v48, %v727_v5  ;;  %v1557_v25 = vsel %vm1082_vm3, %v1079_v44, %v1081_v53 }
  0xbb   : > { %v892_v27 = vmul.f32 %v1412_v30, %v864_v19  ;;  %v861_v29 = vadd.f32 %v849_v20, %v1466_v23  ;;  %v862_v2 = vadd.f32 %v850_v21, %v1454_v12  ;;  %v993_v34 = vrot.slane %v1537_v40, 1 }
  0xbc   : > { %v893_v35 = vmul.f32 %v1415_v31, %v865_v47  ;;  %v894_v50 = vmul.f32 %v1423_v37, %v866_v24  ;;  %v863_v36 = vadd.f32 %v851_v49, %v703_v45  ;;  %v1020_v51 = vmul.f32 %v1521_v39, %v996_v13 }
  0xbd   : > { %vm928_vm4 = vcmp.le.f32.partialorder %v892_v27, 1.0  ;;  %vm940_vm5 = vcmp.ge.f32.partialorder %v892_v27, -1.0  ;;  %v889_v41 = vmul.f32 %v1412_v30, %v861_v29  ;;  %v890_v33 = vmul.f32 %v1415_v31, %v862_v2 }
  0xbe   : > { %v906_v43 = vcombine.low %v892_v27, %v893_v35  ;;  %918 = vst [vmem:[%s1495_s18 + $0x2c] sm:$0x7] %v894_v50  ;;  %vm929_vm6 = vcmp.le.f32.partialorder %v893_v35, 1.0  ;;  %vm930_vm7 = vcmp.le.f32.partialorder %v894_v50, 1.0  ;;  %vm941_vm8 = vcmp.ge.f32.partialorder %v893_v35, -1.0  ;;  %vm952_vm9 = vmand %vm928_vm4, %vm940_vm5 }
  0xbf   : > { %vm942_vm10 = vcmp.ge.f32.partialorder %v894_v50, -1.0  ;;  %vm953_vm11 = vmand %vm929_vm6, %vm941_vm8  ;;  %v1239_v12 = vsel %vm952_vm9, 1.0, %v1264_v14  ;;  %v891_v23 = vmul.f32 %v1423_v37, %v863_v36  ;;  %v905_v45 = vcombine.low %v889_v41, %v890_v33 }
  0xc0   : > { %v1017_v30 = vmul.f32 %v1537_v40, %v993_v34  ;;  %917 = vst [vmem:[%s1495_s18 + $0x24] sm:$0x77] %v906_v43  ;;  %vm954_vm12 = vmand %vm930_vm7, %vm942_vm10  ;;  %v1240_v31 = vsel %vm953_vm11, 1.0, %v1264_v14  ;;  %v1000_v52 = vrot.slane %v1239_v12, 1  ;;  %v1036_v56 = vrot.slane %v1239_v12, 2 }
  0xc1   : > { %v1241_v54 = vsel %vm954_vm12, 1.0, %v1264_v14  ;;  %v1001_v55 = vrot.slane %v1240_v31, 1  ;;  %915 = vst [vmem:[%s1495_s18 + $0x18] sm:$0x77] %v905_v45  ;;  %916 = vst [vmem:[%s1495_s18 + $0x20] sm:$0x7] %v891_v23  ;;  %v1056_v1 = vmul.f32 %v1032_v26, %v1020_v51 }
  0xc2   : > { %vm925_vm13 = vcmp.le.f32.partialorder %v889_v41, 1.0  ;;  %v1024_v6 = vmul.f32 %v1239_v12, %v1000_v52  ;;  %v1037_v57 = vrot.slane %v1240_v31, 2  ;;  %vm926_vm14 = vcmp.le.f32.partialorder %v890_v33, 1.0 }
  0xc3   : > { %vm927_vm15 = vcmp.le.f32.partialorder %v891_v23, 1.0  ;;  %v1025_v37 = vmul.f32 %v1240_v31, %v1001_v55  ;;  %vm937_vm0 = vcmp.ge.f32.partialorder %v889_v41, -1.0  ;;  %vm938_vm2 = vcmp.ge.f32.partialorder %v890_v33, -1.0 }
  0xc4   : > { %vm939_vm4 = vcmp.ge.f32.partialorder %v891_v23, -1.0  ;;  %v1002_v39 = vrot.slane %v1241_v54, 1  ;;  %v1060_v13 = vmul.f32 %v1036_v56, %v1024_v6  ;;  %vm949_vm5 = vmand %vm925_vm13, %vm937_vm0  ;;  %v1029_v22 = vrot.slane %v1537_v40, 2 }
  0xc5   : > { %v1061_v58 = vmul.f32 %v1037_v57, %v1025_v37  ;;  %vm950_vm6 = vmand %vm926_vm14, %vm938_vm2  ;;  %v1236_v59 = vsel %vm949_vm5, 1.0, %v1264_v14  ;;  %v1094_v4 = vrot.slane %v1056_v1, 7  ;;  %v1038_v7 = vrot.slane %v1241_v54, 2 }
  0xc6   : > { %vm951_vm7 = vmand %vm927_vm15, %vm939_vm4  ;;  %v1237_v60 = vsel %vm950_vm6, 1.0, %v1264_v14  ;;  %v997_v61 = vrot.slane %v1236_v59, 1  ;;  %v1053_v3 = vmul.f32 %v1029_v22, %v1017_v30  ;;  %v1026_v63 = vmul.f32 %v1241_v54, %v1002_v39 }
  0xc7   : > { %v1078_v8 = vcombine.low %v1060_v13, %v1061_v58  ;;  %v1238_v62 = vsel %vm951_vm7, 1.0, %v1264_v14  ;;  %v998_v46 = vrot.slane %v1237_v60, 1  ;;  %v1033_v28 = vrot.slane %v1236_v59, 2 }
  0xc8   : > { %v999_v0 = vrot.slane %v1238_v62, 1  ;;  %v1021_v42 = vmul.f32 %v1236_v59, %v997_v61  ;;  %v1034_v40 = vrot.slane %v1237_v60, 2  ;;  %v1035_v5 = vrot.slane %v1238_v62, 2 }
  0xc9   : > { %v1022_v44 = vmul.f32 %v1237_v60, %v998_v46  ;;  %v1095_v32 = vsel %vm1080_vm1, %v1094_v4, %v1053_v3  ;;  %v1062_v11 = vmul.f32 %v1038_v7, %v1026_v63  ;;  %vm1085_vm8 = vcmask 1042434  }
  0xca   : > { %v1023_v9 = vmul.f32 %v1238_v62, %v999_v0  ;;  %v1057_v38 = vmul.f32 %v1033_v28, %v1021_v42  ;;  %vm1087_vm9 = vcmask 1046534   ;;  %vm1090_vm10 = vcmask 1043459  }
  0xcb   : > { %v1058_v10 = vmul.f32 %v1034_v40, %v1022_v44  ;;  %v1096_v15 = vsel %vm1082_vm3, %v1094_v4, %v1095_v32  ;;  %v1100_v48 = vrot.slane %v1062_v11, 5  ;;  %vm1092_vm11 = vcmask 1047559  }
  0xcc   : > { %v1059_v16 = vmul.f32 %v1035_v5, %v1023_v9  ;;  %v1089_v19 = vrot.slane %v1078_v8, 5 }
  0xcd   : > { %v1077_v14 = vcombine.low %v1057_v38, %v1058_v10 }
  0xce   : > { %v1097_v17 = vrot.slane %v1059_v16, 6 }
  0xcf   : > { %v1084_v18 = vrot.slane %v1077_v14, 6 }
  0xd0   : > { %v1098_v53 = vsel %vm1085_vm8, %v1097_v17, %v1096_v15 }
  0xd1   : > { %v1086_v20 = vsel %vm1085_vm8, %v1084_v18, %v1557_v25  ;;  %v1099_v21 = vsel %vm1087_vm9, %v1097_v17, %v1098_v53 }
  0xd2   : > { %v1088_v47 = vsel %vm1087_vm9, %v1084_v18, %v1086_v20  ;;  %v1101_v24 = vsel %vm1090_vm10, %v1100_v48, %v1099_v21 }
  0xd3   : > { %v1091_v49 = vsel %vm1090_vm10, %v1089_v19, %v1088_v47  ;;  %v1102_v26 = vsel %vm1092_vm11, %v1100_v48, %v1101_v24 }
  0xd4   : > { %v1093_v27 = vsel %vm1092_vm11, %v1089_v19, %v1091_v49  ;;  %1106 = vst [vmem:[%s301_s23 + $0x8] sm:$0xf] %v1102_v26 }
  0xd5   : > { %1105 = vst [vmem:[%s301_s23] sm:$0xff] %v1093_v27 }
  0xd6 PF: > { %s17_s21 = sadd.s32 1, %s1262_s21  }
  0xd7   : > { %p14_p4 = scmp.ge.s32.totalorder %s17_s21, 4  }
  0xd9   :  { %16 = sbr.rel (!%p14_p4) target bundleno = 1 (0x1), region = 88 }

// kernel: object_module_forward.7
= control target key start
LH: loop header
LB: loop body
LE: loop exit
PB: predicated region body
PF: predicated region fallthrough
CT: control target
= control target key end

     0   :  { %s2218_s21 = smov 0   ;;  %s3100_s0 = inlined_call_operand.vmem [shape: f32[2,128,3], index: 0, kind: input, shape index: {}]   ;;  %s3101_s1 = inlined_call_operand.vmem [shape: f32[2,4,128], index: 1, kind: input, shape index: {}]   ;;  %s3102_s2 = inlined_call_operand.vmem [shape: f32[2,4,128], index: 2, kind: input, shape index: {}]   ;;  %s3103_s3 = inlined_call_operand.vmem [shape: f32[3,48], index: 3, kind: input, shape index: {}]   ;;  %s3104_s4 = inlined_call_operand.vmem [shape: f32[2,4,3], index: 4, kind: output, shape index: {0}]   ;;  %s3105_s5 = inlined_call_operand.vmem [shape: f32[2,4,48], index: 5, kind: output, shape index: {1}]   ;;  %s3106_s6 = inlined_call_operand.vmem [shape: f32[2,4,48], index: 6, kind: output, shape index: {2}]  }
   0x1 LB: > { %s2082_s22 = sadd.s32 4294967295, %s2181_s21   ;;  %p2086_p0 = scmp.ge.s32.totalorder %s2181_s21, 1  ;;  %s2181_s21 = sphi %s2218_s21, %s17_s21  }
   0x2   : > { %p235_p1 = scmp.lt.s32.totalorder %s2181_s21, 3 }
   0x4   : > { %p236_p2 = pnand %p2086_p0, %p235_p1 }
   0x5   : > { %p280_p3 = scmp.lt.s32.totalorder (!%p236_p2), %s2082_s22, 1  ;;  %v323_v0 = vlaneseq (!%p236_p2)  ;;  %v841_v1 = vld [vmem:[%s3103_s3] sm:$0x7] (!%p236_p2)  ;;  %vm890_vm0 = vcmask (!%p236_p2), 1042432   ;;  %vm655_vm1 = vcmask (!%p236_p2), 23552   ;;  %vm804_vm2 = vcmask (!%p236_p2), 1043456  }
   0x6   : > { %239 = sbr.rel (%p236_p2) target bundleno = 443 (0x1bb), region = 36  ;;  %2131 = vmatprep.subr.msk.mxu0 (!%p236_p2), %vm890_vm0, %v841_v1  ;;  %2157 = vmatprep.subr.msk.mxu1 (!%p236_p2), %vm890_vm0, %v841_v1  ;;  %vm1563_vm4 = vcmask (!%p236_p2), 392192  }
   0x7   : > { %v2229_v2 = vshrl.u32 (!%p236_p2), %v323_v0, 7  ;;  %2132 = vmatpush3.msk.msra.mxu0 (!%p236_p2), %vm890_vm0, %v841_v1  ;;  %2158 = vmatpush3.msk.msra.mxu1 (!%p236_p2), %vm890_vm0, %v841_v1 }
   0x9   : > { %v325_v3 = vsub.s32 (!%p236_p2), 0, %v2229_v2  ;;  %v459_v4 = vsub.s32 (!%p236_p2), 2, %v2229_v2  ;;  %v526_v5 = vsub.s32 (!%p236_p2), 3, %v2229_v2  ;;  %v392_v26 = vsub.s32 (!%p236_p2), 1, %v2229_v2 }
   0xd   : > { %s3108_s22 = smov (!%p280_p3, %s2082_s22), 1 }
   0xe   : > { %s2231_s25 = sshll.u32 %s3108_s22, 2  ;;  %s2113_s26 = sshll.u32 %s3108_s22, 7 }
   0xf   : > { %s288_s29 = scalar_lea.vmem %s3101_s1, %s2231_s25  ;;  %s2243_s8 = scalar_lea.vmem %s3100_s0, %s2113_s26 }
  0x10   : > { %v2245_v6 = vld [vmem:[%s288_s29] sm:$0xf]  ;;  %v2251_v8 = vld [vmem:[%s2243_s8 + $0x8] sm:$0xff]  ;;  %v2259_v10 = vld [vmem:[%s2243_s8 + $0x10] sm:$0xff]  ;;  %s292_s11 = scalar_lea.vmem %s3102_s2, %s2231_s25  ;;  %s296_s14 = scalar_lea.vmem %s3104_s4, %s2231_s25 }
  0x11   : > { %v2248_v7 = vld [vmem:[%s2243_s8] sm:$0xff]  ;;  %v326_v9 = vrot.slane %v2245_v6, %v325_v3  ;;  %v2264_v11 = vrot.slane %v2245_v6, %v459_v4  ;;  %v2269_v12 = vrot.slane %v2245_v6, %v526_v5  ;;  %v2274_v13 = vld [vmem:[%s2243_s8 + $0x18] sm:$0xff]  ;;  %v2280_v15 = vld [vmem:[%s2243_s8 + $0x48] sm:$0xff]  ;;  %v393_v27 = vrot.slane %v2245_v6, %v392_v26  ;;  %s300_s17 = scalar_lea.vmem %s3105_s5, %s2231_s25  ;;  %s304_s20 = scalar_lea.vmem %s3106_s6, %s2231_s25 }
  0x12   : > { %2133 = vmatprep.mubr.msk.f32.mxu0 %vm655_vm1, %v2248_v7  ;;  %v2277_v14 = vld [vmem:[%s2243_s8 + $0x40] sm:$0xff]  ;;  %v2283_v16 = vld [vmem:[%s2243_s8 + $0x50] sm:$0xff]  ;;  %v2299_v18 = vld [vmem:[%s2243_s8 + $0x58] sm:$0xff]  ;;  %v805_v57 = vsel %vm804_vm2, %v2245_v6, 0.0 }
  0x13   : > { %2134 = vmatmul.mubr.msk.f32.vlgmr.msra.gmra.mrb[0].mxu0 %vm655_vm1, %v2251_v8  ;;  %336 = vbcast.lane.b32.xlu1 %v326_v9, 272  ;;  %v2290_v17 = vld [vmem:[%s2243_s8 + $0x20] sm:$0xff]  ;;  %v2302_v19 = vld [vmem:[%s2243_s8 + $0x28] sm:$0xff]  ;;  %v2307_v20 = vld [vmem:[%s2243_s8 + $0x30] sm:$0xff] }
  0x14   : > { %328 = vbcast.lane.b32.xlu0 %v326_v9, 256  ;;  %2136 = vmatprep.mubr.msk.f32.mxu0 %vm655_vm1, %v2259_v10  ;;  %v2314_v21 = vld [vmem:[%s2243_s8 + $0x38] sm:$0xff]  ;;  %v2319_v22 = vld [vmem:[%s2243_s8 + $0x60] sm:$0xff]  ;;  %v2326_v23 = vld [vmem:[%s2243_s8 + $0x68] sm:$0xff] }
  0x15   : > { %2145 = vmatprep.mubr.msk.f32.mxu1 %vm655_vm1, %v2277_v14  ;;  %v2331_v24 = vld [vmem:[%s2243_s8 + $0x70] sm:$0xff]  ;;  %v2336_v25 = vld [vmem:[%s2243_s8 + $0x78] sm:$0xff]  ;;  %v2386_v32 = vld [vmem:[%s292_s11] sm:$0xf] }
  0x16   : > { %2146 = vmatmul.mubr.msk.f32.vlgmr.msra.gmra.mrb[0].mxu1 %vm655_vm1, %v2280_v15  ;;  %v2397_v35 = vrot.slane %v2386_v32, %v325_v3 }
  0x17   : > { %2137 = vmatmul.mubr.msk.f32.gmra.mrb[2].mxu0 %vm655_vm1, %v2274_v13  ;;  %2148 = vmatprep.mubr.msk.f32.mxu1 %vm655_vm1, %v2283_v16 }
  0x18   : > { %340 = vbcast.lane.b32.xlu1 %v326_v9, 280  ;;  %332 = vbcast.lane.b32.xlu0 %v326_v9, 264 }
  0x19   : > { %2139 = vmatprep.mubr.msk.f32.mxu0 %vm655_vm1, %v2290_v17 }
  0x1a   : > { %2149 = vmatmul.mubr.msk.f32.gmra.mrb[2].mxu1 %vm655_vm1, %v2299_v18 }
  0x1b   : > { %2140 = vmatmul.mubr.msk.f32.gmra.mrb[4].mxu0 %vm655_vm1, %v2302_v19  ;;  %2151 = vmatprep.mubr.msk.f32.mxu1 %vm655_vm1, %v2319_v22 }
  0x1c   : > { %348 = vbcast.lane.b32.xlu1 %v326_v9, 296  ;;  %344 = vbcast.lane.b32.xlu0 %v326_v9, 288 }
  0x1d   : > { %2142 = vmatprep.mubr.msk.f32.mxu0 %vm655_vm1, %v2307_v20 }
  0x1e   : > { %2152 = vmatmul.mubr.msk.f32.gmra.mrb[4].mxu1 %vm655_vm1, %v2326_v23 }
  0x1f   : > { %2143 = vmatmul.mubr.msk.f32.gmra.mrb[6].mxu0 %vm655_vm1, %v2314_v21  ;;  %2154 = vmatprep.mubr.msk.f32.mxu1 %vm655_vm1, %v2331_v24 }
  0x20   : > { %356 = vbcast.lane.b32.xlu1 %v326_v9, 312  ;;  %352 = vbcast.lane.b32.xlu0 %v326_v9, 304 }
  0x22   : > { %2155 = vmatmul.mubr.msk.f32.gmra.mrb[6].mxu1 %vm655_vm1, %v2336_v25 }
  0x24   : > { %364 = vbcast.lane.b32.xlu1 %v326_v9, 328  ;;  %360 = vbcast.lane.b32.xlu0 %v326_v9, 320 }
  0x28   : > { %372 = vbcast.lane.b32.xlu1 %v326_v9, 344  ;;  %368 = vbcast.lane.b32.xlu0 %v326_v9, 336 }
  0x2c   : > { %380 = vbcast.lane.b32.xlu1 %v326_v9, 360  ;;  %376 = vbcast.lane.b32.xlu0 %v326_v9, 352 }
  0x30   : > { %388 = vbcast.lane.b32.xlu1 %v326_v9, 376  ;;  %384 = vbcast.lane.b32.xlu0 %v326_v9, 368 }
  0x34   : > { %399 = vbcast.lane.b32.xlu1 %v393_v27, 264  ;;  %395 = vbcast.lane.b32.xlu0 %v393_v27, 256 }
  0x38   : > { %407 = vbcast.lane.b32.xlu1 %v393_v27, 280  ;;  %403 = vbcast.lane.b32.xlu0 %v393_v27, 272 }
  0x3c   : > { %415 = vbcast.lane.b32.xlu1 %v393_v27, 296  ;;  %411 = vbcast.lane.b32.xlu0 %v393_v27, 288 }
  0x40   : > { %423 = vbcast.lane.b32.xlu1 %v393_v27, 312  ;;  %419 = vbcast.lane.b32.xlu0 %v393_v27, 304 }
  0x44   : > { %431 = vbcast.lane.b32.xlu1 %v393_v27, 328  ;;  %427 = vbcast.lane.b32.xlu0 %v393_v27, 320 }
  0x48   : > { %439 = vbcast.lane.b32.xlu1 %v393_v27, 344  ;;  %435 = vbcast.lane.b32.xlu0 %v393_v27, 336 }
  0x4c   : > { %447 = vbcast.lane.b32.xlu1 %v393_v27, 360  ;;  %443 = vbcast.lane.b32.xlu0 %v393_v27, 352 }
  0x50   : > { %455 = vbcast.lane.b32.xlu1 %v393_v27, 376  ;;  %451 = vbcast.lane.b32.xlu0 %v393_v27, 368 }
  0x54   : > { %466 = vbcast.lane.b32.xlu1 %v2264_v11, 264  ;;  %462 = vbcast.lane.b32.xlu0 %v2264_v11, 256 }
  0x58   : > { %474 = vbcast.lane.b32.xlu1 %v2264_v11, 280  ;;  %470 = vbcast.lane.b32.xlu0 %v2264_v11, 272 }
  0x5c   : > { %482 = vbcast.lane.b32.xlu1 %v2264_v11, 296  ;;  %478 = vbcast.lane.b32.xlu0 %v2264_v11, 288 }
  0x60   : > { %490 = vbcast.lane.b32.xlu1 %v2264_v11, 312  ;;  %486 = vbcast.lane.b32.xlu0 %v2264_v11, 304 }
  0x64   : > { %498 = vbcast.lane.b32.xlu1 %v2264_v11, 328  ;;  %494 = vbcast.lane.b32.xlu0 %v2264_v11, 320 }
  0x68   : > { %506 = vbcast.lane.b32.xlu1 %v2264_v11, 344  ;;  %502 = vbcast.lane.b32.xlu0 %v2264_v11, 336 }
  0x6c   : > { %514 = vbcast.lane.b32.xlu1 %v2264_v11, 360  ;;  %510 = vbcast.lane.b32.xlu0 %v2264_v11, 352 }
  0x70   : > { %522 = vbcast.lane.b32.xlu1 %v2264_v11, 376  ;;  %518 = vbcast.lane.b32.xlu0 %v2264_v11, 368 }
  0x74   : > { %533 = vbcast.lane.b32.xlu1 %v2269_v12, 264  ;;  %529 = vbcast.lane.b32.xlu0 %v2269_v12, 256 }
  0x78   : > { %541 = vbcast.lane.b32.xlu1 %v2269_v12, 280  ;;  %537 = vbcast.lane.b32.xlu0 %v2269_v12, 272 }
  0x7c   : > { %549 = vbcast.lane.b32.xlu1 %v2269_v12, 296  ;;  %545 = vbcast.lane.b32.xlu0 %v2269_v12, 288 }
  0x80   : > { %557 = vbcast.lane.b32.xlu1 %v2269_v12, 312  ;;  %553 = vbcast.lane.b32.xlu0 %v2269_v12, 304 }
  0x84   : > { %565 = vbcast.lane.b32.xlu1 %v2269_v12, 328  ;;  %561 = vbcast.lane.b32.xlu0 %v2269_v12, 320 }
  0x85   : > { %v2370_v28 = vpop.permute.xlu1 %336 }
  0x86   : > { %v2372_v29 = vpop.permute.xlu0 %328 }
  0x88   : > { %573 = vbcast.lane.b32.xlu1 %v2269_v12, 344  ;;  %569 = vbcast.lane.b32.xlu0 %v2269_v12, 336 }
  0x8a   : > { %v2376_v30 = vpop.permute.xlu1 %340  ;;  %v2378_v31 = vpop.permute.xlu0 %332 }
  0x8c   : > { %581 = vbcast.lane.b32.xlu1 %v2269_v12, 360  ;;  %577 = vbcast.lane.b32.xlu0 %v2269_v12, 352 }
  0x8e   : > { %v2388_v33 = vpop.permute.xlu1 %348  ;;  %v2390_v34 = vpop.permute.xlu0 %344 }
  0x90   : > { %589 = vbcast.lane.b32.xlu1 %v2269_v12, 376  ;;  %585 = vbcast.lane.b32.xlu0 %v2269_v12, 368 }
  0x92   : > { %v2399_v36 = vpop.permute.xlu1 %356  ;;  %v2401_v37 = vpop.permute.xlu0 %352 }
  0x94   : > { %1044 = vbcast.lane.b32.xlu1 %v2397_v35, 256 }
  0x96   : > { %v2404_v38 = vpop.permute.xlu1 %364  ;;  %v2406_v39 = vpop.permute.xlu0 %360 }
  0x98   : > { %1048 = vbcast.lane.b32.xlu1 %v2397_v35, 264 }
  0x9a   : > { %v2409_v40 = vpop.permute.xlu1 %372  ;;  %v2411_v41 = vpop.permute.xlu0 %368 }
  0x9c   : > { %1052 = vbcast.lane.b32.xlu1 %v2397_v35, 272 }
  0x9e   : > { %v2414_v42 = vpop.permute.xlu1 %380  ;;  %v2416_v43 = vpop.permute.xlu0 %376 }
  0xa0   : > { %1056 = vbcast.lane.b32.xlu1 %v2397_v35, 280 }
  0xa2   : > { %v2419_v44 = vpop.permute.xlu1 %388  ;;  %v2421_v45 = vpop.permute.xlu0 %384 }
  0xa4   : > { %1060 = vbcast.lane.b32.xlu1 %v2397_v35, 288 }
  0xa6   : > { %v400_v46 = vpop.permute.xlu1 %399  ;;  %v396_v47 = vpop.permute.xlu0 %395 }
  0xa7   : > { %v608_v48 = vmul.f32 %v400_v46, %v2251_v8  ;;  %v607_v49 = vmul.f32 %v396_v47, %v2248_v7 }
  0xa8   : > { %1064 = vbcast.lane.b32.xlu1 %v2397_v35, 296 }
  0xa9   : > { %v694_v50 = vsel %vm655_vm1, %v608_v48, 0.0  ;;  %v693_v51 = vsel %vm655_vm1, %v607_v49, 0.0 }
  0xaa   : > { %v408_v52 = vpop.permute.xlu1 %407  ;;  %v404_v53 = vpop.permute.xlu0 %403  ;;  %v695_v56 = vadd.f32 %v694_v50, %v693_v51 }
  0xab   : > { %v610_v54 = vmul.f32 %v408_v52, %v2274_v13  ;;  %v609_v55 = vmul.f32 %v404_v53, %v2259_v10 }
  0xac   : > { %1068 = vbcast.lane.b32.xlu1 %v2397_v35, 304 }
  0xad   : > { %v698_v58 = vsel %vm655_vm1, %v610_v54, 0.0  ;;  %v696_v59 = vsel %vm655_vm1, %v609_v55, 0.0 }
  0xae   : > { %v697_v60 = vadd.f32 %v696_v59, %v695_v56  ;;  %v416_v61 = vpop.permute.xlu1 %415  ;;  %v412_v62 = vpop.permute.xlu0 %411  ;;  %v2451_v56 = vrot.slane %v2386_v32, %v392_v26 }
  0xaf   : > { %v612_v63 = vmul.f32 %v416_v61, %v2302_v19  ;;  %v611_v0 = vmul.f32 %v412_v62, %v2290_v17  ;;  %806 = vadd.xlane.f32.xlu0 %v805_v57 }
  0xb0   : > { %v699_v1 = vadd.f32 %v698_v58, %v697_v60  ;;  %1072 = vbcast.lane.b32.xlu1 %v2397_v35, 312 }
  0xb1   : > { %v702_v3 = vsel %vm655_vm1, %v612_v63, 0.0  ;;  %v700_v9 = vsel %vm655_vm1, %v611_v0, 0.0 }
  0xb2   : > { %v701_v6 = vadd.f32 %v700_v9, %v699_v1  ;;  %v424_v11 = vpop.permute.xlu1 %423  ;;  %v420_v12 = vpop.permute.xlu0 %419 }
  0xb3   : > { %v614_v27 = vmul.f32 %v424_v11, %v2314_v21  ;;  %v613_v46 = vmul.f32 %v420_v12, %v2307_v20 }
  0xb4   : > { %v703_v47 = vadd.f32 %v702_v3, %v701_v6  ;;  %1080 = vbcast.lane.b32.xlu1 %v2397_v35, 328 }
  0xb5   : > { %v706_v48 = vsel %vm655_vm1, %v614_v27, 0.0  ;;  %v704_v49 = vsel %vm655_vm1, %v613_v46, 0.0  ;;  %v2466_v46 = vrot.slane %v2386_v32, %v459_v4 }
  0xb6   : > { %v705_v50 = vadd.f32 %v704_v49, %v703_v47  ;;  %v432_v51 = vpop.permute.xlu1 %431  ;;  %v428_v52 = vpop.permute.xlu0 %427 }
  0xb7   : > { %v616_v53 = vmul.f32 %v432_v51, %v2280_v15  ;;  %v615_v54 = vmul.f32 %v428_v52, %v2277_v14 }
  0xb8   : > { %v707_v55 = vadd.f32 %v706_v48, %v705_v50  ;;  %1084 = vbcast.lane.b32.xlu1 %v2397_v35, 336 }
  0xb9   : > { %v710_v57 = vsel %vm655_vm1, %v616_v53, 0.0  ;;  %v708_v58 = vsel %vm655_vm1, %v615_v54, 0.0 }
  0xba   : > { %v709_v59 = vadd.f32 %v708_v58, %v707_v55  ;;  %v440_v60 = vpop.permute.xlu1 %439  ;;  %v436_v61 = vpop.permute.xlu0 %435 }
  0xbb   : > { %v618_v62 = vmul.f32 %v440_v60, %v2299_v18  ;;  %v617_v63 = vmul.f32 %v436_v61, %v2283_v16  ;;  %v2484_v60 = vrot.slane %v2386_v32, %v526_v5 }
  0xbc   : > { %v711_v0 = vadd.f32 %v710_v57, %v709_v59  ;;  %1111 = vbcast.lane.b32.xlu1 %v2451_v56, 256 }
  0xbd   : > { %v714_v1 = vsel %vm655_vm1, %v618_v62, 0.0  ;;  %v712_v3 = vsel %vm655_vm1, %v617_v63, 0.0 }
  0xbe   : > { %v713_v26 = vadd.f32 %v712_v3, %v711_v0  ;;  %v448_v9 = vpop.permute.xlu1 %447  ;;  %v444_v6 = vpop.permute.xlu0 %443 }
  0xbf   : > { %v620_v11 = vmul.f32 %v448_v9, %v2326_v23  ;;  %v619_v12 = vmul.f32 %v444_v6, %v2319_v22 }
  0xc0   : > { %v715_v27 = vadd.f32 %v714_v1, %v713_v26  ;;  %1115 = vbcast.lane.b32.xlu1 %v2451_v56, 264 }
  0xc1   : > { %v718_v47 = vsel %vm655_vm1, %v620_v11, 0.0  ;;  %v716_v48 = vsel %vm655_vm1, %v619_v12, 0.0 }
  0xc2   : > { %v717_v49 = vadd.f32 %v716_v48, %v715_v27  ;;  %v2470_v50 = vpop.permute.xlu1 %455  ;;  %v452_v51 = vpop.permute.xlu0 %451 }
  0xc3   : > { %v621_v52 = vmul.f32 %v452_v51, %v2331_v24 }
  0xc4   : > { %v719_v53 = vadd.f32 %v718_v47, %v717_v49  ;;  %1178 = vbcast.lane.b32.xlu1 %v2466_v46, 256 }
  0xc5   : > { %v720_v54 = vsel %vm655_vm1, %v621_v52, 0.0  ;;  %1076 = vbcast.lane.b32.xlu0 %v2397_v35, 320 }
  0xc6   : > { %v2476_v55 = vadd.f32 %v720_v54, %v719_v53  ;;  %v467_v4 = vpop.permute.xlu1 %466  ;;  %v463_v57 = vpop.permute.xlu0 %462 }
  0xc7   : > { %v624_v58 = vmul.f32 %v467_v4, %v2251_v8  ;;  %v623_v59 = vmul.f32 %v463_v57, %v2248_v7 }
  0xc8   : > { %1182 = vbcast.lane.b32.xlu1 %v2466_v46, 264 }
  0xc9   : > { %v731_v61 = vsel %vm655_vm1, %v624_v58, 0.0  ;;  %v730_v62 = vsel %vm655_vm1, %v623_v59, 0.0  ;;  %1119 = vbcast.lane.b32.xlu0 %v2451_v56, 272 }
  0xca   : > { %v475_v63 = vpop.permute.xlu1 %474  ;;  %v471_v0 = vpop.permute.xlu0 %470  ;;  %v732_v26 = vadd.f32 %v731_v61, %v730_v62 }
  0xcb   : > { %v626_v1 = vmul.f32 %v475_v63, %v2274_v13  ;;  %v625_v3 = vmul.f32 %v471_v0, %v2259_v10 }
  0xcc   : > { %1245 = vbcast.lane.b32.xlu1 %v2484_v60, 256 }
  0xcd   : > { %v735_v2 = vsel %vm655_vm1, %v626_v1, 0.0  ;;  %v733_v5 = vsel %vm655_vm1, %v625_v3, 0.0  ;;  %1249 = vbcast.lane.b32.xlu0 %v2484_v60, 264 }
  0xce   : > { %v734_v32 = vadd.f32 %v733_v5, %v732_v26  ;;  %v483_v9 = vpop.permute.xlu1 %482  ;;  %v479_v6 = vpop.permute.xlu0 %478 }
  0xcf   : > { %v628_v11 = vmul.f32 %v483_v9, %v2302_v19  ;;  %v627_v12 = vmul.f32 %v479_v6, %v2290_v17 }
  0xd0   : > { %v736_v27 = vadd.f32 %v735_v2, %v734_v32  ;;  %1186 = vbcast.lane.b32.xlu1 %v2466_v46, 272 }
  0xd1   : > { %v739_v47 = vsel %vm655_vm1, %v628_v11, 0.0  ;;  %v737_v48 = vsel %vm655_vm1, %v627_v12, 0.0  ;;  %1123 = vbcast.lane.b32.xlu0 %v2451_v56, 280 }
  0xd2   : > { %v738_v49 = vadd.f32 %v737_v48, %v736_v27  ;;  %v491_v51 = vpop.permute.xlu1 %490  ;;  %v487_v52 = vpop.permute.xlu0 %486 }
  0xd3   : > { %v630_v53 = vmul.f32 %v491_v51, %v2314_v21  ;;  %v629_v54 = vmul.f32 %v487_v52, %v2307_v20 }
  0xd4   : > { %v740_v4 = vadd.f32 %v739_v47, %v738_v49  ;;  %1253 = vbcast.lane.b32.xlu1 %v2484_v60, 272 }
  0xd5   : > { %v743_v57 = vsel %vm655_vm1, %v630_v53, 0.0  ;;  %v741_v58 = vsel %vm655_vm1, %v629_v54, 0.0  ;;  %1190 = vbcast.lane.b32.xlu0 %v2466_v46, 280 }
  0xd6   : > { %v742_v59 = vadd.f32 %v741_v58, %v740_v4  ;;  %v499_v61 = vpop.permute.xlu1 %498  ;;  %v495_v62 = vpop.permute.xlu0 %494 }
  0xd7   : > { %v632_v63 = vmul.f32 %v499_v61, %v2280_v15  ;;  %v631_v0 = vmul.f32 %v495_v62, %v2277_v14  ;;  %v592_v61 = vmul.f32 %v2378_v31, %v2251_v8  ;;  %v593_v31 = vmul.f32 %v2370_v28, %v2259_v10 }
  0xd8   : > { %v744_v1 = vadd.f32 %v743_v57, %v742_v59  ;;  %1127 = vbcast.lane.b32.xlu1 %v2451_v56, 288 }
  0xd9   : > { %v747_v3 = vsel %vm655_vm1, %v632_v63, 0.0  ;;  %v745_v26 = vsel %vm655_vm1, %v631_v0, 0.0  ;;  %1257 = vbcast.lane.b32.xlu0 %v2484_v60, 280 }
  0xda   : > { %v746_v2 = vadd.f32 %v745_v26, %v744_v1  ;;  %v507_v5 = vpop.permute.xlu1 %506  ;;  %v503_v32 = vpop.permute.xlu0 %502  ;;  %v591_v1 = vmul.f32 %v2372_v29, %v2248_v7 }
  0xdb   : > { %v634_v9 = vmul.f32 %v507_v5, %v2299_v18  ;;  %v633_v6 = vmul.f32 %v503_v32, %v2283_v16 }
  0xdc   : > { %v748_v11 = vadd.f32 %v747_v3, %v746_v2  ;;  %1194 = vbcast.lane.b32.xlu1 %v2466_v46, 288 }
  0xdd   : > { %v751_v12 = vsel %vm655_vm1, %v634_v9, 0.0  ;;  %v749_v27 = vsel %vm655_vm1, %v633_v6, 0.0  ;;  %1131 = vbcast.lane.b32.xlu0 %v2451_v56, 296  ;;  %v657_v9 = vsel %vm655_vm1, %v592_v61, 0.0 }
  0xde   : > { %v750_v47 = vadd.f32 %v749_v27, %v748_v11  ;;  %v515_v48 = vpop.permute.xlu1 %514  ;;  %v511_v49 = vpop.permute.xlu0 %510 }
  0xdf   : > { %v636_v51 = vmul.f32 %v515_v48, %v2326_v23  ;;  %v635_v52 = vmul.f32 %v511_v49, %v2319_v22 }
  0xe0   : > { %v752_v53 = vadd.f32 %v751_v12, %v750_v47  ;;  %1261 = vbcast.lane.b32.xlu1 %v2484_v60, 288  ;;  %v656_v12 = vsel %vm655_vm1, %v591_v1, 0.0 }
  0xe1   : > { %v755_v54 = vsel %vm655_vm1, %v636_v51, 0.0  ;;  %v753_v4 = vsel %vm655_vm1, %v635_v52, 0.0  ;;  %1198 = vbcast.lane.b32.xlu0 %v2466_v46, 296  ;;  %v658_v28 = vadd.f32 %v657_v9, %v656_v12  ;;  %v659_v52 = vsel %vm655_vm1, %v593_v31, 0.0 }
  0xe2   : > { %v754_v57 = vadd.f32 %v753_v4, %v752_v53  ;;  %v523_v58 = vpop.permute.xlu1 %522  ;;  %v519_v59 = vpop.permute.xlu0 %518  ;;  %v594_v53 = vmul.f32 %v2376_v30, %v2274_v13  ;;  %v596_v9 = vmul.f32 %v2388_v33, %v2302_v19 }
  0xe3   : > { %v638_v62 = vmul.f32 %v523_v58, %v2336_v25  ;;  %v637_v63 = vmul.f32 %v519_v59, %v2331_v24  ;;  %v660_v61 = vadd.f32 %v659_v52, %v658_v28 }
  0xe4   : > { %v756_v0 = vadd.f32 %v755_v54, %v754_v57  ;;  %1135 = vbcast.lane.b32.xlu1 %v2451_v56, 304 }
  0xe5   : > { %v759_v3 = vsel %vm655_vm1, %v638_v62, 0.0  ;;  %v757_v26 = vsel %vm655_vm1, %v637_v63, 0.0  ;;  %1265 = vbcast.lane.b32.xlu0 %v2484_v60, 296 }
  0xe6   : > { %v758_v2 = vadd.f32 %v757_v26, %v756_v0  ;;  %v534_v5 = vpop.permute.xlu1 %533  ;;  %v530_v32 = vpop.permute.xlu0 %529 }
  0xe7   : > { %v2538_v6 = vpop.f32.mrb[0].mxu0  ;;  %v640_v27 = vmul.f32 %v534_v5, %v2251_v8  ;;  %v639_v47 = vmul.f32 %v530_v32, %v2248_v7  ;;  %v595_v5 = vmul.f32 %v2390_v34, %v2290_v17 }
  0xe8   : > { %v2540_v11 = vadd.f32 %v759_v3, %v758_v2  ;;  %1202 = vbcast.lane.b32.xlu1 %v2466_v46, 304  ;;  %v2543_v29 = vpop.f32.mrb[1].mxu0 }
  0xe9   : > { %1139 = vbcast.lane.b32.xlu0 %v2451_v56, 312  ;;  %v2549_v48 = vpop.f32.mrb[0].mxu1  ;;  %v768_v8 = vsel %vm655_vm1, %v640_v27, 0.0  ;;  %v767_v58 = vsel %vm655_vm1, %v639_v47, 0.0  ;;  %v663_v34 = vsel %vm655_vm1, %v595_v5, 0.0 }
  0xea   : > { %v542_v49 = vpop.permute.xlu1 %541  ;;  %v538_v51 = vpop.permute.xlu0 %537  ;;  %v769_v3 = vadd.f32 %v768_v8, %v767_v58  ;;  %v597_v8 = vmul.f32 %v2401_v37, %v2307_v20 }
  0xeb   : > { %v641_v54 = vmul.f32 %v538_v51, %v2259_v10  ;;  %v2555_v4 = vpop.f32.mrb[2].mxu0  ;;  %v2557_v57 = vpop.f32.mrb[1].mxu1  ;;  %v661_v10 = vsel %vm655_vm1, %v594_v53, 0.0  ;;  %v642_v62 = vmul.f32 %v542_v49, %v2274_v13  ;;  %v665_v53 = vsel %vm655_vm1, %v596_v9, 0.0 }
  0xec   : > { %1269 = vbcast.lane.b32.xlu1 %v2484_v60, 304  ;;  %v2560_v7 = vpop.f32.mrb[3].mxu0  ;;  %v662_v32 = vadd.f32 %v661_v10, %v660_v61  ;;  %v599_v9 = vmul.f32 %v2406_v39, %v2277_v14 }
  0xed   : > { %1206 = vbcast.lane.b32.xlu0 %v2466_v46, 312  ;;  %v2565_v59 = vpop.f32.mrb[2].mxu1  ;;  %v770_v63 = vsel %vm655_vm1, %v641_v54, 0.0  ;;  %v772_v12 = vsel %vm655_vm1, %v642_v62, 0.0  ;;  %v598_v62 = vmul.f32 %v2399_v36, %v2314_v21 }
  0xee   : > { %v550_v30 = vpop.permute.xlu1 %549  ;;  %v2570_v0 = vpop.f32.mrb[4].mxu0  ;;  %v771_v31 = vadd.f32 %v770_v63, %v769_v3  ;;  %v664_v49 = vadd.f32 %v663_v34, %v662_v32 }
  0xef   : > { %v2572_v1 = vpop.f32.mrb[3].mxu1  ;;  %v546_v26 = vpop.permute.xlu0 %545  ;;  %v644_v33 = vmul.f32 %v550_v30, %v2302_v19  ;;  %v667_v30 = vsel %vm655_vm1, %v597_v8, 0.0  ;;  %v669_v5 = vsel %vm655_vm1, %v598_v62, 0.0  ;;  %v602_v62 = vmul.f32 %v2409_v40, %v2299_v18 }
  0xf0   : > { %1143 = vbcast.lane.b32.xlu1 %v2451_v56, 320  ;;  %v2575_v2 = vpop.f32.mrb[5].mxu0  ;;  %v643_v27 = vmul.f32 %v546_v26, %v2290_v17  ;;  %v773_v51 = vadd.f32 %v772_v12, %v771_v31  ;;  %v666_v58 = vadd.f32 %v665_v53, %v664_v49  ;;  %v671_v53 = vsel %vm655_vm1, %v599_v9, 0.0 }
  0xf1   : > { %1273 = vbcast.lane.b32.xlu0 %v2484_v60, 312  ;;  %v776_v63 = vsel %vm655_vm1, %v644_v33, 0.0 }
  0xf2   : > { %v558_v13 = vpop.permute.xlu1 %557  ;;  %v2584_v47 = vpop.f32.mrb[6].mxu0  ;;  %v774_v54 = vsel %vm655_vm1, %v643_v27, 0.0  ;;  %v668_v37 = vadd.f32 %v667_v30, %v666_v58 }
  0xf3   : > { %v2587_v28 = vpop.f32.mrb[7].mxu0  ;;  %v554_v17 = vpop.permute.xlu0 %553  ;;  %v775_v61 = vadd.f32 %v774_v54, %v773_v51  ;;  %v646_v32 = vmul.f32 %v558_v13, %v2314_v21  ;;  %v600_v21 = vmul.f32 %v2404_v38, %v2280_v15 }
  0xf4   : > { %1210 = vbcast.lane.b32.xlu1 %v2466_v46, 320  ;;  %v645_v19 = vmul.f32 %v554_v17, %v2307_v20  ;;  %v2613_v20 = vpop.f32.mrb[4].mxu1  ;;  %v670_v27 = vadd.f32 %v669_v5, %v668_v37 }
  0xf5   : > { %1147 = vbcast.lane.b32.xlu0 %v2451_v56, 328  ;;  %v777_v3 = vadd.f32 %v776_v63, %v775_v61  ;;  %v2618_v12 = vpop.f32.mrb[5].mxu1  ;;  %v780_v13 = vsel %vm655_vm1, %v646_v32, 0.0  ;;  %v673_v8 = vsel %vm655_vm1, %v600_v21, 0.0 }
  0xf6   : > { %v566_v52 = vpop.permute.xlu1 %565  ;;  %v778_v36 = vsel %vm655_vm1, %v645_v19, 0.0  ;;  %v672_v39 = vadd.f32 %v671_v53, %v670_v27 }
  0xf7   : > { %v562_v31 = vpop.permute.xlu0 %561  ;;  %v779_v34 = vadd.f32 %v778_v36, %v777_v3  ;;  %v648_v33 = vmul.f32 %v566_v52, %v2280_v15  ;;  %v601_v15 = vmul.f32 %v2411_v41, %v2283_v16  ;;  %v677_v41 = vsel %vm655_vm1, %v602_v62, 0.0 }
  0xf8   : > { %1277 = vbcast.lane.b32.xlu1 %v2484_v60, 320  ;;  %v647_v51 = vmul.f32 %v562_v31, %v2277_v14  ;;  %v674_v52 = vadd.f32 %v673_v8, %v672_v39 }
  0xf9   : > { %1214 = vbcast.lane.b32.xlu0 %v2466_v46, 328  ;;  %v781_v54 = vadd.f32 %v780_v13, %v779_v34  ;;  %v784_v63 = vsel %vm655_vm1, %v648_v33, 0.0 }
  0xfa   : > { %v2598_v10 = vpop.permute.xlu1 %573  ;;  %v782_v58 = vsel %vm655_vm1, %v647_v51, 0.0 }
  0xfb   : > { %v570_v38 = vpop.permute.xlu0 %569  ;;  %v783_v19 = vadd.f32 %v782_v58, %v781_v54  ;;  %v650_v51 = vmul.f32 %v2598_v10, %v2299_v18  ;;  %v603_v18 = vmul.f32 %v2416_v43, %v2319_v22 }
  0xfc   : > { %1151 = vbcast.lane.b32.xlu1 %v2451_v56, 336  ;;  %v649_v37 = vmul.f32 %v570_v38, %v2283_v16  ;;  %v675_v16 = vsel %vm655_vm1, %v601_v15, 0.0 }
  0xfd   : > { %1281 = vbcast.lane.b32.xlu0 %v2484_v60, 328  ;;  %v785_v9 = vadd.f32 %v784_v63, %v783_v19  ;;  %v676_v13 = vadd.f32 %v675_v16, %v674_v52  ;;  %v788_v52 = vsel %vm655_vm1, %v650_v51, 0.0  ;;  %v604_v19 = vmul.f32 %v2414_v42, %v2326_v23 }
  0xfe   : > { %v2607_v26 = vpop.permute.xlu1 %581  ;;  %v786_v53 = vsel %vm655_vm1, %v649_v37, 0.0 }
  0xff   : > { %v578_v39 = vpop.permute.xlu0 %577  ;;  %v787_v10 = vadd.f32 %v786_v53, %v785_v9  ;;  %v678_v15 = vadd.f32 %v677_v41, %v676_v13  ;;  %v652_v42 = vmul.f32 %v2607_v26, %v2326_v23  ;;  %v681_v16 = vsel %vm655_vm1, %v604_v19, 0.0 }
 0x100   : > { %1218 = vbcast.lane.b32.xlu1 %v2466_v46, 336  ;;  %v651_v63 = vmul.f32 %v578_v39, %v2319_v22  ;;  %v605_v23 = vmul.f32 %v2421_v45, %v2331_v24  ;;  %v622_v45 = vmul.f32 %v2470_v50, %v2336_v25 }
 0x101   : > { %1088 = vbcast.lane.b32.xlu0 %v2397_v35, 344 }
 0x102   : > { %v2620_v49 = vpop.permute.xlu1 %589 }
 0x103   : > { %v586_v9 = vpop.permute.xlu0 %585  ;;  %v654_v19 = vmul.f32 %v2620_v49, %v2336_v25 }
 0x104   : > { %1155 = vbcast.lane.b32.xlu1 %v2451_v56, 344 }
 0x105   : > { %1285 = vbcast.lane.b32.xlu0 %v2484_v60, 336 }
 0x106   : > { %v1045_v17 = vpop.permute.xlu1 %1044 }
 0x107   : > { %vm1307_vm3 = vcmp.gt.f32.partialorder %v1045_v17, 0.0  ;;  %v2658_v17 = vpop.f32.mrb[6].mxu1 }
 0x108   : > { %1222 = vbcast.lane.b32.xlu1 %v2466_v46, 344  ;;  %v1499_v14 = vsel %vm1307_vm3, %v2543_v29, 1e+30  ;;  %v1722_v61 = vsel %vm1307_vm3, %v2543_v29, -1e+30  ;;  %v2663_v38 = vpop.f32.mrb[7].mxu1 }
 0x109   : > { %1092 = vbcast.lane.b32.xlu0 %v2397_v35, 352  ;;  %v1564_v3 = vsel %vm1563_vm4, %v1499_v14, inf  ;;  %v1786_v5 = vsel %vm1563_vm4, %v1722_v61, -inf }
 0x10a   : > { %v1049_v30 = vpop.permute.xlu1 %1048 }
 0x10b   : > { %vm1308_vm5 = vcmp.gt.f32.partialorder %v1049_v30, 0.0 }
 0x10c   : > { %1159 = vbcast.lane.b32.xlu1 %v2451_v56, 352  ;;  %v1500_v40 = vsel %vm1308_vm5, %v2538_v6, 1e+30  ;;  %v1723_v32 = vsel %vm1308_vm5, %v2538_v6, -1e+30 }
 0x10d   : > { %1289 = vbcast.lane.b32.xlu0 %v2484_v60, 344  ;;  %v1565_v36 = vsel %vm1563_vm4, %v1500_v40, inf  ;;  %v1787_v31 = vsel %vm1563_vm4, %v1723_v32, -inf  ;;  %v789_v40 = vadd.f32 %v788_v52, %v787_v10 }
 0x10e   : > { %v1053_v27 = vpop.permute.xlu1 %1052  ;;  %v1566_v34 = vmin.f32 %v1564_v3, %v1565_v36  ;;  %v1788_v21 = vmax.f32 %v1786_v5, %v1787_v31  ;;  %v679_v5 = vsel %vm655_vm1, %v603_v18, 0.0  ;;  %v790_v31 = vsel %vm655_vm1, %v651_v63, 0.0 }
 0x10f   : > { %vm1309_vm6 = vcmp.gt.f32.partialorder %v1053_v27, 0.0  ;;  %v680_v36 = vadd.f32 %v679_v5, %v678_v15  ;;  %v791_v26 = vadd.f32 %v790_v31, %v789_v40 }
 0x110   : > { %1226 = vbcast.lane.b32.xlu1 %v2466_v46, 352  ;;  %v1501_v33 = vsel %vm1309_vm6, %v2560_v7, 1e+30  ;;  %v1724_v54 = vsel %vm1309_vm6, %v2560_v7, -1e+30 }
 0x111   : > { %v1567_v8 = vsel %vm1563_vm4, %v1501_v33, inf  ;;  %v1789_v58 = vsel %vm1563_vm4, %v1724_v54, -inf  ;;  %1096 = vbcast.lane.b32.xlu0 %v2397_v35, 360  ;;  %v682_v33 = vadd.f32 %v681_v16, %v680_v36  ;;  %v792_v54 = vsel %vm655_vm1, %v652_v42, 0.0 }
 0x112   : > { %v1057_v14 = vpop.permute.xlu1 %1056  ;;  %v1568_v61 = vmin.f32 %v1566_v34, %v1567_v8  ;;  %v1790_v62 = vmax.f32 %v1788_v21, %v1789_v58  ;;  %v653_v8 = vmul.f32 %v586_v9, %v2331_v24  ;;  %v606_v58 = vmul.f32 %v2419_v44, %v2336_v25 }
 0x113   : > { %vm1310_vm7 = vcmp.gt.f32.partialorder %v1057_v14, 0.0  ;;  %v683_v24 = vsel %vm655_vm1, %v605_v23, 0.0  ;;  %v796_v36 = vsel %vm655_vm1, %v654_v19, 0.0 }
 0x114   : > { %v1502_v30 = vsel %vm1310_vm7, %v2555_v4, 1e+30  ;;  %v1725_v37 = vsel %vm1310_vm7, %v2555_v4, -1e+30  ;;  %1163 = vbcast.lane.b32.xlu1 %v2451_v56, 360  ;;  %v684_v63 = vadd.f32 %v683_v24, %v682_v33  ;;  %v685_v50 = vsel %vm655_vm1, %v606_v58, 0.0 }
 0x115   : > { %v1569_v43 = vsel %vm1563_vm4, %v1502_v30, inf  ;;  %v1791_v3 = vsel %vm1563_vm4, %v1725_v37, -inf  ;;  %1293 = vbcast.lane.b32.xlu0 %v2484_v60, 352  ;;  %v794_v30 = vsel %vm655_vm1, %v653_v8, 0.0 }
 0x116   : > { %v1061_v22 = vpop.permute.xlu1 %1060  ;;  %v1570_v32 = vmin.f32 %v1568_v61, %v1569_v43  ;;  %v1792_v41 = vmax.f32 %v1790_v62, %v1791_v3  ;;  %v793_v62 = vadd.f32 %v792_v54, %v791_v26  ;;  %v722_v3 = vsel %vm655_vm1, %v622_v45, 0.0 }
 0x117   : > { %vm1311_vm8 = vcmp.gt.f32.partialorder %v1061_v22, 0.0  ;;  %v723_v42 = vadd.f32 %v722_v3, %v2476_v55 }
 0x118   : > { %1230 = vbcast.lane.b32.xlu1 %v2466_v46, 360  ;;  %v1503_v27 = vsel %vm1311_vm8, %v2575_v2, 1e+30  ;;  %v1726_v34 = vsel %vm1311_vm8, %v2575_v2, -1e+30  ;;  %v795_v25 = vadd.f32 %v794_v30, %v793_v62 }
 0x119   : > { %v1571_v21 = vsel %vm1563_vm4, %v1503_v27, inf  ;;  %v1793_v13 = vsel %vm1563_vm4, %v1726_v34, -inf  ;;  %1100 = vbcast.lane.b32.xlu0 %v2397_v35, 368  ;;  %v724_v23 = vrot.slane %v723_v42, 4 }
 0x11a   : > { %v1065_v51 = vpop.permute.xlu1 %1064  ;;  %v1572_v53 = vmin.f32 %v1570_v32, %v1571_v21  ;;  %v1794_v39 = vmax.f32 %v1792_v41, %v1793_v13  ;;  %v686_v41 = vadd.f32 %v685_v50, %v684_v63  ;;  %v797_v27 = vadd.f32 %v796_v36, %v795_v25 }
 0x11b   : > { %vm1312_vm9 = vcmp.gt.f32.partialorder %v1065_v51, 0.0  ;;  %v761_v51 = vrot.slane %v2540_v11, 4  ;;  %v725_v54 = vadd.f32 %v724_v23, %v723_v42 }
 0x11c   : > { %v1504_v18 = vsel %vm1312_vm9, %v2570_v0, 1e+30  ;;  %v1727_v10 = vsel %vm1312_vm9, %v2570_v0, -1e+30  ;;  %1167 = vbcast.lane.b32.xlu1 %v2451_v56, 368  ;;  %v687_v13 = vrot.slane %v686_v41, 4 }
 0x11d   : > { %v1573_v14 = vsel %vm1563_vm4, %v1504_v18, inf  ;;  %v1795_v61 = vsel %vm1563_vm4, %v1727_v10, -inf  ;;  %1297 = vbcast.lane.b32.xlu0 %v2484_v60, 360 }
 0x11e   : > { %v1574_v15 = vmin.f32 %v1572_v53, %v1573_v14  ;;  %v1796_v44 = vmax.f32 %v1794_v39, %v1795_v61  ;;  %v1069_v52 = vpop.permute.xlu1 %1068  ;;  %v798_v53 = vrot.slane %v797_v27, 4  ;;  %v688_v33 = vadd.f32 %v687_v13, %v686_v41 }
 0x11f   : > { %vm1313_vm10 = vcmp.gt.f32.partialorder %v1069_v52, 0.0  ;;  %v726_v14 = vrot.slane %v725_v54, 2 }
 0x120   : > { %1234 = vbcast.lane.b32.xlu1 %v2466_v46, 368  ;;  %v1505_v37 = vsel %vm1313_vm10, %v2587_v28, 1e+30  ;;  %v1728_v43 = vsel %vm1313_vm10, %v2587_v28, -1e+30  ;;  %v799_v18 = vadd.f32 %v798_v53, %v797_v27  ;;  %v689_v45 = vrot.slane %v688_v33, 2 }
 0x121   : > { %v1575_v5 = vsel %vm1563_vm4, %v1505_v37, inf  ;;  %v1797_v40 = vsel %vm1563_vm4, %v1728_v43, -inf  ;;  %1104 = vbcast.lane.b32.xlu0 %v2397_v35, 376  ;;  %v727_v63 = vadd.f32 %v726_v14, %v725_v54 }
 0x122   : > { %v1073_v49 = vpop.permute.xlu1 %1072  ;;  %v2714_v22 = vmin.f32 %v1574_v15, %v1575_v5  ;;  %v2716_v32 = vmax.f32 %v1796_v44, %v1797_v40  ;;  %v800_v62 = vrot.slane %v799_v18, 2 }
 0x123   : > { %vm1314_vm11 = vcmp.gt.f32.partialorder %v1073_v49, 0.0  ;;  %v728_v41 = vrot.slane %v727_v63, 1 }
 0x124   : > { %v1506_v31 = vsel %vm1314_vm11, %v2584_v47, 1e+30  ;;  %v1729_v16 = vsel %vm1314_vm11, %v2584_v47, -1e+30  ;;  %1171 = vbcast.lane.b32.xlu1 %v2451_v56, 376  ;;  %v801_v3 = vadd.f32 %v800_v62, %v799_v18  ;;  %vm830_vm11 = vcmask 1041409  }
 0x125   : > { %v2724_v35 = vsel %vm1563_vm4, %v1506_v31, inf  ;;  %v2727_v9 = vsel %vm1563_vm4, %v1729_v16, -inf  ;;  %1301 = vbcast.lane.b32.xlu0 %v2484_v60, 368 }
 0x126   : > { %v1578_v34 = vmin.f32 %v2714_v22, %v2724_v35  ;;  %v1800_v55 = vmax.f32 %v2716_v32, %v2727_v9  ;;  %v1081_v21 = vpop.permute.xlu1 %1080  ;;  %v802_v16 = vrot.slane %v801_v3, 1 }
 0x127   : > { %vm1316_vm12 = vcmp.gt.f32.partialorder %v1081_v21, 0.0 }
 0x128   : > { %1238 = vbcast.lane.b32.xlu1 %v2466_v46, 376  ;;  %v1508_v56 = vsel %vm1316_vm12, %v2549_v48, 1e+30  ;;  %v2737_v26 = vsel %vm1316_vm12, %v2549_v48, -1e+30  ;;  %v762_v46 = vadd.f32 %v761_v51, %v2540_v11  ;;  %v690_v11 = vadd.f32 %v689_v45, %v688_v33 }
 0x129   : > { %1305 = vbcast.lane.b32.xlu0 %v2484_v60, 376  ;;  %v2770_v51 = vadd.f32 %v728_v41, %v727_v63  ;;  %v2778_v45 = vadd.f32 %v802_v16, %v801_v3 }
 0x12a   : > { %v1085_v39 = vpop.permute.xlu1 %1084  ;;  %v763_v24 = vrot.slane %v762_v46, 2  ;;  %v691_v49 = vrot.slane %v690_v11, 1 }
 0x12b   : > { %vm1317_vm13 = vcmp.gt.f32.partialorder %v1085_v39, 0.0 }
 0x12c   : > { %v1509_v8 = vsel %vm1317_vm13, %v2572_v1, 1e+30  ;;  %v1732_v58 = vsel %vm1317_vm13, %v2572_v1, -1e+30  ;;  %v764_v50 = vadd.f32 %v763_v24, %v762_v46  ;;  %v2768_v23 = vadd.f32 %v691_v49, %v690_v11 }
 0x12d   : > { %v1581_v24 = vsel %vm1563_vm4, %v1508_v56, inf  ;;  %vm833_vm13 = vcmask 1042434  }
 0x12e   : > { %v1112_v10 = vpop.permute.xlu1 %1111  ;;  %v765_v31 = vrot.slane %v764_v50, 1 }
 0x12f   : > { %vm1323_vm14 = vcmp.gt.f32.partialorder %v1112_v10, 0.0 }
 0x130   : > { %v1515_v61 = vsel %vm1323_vm14, %v2543_v29, 1e+30  ;;  %v1738_v60 = vsel %vm1323_vm14, %v2543_v29, -1e+30  ;;  %v2774_v54 = vadd.f32 %v765_v31, %v764_v50  ;;  %v1805_v50 = vsel %vm1563_vm4, %v1732_v58, -inf }
 0x131   : > { %v2747_v44 = vsel %vm1563_vm4, %v1515_v61, inf  ;;  %v2750_v52 = vsel %vm1563_vm4, %v1738_v60, -inf }
 0x132   : > { %v1116_v15 = vpop.permute.xlu1 %1115 }
 0x133   : > { %vm1324_vm15 = vcmp.gt.f32.partialorder %v1116_v15, 0.0 }
 0x134   : > { %v1516_v19 = vsel %vm1324_vm15, %v2538_v6, 1e+30  ;;  %v1739_v30 = vsel %vm1324_vm15, %v2538_v6, -1e+30  ;;  %vm836_vm15 = vcmask 1043459  }
 0x135   : > { %v2755_v37 = vsel %vm1563_vm4, %v1516_v19, inf  ;;  %v2758_v43 = vsel %vm1563_vm4, %v1739_v30, -inf  ;;  %v1803_v19 = vsel %vm1563_vm4, %v2737_v26, -inf  ;;  %v1583_v30 = vsel %vm1563_vm4, %v1509_v8, inf }
 0x136   : > { %v1603_v5 = vmin.f32 %v2747_v44, %v2755_v37  ;;  %v1825_v40 = vmax.f32 %v2750_v52, %v2758_v43  ;;  %v1179_v25 = vpop.permute.xlu1 %1178 }
 0x137   : > { %vm1339_vm0 = vcmp.gt.f32.partialorder %v1179_v25, 0.0 }
 0x138   : > { %v1531_v36 = vsel %vm1339_vm0, %v2543_v29, 1e+30  ;;  %v1754_v42 = vsel %vm1339_vm0, %v2543_v29, -1e+30 }
 0x139   : > { %v1638_v21 = vsel %vm1563_vm4, %v1531_v36, inf  ;;  %v1860_v13 = vsel %vm1563_vm4, %v1754_v42, -inf }
 0x13a   : > { %v1183_v27 = vpop.permute.xlu1 %1182 }
 0x13b   : > { %vm1340_vm1 = vcmp.gt.f32.partialorder %v1183_v27, 0.0 }
 0x13c   : > { %v1532_v53 = vsel %vm1340_vm1, %v2538_v6, 1e+30  ;;  %v1755_v39 = vsel %vm1340_vm1, %v2538_v6, -1e+30  ;;  %v807_v33 = vpop.xlane.xlu0 %806  ;;  %vm839_vm1 = vcmask 19456  }
 0x13d   : > { %v1639_v46 = vsel %vm1563_vm4, %v1532_v53, inf  ;;  %v1861_v18 = vsel %vm1563_vm4, %v1755_v39, -inf  ;;  %v808_v10 = vadd.f32 1e-08, %v807_v33 }
 0x13e   : > { %v1640_v14 = vmin.f32 %v1638_v21, %v1639_v46  ;;  %v1862_v61 = vmax.f32 %v1860_v13, %v1861_v18  ;;  %v1246_v60 = vpop.permute.xlu1 %1245 }
 0x13f   : > { %v810_v62 = vrot.slane %v808_v10, 1  ;;  %v811_v15 = vrot.slane %v808_v10, 2  ;;  %v812_v11 = vrot.slane %v808_v10, 3  ;;  %2167 = vrcp.f32 %v808_v10 }
 0x140   : > { %vm1355_vm2 = vcmp.gt.f32.partialorder %v1246_v60, 0.0  ;;  %v1077_v63 = vpop.permute.xlu0 %1076 }
 0x141   : > { %2169 = vrcp.f32 %v810_v62  ;;  %v1547_v3 = vsel %vm1355_vm2, %v2543_v29, 1e+30  ;;  %v1770_v25 = vsel %vm1355_vm2, %v2543_v29, -1e+30  ;;  %vm1315_vm3 = vcmp.gt.f32.partialorder %v1077_v63, 0.0 }
 0x142   : > { %2171 = vrcp.f32 %v811_v15  ;;  %v2788_v56 = vsel %vm1563_vm4, %v1547_v3, inf  ;;  %v2791_v49 = vsel %vm1563_vm4, %v1770_v25, -inf  ;;  %v1507_v41 = vsel %vm1315_vm3, %v2557_v57, 1e+30  ;;  %v1187_v26 = vpop.permute.xlu1 %1186 }
 0x143   : > { %2173 = vrcp.f32 %v812_v11  ;;  %v1579_v8 = vsel %vm1563_vm4, %v1507_v41, inf  ;;  %v1730_v58 = vsel %vm1315_vm3, %v2557_v57, -1e+30  ;;  %vm1341_vm5 = vcmp.gt.f32.partialorder %v1187_v26, 0.0 }
 0x144   : > { %v1580_v29 = vmin.f32 %v1578_v34, %v1579_v8  ;;  %v1801_v36 = vsel %vm1563_vm4, %v1730_v58, -inf  ;;  %v1533_v42 = vsel %vm1341_vm5, %v2560_v7, 1e+30  ;;  %v1756_v31 = vsel %vm1341_vm5, %v2560_v7, -1e+30  ;;  %v1120_v16 = vpop.permute.xlu0 %1119 }
 0x145   : > { %v1802_v27 = vmax.f32 %v1800_v55, %v1801_v36  ;;  %v1641_v21 = vsel %vm1563_vm4, %v1533_v42, inf  ;;  %v1863_v13 = vsel %vm1563_vm4, %v1756_v31, -inf  ;;  %vm1325_vm6 = vcmp.gt.f32.partialorder %v1120_v16, 0.0 }
 0x146   : > { %v1582_v53 = vmin.f32 %v1580_v29, %v1581_v24  ;;  %v2807_v39 = vmin.f32 %v1640_v14, %v1641_v21  ;;  %v2809_v22 = vmax.f32 %v1862_v61, %v1863_v13  ;;  %v1517_v35 = vsel %vm1325_vm6, %v2560_v7, 1e+30  ;;  %v1254_v34 = vpop.permute.xlu1 %1253 }
 0x147   : > { %v1804_v33 = vmax.f32 %v1802_v27, %v1803_v19  ;;  %v1604_v46 = vsel %vm1563_vm4, %v1517_v35, inf  ;;  %v1740_v18 = vsel %vm1325_vm6, %v2560_v7, -1e+30  ;;  %vm1357_vm7 = vcmp.gt.f32.partialorder %v1254_v34, 0.0 }
 0x148   : > { %v2817_v32 = vmin.f32 %v1603_v5, %v1604_v46  ;;  %v1826_v9 = vsel %vm1563_vm4, %v1740_v18, -inf  ;;  %v1549_v55 = vsel %vm1357_vm7, %v2560_v7, 1e+30  ;;  %v1772_v10 = vsel %vm1357_vm7, %v2560_v7, -1e+30  ;;  %v1250_v14 = vpop.permute.xlu0 %1249 }
 0x149   : > { %v2168_v61 = vpop.eup %2167  ;;  %v2825_v60 = vmax.f32 %v1825_v40, %v1826_v9  ;;  %v1678_v24 = vsel %vm1563_vm4, %v1549_v55, inf  ;;  %v1900_v62 = vsel %vm1563_vm4, %v1772_v10, -inf  ;;  %vm1356_vm8 = vcmp.gt.f32.partialorder %v1250_v14, 0.0 }
 0x14a   : > { %v2830_v44 = vmul.f32 %v2168_v61, %v2768_v23  ;;  %v1548_v37 = vsel %vm1356_vm8, %v2538_v6, 1e+30  ;;  %v1771_v5 = vsel %vm1356_vm8, %v2538_v6, -1e+30  ;;  %v1128_v7 = vpop.permute.xlu1 %1127  ;;  %v2834_v15 = vmin.f32 %v1582_v53, %v1583_v30 }
 0x14b   : > { %v2170_v11 = vpop.eup %2169  ;;  %v1676_v52 = vsel %vm1563_vm4, %v1548_v37, inf  ;;  %v1898_v43 = vsel %vm1563_vm4, %v1771_v5, -inf  ;;  %vm1327_vm9 = vcmp.gt.f32.partialorder %v1128_v7, 0.0  ;;  %v2838_v40 = vmax.f32 %v1804_v33, %v1805_v50 }
 0x14c   : > { %v2172_v63 = vpop.eup %2171  ;;  %v2841_v19 = vmul.f32 %v2170_v11, %v2770_v51  ;;  %v1677_v23 = vmin.f32 %v2788_v56, %v1676_v52  ;;  %v1899_v3 = vmax.f32 %v2791_v49, %v1898_v43  ;;  %v1519_v6 = vsel %vm1327_vm9, %v2575_v2, 1e+30  ;;  %v1124_v30 = vpop.permute.xlu0 %1123 }
 0x14d   : > { %v2174_v25 = vpop.eup %2173  ;;  %v2847_v41 = vmul.f32 %v2172_v63, %v2774_v54  ;;  %v1608_v26 = vsel %vm1563_vm4, %v1519_v6, inf  ;;  %v1742_v50 = vsel %vm1327_vm9, %v2575_v2, -1e+30  ;;  %vm1326_vm10 = vcmp.gt.f32.partialorder %v1124_v30, 0.0 }
 0x14e   : > { %v2852_v8 = vmul.f32 %v2174_v25, %v2778_v45  ;;  %v829_v51 = vrot.slane %v2841_v19, 7  ;;  %v1830_v56 = vsel %vm1563_vm4, %v1742_v50, -inf  ;;  %v1518_v49 = vsel %vm1326_vm10, %v2555_v4, 1e+30  ;;  %v1195_v58 = vpop.permute.xlu1 %1194 }
 0x14f   : > { %v832_v29 = vrot.slane %v2847_v41, 6  ;;  %v1606_v54 = vsel %vm1563_vm4, %v1518_v49, inf  ;;  %v1741_v36 = vsel %vm1326_vm10, %v2555_v4, -1e+30  ;;  %vm1343_vm12 = vcmp.gt.f32.partialorder %v1195_v58, 0.0 }
 0x150   : > { %v835_v42 = vrot.slane %v2852_v8, 5  ;;  %v1607_v45 = vmin.f32 %v2817_v32, %v1606_v54  ;;  %v1828_v31 = vsel %vm1563_vm4, %v1741_v36, -inf  ;;  %v1535_v16 = vsel %vm1343_vm12, %v2575_v2, 1e+30  ;;  %v1191_v27 = vpop.permute.xlu0 %1190 }
 0x151   : > { %v1829_v21 = vmax.f32 %v2825_v60, %v1828_v31  ;;  %v1645_v13 = vsel %vm1563_vm4, %v1535_v16, inf  ;;  %v1758_v53 = vsel %vm1343_vm12, %v2575_v2, -1e+30  ;;  %vm1342_vm14 = vcmp.gt.f32.partialorder %v1191_v27, 0.0 }
 0x152   : > { %v1867_v35 = vsel %vm1563_vm4, %v1758_v53, -inf  ;;  %v1534_v34 = vsel %vm1342_vm14, %v2555_v4, 1e+30  ;;  %v1757_v33 = vsel %vm1342_vm14, %v2555_v4, -1e+30  ;;  %v1262_v46 = vpop.permute.xlu1 %1261  ;;  %v1679_v18 = vmin.f32 %v1677_v23, %v1678_v24 }
 0x153   : > { %v1643_v32 = vsel %vm1563_vm4, %v1534_v34, inf  ;;  %v1865_v9 = vsel %vm1563_vm4, %v1757_v33, -inf  ;;  %vm1359_vm0 = vcmp.gt.f32.partialorder %v1262_v46, 0.0  ;;  %v1901_v55 = vmax.f32 %v1899_v3, %v1900_v62 }
 0x154   : > { %v1644_v10 = vmin.f32 %v2807_v39, %v1643_v32  ;;  %v1866_v14 = vmax.f32 %v2809_v22, %v1865_v9  ;;  %v1551_v61 = vsel %vm1359_vm0, %v2575_v2, 1e+30  ;;  %v1774_v60 = vsel %vm1359_vm0, %v2575_v2, -1e+30  ;;  %v1258_v37 = vpop.permute.xlu0 %1257 }
 0x155   : > { %v1682_v5 = vsel %vm1563_vm4, %v1551_v61, inf  ;;  %v1904_v24 = vsel %vm1563_vm4, %v1774_v60, -inf  ;;  %vm1358_vm2 = vcmp.gt.f32.partialorder %v1258_v37, 0.0  ;;  %v1609_v7 = vmin.f32 %v1607_v45, %v1608_v26 }
 0x156   : > { %v1550_v11 = vsel %vm1358_vm2, %v2555_v4, 1e+30  ;;  %v1773_v62 = vsel %vm1358_vm2, %v2555_v4, -1e+30  ;;  %v1136_v52 = vpop.permute.xlu1 %1135  ;;  %v1831_v43 = vmax.f32 %v1829_v21, %v1830_v56  ;;  %v1646_v39 = vmin.f32 %v1644_v10, %v1645_v13 }
 0x157   : > { %v1680_v22 = vsel %vm1563_vm4, %v1550_v11, inf  ;;  %v1902_v63 = vsel %vm1563_vm4, %v1773_v62, -inf  ;;  %vm1329_vm3 = vcmp.gt.f32.partialorder %v1136_v52, 0.0  ;;  %v1868_v2 = vmax.f32 %v1866_v14, %v1867_v35 }
 0x158   : > { %v1681_v19 = vmin.f32 %v1679_v18, %v1680_v22  ;;  %v1903_v23 = vmax.f32 %v1901_v55, %v1902_v63  ;;  %v1521_v3 = vsel %vm1329_vm3, %v2587_v28, 1e+30  ;;  %v1744_v6 = vsel %vm1329_vm3, %v2587_v28, -1e+30  ;;  %v1132_v30 = vpop.permute.xlu0 %1131 }
 0x159   : > { %v1612_v25 = vsel %vm1563_vm4, %v1521_v3, inf  ;;  %v1834_v4 = vsel %vm1563_vm4, %v1744_v6, -inf  ;;  %vm1328_vm5 = vcmp.gt.f32.partialorder %v1132_v30, 0.0  ;;  %v831_v41 = vsel %vm830_vm11, %v829_v51, %v2830_v44 }
 0x15a   : > { %v1520_v26 = vsel %vm1328_vm5, %v2570_v0, 1e+30  ;;  %v1743_v50 = vsel %vm1328_vm5, %v2570_v0, -1e+30  ;;  %v1203_v56 = vpop.permute.xlu1 %1202  ;;  %v1683_v49 = vmin.f32 %v1681_v19, %v1682_v5  ;;  %v1905_v58 = vmax.f32 %v1903_v23, %v1904_v24 }
 0x15b   : > { %v1610_v54 = vsel %vm1563_vm4, %v1520_v26, inf  ;;  %v1832_v36 = vsel %vm1563_vm4, %v1743_v50, -inf  ;;  %vm1345_vm6 = vcmp.gt.f32.partialorder %v1203_v56, 0.0  ;;  %v834_v45 = vsel %vm833_vm13, %v832_v29, %v831_v41 }
 0x15c   : > { %v1611_v31 = vmin.f32 %v1609_v7, %v1610_v54  ;;  %v1833_v44 = vmax.f32 %v1831_v43, %v1832_v36  ;;  %v1537_v51 = vsel %vm1345_vm6, %v2587_v28, 1e+30  ;;  %v1760_v16 = vsel %vm1345_vm6, %v2587_v28, -1e+30  ;;  %v1199_v27 = vpop.permute.xlu0 %1198 }
 0x15d   : > { %v1649_v21 = vsel %vm1563_vm4, %v1537_v51, inf  ;;  %vm1344_vm7 = vcmp.gt.f32.partialorder %v1199_v27, 0.0  ;;  %v837_v13 = vsel %vm836_vm15, %v835_v42, %v834_v45  ;;  %v1871_v46 = vsel %vm1563_vm4, %v1760_v16, -inf }
 0x15e   : > { %v1536_v53 = vsel %vm1344_vm7, %v2570_v0, 1e+30  ;;  %v1759_v35 = vsel %vm1344_vm7, %v2570_v0, -1e+30  ;;  %v1270_v34 = vpop.permute.xlu1 %1269  ;;  %v1613_v29 = vmin.f32 %v1611_v31, %v1612_v25  ;;  %v1835_v33 = vmax.f32 %v1833_v44, %v1834_v4  ;;  %840 = vst.msk [vmem:[%s296_s14] sm:$0xf] %vm839_vm1, %v837_v13 }
 0x15f   : > { %v1647_v18 = vsel %vm1563_vm4, %v1536_v53, inf  ;;  %v1869_v32 = vsel %vm1563_vm4, %v1759_v35, -inf  ;;  %vm1361_vm8 = vcmp.gt.f32.partialorder %v1270_v34, 0.0 }
 0x160   : > { %v1648_v9 = vmin.f32 %v1646_v39, %v1647_v18  ;;  %v1870_v8 = vmax.f32 %v1868_v2, %v1869_v32  ;;  %v1553_v42 = vsel %vm1361_vm8, %v2587_v28, 1e+30  ;;  %v1776_v55 = vsel %vm1361_vm8, %v2587_v28, -1e+30  ;;  %v1266_v10 = vpop.permute.xlu0 %1265 }
 0x161   : > { %v1686_v14 = vsel %vm1563_vm4, %v1553_v42, inf  ;;  %vm1360_vm9 = vcmp.gt.f32.partialorder %v1266_v10, 0.0  ;;  %v1908_v7 = vsel %vm1563_vm4, %v1776_v55, -inf }
 0x162   : > { %v1552_v61 = vsel %vm1360_vm9, %v2570_v0, 1e+30  ;;  %v1775_v60 = vsel %vm1360_vm9, %v2570_v0, -1e+30  ;;  %v1144_v37 = vpop.permute.xlu1 %1143  ;;  %v1650_v5 = vmin.f32 %v1648_v9, %v1649_v21  ;;  %v1872_v24 = vmax.f32 %v1870_v8, %v1871_v46 }
 0x163   : > { %v1684_v11 = vsel %vm1563_vm4, %v1552_v61, inf  ;;  %v1906_v62 = vsel %vm1563_vm4, %v1775_v60, -inf  ;;  %vm1331_vm10 = vcmp.gt.f32.partialorder %v1144_v37, 0.0 }
 0x164   : > { %v1685_v52 = vmin.f32 %v1683_v49, %v1684_v11  ;;  %v1907_v28 = vmax.f32 %v1905_v58, %v1906_v62  ;;  %v1523_v43 = vsel %vm1331_vm10, %v2557_v57, 1e+30  ;;  %v1746_v39 = vsel %vm1331_vm10, %v2557_v57, -1e+30  ;;  %v1140_v22 = vpop.permute.xlu0 %1139 }
 0x165   : > { %v1616_v63 = vsel %vm1563_vm4, %v1523_v43, inf  ;;  %vm1330_vm12 = vcmp.gt.f32.partialorder %v1140_v22, 0.0  ;;  %v1838_v6 = vsel %vm1563_vm4, %v1746_v39, -inf }
 0x166   : > { %v1522_v0 = vsel %vm1330_vm12, %v2584_v47, 1e+30  ;;  %v1745_v2 = vsel %vm1330_vm12, %v2584_v47, -1e+30  ;;  %v1211_v19 = vpop.permute.xlu1 %1210  ;;  %v1687_v23 = vmin.f32 %v1685_v52, %v1686_v14  ;;  %v1909_v3 = vmax.f32 %v1907_v28, %v1908_v7 }
 0x167   : > { %v1614_v30 = vsel %vm1563_vm4, %v1522_v0, inf  ;;  %v1836_v25 = vsel %vm1563_vm4, %v1745_v2, -inf  ;;  %vm1347_vm14 = vcmp.gt.f32.partialorder %v1211_v19, 0.0 }
 0x168   : > { %v1615_v4 = vmin.f32 %v1613_v29, %v1614_v30  ;;  %v1837_v41 = vmax.f32 %v1835_v33, %v1836_v25  ;;  %v1539_v26 = vsel %vm1347_vm14, %v2557_v57, 1e+30  ;;  %v1762_v50 = vsel %vm1347_vm14, %v2557_v57, -1e+30  ;;  %v1207_v56 = vpop.permute.xlu0 %1206 }
 0x169   : > { %v1653_v49 = vsel %vm1563_vm4, %v1539_v26, inf  ;;  %vm1346_vm0 = vcmp.gt.f32.partialorder %v1207_v56, 0.0  ;;  %v1875_v44 = vsel %vm1563_vm4, %v1762_v50, -inf }
 0x16a   : > { %v1538_v58 = vsel %vm1346_vm0, %v2584_v47, 1e+30  ;;  %v1761_v54 = vsel %vm1346_vm0, %v2584_v47, -1e+30  ;;  %v1278_v36 = vpop.permute.xlu1 %1277  ;;  %v1617_v45 = vmin.f32 %v1615_v4, %v1616_v63  ;;  %v1839_v31 = vmax.f32 %v1837_v41, %v1838_v6 }
 0x16b   : > { %v1651_v51 = vsel %vm1563_vm4, %v1538_v58, inf  ;;  %v1873_v16 = vsel %vm1563_vm4, %v1761_v54, -inf  ;;  %vm1363_vm1 = vcmp.gt.f32.partialorder %v1278_v36, 0.0 }
 0x16c   : > { %v1652_v27 = vmin.f32 %v1650_v5, %v1651_v51  ;;  %v1874_v21 = vmax.f32 %v1872_v24, %v1873_v16  ;;  %v1555_v13 = vsel %vm1363_vm1, %v2557_v57, 1e+30  ;;  %v1778_v53 = vsel %vm1363_vm1, %v2557_v57, -1e+30  ;;  %v1274_v35 = vpop.permute.xlu0 %1273 }
 0x16d   : > { %v1690_v34 = vsel %vm1563_vm4, %v1555_v13, inf  ;;  %vm1362_vm2 = vcmp.gt.f32.partialorder %v1274_v35, 0.0  ;;  %v1912_v9 = vsel %vm1563_vm4, %v1778_v53, -inf }
 0x16e   : > { %v1554_v29 = vsel %vm1362_vm2, %v2584_v47, 1e+30  ;;  %v1777_v33 = vsel %vm1362_vm2, %v2584_v47, -1e+30  ;;  %v1152_v46 = vpop.permute.xlu1 %1151  ;;  %v1654_v18 = vmin.f32 %v1652_v27, %v1653_v49  ;;  %v1876_v32 = vmax.f32 %v1874_v21, %v1875_v44 }
 0x16f   : > { %v1688_v8 = vsel %vm1563_vm4, %v1554_v29, inf  ;;  %v1910_v42 = vsel %vm1563_vm4, %v1777_v33, -inf  ;;  %vm1333_vm3 = vcmp.gt.f32.partialorder %v1152_v46, 0.0 }
 0x170   : > { %v1689_v55 = vmin.f32 %v1687_v23, %v1688_v8  ;;  %v1911_v57 = vmax.f32 %v1909_v3, %v1910_v42  ;;  %v1525_v10 = vsel %vm1333_vm3, %v2572_v1, 1e+30  ;;  %v1748_v14 = vsel %vm1333_vm3, %v2572_v1, -1e+30  ;;  %v1148_v61 = vpop.permute.xlu0 %1147 }
 0x171   : > { %v1620_v60 = vsel %vm1563_vm4, %v1525_v10, inf  ;;  %vm1332_vm5 = vcmp.gt.f32.partialorder %v1148_v61, 0.0  ;;  %v1842_v11 = vsel %vm1563_vm4, %v1748_v14, -inf }
 0x172   : > { %v1524_v47 = vsel %vm1332_vm5, %v2549_v48, 1e+30  ;;  %v1747_v37 = vsel %vm1332_vm5, %v2549_v48, -1e+30  ;;  %v1219_v5 = vpop.permute.xlu1 %1218  ;;  %v2946_v24 = vmin.f32 %v1689_v55, %v1690_v34  ;;  %v2948_v7 = vmax.f32 %v1911_v57, %v1912_v9 }
 0x173   : > { %v1618_v62 = vsel %vm1563_vm4, %v1524_v47, inf  ;;  %v1840_v52 = vsel %vm1563_vm4, %v1747_v37, -inf  ;;  %vm1349_vm6 = vcmp.gt.f32.partialorder %v1219_v5, 0.0 }
 0x174   : > { %v1619_v28 = vmin.f32 %v1617_v45, %v1618_v62  ;;  %v1841_v43 = vmax.f32 %v1839_v31, %v1840_v52  ;;  %v1541_v39 = vsel %vm1349_vm6, %v2572_v1, 1e+30  ;;  %v1215_v22 = vpop.permute.xlu0 %1214  ;;  %v1764_v63 = vsel %vm1349_vm6, %v2572_v1, -1e+30 }
 0x175   : > { %vm1348_vm7 = vcmp.gt.f32.partialorder %v1215_v22, 0.0  ;;  %v1657_v6 = vsel %vm1563_vm4, %v1541_v39, inf  ;;  %v1879_v49 = vsel %vm1563_vm4, %v1764_v63, -inf }
 0x176   : > { %v1540_v0 = vsel %vm1348_vm7, %v2549_v48, 1e+30  ;;  %v1763_v2 = vsel %vm1348_vm7, %v2549_v48, -1e+30  ;;  %v1156_v19 = vpop.permute.xlu1 %1155  ;;  %v1621_v23 = vmin.f32 %v1619_v28, %v1620_v60  ;;  %v1843_v3 = vmax.f32 %v1841_v43, %v1842_v11 }
 0x177   : > { %v1655_v30 = vsel %vm1563_vm4, %v1540_v0, inf  ;;  %v1877_v25 = vsel %vm1563_vm4, %v1763_v2, -inf  ;;  %vm1334_vm8 = vcmp.gt.f32.partialorder %v1156_v19, 0.0 }
 0x178   : > { %v1656_v4 = vmin.f32 %v1654_v18, %v1655_v30  ;;  %v1878_v41 = vmax.f32 %v1876_v32, %v1877_v25  ;;  %v1526_v26 = vsel %vm1334_vm8, %v2565_v59, 1e+30  ;;  %v1749_v50 = vsel %vm1334_vm8, %v2565_v59, -1e+30  ;;  %v1282_v56 = vpop.permute.xlu0 %1281 }
 0x179   : > { %v1622_v58 = vsel %vm1563_vm4, %v1526_v26, inf  ;;  %v1844_v54 = vsel %vm1563_vm4, %v1749_v50, -inf  ;;  %vm1364_vm9 = vcmp.gt.f32.partialorder %v1282_v56, 0.0 }
 0x17a   : > { %v1623_v36 = vmin.f32 %v1621_v23, %v1622_v58  ;;  %v1845_v45 = vmax.f32 %v1843_v3, %v1844_v54  ;;  %v1556_v31 = vsel %vm1364_vm9, %v2549_v48, 1e+30  ;;  %v1779_v44 = vsel %vm1364_vm9, %v2549_v48, -1e+30  ;;  %v1223_v51 = vpop.permute.xlu1 %1222 }
 0x17b   : > { %v1692_v16 = vsel %vm1563_vm4, %v1556_v31, inf  ;;  %v1914_v27 = vsel %vm1563_vm4, %v1779_v44, -inf  ;;  %vm1350_vm10 = vcmp.gt.f32.partialorder %v1223_v51, 0.0  ;;  %v1658_v21 = vmin.f32 %v1656_v4, %v1657_v6 }
 0x17c   : > { %v1693_v13 = vmin.f32 %v2946_v24, %v1692_v16  ;;  %v1915_v53 = vmax.f32 %v2948_v7, %v1914_v27  ;;  %v1542_v35 = vsel %vm1350_vm10, %v2565_v59, 1e+30  ;;  %v1765_v34 = vsel %vm1350_vm10, %v2565_v59, -1e+30  ;;  %v1089_v29 = vpop.permute.xlu0 %1088 }
 0x17d   : > { %v1659_v33 = vsel %vm1563_vm4, %v1542_v35, inf  ;;  %v1880_v46 = vmax.f32 %v1878_v41, %v1879_v49  ;;  %v1881_v48 = vsel %vm1563_vm4, %v1765_v34, -inf  ;;  %vm1318_vm12 = vcmp.gt.f32.partialorder %v1089_v29, 0.0 }
 0x17e   : > { %v1660_v18 = vmin.f32 %v1658_v21, %v1659_v33  ;;  %v1510_v32 = vsel %vm1318_vm12, %v2565_v59, 1e+30  ;;  %v1733_v9 = vsel %vm1318_vm12, %v2565_v59, -1e+30  ;;  %v1160_v8 = vpop.permute.xlu1 %1159 }
 0x17f   : > { %v1882_v42 = vmax.f32 %v1880_v46, %v1881_v48  ;;  %v1585_v55 = vsel %vm1563_vm4, %v1510_v32, inf  ;;  %v1807_v57 = vsel %vm1563_vm4, %v1733_v9, -inf  ;;  %vm1335_vm14 = vcmp.gt.f32.partialorder %v1160_v8, 0.0 }
 0x180   : > { %v1586_v10 = vmin.f32 %v2834_v15, %v1585_v55  ;;  %v1808_v14 = vmax.f32 %v2838_v40, %v1807_v57  ;;  %v1286_v61 = vpop.permute.xlu0 %1285  ;;  %v1527_v60 = vsel %vm1335_vm14, %v2618_v12, 1e+30  ;;  %v1750_v47 = vsel %vm1335_vm14, %v2618_v12, -1e+30 }
 0x181   : > { %vm1365_vm0 = vcmp.gt.f32.partialorder %v1286_v61, 0.0  ;;  %v1624_v37 = vsel %vm1563_vm4, %v1527_v60, inf  ;;  %v1846_v5 = vsel %vm1563_vm4, %v1750_v47, -inf }
 0x182   : > { %v1557_v24 = vsel %vm1365_vm0, %v2572_v1, 1e+30  ;;  %v1780_v7 = vsel %vm1365_vm0, %v2572_v1, -1e+30  ;;  %v1227_v11 = vpop.permute.xlu1 %1226  ;;  %v2987_v62 = vmin.f32 %v1623_v36, %v1624_v37  ;;  %v2989_v15 = vmax.f32 %v1845_v45, %v1846_v5 }
 0x183   : > { %v1694_v40 = vsel %vm1563_vm4, %v1557_v24, inf  ;;  %v1916_v52 = vsel %vm1563_vm4, %v1780_v7, -inf  ;;  %vm1351_vm1 = vcmp.gt.f32.partialorder %v1227_v11, 0.0 }
 0x184   : > { %v2993_v28 = vmin.f32 %v1693_v13, %v1694_v40  ;;  %v2995_v43 = vmax.f32 %v1915_v53, %v1916_v52  ;;  %v1543_v39 = vsel %vm1351_vm1, %v2618_v12, 1e+30  ;;  %v1766_v22 = vsel %vm1351_vm1, %v2618_v12, -1e+30  ;;  %v1093_v63 = vpop.permute.xlu0 %1092 }
 0x185   : > { %v1661_v1 = vsel %vm1563_vm4, %v1543_v39, inf  ;;  %v1883_v0 = vsel %vm1563_vm4, %v1766_v22, -inf  ;;  %vm1319_vm2 = vcmp.gt.f32.partialorder %v1093_v63, 0.0 }
 0x186   : > { %v3001_v2 = vmin.f32 %v1660_v18, %v1661_v1  ;;  %v3003_v19 = vmax.f32 %v1882_v42, %v1883_v0  ;;  %v1511_v23 = vsel %vm1319_vm2, %v2618_v12, 1e+30  ;;  %v1734_v3 = vsel %vm1319_vm2, %v2618_v12, -1e+30  ;;  %v1164_v6 = vpop.permute.xlu1 %1163 }
 0x187   : > { %v1587_v30 = vsel %vm1563_vm4, %v1511_v23, inf  ;;  %v1809_v25 = vsel %vm1563_vm4, %v1734_v3, -inf  ;;  %vm1336_vm3 = vcmp.gt.f32.partialorder %v1164_v6, 0.0 }
 0x188   : > { %v3009_v4 = vmin.f32 %v1586_v10, %v1587_v30  ;;  %v3011_v41 = vmax.f32 %v1808_v14, %v1809_v25  ;;  %v1528_v26 = vsel %vm1336_vm3, %v2613_v20, 1e+30  ;;  %v1751_v50 = vsel %vm1336_vm3, %v2613_v20, -1e+30  ;;  %v1290_v56 = vpop.permute.xlu0 %1289 }
 0x189   : > { %v1626_v49 = vsel %vm1563_vm4, %v1528_v26, inf  ;;  %v1848_v58 = vsel %vm1563_vm4, %v1751_v50, -inf  ;;  %vm1366_vm5 = vcmp.gt.f32.partialorder %v1290_v56, 0.0 }
 0x18a   : > { %v1627_v54 = vmin.f32 %v2987_v62, %v1626_v49  ;;  %v1849_v36 = vmax.f32 %v2989_v15, %v1848_v58  ;;  %v1558_v45 = vsel %vm1366_vm5, %v2565_v59, 1e+30  ;;  %v1781_v31 = vsel %vm1366_vm5, %v2565_v59, -1e+30  ;;  %v1231_v44 = vpop.permute.xlu1 %1230 }
 0x18b   : > { %v1696_v51 = vsel %vm1563_vm4, %v1558_v45, inf  ;;  %v1918_v16 = vsel %vm1563_vm4, %v1781_v31, -inf  ;;  %vm1352_vm6 = vcmp.gt.f32.partialorder %v1231_v44, 0.0 }
 0x18c   : > { %v1697_v27 = vmin.f32 %v2993_v28, %v1696_v51  ;;  %v1919_v21 = vmax.f32 %v2995_v43, %v1918_v16  ;;  %v1544_v13 = vsel %vm1352_vm6, %v2613_v20, 1e+30  ;;  %v1767_v53 = vsel %vm1352_vm6, %v2613_v20, -1e+30  ;;  %v1097_v35 = vpop.permute.xlu0 %1096 }
 0x18d   : > { %v1663_v34 = vsel %vm1563_vm4, %v1544_v13, inf  ;;  %v1885_v29 = vsel %vm1563_vm4, %v1767_v53, -inf  ;;  %vm1320_vm7 = vcmp.gt.f32.partialorder %v1097_v35, 0.0 }
 0x18e   : > { %v1664_v59 = vmin.f32 %v3001_v2, %v1663_v34  ;;  %v1886_v33 = vmax.f32 %v3003_v19, %v1885_v29  ;;  %v1512_v46 = vsel %vm1320_vm7, %v2613_v20, 1e+30  ;;  %v1735_v48 = vsel %vm1320_vm7, %v2613_v20, -1e+30  ;;  %v1168_v18 = vpop.permute.xlu1 %1167 }
 0x18f   : > { %v1589_v32 = vsel %vm1563_vm4, %v1512_v46, inf  ;;  %v1811_v9 = vsel %vm1563_vm4, %v1735_v48, -inf  ;;  %vm1337_vm8 = vcmp.gt.f32.partialorder %v1168_v18, 0.0 }
 0x190   : > { %v1590_v8 = vmin.f32 %v3009_v4, %v1589_v32  ;;  %v1812_v42 = vmax.f32 %v3011_v41, %v1811_v9  ;;  %v1294_v55 = vpop.permute.xlu0 %1293  ;;  %v1529_v57 = vsel %vm1337_vm8, %v2663_v38, 1e+30  ;;  %v1752_v10 = vsel %vm1337_vm8, %v2663_v38, -1e+30 }
 0x191   : > { %vm1367_vm9 = vcmp.gt.f32.partialorder %v1294_v55, 0.0  ;;  %v1628_v14 = vsel %vm1563_vm4, %v1529_v57, inf  ;;  %v1850_v61 = vsel %vm1563_vm4, %v1752_v10, -inf }
 0x192   : > { %v1559_v60 = vsel %vm1367_vm9, %v2618_v12, 1e+30  ;;  %v1782_v47 = vsel %vm1367_vm9, %v2618_v12, -1e+30  ;;  %v1235_v37 = vpop.permute.xlu1 %1234  ;;  %v1629_v5 = vmin.f32 %v1627_v54, %v1628_v14  ;;  %v1851_v24 = vmax.f32 %v1849_v36, %v1850_v61 }
 0x193   : > { %v1698_v7 = vsel %vm1563_vm4, %v1559_v60, inf  ;;  %v1920_v11 = vsel %vm1563_vm4, %v1782_v47, -inf  ;;  %vm1353_vm10 = vcmp.gt.f32.partialorder %v1235_v37, 0.0 }
 0x194   : > { %v3045_v62 = vmin.f32 %v1697_v27, %v1698_v7  ;;  %v3047_v15 = vmax.f32 %v1919_v21, %v1920_v11  ;;  %v1545_v40 = vsel %vm1353_vm10, %v2663_v38, 1e+30  ;;  %v1768_v52 = vsel %vm1353_vm10, %v2663_v38, -1e+30  ;;  %v1101_v28 = vpop.permute.xlu0 %1100 }
 0x195   : > { %v1665_v43 = vsel %vm1563_vm4, %v1545_v40, inf  ;;  %v1887_v12 = vsel %vm1563_vm4, %v1768_v52, -inf  ;;  %vm1321_vm12 = vcmp.gt.f32.partialorder %v1101_v28, 0.0 }
 0x196   : > { %v1666_v39 = vmin.f32 %v1664_v59, %v1665_v43  ;;  %v1888_v22 = vmax.f32 %v1886_v33, %v1887_v12  ;;  %v1513_v63 = vsel %vm1321_vm12, %v2663_v38, 1e+30  ;;  %v1736_v1 = vsel %vm1321_vm12, %v2663_v38, -1e+30  ;;  %v1172_v0 = vpop.permute.xlu1 %1171 }
 0x197   : > { %v1591_v2 = vsel %vm1563_vm4, %v1513_v63, inf  ;;  %v1813_v19 = vsel %vm1563_vm4, %v1736_v1, -inf  ;;  %vm1338_vm14 = vcmp.gt.f32.partialorder %v1172_v0, 0.0 }
 0x198   : > { %v1592_v23 = vmin.f32 %v1590_v8, %v1591_v2  ;;  %v1814_v3 = vmax.f32 %v1812_v42, %v1813_v19  ;;  %v1530_v6 = vsel %vm1338_vm14, %v2658_v17, 1e+30  ;;  %v1753_v30 = vsel %vm1338_vm14, %v2658_v17, -1e+30  ;;  %v1298_v25 = vpop.permute.xlu0 %1297 }
 0x199   : > { %v1630_v4 = vsel %vm1563_vm4, %v1530_v6, inf  ;;  %v1852_v41 = vsel %vm1563_vm4, %v1753_v30, -inf  ;;  %vm1368_vm0 = vcmp.gt.f32.partialorder %v1298_v25, 0.0 }
 0x19a   : > { %v1631_v26 = vmin.f32 %v1629_v5, %v1630_v4  ;;  %v1853_v50 = vmax.f32 %v1851_v24, %v1852_v41  ;;  %v1560_v56 = vsel %vm1368_vm0, %v2613_v20, 1e+30  ;;  %v1783_v49 = vsel %vm1368_vm0, %v2613_v20, -1e+30  ;;  %v1239_v58 = vpop.permute.xlu1 %1238 }
 0x19b   : > { %v1700_v54 = vsel %vm1563_vm4, %v1560_v56, inf  ;;  %v1922_v36 = vsel %vm1563_vm4, %v1783_v49, -inf  ;;  %vm1354_vm1 = vcmp.gt.f32.partialorder %v1239_v58, 0.0 }
 0x19c   : > { %v1632_v45 = vrot.slane %v1631_v26, 4  ;;  %v1854_v31 = vrot.slane %v1853_v50, 4  ;;  %v1701_v44 = vmin.f32 %v3045_v62, %v1700_v54  ;;  %v1923_v51 = vmax.f32 %v3047_v15, %v1922_v36  ;;  %v1105_v16 = vpop.permute.xlu0 %1104 }
 0x19d   : > { %v1546_v27 = vsel %vm1354_vm1, %v2658_v17, 1e+30  ;;  %v1769_v21 = vsel %vm1354_vm1, %v2658_v17, -1e+30  ;;  %vm1322_vm2 = vcmp.gt.f32.partialorder %v1105_v16, 0.0 }
 0x19e   : > { %v1633_v13 = vmin.f32 %v1631_v26, %v1632_v45  ;;  %v1855_v20 = vmax.f32 %v1853_v50, %v1854_v31  ;;  %v1667_v53 = vsel %vm1563_vm4, %v1546_v27, inf  ;;  %v1889_v35 = vsel %vm1563_vm4, %v1769_v21, -inf }
 0x19f   : > { %v1668_v34 = vmin.f32 %v1666_v39, %v1667_v53  ;;  %v1890_v29 = vmax.f32 %v1888_v22, %v1889_v35  ;;  %v1514_v59 = vsel %vm1322_vm2, %v2658_v17, 1e+30  ;;  %v1737_v33 = vsel %vm1322_vm2, %v2658_v17, -1e+30 }
 0x1a0   : > { %v1634_v46 = vrot.slane %v1633_v13, 2  ;;  %v1856_v48 = vrot.slane %v1855_v20, 2  ;;  %v1593_v18 = vsel %vm1563_vm4, %v1514_v59, inf  ;;  %v1815_v32 = vsel %vm1563_vm4, %v1737_v33, -inf  ;;  %v1302_v9 = vpop.permute.xlu0 %1301 }
 0x1a1   : > { %v1669_v8 = vrot.slane %v1668_v34, 4  ;;  %v1891_v42 = vrot.slane %v1890_v29, 4  ;;  %v1594_v55 = vmin.f32 %v1592_v23, %v1593_v18  ;;  %v1816_v57 = vmax.f32 %v1814_v3, %v1815_v32 }
 0x1a2   : > { %v1635_v10 = vmin.f32 %v1633_v13, %v1634_v46  ;;  %vm1369_vm3 = vcmp.gt.f32.partialorder %v1302_v9, 0.0  ;;  %v1857_v37 = vmax.f32 %v1855_v20, %v1856_v48 }
 0x1a3   : > { %v1670_v14 = vmin.f32 %v1668_v34, %v1669_v8  ;;  %v1892_v61 = vmax.f32 %v1890_v29, %v1891_v42  ;;  %v1595_v60 = vrot.slane %v1594_v55, 4  ;;  %v1817_v47 = vrot.slane %v1816_v57, 4 }
 0x1a4   : > { %v1561_v5 = vsel %vm1369_vm3, %v2663_v38, 1e+30  ;;  %v1784_v24 = vsel %vm1369_vm3, %v2663_v38, -1e+30  ;;  %v1306_v40 = vpop.permute.xlu0 %1305  ;;  %v1636_v52 = vrot.slane %v1635_v10, 1  ;;  %v1858_v1 = vrot.slane %v1857_v37, 1 }
 0x1a5   : > { %v1671_v7 = vrot.slane %v1670_v14, 2  ;;  %v1893_v11 = vrot.slane %v1892_v61, 2  ;;  %v1596_v62 = vmin.f32 %v1594_v55, %v1595_v60  ;;  %v1818_v15 = vmax.f32 %v1816_v57, %v1817_v47 }
 0x1a6   : > { %v1702_v28 = vsel %vm1563_vm4, %v1561_v5, inf  ;;  %v1924_v43 = vsel %vm1563_vm4, %v1784_v24, -inf  ;;  %vm1370_vm5 = vcmp.gt.f32.partialorder %v1306_v40, 0.0  ;;  %v1637_v41 = vmin.f32 %v1635_v10, %v1636_v52 }
 0x1a7   : > { %v1672_v12 = vmin.f32 %v1670_v14, %v1671_v7  ;;  %v1894_v39 = vmax.f32 %v1892_v61, %v1893_v11  ;;  %v1597_v22 = vrot.slane %v1596_v62, 2  ;;  %v1819_v63 = vrot.slane %v1818_v15, 2 }
 0x1a8   : > { %v1703_v0 = vmin.f32 %v1701_v44, %v1702_v28  ;;  %v1925_v2 = vmax.f32 %v1923_v51, %v1924_v43  ;;  %v1562_v6 = vsel %vm1370_vm5, %v2658_v17, 1e+30  ;;  %v1785_v30 = vsel %vm1370_vm5, %v2658_v17, -1e+30 }
 0x1a9   : > { %v1598_v19 = vmin.f32 %v1596_v62, %v1597_v22  ;;  %v1820_v38 = vmax.f32 %v1818_v15, %v1819_v63  ;;  %v1673_v23 = vrot.slane %v1672_v12, 1  ;;  %v1895_v3 = vrot.slane %v1894_v39, 1 }
 0x1aa   : > { %v1859_v26 = vmax.f32 %v1857_v37, %v1858_v1  ;;  %v1704_v50 = vsel %vm1563_vm4, %v1562_v6, inf  ;;  %v1926_v56 = vsel %vm1563_vm4, %v1785_v30, -inf  ;;  %vm1720_vm4 = vcmask 388096  }
 0x1ab   : > { %v1599_v25 = vrot.slane %v1598_v19, 1  ;;  %v1821_v4 = vrot.slane %v1820_v38, 1  ;;  %v1705_v54 = vmin.f32 %v1703_v0, %v1704_v50  ;;  %v1927_v36 = vmax.f32 %v1925_v2, %v1926_v56 }
 0x1ac   : > { %v1674_v45 = vmin.f32 %v1672_v12, %v1673_v23  ;;  %v1896_v31 = vmax.f32 %v1894_v39, %v1895_v3 }
 0x1ad   : > { %v1600_v49 = vmin.f32 %v1598_v19, %v1599_v25  ;;  %v1822_v58 = vmax.f32 %v1820_v38, %v1821_v4  ;;  %v1706_v51 = vrot.slane %v1705_v54, 4  ;;  %v1928_v16 = vrot.slane %v1927_v36, 4 }
 0x1af   : > { %v1716_v44 = vsel %vm830_vm11, %v1637_v41, %v1600_v49  ;;  %v1938_v17 = vsel %vm830_vm11, %v1859_v26, %v1822_v58  ;;  %v1707_v13 = vmin.f32 %v1705_v54, %v1706_v51  ;;  %v1929_v20 = vmax.f32 %v1927_v36, %v1928_v16 }
 0x1b0   : > { %v1717_v27 = vsel %vm833_vm13, %v1674_v45, %v1716_v44  ;;  %v1939_v21 = vsel %vm833_vm13, %v1896_v31, %v1938_v17 }
 0x1b1   : > { %v1708_v53 = vrot.slane %v1707_v13, 2  ;;  %v1930_v35 = vrot.slane %v1929_v20, 2 }
 0x1b3   : > { %v1709_v34 = vmin.f32 %v1707_v13, %v1708_v53  ;;  %v1931_v29 = vmax.f32 %v1929_v20, %v1930_v35 }
 0x1b5   : > { %v1710_v59 = vrot.slane %v1709_v34, 1  ;;  %v1932_v33 = vrot.slane %v1931_v29, 1 }
 0x1b7   : > { %v1711_v46 = vmin.f32 %v1709_v34, %v1710_v59  ;;  %v1933_v48 = vmax.f32 %v1931_v29, %v1932_v33 }
 0x1b9   : > { %v1718_v18 = vsel %vm836_vm15, %v1711_v46, %v1717_v27  ;;  %v1940_v32 = vsel %vm836_vm15, %v1933_v48, %v1939_v21 }
 0x1ba   : > { %1721 = vst.msk [vmem:[%s300_s17] sm:$0xf] %vm1720_vm4, %v1718_v18  ;;  %1942 = vst.msk [vmem:[%s304_s20] sm:$0xf] %vm1720_vm4, %v1940_v32 }
 0x1bb PF: > { %s17_s21 = sadd.s32 1, %s2181_s21  }
 0x1bc   : > { %p14_p4 = scmp.ge.s32.totalorder %s17_s21, 4  }
 0x1be   :  { %16 = sbr.rel (!%p14_p4) target bundleno = 1 (0x1), region = 96 }

// kernel: object_module_forward.8
= control target key start
LH: loop header
LB: loop body
LE: loop exit
PB: predicated region body
PF: predicated region fallthrough
CT: control target
= control target key end

     0   :  { %s5246_s24 = smov 0   ;;  %s8976_s0 = inlined_call_operand.vmem [shape: f32[2,128,3], index: 0, kind: input, shape index: {}]   ;;  %s8977_s1 = inlined_call_operand.vmem [shape: f32[2,4,128,8], index: 1, kind: input, shape index: {}]   ;;  %s8978_s2 = inlined_call_operand.vmem [shape: f32[2,4,3], index: 2, kind: input, shape index: {}]   ;;  %s8979_s3 = inlined_call_operand.vmem [shape: f32[2,4,3,3], index: 3, kind: input, shape index: {}]   ;;  %s8980_s4 = inlined_call_operand.vmem [shape: f32[3,64], index: 4, kind: input, shape index: {}]   ;;  %s8981_s5 = inlined_call_operand.vmem [shape: f32[8,64], index: 5, kind: input, shape index: {}]   ;;  %s8982_s6 = inlined_call_operand.vmem [shape: f32[1,64], index: 6, kind: input, shape index: {}]   ;;  %s8983_s7 = inlined_call_operand.vmem [shape: f32[2,4,64], index: 7, kind: output, shape index: {}]  }
   0x1 LB: > { %s4855_s25 = sadd.s32 4294967295, %s5199_s24   ;;  %p4859_p0 = scmp.ge.s32.totalorder %s5199_s24, 1  ;;  %s5199_s24 = sphi %s5246_s24, %s17_s24  }
   0x2   : > { %p266_p1 = scmp.lt.s32.totalorder %s5199_s24, 3 }
   0x4   : > { %p267_p2 = pnand %p4859_p0, %p266_p1 }
   0x6   : > { %270 = sbr.rel (%p267_p2) target bundleno = 1265 (0x4f1), region = 48 }
   0xd   : > { %p311_p3 = scmp.lt.s32.totalorder %s4855_s25, 1  ;;  %v432_v0 = vlaneseq  ;;  %v8984_v1 = vmov 1   ;;  %v8986_v2 = vmov 0   ;;  %v5203_v3 = vmov 1966171168  }
   0xe   : > { %5182 = vset.pattern.permute.xlu0 %v8984_v1  ;;  %5181 = vset.pattern.permute.xlu1 %v8986_v2  ;;  %v430_v4 = vunpack.c.l.s4 %v5203_v3  ;;  %vm2113_vm0 = vcmask 23552  }
   0xf   : > { %s9967_s25 = smov (!%p311_p3, %s4855_s25), 1  ;;  %v5258_v5 = vshrl.u32 %v432_v0, 7 }
  0x10   : > { %v431_v6 = vunpack.c.0.s8 %v430_v4  ;;  %s5000_s26 = sshll.u32 %s9967_s25, 7  ;;  %s4864_s27 = sshll.u32 %s9967_s25, 2  ;;  %v8988_v4 = vmov 2  }
  0x11   : > { %9138 = vst [vmem:[#allocation2_spill] sm:$0xff] %v5258_v5  ;;  %s5266_s30 = scalar_lea.vmem %s8976_s0, %s5000_s26  ;;  %s324_s10 = scalar_lea.vmem %s8978_s2, %s4864_s27  ;;  %v5274_v8 = vsub.s32 0, %v5258_v5 }
  0x12   : > { %v434_v7 = vsub.s32 %v431_v6, %v5258_v5  ;;  %v4868_v9 = vld.sshfl [vmem:[%s324_s10] sm:$0x33 pattern:$0x75316420]  ;;  %v5277_v11 = vld [vmem:[%s5266_s30 + $0x10] sm:$0xff]  ;;  %v5286_v14 = vld [vmem:[%s5266_s30 + $0x18] sm:$0xff]  ;;  %s333_s9 = scalar_lea.vmem %s8983_s7, %s4864_s27 }
  0x13   : > { %9139 = vst [vmem:[#allocation3_spill] sm:$0xff] %v5274_v8  ;;  %v5283_v13 = vld [vmem:[%s5266_s30] sm:$0xff]  ;;  %v5303_v18 = vld [vmem:[%s5266_s30 + $0x28] sm:$0xff]  ;;  %v5312_v20 = vld [vmem:[%s5266_s30 + $0x38] sm:$0xff]  ;;  %v428_v27 = vcombine.high %v4868_v9, %v4868_v9  ;;  %s5002_s11 = sshll.u32 %s9967_s25, 4  ;;  %s5001_s15 = sshll.u32 %s9967_s25, 9 }
  0x14   : > { %v435_v10 = vrot.slane %v4868_v9, %v434_v7  ;;  %v5315_v21 = vld [vmem:[%s5266_s30 + $0x8] sm:$0xff]  ;;  %v5337_v26 = vld [vmem:[%s5266_s30 + $0x58] sm:$0xff]  ;;  %v5520_v63 = vld [vmem:[%s5266_s30 + $0x20] sm:$0xff]  ;;  %s329_s14 = scalar_lea.vmem %s8979_s3, %s5002_s11  ;;  %s7470_s18 = scalar_lea.vmem %s8977_s1, %s5001_s15 }
  0x15   : > { %v5328_v24 = vld [vmem:[%s5266_s30 + $0x48] sm:$0xff]  ;;  %v442_v30 = vrot.slane %v428_v27, %v434_v7  ;;  %v5355_v32 = vld [vmem:[%s5266_s30 + $0x78] sm:$0xff]  ;;  %v5534_v7 = vld [vmem:[%s5266_s30 + $0x30] sm:$0xff] }
  0x16   : > { %v5280_v12 = vrot.slane %v435_v10, %v5274_v8  ;;  %v5346_v29 = vld [vmem:[%s5266_s30 + $0x68] sm:$0xff]  ;;  %v443_v41 = vcombine.high %v435_v10, %v435_v10  ;;  %v5586_v2 = vld [vmem:[%s5266_s30 + $0x70] sm:$0xff] }
  0x17   : > { %v5358_v33 = vrot.slane %v442_v30, %v5274_v8  ;;  %v444_v51 = vcombine.high %v442_v30, %v442_v30 }
  0x18   : > { %v5290_v15 = vsub.f32 %v5277_v11, %v5280_v12  ;;  %v5294_v16 = vsub.f32 %v5283_v13, %v5280_v12  ;;  %v5299_v17 = vsub.f32 %v5286_v14, %v5280_v12  ;;  %v5308_v19 = vsub.f32 %v5303_v18, %v5280_v12 }
  0x19   : > { %v5319_v22 = vsub.f32 %v5315_v21, %v5280_v12  ;;  %v5324_v23 = vsub.f32 %v5312_v20, %v5280_v12  ;;  %v5333_v25 = vsub.f32 %v5328_v24, %v5280_v12  ;;  %v5342_v28 = vsub.f32 %v5337_v26, %v5280_v12 }
  0x1a   : > { %541 = vperm.xlu1 %5181, %v5290_v15   ;;  %930 = vperm.xlu0 %5182, %v5294_v16   ;;  %v5351_v31 = vsub.f32 %v5346_v29, %v5280_v12  ;;  %v5363_v34 = vsub.f32 %v5355_v32, %v5280_v12  ;;  %v5369_v35 = vsub.f32 %v5315_v21, %v5358_v33 }
  0x1b   : > { %v5375_v36 = vsub.f32 %v5286_v14, %v5358_v33  ;;  %v5381_v37 = vsub.f32 %v5303_v18, %v5358_v33  ;;  %v5387_v38 = vsub.f32 %v5312_v20, %v5358_v33  ;;  %v5393_v39 = vsub.f32 %v5328_v24, %v5358_v33 }
  0x1c   : > { %v5399_v40 = vsub.f32 %v5337_v26, %v5358_v33  ;;  %v5405_v42 = vsub.f32 %v5346_v29, %v5358_v33  ;;  %v5409_v43 = vrot.slane %v443_v41, %v5274_v8  ;;  %v5414_v44 = vsub.f32 %v5355_v32, %v5358_v33 }
  0x1d   : > { %v5460_v53 = vrot.slane %v444_v51, %v5274_v8  ;;  %v5530_v6 = vsub.f32 %v5520_v63, %v5280_v12 }
  0x1e   : > { %546 = vperm.xlu1 %5181, %v5299_v17   ;;  %942 = vperm.xlu0 %5182, %v5299_v17   ;;  %v5420_v45 = vsub.f32 %v5315_v21, %v5409_v43  ;;  %v5426_v46 = vsub.f32 %v5286_v14, %v5409_v43  ;;  %v5432_v47 = vsub.f32 %v5303_v18, %v5409_v43 }
  0x1f   : > { %v5438_v48 = vsub.f32 %v5312_v20, %v5409_v43  ;;  %v5444_v49 = vsub.f32 %v5328_v24, %v5409_v43  ;;  %v5450_v50 = vsub.f32 %v5337_v26, %v5409_v43  ;;  %v5456_v52 = vsub.f32 %v5346_v29, %v5409_v43 }
  0x20   : > { %v5465_v54 = vsub.f32 %v5355_v32, %v5409_v43  ;;  %v5471_v55 = vsub.f32 %v5315_v21, %v5460_v53  ;;  %v5477_v56 = vsub.f32 %v5286_v14, %v5460_v53  ;;  %v5483_v57 = vsub.f32 %v5303_v18, %v5460_v53  ;;  %v5547_v18 = vld [vmem:[%s5266_s30 + $0x40] sm:$0xff] }
  0x21   : > { %v5489_v58 = vsub.f32 %v5312_v20, %v5460_v53  ;;  %v5495_v59 = vsub.f32 %v5328_v24, %v5460_v53  ;;  %v5501_v60 = vsub.f32 %v5337_v26, %v5460_v53  ;;  %v5507_v61 = vsub.f32 %v5346_v29, %v5460_v53  ;;  %v5560_v26 = vld [vmem:[%s5266_s30 + $0x50] sm:$0xff] }
  0x22   : > { %556 = vperm.xlu1 %5181, %v5308_v19   ;;  %950 = vperm.xlu0 %5182, %v5308_v19   ;;  %9140 = vst [vmem:[#allocation4_spill] sm:$0xff] %v5477_v56  ;;  %9141 = vst [vmem:[#allocation5_spill] sm:$0xff] %v5483_v57  ;;  %v5514_v62 = vsub.f32 %v5355_v32, %v5460_v53  ;;  %v5543_v14 = vsub.f32 %v5534_v7, %v5280_v12  ;;  %v5573_v32 = vld [vmem:[%s5266_s30 + $0x60] sm:$0xff] }
  0x23   : > { %9142 = vst [vmem:[#allocation6_spill] sm:$0xff] %v5489_v58  ;;  %9143 = vst [vmem:[#allocation7_spill] sm:$0xff] %v5495_v59  ;;  %v5556_v24 = vsub.f32 %v5547_v18, %v5280_v12  ;;  %v5569_v30 = vsub.f32 %v5560_v26, %v5280_v12  ;;  %v5735_v8 = vsub.f32 %v5560_v26, %v5409_v43 }
  0x24   : > { %9144 = vst [vmem:[#allocation8_spill] sm:$0xff] %v5501_v60  ;;  %9145 = vst [vmem:[#allocation9_spill] sm:$0xff] %v5507_v61  ;;  %v5765_v5 = vsub.f32 %v5283_v13, %v5460_v53 }
  0x25   : > { %9146 = vst [vmem:[#allocation10_spill] sm:$0xff] %v5514_v62 }
  0x26   : > { %566 = vperm.xlu1 %5181, %v5324_v23   ;;  %958 = vperm.xlu0 %5182, %v5324_v23  }
  0x2a   : > { %576 = vperm.xlu1 %5181, %v5333_v25   ;;  %966 = vperm.xlu0 %5182, %v5333_v25  }
  0x2e   : > { %586 = vperm.xlu1 %5181, %v5342_v28   ;;  %974 = vperm.xlu0 %5182, %v5342_v28  }
  0x32   : > { %596 = vperm.xlu1 %5181, %v5351_v31   ;;  %982 = vperm.xlu0 %5182, %v5351_v31  }
  0x36   : > { %606 = vperm.xlu1 %5181, %v5363_v34   ;;  %990 = vperm.xlu0 %5182, %v5363_v34  }
  0x3a   : > { %616 = vperm.xlu1 %5181, %v5369_v35   ;;  %998 = vperm.xlu0 %5182, %v5369_v35  }
  0x3e   : > { %626 = vperm.xlu1 %5181, %v5375_v36   ;;  %1006 = vperm.xlu0 %5182, %v5375_v36  }
  0x42   : > { %636 = vperm.xlu1 %5181, %v5381_v37   ;;  %1014 = vperm.xlu0 %5182, %v5381_v37  }
  0x46   : > { %646 = vperm.xlu1 %5181, %v5387_v38   ;;  %1022 = vperm.xlu0 %5182, %v5387_v38  }
  0x4a   : > { %656 = vperm.xlu1 %5181, %v5393_v39   ;;  %1030 = vperm.xlu0 %5182, %v5393_v39  }
  0x4e   : > { %666 = vperm.xlu1 %5181, %v5399_v40   ;;  %1038 = vperm.xlu0 %5182, %v5399_v40  }
  0x52   : > { %676 = vperm.xlu1 %5181, %v5405_v42   ;;  %1046 = vperm.xlu0 %5182, %v5405_v42  }
  0x56   : > { %686 = vperm.xlu1 %5181, %v5414_v44   ;;  %1054 = vperm.xlu0 %5182, %v5414_v44  }
  0x5a   : > { %696 = vperm.xlu1 %5181, %v5420_v45   ;;  %1062 = vperm.xlu0 %5182, %v5420_v45  }
  0x5e   : > { %706 = vperm.xlu1 %5181, %v5426_v46   ;;  %1070 = vperm.xlu0 %5182, %v5426_v46  }
  0x62   : > { %716 = vperm.xlu1 %5181, %v5432_v47   ;;  %1078 = vperm.xlu0 %5182, %v5432_v47  }
  0x66   : > { %726 = vperm.xlu1 %5181, %v5438_v48   ;;  %1086 = vperm.xlu0 %5182, %v5438_v48  }
  0x6a   : > { %736 = vperm.xlu1 %5181, %v5444_v49   ;;  %1094 = vperm.xlu0 %5182, %v5444_v49  }
  0x6e   : > { %746 = vperm.xlu1 %5181, %v5450_v50   ;;  %1102 = vperm.xlu0 %5182, %v5450_v50  }
  0x72   : > { %756 = vperm.xlu1 %5181, %v5456_v52   ;;  %1110 = vperm.xlu0 %5182, %v5456_v52  }
  0x76   : > { %766 = vperm.xlu1 %5181, %v5465_v54   ;;  %1118 = vperm.xlu0 %5182, %v5465_v54  }
  0x7a   : > { %776 = vperm.xlu1 %5181, %v5471_v55   ;;  %1126 = vperm.xlu0 %5182, %v5471_v55  }
  0x7e   : > { %786 = vperm.xlu1 %5181, %v5477_v56   ;;  %1134 = vperm.xlu0 %5182, %v5477_v56   ;;  %v5755_v56 = vsub.f32 %v5586_v2, %v5409_v43 }
  0x82   : > { %796 = vperm.xlu1 %5181, %v5483_v57   ;;  %1142 = vperm.xlu0 %5182, %v5483_v57   ;;  %v5745_v57 = vsub.f32 %v5573_v32, %v5409_v43 }
  0x86   : > { %806 = vperm.xlu1 %5181, %v5489_v58   ;;  %1150 = vperm.xlu0 %5182, %v5489_v58   ;;  %v5655_v58 = vsub.f32 %v5560_v26, %v5358_v33 }
  0x8a   : > { %816 = vperm.xlu1 %5181, %v5495_v59   ;;  %1158 = vperm.xlu0 %5182, %v5495_v59  }
  0x8e   : > { %826 = vperm.xlu1 %5181, %v5501_v60   ;;  %1166 = vperm.xlu0 %5182, %v5501_v60  }
  0x92   : > { %836 = vperm.xlu1 %5181, %v5507_v61   ;;  %1174 = vperm.xlu0 %5182, %v5507_v61   ;;  %v5595_v61 = vsub.f32 %v5586_v2, %v5280_v12 }
  0x96   : > { %5183 = vset.pattern.permute.xlu1 %v8984_v1  ;;  %1182 = vperm.xlu0 %5182, %v5514_v62   ;;  %v5582_v1 = vsub.f32 %v5573_v32, %v5280_v12  ;;  %v5615_v12 = vsub.f32 %v5277_v11, %v5358_v33 }
  0x97   : > { %934 = vperm.xlu1 %5183, %v5319_v22  }
  0x99   : > { %v5522_v0 = vpop.permute.xlu1 %541  ;;  %v5524_v3 = vpop.permute.xlu0 %930 }
  0x9a   : > { %9147 = vst [vmem:[#allocation11_spill] sm:$0xff] %v5522_v0  ;;  %9148 = vst [vmem:[#allocation12_spill] sm:$0xff] %v5524_v3  ;;  %5185 = vset.pattern.permute.xlu0 %v8988_v4  ;;  %v5605_v3 = vsub.f32 %v5283_v13, %v5358_v33 }
  0x9b   : > { %938 = vperm.xlu1 %5183, %v5290_v15   ;;  %1334 = vperm.xlu0 %5185, %v5319_v22  }
  0x9d   : > { %v5536_v9 = vpop.permute.xlu1 %546  ;;  %v5538_v10 = vpop.permute.xlu0 %942 }
  0x9e   : > { %9149 = vst [vmem:[#allocation13_spill] sm:$0xff] %v5536_v9  ;;  %9150 = vst [vmem:[#allocation14_spill] sm:$0xff] %v5538_v10  ;;  %v5715_v10 = vsub.f32 %v5534_v7, %v5409_v43  ;;  %v5725_v9 = vsub.f32 %v5547_v18, %v5409_v43 }
  0x9f   : > { %946 = vperm.xlu1 %5183, %v5530_v6   ;;  %1346 = vperm.xlu0 %5185, %v5530_v6  }
  0xa1   : > { %v5549_v20 = vpop.permute.xlu1 %556  ;;  %v5551_v21 = vpop.permute.xlu0 %950 }
  0xa2   : > { %9151 = vst [vmem:[#allocation15_spill] sm:$0xff] %v5549_v20  ;;  %9152 = vst [vmem:[#allocation16_spill] sm:$0xff] %v5551_v21  ;;  %v5685_v21 = vsub.f32 %v5283_v13, %v5409_v43  ;;  %v5705_v20 = vsub.f32 %v5520_v63, %v5409_v43  ;;  %v5785_v13 = vsub.f32 %v5520_v63, %v5460_v53 }
  0xa3   : > { %954 = vperm.xlu1 %5183, %v5543_v14   ;;  %1354 = vperm.xlu0 %5185, %v5543_v14  }
  0xa5   : > { %v5562_v27 = vpop.permute.xlu1 %566  ;;  %v5564_v29 = vpop.permute.xlu0 %958 }
  0xa6   : > { %9153 = vst [vmem:[#allocation17_spill] sm:$0xff] %v5562_v27  ;;  %9154 = vst [vmem:[#allocation18_spill] sm:$0xff] %v5564_v29  ;;  %v5665_v29 = vsub.f32 %v5573_v32, %v5358_v33  ;;  %v5675_v27 = vsub.f32 %v5586_v2, %v5358_v33 }
  0xa7   : > { %962 = vperm.xlu1 %5183, %v5556_v24   ;;  %1362 = vperm.xlu0 %5185, %v5556_v24  }
  0xa9   : > { %v5575_v41 = vpop.permute.xlu1 %576  ;;  %v5577_v51 = vpop.permute.xlu0 %966 }
  0xaa   : > { %9155 = vst [vmem:[#allocation19_spill] sm:$0xff] %v5575_v41  ;;  %9156 = vst [vmem:[#allocation20_spill] sm:$0xff] %v5577_v51  ;;  %v5635_v51 = vsub.f32 %v5534_v7, %v5358_v33  ;;  %v5645_v41 = vsub.f32 %v5547_v18, %v5358_v33 }
  0xab   : > { %970 = vperm.xlu1 %5183, %v5569_v30   ;;  %1370 = vperm.xlu0 %5185, %v5569_v30  }
  0xad   : > { %v5588_v4 = vpop.permute.xlu1 %586  ;;  %v5590_v62 = vpop.permute.xlu0 %974 }
  0xae   : > { %9157 = vst [vmem:[#allocation21_spill] sm:$0xff] %v5588_v4  ;;  %9158 = vst [vmem:[#allocation22_spill] sm:$0xff] %v5590_v62  ;;  %v5625_v4 = vsub.f32 %v5520_v63, %v5358_v33  ;;  %v5695_v33 = vsub.f32 %v5277_v11, %v5409_v43  ;;  %v5775_v43 = vsub.f32 %v5277_v11, %v5460_v53 }
  0xaf   : > { %978 = vperm.xlu1 %5183, %v5582_v1   ;;  %1378 = vperm.xlu0 %5185, %v5582_v1   ;;  %v5795_v11 = vsub.f32 %v5534_v7, %v5460_v53  ;;  %v5805_v63 = vsub.f32 %v5547_v18, %v5460_v53  ;;  %v5815_v7 = vsub.f32 %v5560_v26, %v5460_v53 }
  0xb0   : > { %v5825_v18 = vsub.f32 %v5573_v32, %v5460_v53  ;;  %v5835_v26 = vsub.f32 %v5586_v2, %v5460_v53 }
  0xb1   : > { %v5598_v60 = vpop.permute.xlu1 %596  ;;  %v5600_v59 = vpop.permute.xlu0 %982  ;;  %9203 = vst [vmem:[#allocation67_spill] sm:$0xff] %v5815_v7 }
  0xb2   : > { %9159 = vst [vmem:[#allocation23_spill] sm:$0xff] %v5598_v60  ;;  %9160 = vst [vmem:[#allocation24_spill] sm:$0xff] %v5600_v59 }
  0xb3   : > { %986 = vperm.xlu1 %5183, %v5595_v61   ;;  %1386 = vperm.xlu0 %5185, %v5595_v61  }
  0xb5   : > { %v5608_v0 = vpop.permute.xlu1 %606  ;;  %v5610_v62 = vpop.permute.xlu0 %990 }
  0xb6   : > { %9161 = vst [vmem:[#allocation25_spill] sm:$0xff] %v5608_v0  ;;  %9162 = vst [vmem:[#allocation26_spill] sm:$0xff] %v5610_v62 }
  0xb7   : > { %994 = vperm.xlu1 %5183, %v5605_v3   ;;  %1394 = vperm.xlu0 %5185, %v5605_v3  }
  0xb9   : > { %v5618_v59 = vpop.permute.xlu1 %616  ;;  %v5620_v60 = vpop.permute.xlu0 %998 }
  0xba   : > { %9163 = vst [vmem:[#allocation27_spill] sm:$0xff] %v5618_v59  ;;  %9164 = vst [vmem:[#allocation28_spill] sm:$0xff] %v5620_v60 }
  0xbb   : > { %1002 = vperm.xlu1 %5183, %v5615_v12   ;;  %1402 = vperm.xlu0 %5185, %v5615_v12  }
  0xbd   : > { %v5628_v62 = vpop.permute.xlu1 %626  ;;  %v5630_v0 = vpop.permute.xlu0 %1006 }
  0xbe   : > { %9165 = vst [vmem:[#allocation29_spill] sm:$0xff] %v5628_v62  ;;  %9166 = vst [vmem:[#allocation30_spill] sm:$0xff] %v5630_v0 }
  0xbf   : > { %1010 = vperm.xlu1 %5183, %v5625_v4   ;;  %1410 = vperm.xlu0 %5185, %v5625_v4  }
  0xc1   : > { %v5638_v60 = vpop.permute.xlu1 %636  ;;  %v5640_v59 = vpop.permute.xlu0 %1014 }
  0xc2   : > { %9167 = vst [vmem:[#allocation31_spill] sm:$0xff] %v5638_v60  ;;  %9168 = vst [vmem:[#allocation32_spill] sm:$0xff] %v5640_v59 }
  0xc3   : > { %1018 = vperm.xlu1 %5183, %v5635_v51   ;;  %1418 = vperm.xlu0 %5185, %v5635_v51  }
  0xc5   : > { %v5648_v0 = vpop.permute.xlu1 %646  ;;  %v5650_v62 = vpop.permute.xlu0 %1022 }
  0xc6   : > { %9169 = vst [vmem:[#allocation33_spill] sm:$0xff] %v5648_v0  ;;  %9170 = vst [vmem:[#allocation34_spill] sm:$0xff] %v5650_v62 }
  0xc7   : > { %1026 = vperm.xlu1 %5183, %v5645_v41   ;;  %1426 = vperm.xlu0 %5185, %v5645_v41  }
  0xc9   : > { %v5658_v59 = vpop.permute.xlu1 %656  ;;  %v5660_v60 = vpop.permute.xlu0 %1030 }
  0xca   : > { %9171 = vst [vmem:[#allocation35_spill] sm:$0xff] %v5658_v59  ;;  %9172 = vst [vmem:[#allocation36_spill] sm:$0xff] %v5660_v60 }
  0xcb   : > { %1034 = vperm.xlu1 %5183, %v5655_v58   ;;  %1434 = vperm.xlu0 %5185, %v5655_v58  }
  0xcd   : > { %v5668_v62 = vpop.permute.xlu1 %666  ;;  %v5670_v0 = vpop.permute.xlu0 %1038 }
  0xce   : > { %9173 = vst [vmem:[#allocation37_spill] sm:$0xff] %v5668_v62  ;;  %9174 = vst [vmem:[#allocation38_spill] sm:$0xff] %v5670_v0 }
  0xcf   : > { %1042 = vperm.xlu1 %5183, %v5665_v29   ;;  %1442 = vperm.xlu0 %5185, %v5665_v29  }
  0xd1   : > { %v5678_v60 = vpop.permute.xlu1 %676  ;;  %v5680_v59 = vpop.permute.xlu0 %1046 }
  0xd2   : > { %9175 = vst [vmem:[#allocation39_spill] sm:$0xff] %v5678_v60  ;;  %9176 = vst [vmem:[#allocation40_spill] sm:$0xff] %v5680_v59 }
  0xd3   : > { %1050 = vperm.xlu1 %5183, %v5675_v27   ;;  %1450 = vperm.xlu0 %5185, %v5675_v27  }
  0xd5   : > { %v5688_v0 = vpop.permute.xlu1 %686  ;;  %v5690_v62 = vpop.permute.xlu0 %1054 }
  0xd6   : > { %9177 = vst [vmem:[#allocation41_spill] sm:$0xff] %v5688_v0  ;;  %9178 = vst [vmem:[#allocation42_spill] sm:$0xff] %v5690_v62 }
  0xd7   : > { %1058 = vperm.xlu1 %5183, %v5685_v21   ;;  %1458 = vperm.xlu0 %5185, %v5685_v21  }
  0xd9   : > { %v5698_v59 = vpop.permute.xlu1 %696  ;;  %v5700_v60 = vpop.permute.xlu0 %1062 }
  0xda   : > { %9179 = vst [vmem:[#allocation43_spill] sm:$0xff] %v5698_v59  ;;  %9180 = vst [vmem:[#allocation44_spill] sm:$0xff] %v5700_v60 }
  0xdb   : > { %1066 = vperm.xlu1 %5183, %v5695_v33   ;;  %1466 = vperm.xlu0 %5185, %v5695_v33  }
  0xdd   : > { %v5708_v62 = vpop.permute.xlu1 %706  ;;  %v5710_v0 = vpop.permute.xlu0 %1070 }
  0xde   : > { %9181 = vst [vmem:[#allocation45_spill] sm:$0xff] %v5708_v62  ;;  %9182 = vst [vmem:[#allocation46_spill] sm:$0xff] %v5710_v0 }
  0xdf   : > { %1074 = vperm.xlu1 %5183, %v5705_v20   ;;  %1474 = vperm.xlu0 %5185, %v5705_v20  }
  0xe1   : > { %v5718_v60 = vpop.permute.xlu1 %716  ;;  %v5720_v59 = vpop.permute.xlu0 %1078 }
  0xe2   : > { %9183 = vst [vmem:[#allocation47_spill] sm:$0xff] %v5718_v60  ;;  %9184 = vst [vmem:[#allocation48_spill] sm:$0xff] %v5720_v59 }
  0xe3   : > { %1082 = vperm.xlu1 %5183, %v5715_v10   ;;  %1482 = vperm.xlu0 %5185, %v5715_v10  }
  0xe5   : > { %v5728_v0 = vpop.permute.xlu1 %726  ;;  %v5730_v62 = vpop.permute.xlu0 %1086 }
  0xe6   : > { %9185 = vst [vmem:[#allocation49_spill] sm:$0xff] %v5728_v0  ;;  %9186 = vst [vmem:[#allocation50_spill] sm:$0xff] %v5730_v62 }
  0xe7   : > { %1090 = vperm.xlu1 %5183, %v5725_v9   ;;  %1490 = vperm.xlu0 %5185, %v5725_v9  }
  0xe9   : > { %v5738_v59 = vpop.permute.xlu1 %736  ;;  %v5740_v60 = vpop.permute.xlu0 %1094 }
  0xea   : > { %9187 = vst [vmem:[#allocation51_spill] sm:$0xff] %v5738_v59  ;;  %9188 = vst [vmem:[#allocation52_spill] sm:$0xff] %v5740_v60 }
  0xeb   : > { %1098 = vperm.xlu1 %5183, %v5735_v8   ;;  %1498 = vperm.xlu0 %5185, %v5735_v8  }
  0xed   : > { %v5748_v62 = vpop.permute.xlu1 %746  ;;  %v5750_v0 = vpop.permute.xlu0 %1102 }
  0xee   : > { %9189 = vst [vmem:[#allocation53_spill] sm:$0xff] %v5748_v62  ;;  %9190 = vst [vmem:[#allocation54_spill] sm:$0xff] %v5750_v0 }
  0xef   : > { %1106 = vperm.xlu1 %5183, %v5745_v57   ;;  %1506 = vperm.xlu0 %5185, %v5745_v57  }
  0xf1   : > { %v5758_v60 = vpop.permute.xlu1 %756  ;;  %v5760_v59 = vpop.permute.xlu0 %1110 }
  0xf2   : > { %9191 = vst [vmem:[#allocation55_spill] sm:$0xff] %v5758_v60  ;;  %9192 = vst [vmem:[#allocation56_spill] sm:$0xff] %v5760_v59 }
  0xf3   : > { %1114 = vperm.xlu1 %5183, %v5755_v56   ;;  %1514 = vperm.xlu0 %5185, %v5755_v56  }
  0xf5   : > { %v5768_v0 = vpop.permute.xlu1 %766  ;;  %v5770_v62 = vpop.permute.xlu0 %1118 }
  0xf6   : > { %9193 = vst [vmem:[#allocation57_spill] sm:$0xff] %v5768_v0  ;;  %9194 = vst [vmem:[#allocation58_spill] sm:$0xff] %v5770_v62 }
  0xf7   : > { %1122 = vperm.xlu1 %5183, %v5765_v5   ;;  %1522 = vperm.xlu0 %5185, %v5765_v5  }
  0xf9   : > { %v5778_v59 = vpop.permute.xlu1 %776  ;;  %v5780_v60 = vpop.permute.xlu0 %1126 }
  0xfa   : > { %9195 = vst [vmem:[#allocation59_spill] sm:$0xff] %v5778_v59  ;;  %9196 = vst [vmem:[#allocation60_spill] sm:$0xff] %v5780_v60 }
  0xfb   : > { %1130 = vperm.xlu1 %5183, %v5775_v43   ;;  %1530 = vperm.xlu0 %5185, %v5775_v43  }
  0xfd   : > { %v5788_v62 = vpop.permute.xlu1 %786  ;;  %v5790_v0 = vpop.permute.xlu0 %1134 }
  0xfe   : > { %9197 = vst [vmem:[#allocation61_spill] sm:$0xff] %v5788_v62  ;;  %9198 = vst [vmem:[#allocation62_spill] sm:$0xff] %v5790_v0 }
  0xff   : > { %1138 = vperm.xlu1 %5183, %v5785_v13   ;;  %1538 = vperm.xlu0 %5185, %v5785_v13  }
 0x101   : > { %v5798_v60 = vpop.permute.xlu1 %796  ;;  %v5800_v59 = vpop.permute.xlu0 %1142 }
 0x102   : > { %9199 = vst [vmem:[#allocation63_spill] sm:$0xff] %v5798_v60  ;;  %9200 = vst [vmem:[#allocation64_spill] sm:$0xff] %v5800_v59 }
 0x103   : > { %1146 = vperm.xlu1 %5183, %v5795_v11   ;;  %1546 = vperm.xlu0 %5185, %v5795_v11  }
 0x105   : > { %v5808_v0 = vpop.permute.xlu1 %806  ;;  %v5810_v62 = vpop.permute.xlu0 %1150 }
 0x106   : > { %9201 = vst [vmem:[#allocation65_spill] sm:$0xff] %v5808_v0  ;;  %9202 = vst [vmem:[#allocation66_spill] sm:$0xff] %v5810_v62 }
 0x107   : > { %1154 = vperm.xlu1 %5183, %v5805_v63   ;;  %1554 = vperm.xlu0 %5185, %v5805_v63  }
 0x109   : > { %v5818_v59 = vpop.permute.xlu1 %816  ;;  %v5820_v60 = vpop.permute.xlu0 %1158 }
 0x10a   : > { %9204 = vst [vmem:[#allocation68_spill] sm:$0xff] %v5818_v59  ;;  %9205 = vst [vmem:[#allocation69_spill] sm:$0xff] %v5820_v60 }
 0x10b   : > { %1162 = vperm.xlu1 %5183, %v5815_v7   ;;  %1562 = vperm.xlu0 %5185, %v5815_v7   ;;  %v9212_v7 = vmov 0  }
 0x10d   : > { %v5828_v62 = vpop.permute.xlu1 %826  ;;  %v5830_v0 = vpop.permute.xlu0 %1166 }
 0x10e   : > { %9206 = vst [vmem:[#allocation70_spill] sm:$0xff] %v5828_v62  ;;  %9207 = vst [vmem:[#allocation71_spill] sm:$0xff] %v5830_v0  ;;  %v9211_v0 = vmov 2  }
 0x10f   : > { %1170 = vperm.xlu1 %5183, %v5825_v18   ;;  %1570 = vperm.xlu0 %5185, %v5825_v18  }
 0x111   : > { %v5838_v60 = vpop.permute.xlu1 %836  ;;  %v5840_v59 = vpop.permute.xlu0 %1174 }
 0x112   : > { %9208 = vst [vmem:[#allocation72_spill] sm:$0xff] %v5840_v59 }
 0x113   : > { %1178 = vperm.xlu1 %5183, %v5835_v26   ;;  %1578 = vperm.xlu0 %5185, %v5835_v26  }
 0x115   : > { %v5844_v32 = vpop.permute.xlu0 %1182 }
 0x116   : > { %9209 = vst [vmem:[#allocation73_spill] sm:$0xff] %v5844_v32  ;;  %v5846_v62 = vpop.permute.xlu1 %934 }
 0x117   : > { %9210 = vst [vmem:[#allocation74_spill] sm:$0xff] %v5846_v62  ;;  %5184 = vset.pattern.permute.xlu1 %v9211_v0  ;;  %5186 = vset.pattern.permute.xlu0 %v9212_v7 }
 0x118   : > { %1330 = vperm.xlu1 %5184, %v5294_v16   ;;  %531 = vperm.xlu0 %5186, %v5294_v16  }
 0x11a   : > { %v5852_v2 = vpop.permute.xlu1 %938  ;;  %v5854_v53 = vpop.permute.xlu0 %1334 }
 0x11c   : > { %1338 = vperm.xlu1 %5184, %v5290_v15   ;;  %536 = vperm.xlu0 %5186, %v5319_v22  }
 0x11e   : > { %v5858_v59 = vpop.permute.xlu1 %946  ;;  %v5860_v32 = vpop.permute.xlu0 %1346 }
 0x120   : > { %1342 = vperm.xlu1 %5184, %v5299_v17   ;;  %551 = vperm.xlu0 %5186, %v5530_v6  }
 0x122   : > { %v5864_v0 = vpop.permute.xlu1 %954  ;;  %v5866_v62 = vpop.permute.xlu0 %1354 }
 0x124   : > { %1350 = vperm.xlu1 %5184, %v5308_v19   ;;  %561 = vperm.xlu0 %5186, %v5543_v14  }
 0x126   : > { %v5870_v16 = vpop.permute.xlu1 %962  ;;  %v5872_v15 = vpop.permute.xlu0 %1362 }
 0x128   : > { %1358 = vperm.xlu1 %5184, %v5324_v23   ;;  %571 = vperm.xlu0 %5186, %v5556_v24  }
 0x12a   : > { %v5876_v22 = vpop.permute.xlu1 %970  ;;  %v5878_v17 = vpop.permute.xlu0 %1370 }
 0x12c   : > { %1366 = vperm.xlu1 %5184, %v5333_v25   ;;  %581 = vperm.xlu0 %5186, %v5569_v30  }
 0x12e   : > { %v5882_v6 = vpop.permute.xlu1 %978  ;;  %v5884_v19 = vpop.permute.xlu0 %1378 }
 0x130   : > { %1374 = vperm.xlu1 %5184, %v5342_v28   ;;  %591 = vperm.xlu0 %5186, %v5582_v1  }
 0x132   : > { %v5888_v14 = vpop.permute.xlu1 %986  ;;  %v5890_v23 = vpop.permute.xlu0 %1386 }
 0x133   : > { %9213 = vst [vmem:[#allocation75_spill] sm:$0xff] %v5888_v14  ;;  %9214 = vst [vmem:[#allocation76_spill] sm:$0xff] %v5890_v23 }
 0x134   : > { %1382 = vperm.xlu1 %5184, %v5351_v31   ;;  %601 = vperm.xlu0 %5186, %v5595_v61  }
 0x136   : > { %v5894_v24 = vpop.permute.xlu1 %994  ;;  %v5896_v25 = vpop.permute.xlu0 %1394 }
 0x137   : > { %9215 = vst [vmem:[#allocation77_spill] sm:$0xff] %v5894_v24  ;;  %9216 = vst [vmem:[#allocation78_spill] sm:$0xff] %v5896_v25  ;;  %v9317_v24 = vld [vmem:[#allocation47_spill] sm:$0xff] }
 0x138   : > { %1390 = vperm.xlu1 %5184, %v5363_v34   ;;  %611 = vperm.xlu0 %5186, %v5605_v3  }
 0x13a   : > { %v5900_v30 = vpop.permute.xlu1 %1002  ;;  %v5902_v28 = vpop.permute.xlu0 %1402 }
 0x13b   : > { %9217 = vst [vmem:[#allocation79_spill] sm:$0xff] %v5900_v30  ;;  %9218 = vst [vmem:[#allocation80_spill] sm:$0xff] %v5902_v28  ;;  %v9313_v28 = vld [vmem:[#allocation44_spill] sm:$0xff] }
 0x13c   : > { %1398 = vperm.xlu1 %5184, %v5369_v35   ;;  %621 = vperm.xlu0 %5186, %v5615_v12  }
 0x13e   : > { %v5906_v1 = vpop.permute.xlu1 %1010  ;;  %v5908_v31 = vpop.permute.xlu0 %1410 }
 0x13f   : > { %9219 = vst [vmem:[#allocation81_spill] sm:$0xff] %v5906_v1  ;;  %9220 = vst [vmem:[#allocation82_spill] sm:$0xff] %v5908_v31  ;;  %v9309_v31 = vld [vmem:[#allocation40_spill] sm:$0xff]  ;;  %v9312_v1 = vld [vmem:[#allocation43_spill] sm:$0xff] }
 0x140   : > { %1406 = vperm.xlu1 %5184, %v5375_v36   ;;  %631 = vperm.xlu0 %5186, %v5625_v4  }
 0x142   : > { %v5912_v61 = vpop.permute.xlu1 %1018  ;;  %v5914_v34 = vpop.permute.xlu0 %1418 }
 0x143   : > { %9221 = vst [vmem:[#allocation83_spill] sm:$0xff] %v5912_v61  ;;  %9222 = vst [vmem:[#allocation84_spill] sm:$0xff] %v5914_v34  ;;  %v9308_v61 = vld [vmem:[#allocation39_spill] sm:$0xff] }
 0x144   : > { %1414 = vperm.xlu1 %5184, %v5381_v37   ;;  %641 = vperm.xlu0 %5186, %v5635_v51  }
 0x146   : > { %v5918_v3 = vpop.permute.xlu1 %1026  ;;  %v5920_v35 = vpop.permute.xlu0 %1426 }
 0x147   : > { %9223 = vst [vmem:[#allocation85_spill] sm:$0xff] %v5918_v3  ;;  %9224 = vst [vmem:[#allocation86_spill] sm:$0xff] %v5920_v35  ;;  %v9304_v35 = vld [vmem:[#allocation36_spill] sm:$0xff] }
 0x148   : > { %1422 = vperm.xlu1 %5184, %v5387_v38   ;;  %651 = vperm.xlu0 %5186, %v5645_v41   ;;  %v9305_v3 = vld [vmem:[#allocation8_spill] sm:$0xff] }
 0x14a   : > { %v5924_v12 = vpop.permute.xlu1 %1034  ;;  %v5926_v36 = vpop.permute.xlu0 %1434 }
 0x14b   : > { %9225 = vst [vmem:[#allocation87_spill] sm:$0xff] %v5924_v12  ;;  %9226 = vst [vmem:[#allocation88_spill] sm:$0xff] %v5926_v36  ;;  %v9288_v36 = vld [vmem:[#allocation23_spill] sm:$0xff]  ;;  %v9289_v12 = vld [vmem:[#allocation24_spill] sm:$0xff] }
 0x14c   : > { %1430 = vperm.xlu1 %5184, %v5393_v39   ;;  %661 = vperm.xlu0 %5186, %v5655_v58  }
 0x14e   : > { %v5930_v4 = vpop.permute.xlu1 %1042  ;;  %v5932_v37 = vpop.permute.xlu0 %1442 }
 0x14f   : > { %9227 = vst [vmem:[#allocation89_spill] sm:$0xff] %v5930_v4  ;;  %9228 = vst [vmem:[#allocation90_spill] sm:$0xff] %v5932_v37 }
 0x150   : > { %1438 = vperm.xlu1 %5184, %v5399_v40   ;;  %671 = vperm.xlu0 %5186, %v5665_v29  }
 0x152   : > { %v5936_v51 = vpop.permute.xlu1 %1050  ;;  %v5938_v38 = vpop.permute.xlu0 %1450 }
 0x153   : > { %9229 = vst [vmem:[#allocation91_spill] sm:$0xff] %v5936_v51  ;;  %9230 = vst [vmem:[#allocation92_spill] sm:$0xff] %v5938_v38 }
 0x154   : > { %1446 = vperm.xlu1 %5184, %v5405_v42   ;;  %681 = vperm.xlu0 %5186, %v5675_v27  }
 0x156   : > { %v5942_v41 = vpop.permute.xlu1 %1058  ;;  %v5944_v39 = vpop.permute.xlu0 %1458 }
 0x157   : > { %9231 = vst [vmem:[#allocation93_spill] sm:$0xff] %v5942_v41  ;;  %9232 = vst [vmem:[#allocation94_spill] sm:$0xff] %v5944_v39 }
 0x158   : > { %1454 = vperm.xlu1 %5184, %v5414_v44   ;;  %691 = vperm.xlu0 %5186, %v5685_v21  }
 0x15a   : > { %v5948_v58 = vpop.permute.xlu1 %1066  ;;  %v5950_v40 = vpop.permute.xlu0 %1466 }
 0x15b   : > { %9233 = vst [vmem:[#allocation95_spill] sm:$0xff] %v5948_v58  ;;  %9234 = vst [vmem:[#allocation96_spill] sm:$0xff] %v5950_v40 }
 0x15c   : > { %1462 = vperm.xlu1 %5184, %v5420_v45   ;;  %701 = vperm.xlu0 %5186, %v5695_v33  }
 0x15e   : > { %v5954_v29 = vpop.permute.xlu1 %1074  ;;  %v5956_v42 = vpop.permute.xlu0 %1474 }
 0x15f   : > { %9235 = vst [vmem:[#allocation97_spill] sm:$0xff] %v5954_v29  ;;  %9236 = vst [vmem:[#allocation98_spill] sm:$0xff] %v5956_v42 }
 0x160   : > { %1470 = vperm.xlu1 %5184, %v5426_v46   ;;  %711 = vperm.xlu0 %5186, %v5705_v20  }
 0x162   : > { %v5960_v27 = vpop.permute.xlu1 %1082  ;;  %v5962_v44 = vpop.permute.xlu0 %1482 }
 0x163   : > { %9237 = vst [vmem:[#allocation99_spill] sm:$0xff] %v5960_v27  ;;  %9238 = vst [vmem:[#allocation100_spill] sm:$0xff] %v5962_v44  ;;  %v9270_v44 = vld [vmem:[#allocation19_spill] sm:$0xff] }
 0x164   : > { %1478 = vperm.xlu1 %5184, %v5432_v47   ;;  %721 = vperm.xlu0 %5186, %v5715_v10  }
 0x166   : > { %v5966_v21 = vpop.permute.xlu1 %1090  ;;  %v5968_v45 = vpop.permute.xlu0 %1490 }
 0x167   : > { %9239 = vst [vmem:[#allocation101_spill] sm:$0xff] %v5966_v21  ;;  %9240 = vst [vmem:[#allocation102_spill] sm:$0xff] %v5968_v45  ;;  %v9268_v45 = vld [vmem:[#allocation18_spill] sm:$0xff]  ;;  %v6050_v21 = vld [vmem:[%s329_s14 + $0xc] sm:$0x7] }
 0x168   : > { %1486 = vperm.xlu1 %5184, %v5438_v48   ;;  %731 = vperm.xlu0 %5186, %v5725_v9  }
 0x16a   : > { %v5972_v33 = vpop.permute.xlu1 %1098  ;;  %v5974_v46 = vpop.permute.xlu0 %1498 }
 0x16b   : > { %9241 = vst [vmem:[#allocation103_spill] sm:$0xff] %v5972_v33  ;;  %9242 = vst [vmem:[#allocation104_spill] sm:$0xff] %v5974_v46  ;;  %v9266_v46 = vld [vmem:[#allocation16_spill] sm:$0xff] }
 0x16c   : > { %1494 = vperm.xlu1 %5184, %v5444_v49   ;;  %741 = vperm.xlu0 %5186, %v5735_v8  }
 0x16e   : > { %v5978_v47 = vpop.permute.xlu1 %1106  ;;  %v5980_v10 = vpop.permute.xlu0 %1506 }
 0x16f   : > { %9243 = vst [vmem:[#allocation105_spill] sm:$0xff] %v5978_v47  ;;  %9244 = vst [vmem:[#allocation106_spill] sm:$0xff] %v5980_v10  ;;  %v6036_v10 = vld [vmem:[%s329_s14 + $0x4] sm:$0x7]  ;;  %v9265_v47 = vld [vmem:[#allocation15_spill] sm:$0xff] }
 0x170   : > { %1502 = vperm.xlu1 %5184, %v5450_v50   ;;  %751 = vperm.xlu0 %5186, %v5745_v57  }
 0x172   : > { %v5984_v48 = vpop.permute.xlu1 %1114  ;;  %v5986_v9 = vpop.permute.xlu0 %1514 }
 0x173   : > { %9245 = vst [vmem:[#allocation107_spill] sm:$0xff] %v5984_v48  ;;  %9246 = vst [vmem:[#allocation108_spill] sm:$0xff] %v5986_v9  ;;  %v9263_v9 = vld [vmem:[#allocation14_spill] sm:$0xff] }
 0x174   : > { %1510 = vperm.xlu1 %5184, %v5456_v52   ;;  %761 = vperm.xlu0 %5186, %v5755_v56   ;;  %v9252_v56 = vld [vmem:[#allocation2_spill] sm:$0xff] }
 0x175   : > { %v6009_v57 = vsub.s32 1, %v9252_v56 }
 0x176   : > { %v5990_v49 = vpop.permute.xlu1 %1122  ;;  %v5992_v20 = vpop.permute.xlu0 %1522 }
 0x177   : > { %9247 = vst [vmem:[#allocation109_spill] sm:$0xff] %v5990_v49  ;;  %9248 = vst [vmem:[#allocation110_spill] sm:$0xff] %v5992_v20  ;;  %v9259_v20 = vld [vmem:[#allocation3_spill] sm:$0xff]  ;;  %v6094_v41 = vrot.slane %v6050_v21, %v6009_v57 }
 0x178   : > { %1518 = vperm.xlu1 %5184, %v5465_v54   ;;  %771 = vperm.xlu0 %5186, %v5765_v5   ;;  %9253 = vst [vmem:[#allocation2_spill] sm:$0xff] %v6009_v57  ;;  %v9255_v5 = vld [vmem:[#allocation4_spill] sm:$0xff]  ;;  %v6090_v39 = vrot.slane %v6050_v21, %v9259_v20 }
 0x17a   : > { %v5996_v8 = vpop.permute.xlu1 %1130  ;;  %v5998_v50 = vpop.permute.xlu0 %1530  ;;  %9280 = vst [vmem:[#allocation18_spill] sm:$0xff] %v6090_v39 }
 0x17b   : > { %9249 = vst [vmem:[#allocation111_spill] sm:$0xff] %v5996_v8  ;;  %9250 = vst [vmem:[#allocation112_spill] sm:$0xff] %v5998_v50  ;;  %v415_v50 = vld [vmem:[%s329_s14] sm:$0x7] }
 0x17c   : > { %1526 = vperm.xlu1 %5184, %v5471_v55   ;;  %781 = vperm.xlu0 %5186, %v5775_v43   ;;  %v6018_v55 = vrot.slane %v415_v50, %v6009_v57  ;;  %v6024_v49 = vrot.slane %v415_v50, %v9259_v20 }
 0x17e   : > { %v6003_v52 = vpop.permute.xlu1 %1138  ;;  %v6011_v54 = vpop.permute.xlu0 %1538  ;;  %v1204_v48 = vmul.f32 %v6018_v55, %v9263_v9  ;;  %v9269_v9 = vld [vmem:[#allocation6_spill] sm:$0xff]  ;;  %v874_v27 = vmul.f32 %v6024_v49, %v9270_v44 }
 0x17f   : > { %9251 = vst [vmem:[#allocation113_spill] sm:$0xff] %v6003_v52  ;;  %9254 = vst [vmem:[#allocation114_spill] sm:$0xff] %v6011_v54  ;;  %v9258_v52 = vld [vmem:[#allocation5_spill] sm:$0xff] }
 0x180   : > { %1534 = vperm.xlu1 %5184, %v9255_v5   ;;  %791 = vperm.xlu0 %5186, %v5785_v13   ;;  %v6030_v5 = vsub.s32 2, %v9252_v56  ;;  %v9262_v13 = vld [vmem:[#allocation13_spill] sm:$0xff] }
 0x181   : > { %v9267_v56 = vld [vmem:[#allocation17_spill] sm:$0xff] }
 0x182   : > { %v6015_v8 = vpop.permute.xlu1 %1146  ;;  %v6020_v43 = vpop.permute.xlu0 %1546  ;;  %9261 = vst [vmem:[#allocation116_spill] sm:$0xff] %v6030_v5  ;;  %v872_v33 = vmul.f32 %v6024_v49, %v9267_v56  ;;  %v6068_v56 = vrot.slane %v6036_v10, %v6009_v57  ;;  %v6105_v37 = vrot.slane %v415_v50, %v6030_v5 }
 0x183   : > { %9256 = vst [vmem:[#allocation4_spill] sm:$0xff] %v6015_v8  ;;  %9257 = vst [vmem:[#allocation115_spill] sm:$0xff] %v6020_v43  ;;  %v868_v8 = vmul.f32 %v6024_v49, %v9262_v13  ;;  %v6038_v43 = vld [vmem:[%s329_s14 + $0x8] sm:$0x7]  ;;  %v1208_v13 = vmul.f32 %v6018_v55, %v9268_v45  ;;  %v6064_v45 = vrot.slane %v6036_v10, %v9259_v20 }
 0x184   : > { %1542 = vperm.xlu1 %5184, %v9258_v52   ;;  %801 = vperm.xlu0 %5186, %v5795_v11   ;;  %v870_v11 = vmul.f32 %v6024_v49, %v9265_v47  ;;  %v9272_v47 = vld [vmem:[#allocation21_spill] sm:$0xff]  ;;  %9275 = vst [vmem:[#allocation15_spill] sm:$0xff] %v6068_v56  ;;  %v6072_v44 = vrot.slane %v6038_v43, %v9259_v20 }
 0x185   : > { %v876_v29 = vmul.f32 %v6024_v49, %v9272_v47  ;;  %9274 = vst [vmem:[#allocation14_spill] sm:$0xff] %v6064_v45  ;;  %v9278_v47 = vld [vmem:[#allocation11_spill] sm:$0xff]  ;;  %v6098_v51 = vadd.f32 %v1204_v48, %v868_v8  ;;  %v1214_v48 = vmul.f32 %v6018_v55, %v9289_v12  ;;  %v9297_v12 = vld [vmem:[#allocation30_spill] sm:$0xff] }
 0x186   : > { %v6027_v54 = vpop.permute.xlu1 %1154  ;;  %v6040_v52 = vpop.permute.xlu0 %1554  ;;  %9276 = vst [vmem:[#allocation16_spill] sm:$0xff] %v6072_v44  ;;  %v9290_v8 = vld [vmem:[#allocation67_spill] sm:$0xff] }
 0x187   : > { %9260 = vst [vmem:[#allocation5_spill] sm:$0xff] %v6027_v54  ;;  %9264 = vst [vmem:[#allocation13_spill] sm:$0xff] %v6040_v52  ;;  %v1206_v54 = vmul.f32 %v6018_v55, %v9266_v46  ;;  %v9271_v52 = vld [vmem:[#allocation20_spill] sm:$0xff]  ;;  %v9273_v46 = vld [vmem:[#allocation22_spill] sm:$0xff] }
 0x188   : > { %1550 = vperm.xlu1 %5184, %v9269_v9   ;;  %v1210_v42 = vmul.f32 %v6018_v55, %v9271_v52  ;;  %v1212_v40 = vmul.f32 %v6018_v55, %v9273_v46  ;;  %811 = vperm.xlu0 %5186, %v5805_v63   ;;  %v6076_v52 = vrot.slane %v6038_v43, %v6009_v57  ;;  %v9279_v46 = vld [vmem:[#allocation12_spill] sm:$0xff] }
 0x189   : > { %v6082_v63 = vmul.f32 %v6024_v49, %v9278_v47  ;;  %v6086_v58 = vmul.f32 %v6018_v55, %v9279_v46  ;;  %9282 = vst [vmem:[#allocation19_spill] sm:$0xff] %v6098_v51  ;;  %v6102_v47 = vadd.f32 %v1208_v13, %v872_v33  ;;  %v9285_v46 = vld [vmem:[#allocation7_spill] sm:$0xff]  ;;  %v878_v57 = vmul.f32 %v6024_v49, %v9288_v36  ;;  %v9296_v36 = vld [vmem:[#allocation29_spill] sm:$0xff] }
 0x18a   : > { %v6078_v9 = vpop.permute.xlu1 %1162  ;;  %v6096_v38 = vpop.permute.xlu0 %1562  ;;  %v6108_v4 = vadd.f32 %v1210_v42, %v874_v27  ;;  %v6110_v20 = vadd.f32 %v1212_v40, %v876_v29  ;;  %v9293_v13 = vld [vmem:[#allocation27_spill] sm:$0xff]  ;;  %v9294_v27 = vld [vmem:[#allocation28_spill] sm:$0xff] }
 0x18b   : > { %9277 = vst [vmem:[#allocation17_spill] sm:$0xff] %v6078_v9  ;;  %9281 = vst [vmem:[#allocation6_spill] sm:$0xff] %v6096_v38  ;;  %v6100_v9 = vadd.f32 %v1206_v54, %v870_v11  ;;  %v9291_v54 = vld [vmem:[#allocation25_spill] sm:$0xff]  ;;  %v9292_v11 = vld [vmem:[#allocation26_spill] sm:$0xff]  ;;  %v882_v42 = vmul.f32 %v6064_v45, %v9293_v13  ;;  %v1218_v40 = vmul.f32 %v6068_v56, %v9294_v27 }
 0x18c   : > { %9284 = vst [vmem:[#allocation21_spill] sm:$0xff] %v6102_v47  ;;  %1558 = vperm.xlu1 %5184, %v9285_v46   ;;  %9286 = vst [vmem:[#allocation22_spill] sm:$0xff] %v6108_v4  ;;  %821 = vperm.xlu0 %5186, %v9290_v8   ;;  %v880_v33 = vmul.f32 %v6024_v49, %v9291_v54  ;;  %v1216_v50 = vmul.f32 %v6018_v55, %v9292_v11  ;;  %v9298_v38 = vld [vmem:[#allocation31_spill] sm:$0xff]  ;;  %v9301_v13 = vld [vmem:[#allocation33_spill] sm:$0xff] }
 0x18d   : > { %9283 = vst [vmem:[#allocation20_spill] sm:$0xff] %v6100_v9  ;;  %9287 = vst [vmem:[#allocation11_spill] sm:$0xff] %v6110_v20  ;;  %v884_v46 = vmul.f32 %v6064_v45, %v9296_v36  ;;  %v1220_v8 = vmul.f32 %v6068_v56, %v9297_v12  ;;  %v886_v54 = vmul.f32 %v6064_v45, %v9298_v38  ;;  %v9299_v20 = vld [vmem:[#allocation32_spill] sm:$0xff]  ;;  %v9302_v27 = vld [vmem:[#allocation34_spill] sm:$0xff] }
 0x18e   : > { %v6125_v29 = vpop.permute.xlu1 %1170  ;;  %v1222_v11 = vmul.f32 %v6068_v56, %v9299_v20  ;;  %v6135_v4 = vpop.permute.xlu0 %1570  ;;  %v888_v47 = vmul.f32 %v6064_v45, %v9301_v13  ;;  %v9303_v9 = vld [vmem:[#allocation35_spill] sm:$0xff]  ;;  %v1226_v12 = vmul.f32 %v6068_v56, %v9304_v35  ;;  %v9306_v38 = vld [vmem:[#allocation37_spill] sm:$0xff]  ;;  %v9307_v20 = vld [vmem:[#allocation38_spill] sm:$0xff]  ;;  %v894_v13 = vmul.f32 %v6064_v45, %v9308_v61 }
 0x18f   : > { %9295 = vst [vmem:[#allocation12_spill] sm:$0xff] %v6125_v29  ;;  %9300 = vst [vmem:[#allocation7_spill] sm:$0xff] %v6135_v4  ;;  %v1224_v29 = vmul.f32 %v6068_v56, %v9302_v27  ;;  %v890_v36 = vmul.f32 %v6064_v45, %v9303_v9  ;;  %v892_v34 = vmul.f32 %v6064_v45, %v9306_v38  ;;  %v9310_v9 = vld [vmem:[#allocation41_spill] sm:$0xff]  ;;  %v9311_v35 = vld [vmem:[#allocation42_spill] sm:$0xff] }
 0x190   : > { %1566 = vperm.xlu1 %5184, %v9305_v3   ;;  %v1228_v4 = vmul.f32 %v6068_v56, %v9307_v20  ;;  %v1230_v27 = vmul.f32 %v6068_v56, %v9309_v31  ;;  %831 = vperm.xlu0 %5186, %v5825_v18   ;;  %v896_v51 = vmul.f32 %v6064_v45, %v9310_v9  ;;  %v9315_v61 = vld [vmem:[#allocation45_spill] sm:$0xff]  ;;  %v9316_v31 = vld [vmem:[#allocation46_spill] sm:$0xff]  ;;  %v9318_v45 = vld [vmem:[#allocation48_spill] sm:$0xff] }
 0x191   : > { %v1232_v3 = vmul.f32 %v6068_v56, %v9311_v35  ;;  %v898_v38 = vmul.f32 %v6072_v44, %v9312_v1  ;;  %v1234_v20 = vmul.f32 %v6076_v52, %v9313_v28  ;;  %v900_v25 = vmul.f32 %v6072_v44, %v9315_v61 }
 0x192   : > { %v6163_v30 = vpop.permute.xlu1 %1178  ;;  %v1236_v18 = vmul.f32 %v6076_v52, %v9316_v31  ;;  %v902_v9 = vmul.f32 %v6072_v44, %v9317_v24  ;;  %v1238_v35 = vmul.f32 %v6076_v52, %v9318_v45  ;;  %v6173_v56 = vpop.permute.xlu0 %1578  ;;  %v6175_v1 = vadd.f32 %v1214_v48, %v878_v57 }
 0x193   : > { %9314 = vst [vmem:[#allocation23_spill] sm:$0xff] %v6163_v30  ;;  %9319 = vst [vmem:[#allocation24_spill] sm:$0xff] %v6173_v56  ;;  %v6177_v23 = vadd.f32 %v1216_v50, %v880_v33  ;;  %v6179_v28 = vadd.f32 %v1218_v40, %v882_v42  ;;  %v6183_v61 = vrot.slane %v6036_v10, %v6030_v5  ;;  %v9320_v30 = vld [vmem:[#allocation9_spill] sm:$0xff]  ;;  %v9345_v56 = vld [vmem:[#allocation63_spill] sm:$0xff] }
 0x194   : > { %1574 = vperm.xlu1 %5184, %v9320_v30   ;;  %v6186_v31 = vadd.f32 %v1220_v8, %v884_v46  ;;  %v6188_v24 = vadd.f32 %v1222_v11, %v886_v54  ;;  %v6190_v14 = vadd.f32 %v1224_v29, %v888_v47  ;;  %v6192_v45 = vadd.f32 %v1226_v12, %v890_v36  ;;  %v9330_v42 = vld [vmem:[#allocation49_spill] sm:$0xff]  ;;  %v9332_v29 = vld [vmem:[#allocation51_spill] sm:$0xff]  ;;  %v9333_v46 = vld [vmem:[#allocation52_spill] sm:$0xff] }
 0x195   : > { %841 = vperm.xlu0 %5186, %v5835_v26   ;;  %v6195_v57 = vadd.f32 %v1228_v4, %v892_v34  ;;  %v6197_v48 = vadd.f32 %v1230_v27, %v894_v13  ;;  %v6199_v33 = vadd.f32 %v1232_v3, %v896_v51  ;;  %v6203_v10 = vrot.slane %v6038_v43, %v6030_v5  ;;  %v9331_v34 = vld [vmem:[#allocation50_spill] sm:$0xff]  ;;  %v9334_v8 = vld [vmem:[#allocation53_spill] sm:$0xff]  ;;  %v9337_v13 = vld [vmem:[#allocation55_spill] sm:$0xff] }
 0x196   : > { %9321 = vst [vmem:[#allocation67_spill] sm:$0xff] %v6188_v24  ;;  %9322 = vst [vmem:[#allocation25_spill] sm:$0xff] %v6190_v14  ;;  %v6205_v30 = vadd.f32 %v1234_v20, %v898_v38  ;;  %v6207_v50 = vadd.f32 %v1236_v18, %v900_v25  ;;  %v6209_v47 = vadd.f32 %v1238_v35, %v902_v9  ;;  %v9335_v11 = vld [vmem:[#allocation10_spill] sm:$0xff]  ;;  %v9338_v3 = vld [vmem:[#allocation56_spill] sm:$0xff] }
 0x197   : > { %9323 = vst [vmem:[#allocation26_spill] sm:$0xff] %v6192_v45  ;;  %9324 = vst [vmem:[#allocation27_spill] sm:$0xff] %v6195_v57  ;;  %v904_v40 = vmul.f32 %v6072_v44, %v9330_v42  ;;  %v1331_v26 = vpop.permute.xlu1 %1330  ;;  %v1240_v4 = vmul.f32 %v6076_v52, %v9331_v34  ;;  %v906_v51 = vmul.f32 %v6072_v44, %v9332_v29  ;;  %v532_v25 = vpop.permute.xlu0 %531  ;;  %v9336_v36 = vld [vmem:[#allocation54_spill] sm:$0xff]  ;;  %v9339_v20 = vld [vmem:[#allocation57_spill] sm:$0xff] }
 0x198   : > { %9325 = vst [vmem:[#allocation28_spill] sm:$0xff] %v6197_v48  ;;  %9326 = vst [vmem:[#allocation29_spill] sm:$0xff] %v6199_v33  ;;  %v1242_v43 = vmul.f32 %v6076_v52, %v9333_v46  ;;  %v908_v54 = vmul.f32 %v6072_v44, %v9334_v8  ;;  %1582 = vperm.xlu1 %5184, %v9335_v11   ;;  %v1244_v12 = vmul.f32 %v6076_v52, %v9336_v36  ;;  %v9340_v9 = vld [vmem:[#allocation58_spill] sm:$0xff]  ;;  %v9341_v42 = vld [vmem:[#allocation59_spill] sm:$0xff] }
 0x199   : > { %9327 = vst [vmem:[#allocation30_spill] sm:$0xff] %v6205_v30  ;;  %9328 = vst [vmem:[#allocation31_spill] sm:$0xff] %v6207_v50  ;;  %v910_v27 = vmul.f32 %v6072_v44, %v9337_v13  ;;  %v1246_v38 = vmul.f32 %v6076_v52, %v9338_v3  ;;  %v912_v18 = vmul.f32 %v6072_v44, %v9339_v20  ;;  %v9342_v29 = vld [vmem:[#allocation60_spill] sm:$0xff]  ;;  %v9343_v36 = vld [vmem:[#allocation61_spill] sm:$0xff] }
 0x19a   : > { %9329 = vst [vmem:[#allocation32_spill] sm:$0xff] %v6209_v47  ;;  %v1248_v35 = vmul.f32 %v6076_v52, %v9340_v9  ;;  %v914_v34 = vmul.f32 %v6090_v39, %v9341_v42  ;;  %v1250_v46 = vmul.f32 %v6094_v41, %v9342_v29  ;;  %v865_v8 = vmul.f32 %v6024_v49, %v532_v25  ;;  %v9344_v11 = vld [vmem:[#allocation62_spill] sm:$0xff]  ;;  %v9346_v47 = vld [vmem:[#allocation64_spill] sm:$0xff]  ;;  %v9347_v30 = vld [vmem:[#allocation65_spill] sm:$0xff] }
 0x19b   : > { %v916_v13 = vmul.f32 %v6090_v39, %v9343_v36  ;;  %v1252_v3 = vmul.f32 %v6094_v41, %v9344_v11  ;;  %v918_v20 = vmul.f32 %v6090_v39, %v9345_v56  ;;  %v1254_v9 = vmul.f32 %v6094_v41, %v9346_v47  ;;  %v1339_v50 = vpop.permute.xlu1 %1338  ;;  %v9348_v33 = vld [vmem:[#allocation66_spill] sm:$0xff]  ;;  %v9349_v25 = vld [vmem:[#allocation68_spill] sm:$0xff]  ;;  %v9350_v36 = vld [vmem:[#allocation69_spill] sm:$0xff]  ;;  %v537_v11 = vpop.permute.xlu0 %536 }
 0x19c   : > { %v920_v42 = vmul.f32 %v6090_v39, %v9347_v30  ;;  %v1256_v29 = vmul.f32 %v6094_v41, %v9348_v33  ;;  %v922_v44 = vmul.f32 %v6090_v39, %v9349_v25  ;;  %v1258_v48 = vmul.f32 %v6094_v41, %v9350_v36  ;;  %5187 = vset.pattern.permute.xlu1 %v9212_v7  ;;  %v9351_v47 = vld [vmem:[#allocation70_spill] sm:$0xff]  ;;  %v9352_v30 = vld [vmem:[#allocation71_spill] sm:$0xff] }
 0x19d   : > { %v6254_v56 = vadd.f32 %v1240_v4, %v904_v40  ;;  %v6256_v57 = vadd.f32 %v1242_v43, %v906_v51  ;;  %v924_v45 = vmul.f32 %v6090_v39, %v9351_v47  ;;  %v1260_v14 = vmul.f32 %v6094_v41, %v9352_v30  ;;  %v9366_v47 = vld [vmem:[#allocation76_spill] sm:$0xff]  ;;  %v9367_v30 = vld [vmem:[#allocation77_spill] sm:$0xff] }
 0x19e   : > { %v6262_v33 = vadd.f32 %v1244_v12, %v908_v54  ;;  %v6264_v24 = vadd.f32 %v1246_v38, %v910_v27  ;;  %v6268_v25 = vrot.slane %v6050_v21, %v6030_v5  ;;  %v1265_v7 = vadd.f32 %v6086_v58, %v865_v8  ;;  %v9363_v8 = vld [vmem:[#allocation74_spill] sm:$0xff]  ;;  %v9381_v5 = vld [vmem:[#allocation20_spill] sm:$0xff] }
 0x19f   : > { %v6271_v40 = vadd.f32 %v1248_v35, %v912_v18  ;;  %v6273_v4 = vadd.f32 %v1250_v46, %v914_v34  ;;  %v6275_v51 = vadd.f32 %v1252_v3, %v916_v13  ;;  %v1203_v43 = vmul.f32 %v6018_v55, %v5852_v2  ;;  %v1343_v36 = vpop.permute.xlu1 %1342  ;;  %v552_v38 = vpop.permute.xlu0 %551  ;;  %v9361_v34 = vld [vmem:[#allocation72_spill] sm:$0xff] }
 0x1a0   : > { %v6279_v54 = vadd.f32 %v1254_v9, %v918_v20  ;;  %v6281_v12 = vadd.f32 %v1256_v29, %v920_v42  ;;  %v6283_v27 = vadd.f32 %v1258_v48, %v922_v44  ;;  %v1601_v21 = vmul.f32 %v6105_v37, %v1331_v26  ;;  %v9365_v29 = vld [vmem:[#allocation75_spill] sm:$0xff] }
 0x1a1   : > { %9353 = vst [vmem:[#allocation33_spill] sm:$0xff] %v6271_v40  ;;  %9354 = vst [vmem:[#allocation34_spill] sm:$0xff] %v6273_v4  ;;  %v6286_v58 = vadd.f32 %v1260_v14, %v924_v45  ;;  %v6290_v18 = vmul.f32 %v6090_v39, %v5838_v60  ;;  %v1603_v35 = vmul.f32 %v6105_v37, %v1339_v50  ;;  %v9014_v4 = vmov 0.0  }
 0x1a2   : > { %9355 = vst [vmem:[#allocation35_spill] sm:$0xff] %v6275_v51  ;;  %9356 = vst [vmem:[#allocation36_spill] sm:$0xff] %v6279_v54  ;;  %v866_v2 = vmul.f32 %v6024_v49, %v537_v11  ;;  %v6296_v46 = vmul.f32 %v6094_v41, %v9361_v34  ;;  %v1202_v44 = vmul.f32 %v6018_v55, %v9363_v8  ;;  %v9372_v8 = vld [vmem:[#allocation81_spill] sm:$0xff]  ;;  %v9390_v54 = vld [vmem:[#allocation92_spill] sm:$0xff]  ;;  %v9400_v39 = vmov 0.0  }
 0x1a3   : > { %9357 = vst [vmem:[#allocation8_spill] sm:$0xff] %v6281_v12  ;;  %9358 = vst [vmem:[#allocation37_spill] sm:$0xff] %v6283_v27  ;;  %v1602_v48 = vmul.f32 %v6105_v37, %v5854_v53  ;;  %v1665_v14 = vadd.f32 %v1601_v21, %v1265_v7  ;;  %v1267_v45 = vadd.f32 %v1203_v43, %v6082_v63  ;;  %v1351_v26 = vpop.permute.xlu1 %1350  ;;  %v562_v20 = vpop.permute.xlu0 %561  ;;  %v9368_v7 = vld [vmem:[#allocation15_spill] sm:$0xff] }
 0x1a4   : > { %9359 = vst [vmem:[#allocation38_spill] sm:$0xff] %v6286_v58  ;;  %9360 = vst [vmem:[#allocation39_spill] sm:$0xff] %v6290_v18  ;;  %v1205_v60 = vmul.f32 %v6018_v55, %v5858_v59  ;;  %v1605_v50 = vmul.f32 %v6105_v37, %v5860_v32  ;;  %v1207_v13 = vmul.f32 %v6018_v55, %v5864_v0 }
 0x1a5   : > { %9362 = vst [vmem:[#allocation40_spill] sm:$0xff] %v6296_v46  ;;  %v6311_v3 = vmul.f32 %v6105_v37, %v5866_v62  ;;  %v1209_v53 = vmul.f32 %v6018_v55, %v5870_v16  ;;  %v6317_v63 = vmul.f32 %v6105_v37, %v5872_v15  ;;  %v6321_v59 = vmul.f32 %v6018_v55, %v5876_v22 }
 0x1a6   : > { %v1667_v32 = vadd.f32 %v1603_v35, %v1267_v45  ;;  %v1266_v9 = vadd.f32 %v1202_v44, %v866_v2  ;;  %v1604_v0 = vmul.f32 %v6105_v37, %v1343_v36  ;;  %v6326_v62 = vmul.f32 %v6105_v37, %v5878_v17  ;;  %v9369_v36 = vld [vmem:[#allocation78_spill] sm:$0xff]  ;;  %v9371_v35 = vld [vmem:[#allocation80_spill] sm:$0xff] }
 0x1a7   : > { %v6330_v16 = vmul.f32 %v6018_v55, %v5882_v6  ;;  %v6332_v42 = vmul.f32 5.0, %v1665_v14  ;;  %v869_v15 = vmul.f32 %v6024_v49, %v552_v38  ;;  %v6337_v22 = vmul.f32 %v6105_v37, %v5884_v19  ;;  %v1359_v43 = vpop.permute.xlu1 %1358  ;;  %v9370_v38 = vld [vmem:[#allocation79_spill] sm:$0xff]  ;;  %v572_v34 = vpop.permute.xlu0 %571 }
 0x1a8   : > { %v6341_v11 = vmul.f32 %v6018_v55, %v9365_v29  ;;  %v6345_v17 = vmul.f32 %v6105_v37, %v9366_v47  ;;  %v6349_v6 = vmul.f32 %v9368_v7, %v9367_v30  ;;  %v6353_v21 = vmul.f32 %v6183_v61, %v9369_v36  ;;  %v9374_v29 = vld [vmem:[#allocation19_spill] sm:$0xff] }
 0x1a9   : > { %9364 = vst [vmem:[#allocation41_spill] sm:$0xff] %v6332_v42  ;;  %v6357_v19 = vmul.f32 %v9368_v7, %v9370_v38  ;;  %v6361_v55 = vmul.f32 %v6183_v61, %v9371_v35  ;;  %v1606_v2 = vmul.f32 %v6105_v37, %v1351_v26  ;;  %v6366_v44 = vmul.f32 %v9368_v7, %v9372_v8  ;;  %v9375_v38 = vld [vmem:[#allocation82_spill] sm:$0xff]  ;;  %v9376_v35 = vld [vmem:[#allocation83_spill] sm:$0xff] }
 0x1aa   : > { %v6368_v14 = vmul.f32 5.0, %v1667_v32  ;;  %v1666_v45 = vadd.f32 %v1602_v48, %v1266_v9  ;;  %v1668_v47 = vadd.f32 %v1604_v0, %v9374_v29  ;;  %v1269_v30 = vadd.f32 %v1205_v60, %v869_v15  ;;  %v9377_v32 = vld [vmem:[#allocation84_spill] sm:$0xff]  ;;  %v9378_v9 = vld [vmem:[#allocation85_spill] sm:$0xff]  ;;  %v9379_v0 = vld [vmem:[#allocation86_spill] sm:$0xff] }
 0x1ab   : > { %v871_v36 = vmul.f32 %v6024_v49, %v562_v20  ;;  %vm1793_vm1 = vcmp.le.f32.partialorder %v6332_v42, 1.0  ;;  %vm1857_vm2 = vcmp.ge.f32.partialorder %v6332_v42, -1.0  ;;  %v6376_v26 = vmul.f32 %v6183_v61, %v9375_v38  ;;  %v1367_v20 = vpop.permute.xlu1 %1366  ;;  %v9380_v29 = vld [vmem:[#allocation87_spill] sm:$0xff]  ;;  %v582_v18 = vpop.permute.xlu0 %581 }
 0x1ac   : > { %9373 = vst [vmem:[#allocation42_spill] sm:$0xff] %v6368_v14  ;;  %v6380_v8 = vmul.f32 %v9368_v7, %v9376_v35  ;;  %v6384_v48 = vmul.f32 %v6183_v61, %v9377_v32  ;;  %v6388_v60 = vmul.f32 %v9368_v7, %v9378_v9  ;;  %v6392_v15 = vmul.f32 %v6183_v61, %v9379_v0  ;;  %v9382_v32 = vld [vmem:[#allocation88_spill] sm:$0xff]  ;;  %vm6409_vm3 = vmand %vm1793_vm1, %vm1857_vm2  ;;  %v9389_v42 = vld [vmem:[#allocation91_spill] sm:$0xff] }
 0x1ad   : > { %v6396_v38 = vmul.f32 %v9368_v7, %v9380_v29  ;;  %v1670_v35 = vadd.f32 %v1606_v2, %v9381_v5  ;;  %v1608_v46 = vmul.f32 %v6105_v37, %v1359_v43  ;;  %v6402_v58 = vmul.f32 %v6183_v61, %v9382_v32  ;;  %v9387_v29 = vld [vmem:[#allocation89_spill] sm:$0xff]  ;;  %v9388_v32 = vld [vmem:[#allocation90_spill] sm:$0xff] }
 0x1ae   : > { %v6404_v9 = vmul.f32 5.0, %v1668_v47  ;;  %v873_v27 = vmul.f32 %v6024_v49, %v572_v34  ;;  %vm1795_vm4 = vcmp.le.f32.partialorder %v6368_v14, 1.0  ;;  %v6414_v5 = vmul.f32 5.0, %v1666_v45 }
 0x1af   : > { %v1669_v43 = vadd.f32 %v1605_v50, %v1269_v30  ;;  %v1271_v2 = vadd.f32 %v1207_v13, %v871_v36  ;;  %vm1859_vm5 = vcmp.ge.f32.partialorder %v6368_v14, -1.0  ;;  %v6419_v47 = vmul.f32 %v9368_v7, %v9387_v29  ;;  %v1375_v50 = vpop.permute.xlu1 %1374  ;;  %v9392_v30 = vld [vmem:[#allocation21_spill] sm:$0xff]  ;;  %v592_v51 = vpop.permute.xlu0 %591 }
 0x1b0   : > { %9383 = vst [vmem:[#allocation43_spill] sm:$0xff] %v6404_v9  ;;  %9386 = vst [vmem:[#allocation44_spill] sm:$0xff] %v6414_v5  ;;  %v6423_v34 = vmul.f32 %v6183_v61, %v9388_v32  ;;  %v6427_v12 = vmul.f32 %v9368_v7, %v9389_v42  ;;  %v6431_v45 = vmul.f32 %v6183_v61, %v9390_v54  ;;  %v6433_v13 = vmul.f32 5.0, %v1670_v35  ;;  %v9398_v35 = vld [vmem:[#allocation95_spill] sm:$0xff] }
 0x1b1   : > { %v1672_v36 = vadd.f32 %v1608_v46, %v9392_v30  ;;  %v1610_v29 = vmul.f32 %v6105_v37, %v1367_v20  ;;  %v4869_v32 = vsel %vm6409_vm3, 1.0, %v9014_v4  ;;  %v1273_v40 = vadd.f32 %v1209_v53, %v873_v27  ;;  %vm6443_vm6 = vmand %vm1795_vm4, %vm1859_vm5  ;;  %v9396_v27 = vld [vmem:[#allocation93_spill] sm:$0xff]  ;;  %v9397_v53 = vld [vmem:[#allocation94_spill] sm:$0xff] }
 0x1b2   : > { %9391 = vst [vmem:[#allocation45_spill] sm:$0xff] %v6433_v13  ;;  %v875_v42 = vmul.f32 %v6024_v49, %v582_v18  ;;  %vm1796_vm7 = vcmp.le.f32.partialorder %v6404_v9, 1.0  ;;  %vm1860_vm8 = vcmp.ge.f32.partialorder %v6404_v9, -1.0  ;;  %v6449_v46 = vmul.f32 5.0, %v1669_v43 }
 0x1b3   : > { %v1671_v7 = vadd.f32 %v6311_v3, %v1271_v2  ;;  %vm1794_vm9 = vcmp.le.f32.partialorder %v6414_v5, 1.0  ;;  %vm1858_vm10 = vcmp.ge.f32.partialorder %v6414_v5, -1.0  ;;  %v6456_v18 = vmul.f32 %v6076_v52, %v9396_v27  ;;  %v1383_v43 = vpop.permute.xlu1 %1382  ;;  %v9399_v2 = vld [vmem:[#allocation22_spill] sm:$0xff]  ;;  %v602_v14 = vpop.permute.xlu0 %601  ;;  %vm1924_vm11 = vmand %vm1796_vm7, %vm1860_vm8 }
 0x1b4   : > { %9395 = vst [vmem:[#allocation46_spill] sm:$0xff] %v6449_v46  ;;  %v6460_v20 = vmul.f32 %v6203_v10, %v9397_v53  ;;  %v6464_v0 = vmul.f32 %v6076_v52, %v9398_v35  ;;  %v2114_v30 = vsel %vm2113_vm0, %v4869_v32, inf  ;;  %v6467_v3 = vmul.f32 5.0, %v1672_v36  ;;  %vm1922_vm13 = vmand %vm1794_vm9, %vm1858_vm10 }
 0x1b5   : > { %v1674_v4 = vadd.f32 %v1610_v29, %v9399_v2  ;;  %2115 = vmin.xlane.f32.xlu0 %v2114_v30  ;;  %v4871_v27 = vsel %vm6443_vm6, 1.0, %v9400_v39  ;;  %vm1798_vm12 = vcmp.le.f32.partialorder %v6433_v13, 1.0  ;;  %v1673_v53 = vadd.f32 %v6317_v63, %v1273_v40  ;;  %v9401_v40 = vld [vmem:[#allocation96_spill] sm:$0xff] }
 0x1b6   : > { %v1275_v36 = vadd.f32 %v6321_v59, %v875_v42  ;;  %v1612_v32 = vmul.f32 %v6105_v37, %v1375_v50  ;;  %vm1862_vm14 = vcmp.ge.f32.partialorder %v6433_v13, -1.0  ;;  %v6486_v29 = vmul.f32 5.0, %v1671_v7  ;;  %v9402_v59 = vld [vmem:[#allocation97_spill] sm:$0xff] }
 0x1b7   : > { %v877_v54 = vmul.f32 %v6024_v49, %v592_v51  ;;  %vm1797_vm15 = vcmp.le.f32.partialorder %v6449_v46, 1.0  ;;  %vm1861_vm1 = vcmp.ge.f32.partialorder %v6449_v46, -1.0  ;;  %v6493_v63 = vmul.f32 %v6203_v10, %v9401_v40  ;;  %v1391_v42 = vpop.permute.xlu1 %1390  ;;  %v612_v2 = vpop.permute.xlu0 %611  ;;  %vm1926_vm2 = vmand %vm1798_vm12, %vm1862_vm14 }
 0x1b8   : > { %v6497_v50 = vmul.f32 %v6076_v52, %v9402_v59  ;;  %v2120_v35 = vsel %vm2113_vm0, %v4871_v27, inf  ;;  %v4872_v7 = vsel %vm1924_vm11, 1.0, %v9400_v39  ;;  %v6501_v30 = vmul.f32 5.0, %v1674_v4  ;;  %v9403_v59 = vld [vmem:[#allocation11_spill] sm:$0xff]  ;;  %vm6518_vm4 = vmand %vm1797_vm15, %vm1861_vm1 }
 0x1b9   : > { %v1614_v51 = vmul.f32 %v6105_v37, %v1383_v43  ;;  %2121 = vmin.xlane.f32.xlu0 %v2120_v35  ;;  %v4870_v5 = vsel %vm1922_vm13, 1.0, %v9400_v39  ;;  %vm1800_vm3 = vcmp.le.f32.partialorder %v6467_v3, 1.0  ;;  %v6510_v40 = vmul.f32 5.0, %v1673_v53 }
 0x1ba   : > { %v1675_v27 = vadd.f32 %v6326_v62, %v1275_v36  ;;  %v1676_v4 = vadd.f32 %v1612_v32, %v9403_v59  ;;  %vm1864_vm5 = vcmp.ge.f32.partialorder %v6467_v3, -1.0  ;;  %v1277_v35 = vadd.f32 %v6330_v16, %v877_v54  ;;  %v9406_v62 = vld [vmem:[#allocation98_spill] sm:$0xff] }
 0x1bb   : > { %v879_v13 = vmul.f32 %v6024_v49, %v602_v14  ;;  %vm1799_vm6 = vcmp.le.f32.partialorder %v6486_v29, 1.0  ;;  %vm1863_vm7 = vcmp.ge.f32.partialorder %v6486_v29, -1.0  ;;  %v6529_v53 = vmul.f32 %v6203_v10, %v9406_v62  ;;  %v1399_v36 = vpop.permute.xlu1 %1398  ;;  %v622_v49 = vpop.permute.xlu0 %621  ;;  %vm1928_vm8 = vmand %vm1800_vm3, %vm1864_vm5 }
 0x1bc   : > { %v2123_v32 = vsel %vm2113_vm0, %v4872_v7, inf  ;;  %v2117_v59 = vsel %vm2113_vm0, %v4870_v5, inf  ;;  %v4874_v46 = vsel %vm1926_vm2, 1.0, %v9400_v39  ;;  %v1678_v9 = vadd.f32 %v1614_v51, %v6175_v1  ;;  %v9408_v1 = vld [vmem:[#allocation14_spill] sm:$0xff]  ;;  %vm6553_vm10 = vmand %vm1799_vm6, %vm1863_vm7 }
 0x1bd   : > { %v1616_v16 = vmul.f32 %v6105_v37, %v1391_v42  ;;  %2124 = vmin.xlane.f32.xlu0 %v2123_v32  ;;  %2118 = vmin.xlane.f32.xlu1 %v2117_v59  ;;  %v4873_v14 = vsel %vm6518_vm4, 1.0, %v9400_v39  ;;  %vm1802_vm9 = vcmp.le.f32.partialorder %v6501_v30, 1.0  ;;  %v6544_v5 = vmul.f32 5.0, %v1675_v27  ;;  %v9411_v27 = vld [vmem:[#allocation99_spill] sm:$0xff] }
 0x1be   : > { %v6546_v54 = vmul.f32 5.0, %v1676_v4  ;;  %v881_v37 = vmul.f32 %v9408_v1, %v612_v2  ;;  %vm1866_vm11 = vcmp.ge.f32.partialorder %v6501_v30, -1.0  ;;  %v1677_v7 = vadd.f32 %v6337_v22, %v1277_v35 }
 0x1bf   : > { %9407 = vst [vmem:[#allocation47_spill] sm:$0xff] %v6544_v5  ;;  %v1279_v51 = vadd.f32 %v6341_v11, %v879_v13  ;;  %vm1801_vm12 = vcmp.le.f32.partialorder %v6510_v40, 1.0  ;;  %vm1865_vm13 = vcmp.ge.f32.partialorder %v6510_v40, -1.0  ;;  %v6564_v2 = vmul.f32 %v6076_v52, %v9411_v27  ;;  %v1407_v4 = vpop.permute.xlu1 %1406  ;;  %v632_v13 = vpop.permute.xlu0 %631  ;;  %vm1930_vm14 = vmand %vm1802_vm9, %vm1866_vm11 }
 0x1c0   : > { %v2129_v43 = vsel %vm2113_vm0, %v4874_v46, inf  ;;  %v2126_v62 = vsel %vm2113_vm0, %v4873_v14, inf  ;;  %v4876_v32 = vsel %vm1928_vm8, 1.0, %v9400_v39  ;;  %v6569_v59 = vmul.f32 5.0, %v1678_v9  ;;  %vm6586_vm15 = vmand %vm1801_vm12, %vm1865_vm13 }
 0x1c1   : > { %v1680_v22 = vadd.f32 %v1616_v16, %v6177_v23  ;;  %v1618_v11 = vmul.f32 %v6183_v61, %v1399_v36  ;;  %2130 = vmin.xlane.f32.xlu0 %v2129_v43  ;;  %2127 = vmin.xlane.f32.xlu1 %v2126_v62  ;;  %v4875_v35 = vsel %vm6553_vm10, 1.0, %v9400_v39  ;;  %v1281_v46 = vadd.f32 %v6349_v6, %v881_v37  ;;  %v9415_v6 = vld [vmem:[#allocation100_spill] sm:$0xff] }
 0x1c2   : > { %v883_v9 = vmul.f32 %v9408_v1, %v622_v49  ;;  %vm1804_vm1 = vcmp.le.f32.partialorder %v6546_v54, 1.0  ;;  %vm1868_vm2 = vcmp.ge.f32.partialorder %v6546_v54, -1.0  ;;  %v6592_v36 = vmul.f32 5.0, %v1677_v7 }
 0x1c3   : > { %v1679_v16 = vadd.f32 %v6345_v17, %v1279_v51  ;;  %vm1803_vm3 = vcmp.le.f32.partialorder %v6544_v5, 1.0  ;;  %vm1867_vm4 = vcmp.ge.f32.partialorder %v6544_v5, -1.0  ;;  %v6599_v49 = vmul.f32 %v6203_v10, %v9415_v6  ;;  %v1415_v14 = vpop.permute.xlu1 %1414  ;;  %v642_v17 = vpop.permute.xlu0 %641  ;;  %vm1932_vm5 = vmand %vm1804_vm1, %vm1868_vm2 }
 0x1c4   : > { %9414 = vst [vmem:[#allocation48_spill] sm:$0xff] %v6592_v36  ;;  %v2135_v37 = vsel %vm2113_vm0, %v4876_v32, inf  ;;  %v2132_v42 = vsel %vm2113_vm0, %v4875_v35, inf  ;;  %v4878_v27 = vsel %vm1930_vm14, 1.0, %v9400_v39  ;;  %v6604_v43 = vmul.f32 5.0, %v1680_v22  ;;  %vm6622_vm7 = vmand %vm1803_vm3, %vm1867_vm4 }
 0x1c5   : > { %v1682_v7 = vadd.f32 %v1618_v11, %v6179_v28  ;;  %2136 = vmin.xlane.f32.xlu0 %v2135_v37  ;;  %2133 = vmin.xlane.f32.xlu1 %v2132_v42  ;;  %v4877_v51 = vsel %vm6586_vm15, 1.0, %v9400_v39  ;;  %vm1806_vm6 = vcmp.le.f32.partialorder %v6569_v59, 1.0  ;;  %v1681_v62 = vadd.f32 %v6353_v21, %v1281_v46  ;;  %v9419_v21 = vld [vmem:[#allocation101_spill] sm:$0xff] }
 0x1c6   : > { %v1283_v32 = vadd.f32 %v6357_v19, %v883_v9  ;;  %v1620_v28 = vmul.f32 %v6183_v61, %v1407_v4  ;;  %vm1870_vm8 = vcmp.ge.f32.partialorder %v6569_v59, -1.0  ;;  %v6627_v11 = vmul.f32 5.0, %v1679_v16 }
 0x1c7   : > { %v885_v35 = vmul.f32 %v9408_v1, %v632_v13  ;;  %vm1805_vm9 = vcmp.le.f32.partialorder %v6592_v36, 1.0  ;;  %vm1869_vm10 = vcmp.ge.f32.partialorder %v6592_v36, -1.0  ;;  %v6634_v19 = vmul.f32 %v6076_v52, %v9419_v21  ;;  %v1423_v4 = vpop.permute.xlu1 %1422  ;;  %v652_v13 = vpop.permute.xlu0 %651  ;;  %vm1934_vm11 = vmand %vm1806_vm6, %vm1870_vm8 }
 0x1c8   : > { %9418 = vst [vmem:[#allocation9_spill] sm:$0xff] %v6627_v11  ;;  %v2141_v46 = vsel %vm2113_vm0, %v4878_v27, inf  ;;  %v2138_v9 = vsel %vm2113_vm0, %v4877_v51, inf  ;;  %v4880_v23 = vsel %vm1932_vm5, 1.0, %v9400_v39  ;;  %v6639_v6 = vmul.f32 5.0, %v1682_v7  ;;  %vm6658_vm13 = vmand %vm1805_vm9, %vm1869_vm10 }
 0x1c9   : > { %v1622_v16 = vmul.f32 %v6183_v61, %v1415_v14  ;;  %2142 = vmin.xlane.f32.xlu0 %v2141_v46  ;;  %2139 = vmin.xlane.f32.xlu1 %v2138_v9  ;;  %v4879_v37 = vsel %vm6622_vm7, 1.0, %v9400_v39  ;;  %vm1808_vm12 = vcmp.le.f32.partialorder %v6604_v43, 1.0  ;;  %v6650_v42 = vmul.f32 5.0, %v1681_v62  ;;  %v9424_v46 = vld [vmem:[#allocation67_spill] sm:$0xff] }
 0x1ca   : > { %v1683_v27 = vadd.f32 %v6361_v55, %v1283_v32  ;;  %v1684_v14 = vadd.f32 %v1620_v28, %v6186_v31  ;;  %vm1872_vm14 = vcmp.ge.f32.partialorder %v6604_v43, -1.0  ;;  %v1285_v51 = vadd.f32 %v6366_v44, %v885_v35  ;;  %v9423_v55 = vld [vmem:[#allocation102_spill] sm:$0xff] }
 0x1cb   : > { %9420 = vst [vmem:[#allocation49_spill] sm:$0xff] %v6650_v42  ;;  %v887_v22 = vmul.f32 %v9408_v1, %v642_v17  ;;  %vm1807_vm15 = vcmp.le.f32.partialorder %v6627_v11, 1.0  ;;  %vm1871_vm1 = vcmp.ge.f32.partialorder %v6627_v11, -1.0  ;;  %v6669_v31 = vmul.f32 %v6203_v10, %v9423_v55  ;;  %v1431_v62 = vpop.permute.xlu1 %1430  ;;  %v662_v17 = vpop.permute.xlu0 %661  ;;  %vm1936_vm2 = vmand %vm1808_vm12, %vm1872_vm14 }
 0x1cc   : > { %v2147_v32 = vsel %vm2113_vm0, %v4880_v23, inf  ;;  %v2144_v28 = vsel %vm2113_vm0, %v4879_v37, inf  ;;  %v4882_v21 = vsel %vm1934_vm11, 1.0, %v9400_v39  ;;  %v1686_v9 = vadd.f32 %v1622_v16, %v9424_v46  ;;  %vm6693_vm4 = vmand %vm1807_vm15, %vm1871_vm1 }
 0x1cd   : > { %v1624_v44 = vmul.f32 %v6183_v61, %v1423_v4  ;;  %2148 = vmin.xlane.f32.xlu0 %v2147_v32  ;;  %2145 = vmin.xlane.f32.xlu1 %v2144_v28  ;;  %v4881_v35 = vsel %vm6658_vm13, 1.0, %v9400_v39  ;;  %vm1810_vm3 = vcmp.le.f32.partialorder %v6639_v6, 1.0  ;;  %v6684_v23 = vmul.f32 5.0, %v1683_v27  ;;  %v9428_v27 = vld [vmem:[#allocation103_spill] sm:$0xff] }
 0x1ce   : > { %v6686_v37 = vmul.f32 5.0, %v1684_v14  ;;  %v889_v4 = vmul.f32 %v9408_v1, %v652_v13  ;;  %vm1874_vm5 = vcmp.ge.f32.partialorder %v6639_v6, -1.0  ;;  %v1685_v7 = vadd.f32 %v6376_v26, %v1285_v51  ;;  %v9429_v26 = vld [vmem:[#allocation25_spill] sm:$0xff] }
 0x1cf   : > { %9425 = vst [vmem:[#allocation50_spill] sm:$0xff] %v6684_v23  ;;  %v1287_v55 = vadd.f32 %v6380_v8, %v887_v22  ;;  %vm1809_vm6 = vcmp.le.f32.partialorder %v6650_v42, 1.0  ;;  %vm1873_vm7 = vcmp.ge.f32.partialorder %v6650_v42, -1.0  ;;  %v6704_v13 = vmul.f32 %v6076_v52, %v9428_v27  ;;  %v1439_v14 = vpop.permute.xlu1 %1438  ;;  %v672_v22 = vpop.permute.xlu0 %671  ;;  %vm1938_vm8 = vmand %vm1810_vm3, %vm1874_vm5 }
 0x1d0   : > { %v2153_v32 = vsel %vm2113_vm0, %v4882_v21, inf  ;;  %v2150_v28 = vsel %vm2113_vm0, %v4881_v35, inf  ;;  %v4884_v46 = vsel %vm1936_vm2, 1.0, %v9400_v39  ;;  %v6709_v11 = vmul.f32 5.0, %v1686_v9  ;;  %vm6726_vm9 = vmand %vm1809_vm6, %vm1873_vm7 }
 0x1d1   : > { %v1688_v51 = vadd.f32 %v1624_v44, %v9429_v26  ;;  %v1626_v8 = vmul.f32 %v6183_v61, %v1431_v62  ;;  %2154 = vmin.xlane.f32.xlu0 %v2153_v32  ;;  %2151 = vmin.xlane.f32.xlu1 %v2150_v28  ;;  %v4883_v27 = vsel %vm6693_vm4, 1.0, %v9400_v39  ;;  %v1289_v21 = vadd.f32 %v6388_v60, %v889_v4  ;;  %v9433_v60 = vld [vmem:[#allocation104_spill] sm:$0xff] }
 0x1d2   : > { %v891_v9 = vmul.f32 %v9408_v1, %v662_v17  ;;  %vm1812_vm10 = vcmp.le.f32.partialorder %v6686_v37, 1.0  ;;  %vm1876_vm11 = vcmp.ge.f32.partialorder %v6686_v37, -1.0  ;;  %v6732_v44 = vmul.f32 5.0, %v1685_v7  ;;  %v9434_v7 = vld [vmem:[#allocation26_spill] sm:$0xff] }
 0x1d3   : > { %v1687_v35 = vadd.f32 %v6384_v48, %v1287_v55  ;;  %vm1811_vm12 = vcmp.le.f32.partialorder %v6684_v23, 1.0  ;;  %vm1875_vm13 = vcmp.ge.f32.partialorder %v6684_v23, -1.0  ;;  %v6739_v17 = vmul.f32 %v6203_v10, %v9433_v60  ;;  %v1447_v4 = vpop.permute.xlu1 %1446  ;;  %v682_v48 = vpop.permute.xlu0 %681  ;;  %vm1940_vm14 = vmand %vm1812_vm10, %vm1876_vm11 }
 0x1d4   : > { %9432 = vst [vmem:[#allocation51_spill] sm:$0xff] %v6732_v44  ;;  %v2159_v16 = vsel %vm2113_vm0, %v4884_v46, inf  ;;  %v2156_v32 = vsel %vm2113_vm0, %v4883_v27, inf  ;;  %v4886_v28 = vsel %vm1938_vm8, 1.0, %v9400_v39  ;;  %v6744_v26 = vmul.f32 5.0, %v1688_v51  ;;  %vm6762_vm1 = vmand %vm1811_vm12, %vm1875_vm13 }
 0x1d5   : > { %v1690_v42 = vadd.f32 %v1626_v8, %v9434_v7  ;;  %2160 = vmin.xlane.f32.xlu0 %v2159_v16  ;;  %2157 = vmin.xlane.f32.xlu1 %v2156_v32  ;;  %v4885_v55 = vsel %vm6726_vm9, 1.0, %v9400_v39  ;;  %vm1814_vm15 = vcmp.le.f32.partialorder %v6709_v11, 1.0  ;;  %v1689_v46 = vadd.f32 %v6392_v15, %v1289_v21  ;;  %v9438_v15 = vld [vmem:[#allocation105_spill] sm:$0xff] }
 0x1d6   : > { %v1291_v51 = vadd.f32 %v6396_v38, %v891_v9  ;;  %v1628_v8 = vmul.f32 %v6183_v61, %v1439_v14  ;;  %vm1878_vm2 = vcmp.ge.f32.partialorder %v6709_v11, -1.0  ;;  %v6767_v62 = vmul.f32 5.0, %v1687_v35 }
 0x1d7   : > { %v893_v60 = vmul.f32 %v9408_v1, %v672_v22  ;;  %vm1813_vm3 = vcmp.le.f32.partialorder %v6732_v44, 1.0  ;;  %vm1877_vm4 = vcmp.ge.f32.partialorder %v6732_v44, -1.0  ;;  %v6774_v38 = vmul.f32 %v6076_v52, %v9438_v15  ;;  %v1455_v14 = vpop.permute.xlu1 %1454  ;;  %v692_v22 = vpop.permute.xlu0 %691  ;;  %vm1942_vm5 = vmand %vm1814_vm15, %vm1878_vm2  ;;  %v9443_v44 = vld [vmem:[#allocation28_spill] sm:$0xff] }
 0x1d8   : > { %9437 = vst [vmem:[#allocation52_spill] sm:$0xff] %v6767_v62  ;;  %v2165_v21 = vsel %vm2113_vm0, %v4886_v28, inf  ;;  %v2162_v9 = vsel %vm2113_vm0, %v4885_v55, inf  ;;  %v4888_v16 = vsel %vm1940_vm14, 1.0, %v9400_v39  ;;  %v6779_v32 = vmul.f32 5.0, %v1690_v42  ;;  %v9439_v55 = vld [vmem:[#allocation27_spill] sm:$0xff]  ;;  %vm6798_vm7 = vmand %vm1813_vm3, %vm1877_vm4 }
 0x1d9   : > { %v1630_v35 = vmul.f32 %v6183_v61, %v1447_v4  ;;  %2166 = vmin.xlane.f32.xlu0 %v2165_v21  ;;  %2163 = vmin.xlane.f32.xlu1 %v2162_v9  ;;  %v4887_v7 = vsel %vm6762_vm1, 1.0, %v9400_v39  ;;  %vm1816_vm6 = vcmp.le.f32.partialorder %v6744_v26, 1.0  ;;  %v6790_v28 = vmul.f32 5.0, %v1689_v46 }
 0x1da   : > { %v1691_v42 = vadd.f32 %v6402_v58, %v1291_v51  ;;  %v1692_v4 = vadd.f32 %v1628_v8, %v9439_v55  ;;  %vm1880_vm8 = vcmp.ge.f32.partialorder %v6744_v26, -1.0  ;;  %v1293_v15 = vadd.f32 %v6419_v47, %v893_v60  ;;  %v9442_v58 = vld [vmem:[#allocation106_spill] sm:$0xff] }
 0x1db   : > { %v895_v21 = vmul.f32 %v9408_v1, %v682_v48  ;;  %vm1815_vm9 = vcmp.le.f32.partialorder %v6767_v62, 1.0  ;;  %vm1879_vm10 = vcmp.ge.f32.partialorder %v6767_v62, -1.0  ;;  %v6809_v46 = vmul.f32 %v6203_v10, %v9442_v58  ;;  %v1463_v51 = vpop.permute.xlu1 %1462  ;;  %v702_v1 = vpop.permute.xlu0 %701  ;;  %vm1944_vm11 = vmand %vm1816_vm6, %vm1880_vm8 }
 0x1dc   : > { %v2171_v8 = vsel %vm2113_vm0, %v4888_v16, inf  ;;  %v2168_v9 = vsel %vm2113_vm0, %v4887_v7, inf  ;;  %v4890_v55 = vsel %vm1942_vm5, 1.0, %v9400_v39  ;;  %v1694_v23 = vadd.f32 %v1630_v35, %v9443_v44  ;;  %v9445_v44 = vld [vmem:[#allocation16_spill] sm:$0xff]  ;;  %vm6833_vm13 = vmand %vm1815_vm9, %vm1879_vm10 }
 0x1dd   : > { %v1632_v47 = vmul.f32 %v6183_v61, %v1455_v14  ;;  %2172 = vmin.xlane.f32.xlu0 %v2171_v8  ;;  %2169 = vmin.xlane.f32.xlu1 %v2168_v9  ;;  %v4889_v48 = vsel %vm6798_vm7, 1.0, %v9400_v39  ;;  %vm1818_vm12 = vcmp.le.f32.partialorder %v6779_v32, 1.0  ;;  %v6824_v60 = vmul.f32 5.0, %v1691_v42  ;;  %v9448_v42 = vld [vmem:[#allocation107_spill] sm:$0xff] }
 0x1de   : > { %v6826_v16 = vmul.f32 5.0, %v1692_v4  ;;  %v897_v61 = vmul.f32 %v9445_v44, %v692_v22  ;;  %vm1882_vm14 = vcmp.ge.f32.partialorder %v6779_v32, -1.0  ;;  %v1693_v35 = vadd.f32 %v6423_v34, %v1293_v15  ;;  %v9449_v34 = vld [vmem:[#allocation29_spill] sm:$0xff] }
 0x1df   : > { %9444 = vst [vmem:[#allocation53_spill] sm:$0xff] %v6824_v60  ;;  %v1295_v7 = vadd.f32 %v6427_v12, %v895_v21  ;;  %vm1817_vm15 = vcmp.le.f32.partialorder %v6790_v28, 1.0  ;;  %vm1881_vm1 = vcmp.ge.f32.partialorder %v6790_v28, -1.0  ;;  %v6844_v22 = vmul.f32 %v6076_v52, %v9448_v42  ;;  %v1471_v4 = vpop.permute.xlu1 %1470  ;;  %v712_v21 = vpop.permute.xlu0 %711  ;;  %vm1946_vm2 = vmand %vm1818_vm12, %vm1882_vm14 }
 0x1e0   : > { %v2177_v27 = vsel %vm2113_vm0, %v4890_v55, inf  ;;  %v2174_v58 = vsel %vm2113_vm0, %v4889_v48, inf  ;;  %v4892_v8 = vsel %vm1944_vm11, 1.0, %v9400_v39  ;;  %v6849_v9 = vmul.f32 5.0, %v1694_v23  ;;  %vm6866_vm3 = vmand %vm1817_vm15, %vm1881_vm1 }
 0x1e1   : > { %v1696_v15 = vadd.f32 %v1632_v47, %v9449_v34  ;;  %v1634_v12 = vmul.f32 %v6203_v10, %v1463_v51  ;;  %2178 = vmin.xlane.f32.xlu0 %v2177_v27  ;;  %2175 = vmin.xlane.f32.xlu1 %v2174_v58  ;;  %v4891_v52 = vsel %vm6833_vm13, 1.0, %v9400_v39  ;;  %v1297_v55 = vadd.f32 %v6456_v18, %v897_v61  ;;  %v9453_v18 = vld [vmem:[#allocation108_spill] sm:$0xff] }
 0x1e2   : > { %v899_v23 = vmul.f32 %v9445_v44, %v702_v1  ;;  %vm1820_vm4 = vcmp.le.f32.partialorder %v6826_v16, 1.0  ;;  %vm1884_vm5 = vcmp.ge.f32.partialorder %v6826_v16, -1.0  ;;  %v6872_v47 = vmul.f32 5.0, %v1693_v35  ;;  %v9454_v35 = vld [vmem:[#allocation30_spill] sm:$0xff] }
 0x1e3   : > { %v1695_v48 = vadd.f32 %v6431_v45, %v1295_v7  ;;  %vm1819_vm6 = vcmp.le.f32.partialorder %v6824_v60, 1.0  ;;  %vm1883_vm7 = vcmp.ge.f32.partialorder %v6824_v60, -1.0  ;;  %v6879_v1 = vmul.f32 %v6203_v10, %v9453_v18  ;;  %v1479_v61 = vpop.permute.xlu1 %1478  ;;  %v722_v45 = vpop.permute.xlu0 %721  ;;  %vm1948_vm8 = vmand %vm1820_vm4, %vm1884_vm5 }
 0x1e4   : > { %9452 = vst [vmem:[#allocation54_spill] sm:$0xff] %v6872_v47  ;;  %v2183_v14 = vsel %vm2113_vm0, %v4892_v8, inf  ;;  %v2180_v42 = vsel %vm2113_vm0, %v4891_v52, inf  ;;  %v4894_v27 = vsel %vm1946_vm2, 1.0, %v9400_v39  ;;  %v6884_v58 = vmul.f32 5.0, %v1696_v15  ;;  %vm6902_vm10 = vmand %vm1819_vm6, %vm1883_vm7 }
 0x1e5   : > { %v1698_v34 = vadd.f32 %v1634_v12, %v9454_v35  ;;  %2184 = vmin.xlane.f32.xlu0 %v2183_v14  ;;  %2181 = vmin.xlane.f32.xlu1 %v2180_v42  ;;  %v4893_v7 = vsel %vm6866_vm3, 1.0, %v9400_v39  ;;  %vm1822_vm9 = vcmp.le.f32.partialorder %v6849_v9, 1.0  ;;  %v1697_v8 = vadd.f32 %v6460_v20, %v1297_v55  ;;  %v9458_v20 = vld [vmem:[#allocation109_spill] sm:$0xff] }
 0x1e6   : > { %v1299_v15 = vadd.f32 %v6464_v0, %v899_v23  ;;  %v1636_v12 = vmul.f32 %v6203_v10, %v1471_v4  ;;  %vm1886_vm11 = vcmp.ge.f32.partialorder %v6849_v9, -1.0  ;;  %v6907_v51 = vmul.f32 5.0, %v1695_v48 }
 0x1e7   : > { %v901_v18 = vmul.f32 %v9445_v44, %v712_v21  ;;  %vm1821_vm12 = vcmp.le.f32.partialorder %v6872_v47, 1.0  ;;  %vm1885_vm13 = vcmp.ge.f32.partialorder %v6872_v47, -1.0  ;;  %v6914_v0 = vmul.f32 %v6094_v41, %v9458_v20  ;;  %v1487_v4 = vpop.permute.xlu1 %1486  ;;  %v732_v21 = vpop.permute.xlu0 %731  ;;  %vm1950_vm14 = vmand %vm1822_vm9, %vm1886_vm11  ;;  %v9464_v47 = vld [vmem:[#allocation32_spill] sm:$0xff] }
 0x1e8   : > { %9457 = vst [vmem:[#allocation55_spill] sm:$0xff] %v6907_v51  ;;  %v2189_v55 = vsel %vm2113_vm0, %v4894_v27, inf  ;;  %v2186_v23 = vsel %vm2113_vm0, %v4893_v7, inf  ;;  %v4896_v14 = vsel %vm1948_vm8, 1.0, %v9400_v39  ;;  %v6919_v42 = vmul.f32 5.0, %v1698_v34  ;;  %v9460_v7 = vld [vmem:[#allocation31_spill] sm:$0xff]  ;;  %vm6938_vm1 = vmand %vm1821_vm12, %vm1885_vm13 }
 0x1e9   : > { %v1638_v48 = vmul.f32 %v6203_v10, %v1479_v61  ;;  %2190 = vmin.xlane.f32.xlu0 %v2189_v55  ;;  %2187 = vmin.xlane.f32.xlu1 %v2186_v23  ;;  %v4895_v35 = vsel %vm6902_vm10, 1.0, %v9400_v39  ;;  %vm1824_vm15 = vcmp.le.f32.partialorder %v6884_v58, 1.0  ;;  %v6930_v27 = vmul.f32 5.0, %v1697_v8 }
 0x1ea   : > { %v1699_v34 = vadd.f32 %v6493_v63, %v1299_v15  ;;  %v1700_v61 = vadd.f32 %v1636_v12, %v9460_v7  ;;  %vm1888_vm2 = vcmp.ge.f32.partialorder %v6884_v58, -1.0  ;;  %v1301_v20 = vadd.f32 %v6497_v50, %v901_v18  ;;  %v9463_v63 = vld [vmem:[#allocation110_spill] sm:$0xff] }
 0x1eb   : > { %9459 = vst [vmem:[#allocation56_spill] sm:$0xff] %v6930_v27  ;;  %v903_v55 = vmul.f32 %v9445_v44, %v722_v45  ;;  %vm1823_vm3 = vcmp.le.f32.partialorder %v6907_v51, 1.0  ;;  %vm1887_vm4 = vcmp.ge.f32.partialorder %v6907_v51, -1.0  ;;  %v6949_v8 = vmul.f32 %v6268_v25, %v9463_v63  ;;  %v1495_v15 = vpop.permute.xlu1 %1494  ;;  %v742_v45 = vpop.permute.xlu0 %741  ;;  %vm1952_vm5 = vmand %vm1824_vm15, %vm1888_vm2 }
 0x1ec   : > { %v2195_v12 = vsel %vm2113_vm0, %v4896_v14, inf  ;;  %v2192_v23 = vsel %vm2113_vm0, %v4895_v35, inf  ;;  %v4898_v7 = vsel %vm1950_vm14, 1.0, %v9400_v39  ;;  %v1702_v60 = vadd.f32 %v1638_v48, %v9464_v47  ;;  %vm6973_vm7 = vmand %vm1823_vm3, %vm1887_vm4 }
 0x1ed   : > { %v1640_v50 = vmul.f32 %v6203_v10, %v1487_v4  ;;  %2196 = vmin.xlane.f32.xlu0 %v2195_v12  ;;  %2193 = vmin.xlane.f32.xlu1 %v2192_v23  ;;  %v4897_v18 = vsel %vm6938_vm1, 1.0, %v9400_v39  ;;  %vm1826_vm6 = vcmp.le.f32.partialorder %v6919_v42, 1.0  ;;  %v6964_v14 = vmul.f32 5.0, %v1699_v34  ;;  %v9469_v34 = vld [vmem:[#allocation111_spill] sm:$0xff] }
 0x1ee   : > { %v6966_v35 = vmul.f32 5.0, %v1700_v61  ;;  %v905_v47 = vmul.f32 %v9445_v44, %v732_v21  ;;  %vm1890_vm8 = vcmp.ge.f32.partialorder %v6919_v42, -1.0  ;;  %v1701_v48 = vadd.f32 %v6529_v53, %v1301_v20 }
 0x1ef   : > { %9465 = vst [vmem:[#allocation57_spill] sm:$0xff] %v6964_v14  ;;  %v1303_v52 = vadd.f32 %v6564_v2, %v903_v55  ;;  %vm1825_vm9 = vcmp.le.f32.partialorder %v6930_v27, 1.0  ;;  %vm1889_vm10 = vcmp.ge.f32.partialorder %v6930_v27, -1.0  ;;  %v6984_v21 = vmul.f32 %v6094_v41, %v9469_v34  ;;  %v1503_v61 = vpop.permute.xlu1 %1502  ;;  %v752_v20 = vpop.permute.xlu0 %751  ;;  %vm1954_vm11 = vmand %vm1826_vm6, %vm1890_vm8 }
 0x1f0   : > { %9466 = vst [vmem:[#allocation58_spill] sm:$0xff] %v6966_v35  ;;  %v2201_v63 = vsel %vm2113_vm0, %v4898_v7, inf  ;;  %v2198_v12 = vsel %vm2113_vm0, %v4897_v18, inf  ;;  %v4900_v23 = vsel %vm1952_vm5, 1.0, %v9400_v39  ;;  %v6989_v51 = vmul.f32 5.0, %v1702_v60  ;;  %vm7006_vm12 = vmand %vm1825_vm9, %vm1889_vm10 }
 0x1f1   : > { %v1704_v53 = vadd.f32 %v1640_v50, %v6254_v56  ;;  %v1642_v2 = vmul.f32 %v6203_v10, %v1495_v15  ;;  %2202 = vmin.xlane.f32.xlu0 %v2201_v63  ;;  %2199 = vmin.xlane.f32.xlu1 %v2198_v12  ;;  %v4899_v55 = vsel %vm6973_vm7, 1.0, %v9400_v39  ;;  %v1305_v7 = vadd.f32 %v6634_v19, %v905_v47  ;;  %v9473_v19 = vld [vmem:[#allocation112_spill] sm:$0xff] }
 0x1f2   : > { %v907_v60 = vmul.f32 %v9445_v44, %v742_v45  ;;  %vm1828_vm13 = vcmp.le.f32.partialorder %v6966_v35, 1.0  ;;  %vm1892_vm14 = vcmp.ge.f32.partialorder %v6966_v35, -1.0  ;;  %v7012_v15 = vmul.f32 5.0, %v1701_v48 }
 0x1f3   : > { %v1703_v50 = vadd.f32 %v6599_v49, %v1303_v52  ;;  %vm1827_vm15 = vcmp.le.f32.partialorder %v6964_v14, 1.0  ;;  %vm1891_vm1 = vcmp.ge.f32.partialorder %v6964_v14, -1.0  ;;  %v7019_v45 = vmul.f32 %v6268_v25, %v9473_v19  ;;  %v1511_v18 = vpop.permute.xlu1 %1510  ;;  %v762_v49 = vpop.permute.xlu0 %761  ;;  %vm1956_vm2 = vmand %vm1828_vm13, %vm1892_vm14 }
 0x1f4   : > { %9472 = vst [vmem:[#allocation59_spill] sm:$0xff] %v7012_v15  ;;  %v2207_v47 = vsel %vm2113_vm0, %v4900_v23, inf  ;;  %v2204_v4 = vsel %vm2113_vm0, %v4899_v55, inf  ;;  %v4902_v34 = vsel %vm1954_vm11, 1.0, %v9400_v39  ;;  %v7024_v63 = vmul.f32 5.0, %v1704_v53  ;;  %vm7042_vm4 = vmand %vm1827_vm15, %vm1891_vm1 }
 0x1f5   : > { %v1706_v48 = vadd.f32 %v1642_v2, %v6256_v57  ;;  %2208 = vmin.xlane.f32.xlu0 %v2207_v47  ;;  %2205 = vmin.xlane.f32.xlu1 %v2204_v4  ;;  %v4901_v52 = vsel %vm7006_vm12, 1.0, %v9400_v39  ;;  %vm1830_vm3 = vcmp.le.f32.partialorder %v6989_v51, 1.0  ;;  %v1705_v12 = vadd.f32 %v6669_v31, %v1305_v7  ;;  %v9477_v31 = vld [vmem:[#allocation113_spill] sm:$0xff] }
 0x1f6   : > { %v1307_v23 = vadd.f32 %v6704_v13, %v907_v60  ;;  %v1644_v57 = vmul.f32 %v6203_v10, %v1503_v61  ;;  %vm1894_vm5 = vcmp.ge.f32.partialorder %v6989_v51, -1.0  ;;  %v7047_v2 = vmul.f32 5.0, %v1703_v50 }
 0x1f7   : > { %v909_v55 = vmul.f32 %v9445_v44, %v752_v20  ;;  %vm1829_vm6 = vcmp.le.f32.partialorder %v7012_v15, 1.0  ;;  %vm1893_vm7 = vcmp.ge.f32.partialorder %v7012_v15, -1.0  ;;  %v7054_v13 = vmul.f32 %v6094_v41, %v9477_v31  ;;  %v1519_v61 = vpop.permute.xlu1 %1518  ;;  %v772_v20 = vpop.permute.xlu0 %771  ;;  %vm1958_vm8 = vmand %vm1830_vm3, %vm1894_vm5 }
 0x1f8   : > { %9476 = vst [vmem:[#allocation60_spill] sm:$0xff] %v7047_v2  ;;  %v2213_v7 = vsel %vm2113_vm0, %v4902_v34, inf  ;;  %v2210_v60 = vsel %vm2113_vm0, %v4901_v52, inf  ;;  %v4904_v56 = vsel %vm1956_vm2, 1.0, %v9400_v39  ;;  %v7059_v19 = vmul.f32 5.0, %v1706_v48  ;;  %vm7078_vm10 = vmand %vm1829_vm6, %vm1893_vm7 }
 0x1f9   : > { %v1646_v50 = vmul.f32 %v6203_v10, %v1511_v18  ;;  %2214 = vmin.xlane.f32.xlu0 %v2213_v7  ;;  %2211 = vmin.xlane.f32.xlu1 %v2210_v60  ;;  %v4903_v47 = vsel %vm7042_vm4, 1.0, %v9400_v39  ;;  %vm1832_vm9 = vcmp.le.f32.partialorder %v7024_v63, 1.0  ;;  %v7070_v4 = vmul.f32 5.0, %v1705_v12 }
 0x1fa   : > { %v1707_v34 = vadd.f32 %v6739_v17, %v1307_v23  ;;  %v1708_v18 = vadd.f32 %v1644_v57, %v6262_v33  ;;  %vm1896_vm11 = vcmp.ge.f32.partialorder %v7024_v63, -1.0  ;;  %v1309_v52 = vadd.f32 %v6774_v38, %v909_v55  ;;  %v9481_v17 = vld [vmem:[#allocation114_spill] sm:$0xff] }
 0x1fb   : > { %9478 = vst [vmem:[#allocation61_spill] sm:$0xff] %v7070_v4  ;;  %v911_v53 = vmul.f32 %v9445_v44, %v762_v49  ;;  %vm1831_vm12 = vcmp.le.f32.partialorder %v7047_v2, 1.0  ;;  %vm1895_vm13 = vcmp.ge.f32.partialorder %v7047_v2, -1.0  ;;  %v7089_v33 = vmul.f32 %v6268_v25, %v9481_v17  ;;  %v1527_v12 = vpop.permute.xlu1 %1526  ;;  %v782_v44 = vpop.permute.xlu0 %781  ;;  %vm1960_vm14 = vmand %vm1832_vm9, %vm1896_vm11 }
 0x1fc   : > { %v2219_v23 = vsel %vm2113_vm0, %v4904_v56, inf  ;;  %v2216_v57 = vsel %vm2113_vm0, %v4903_v47, inf  ;;  %v4906_v31 = vsel %vm1958_vm8, 1.0, %v9400_v39  ;;  %v1710_v7 = vadd.f32 %v1646_v50, %v6264_v24  ;;  %v9484_v24 = vld [vmem:[#allocation18_spill] sm:$0xff]  ;;  %vm7113_vm1 = vmand %vm1831_vm12, %vm1895_vm13  ;;  %v9487_v47 = vld [vmem:[#allocation4_spill] sm:$0xff] }
 0x1fd   : > { %v1648_v38 = vmul.f32 %v6203_v10, %v1519_v61  ;;  %2220 = vmin.xlane.f32.xlu0 %v2219_v23  ;;  %2217 = vmin.xlane.f32.xlu1 %v2216_v57  ;;  %v4905_v49 = vsel %vm7078_vm10, 1.0, %v9400_v39  ;;  %vm1834_vm15 = vcmp.le.f32.partialorder %v7059_v19, 1.0  ;;  %v7104_v55 = vmul.f32 5.0, %v1707_v34 }
 0x1fe   : > { %v7106_v60 = vmul.f32 5.0, %v1708_v18  ;;  %v913_v10 = vmul.f32 %v9484_v24, %v772_v20  ;;  %vm1898_vm2 = vcmp.ge.f32.partialorder %v7059_v19, -1.0  ;;  %v1709_v56 = vadd.f32 %v6809_v46, %v1309_v52  ;;  %v9489_v46 = vld [vmem:[#allocation33_spill] sm:$0xff] }
 0x1ff   : > { %9482 = vst [vmem:[#allocation62_spill] sm:$0xff] %v7104_v55  ;;  %v1311_v50 = vadd.f32 %v6844_v22, %v911_v53  ;;  %vm1833_vm3 = vcmp.le.f32.partialorder %v7070_v4, 1.0  ;;  %vm1897_vm4 = vcmp.ge.f32.partialorder %v7070_v4, -1.0  ;;  %v7124_v20 = vmul.f32 %v6094_v41, %v9487_v47  ;;  %v1535_v34 = vpop.permute.xlu1 %1534  ;;  %v792_v53 = vpop.permute.xlu0 %791  ;;  %vm1962_vm5 = vmand %vm1834_vm15, %vm1898_vm2 }
 0x200   : > { %9483 = vst [vmem:[#allocation63_spill] sm:$0xff] %v7106_v60  ;;  %v2225_v18 = vsel %vm2113_vm0, %v4906_v31, inf  ;;  %v2222_v48 = vsel %vm2113_vm0, %v4905_v49, inf  ;;  %v4908_v17 = vsel %vm1960_vm14, 1.0, %v9400_v39  ;;  %v7129_v23 = vmul.f32 5.0, %v1710_v7  ;;  %vm7146_vm6 = vmand %vm1833_vm3, %vm1897_vm4 }
 0x201   : > { %v1712_v52 = vadd.f32 %v1648_v38, %v9489_v46  ;;  %v1650_v22 = vmul.f32 %v6268_v25, %v1527_v12  ;;  %2226 = vmin.xlane.f32.xlu0 %v2225_v18  ;;  %2223 = vmin.xlane.f32.xlu1 %v2222_v48  ;;  %v4907_v57 = vsel %vm7113_vm1, 1.0, %v9400_v39  ;;  %v1313_v31 = vadd.f32 %v6914_v0, %v913_v10  ;;  %v9493_v0 = vld [vmem:[#allocation115_spill] sm:$0xff] }
 0x202   : > { %9488 = vst [vmem:[#allocation64_spill] sm:$0xff] %v7129_v23  ;;  %v915_v7 = vmul.f32 %v9484_v24, %v782_v44  ;;  %vm1836_vm7 = vcmp.le.f32.partialorder %v7106_v60, 1.0  ;;  %vm1900_vm8 = vcmp.ge.f32.partialorder %v7106_v60, -1.0  ;;  %v7152_v38 = vmul.f32 5.0, %v1709_v56  ;;  %v9495_v56 = vld [vmem:[#allocation34_spill] sm:$0xff] }
 0x203   : > { %v1711_v49 = vadd.f32 %v6879_v1, %v1311_v50  ;;  %vm1835_vm9 = vcmp.le.f32.partialorder %v7104_v55, 1.0  ;;  %vm1899_vm10 = vcmp.ge.f32.partialorder %v7104_v55, -1.0  ;;  %v7159_v44 = vmul.f32 %v6268_v25, %v9493_v0  ;;  %v1543_v10 = vpop.permute.xlu1 %1542  ;;  %v802_v1 = vpop.permute.xlu0 %801  ;;  %vm1964_vm11 = vmand %vm1836_vm7, %vm1900_vm8 }
 0x204   : > { %9492 = vst [vmem:[#allocation65_spill] sm:$0xff] %v7152_v38  ;;  %v2231_v61 = vsel %vm2113_vm0, %v4908_v17, inf  ;;  %v2228_v47 = vsel %vm2113_vm0, %v4907_v57, inf  ;;  %v4910_v18 = vsel %vm1962_vm5, 1.0, %v9400_v39  ;;  %v7164_v48 = vmul.f32 5.0, %v1712_v52  ;;  %vm7182_vm13 = vmand %vm1835_vm9, %vm1899_vm10 }
 0x205   : > { %v1714_v46 = vadd.f32 %v1650_v22, %v9495_v56  ;;  %2232 = vmin.xlane.f32.xlu0 %v2231_v61  ;;  %2229 = vmin.xlane.f32.xlu1 %v2228_v47  ;;  %v4909_v50 = vsel %vm7146_vm6, 1.0, %v9400_v39  ;;  %vm1838_vm12 = vcmp.le.f32.partialorder %v7129_v23, 1.0  ;;  %v1713_v17 = vadd.f32 %v6949_v8, %v1313_v31  ;;  %v9499_v8 = vld [vmem:[#allocation5_spill] sm:$0xff] }
 0x206   : > { %9494 = vst [vmem:[#allocation66_spill] sm:$0xff] %v7164_v48  ;;  %v1315_v52 = vadd.f32 %v6984_v21, %v915_v7  ;;  %v1652_v22 = vmul.f32 %v6268_v25, %v1535_v34  ;;  %vm1902_vm14 = vcmp.ge.f32.partialorder %v7129_v23, -1.0  ;;  %v7187_v12 = vmul.f32 5.0, %v1711_v49 }
 0x207   : > { %v917_v0 = vmul.f32 %v9484_v24, %v792_v53  ;;  %vm1837_vm15 = vcmp.le.f32.partialorder %v7152_v38, 1.0  ;;  %vm1901_vm1 = vcmp.ge.f32.partialorder %v7152_v38, -1.0  ;;  %v1257_v21 = vmul.f32 %v6094_v41, %v9499_v8  ;;  %v1551_v34 = vpop.permute.xlu1 %1550  ;;  %v812_v53 = vpop.permute.xlu0 %811  ;;  %vm1966_vm2 = vmand %vm1838_vm12, %vm1902_vm14  ;;  %v9504_v38 = vld [vmem:[#allocation36_spill] sm:$0xff] }
 0x208   : > { %9498 = vst [vmem:[#allocation68_spill] sm:$0xff] %v7187_v12  ;;  %v2237_v31 = vsel %vm2113_vm0, %v4910_v18, inf  ;;  %v2234_v7 = vsel %vm2113_vm0, %v4909_v50, inf  ;;  %v4912_v61 = vsel %vm1964_vm11, 1.0, %v9400_v39  ;;  %v7197_v47 = vmul.f32 5.0, %v1714_v46  ;;  %v9500_v50 = vld [vmem:[#allocation35_spill] sm:$0xff]  ;;  %vm7216_vm4 = vmand %vm1837_vm15, %vm1901_vm1 }
 0x209   : > { %v1654_v49 = vmul.f32 %v6268_v25, %v1543_v10  ;;  %2238 = vmin.xlane.f32.xlu0 %v2237_v31  ;;  %2235 = vmin.xlane.f32.xlu1 %v2234_v7  ;;  %v4911_v56 = vsel %vm7182_vm13, 1.0, %v9400_v39  ;;  %vm1840_vm3 = vcmp.le.f32.partialorder %v7164_v48, 1.0  ;;  %v7208_v18 = vmul.f32 5.0, %v1713_v17 }
 0x20a   : > { %v1715_v46 = vadd.f32 %v7019_v45, %v1315_v52  ;;  %v1716_v10 = vadd.f32 %v1652_v22, %v9500_v50  ;;  %vm1904_vm5 = vcmp.ge.f32.partialorder %v7164_v48, -1.0  ;;  %v1317_v8 = vadd.f32 %v7054_v13, %v917_v0  ;;  %v9503_v45 = vld [vmem:[#allocation13_spill] sm:$0xff] }
 0x20b   : > { %v919_v31 = vmul.f32 %v9484_v24, %v802_v1  ;;  %vm1839_vm6 = vcmp.le.f32.partialorder %v7187_v12, 1.0  ;;  %vm1903_vm7 = vcmp.ge.f32.partialorder %v7187_v12, -1.0  ;;  %v1657_v17 = vmul.f32 %v6268_v25, %v9503_v45  ;;  %v1559_v52 = vpop.permute.xlu1 %1558  ;;  %v822_v1 = vpop.permute.xlu0 %821  ;;  %vm1968_vm8 = vmand %vm1840_vm3, %vm1904_vm5  ;;  %v9508_v12 = vld [vmem:[#allocation8_spill] sm:$0xff] }
 0x20c   : > { %v2243_v22 = vsel %vm2113_vm0, %v4912_v61, inf  ;;  %v2240_v7 = vsel %vm2113_vm0, %v4911_v56, inf  ;;  %v4914_v50 = vsel %vm1966_vm2, 1.0, %v9400_v39  ;;  %v1718_v55 = vadd.f32 %v1654_v49, %v9504_v38  ;;  %vm7249_vm10 = vmand %vm1839_vm6, %vm1903_vm7 }
 0x20d   : > { %v1656_v13 = vmul.f32 %v6268_v25, %v1551_v34  ;;  %2244 = vmin.xlane.f32.xlu0 %v2243_v22  ;;  %2241 = vmin.xlane.f32.xlu1 %v2240_v7  ;;  %v4913_v0 = vsel %vm7216_vm4, 1.0, %v9400_v39  ;;  %vm1842_vm9 = vcmp.le.f32.partialorder %v7197_v47, 1.0  ;;  %v7240_v61 = vmul.f32 5.0, %v1715_v46  ;;  %v9507_v46 = vld [vmem:[#allocation17_spill] sm:$0xff] }
 0x20e   : > { %v7242_v56 = vmul.f32 5.0, %v1716_v10  ;;  %v921_v38 = vmul.f32 %v9484_v24, %v812_v53  ;;  %vm1906_vm11 = vcmp.ge.f32.partialorder %v7197_v47, -1.0  ;;  %v1717_v49 = vadd.f32 %v7089_v33, %v1317_v8 }
 0x20f   : > { %v1319_v57 = vadd.f32 %v7124_v20, %v919_v31  ;;  %vm1841_vm12 = vcmp.le.f32.partialorder %v7208_v18, 1.0  ;;  %vm1905_vm13 = vcmp.ge.f32.partialorder %v7208_v18, -1.0  ;;  %v1259_v53 = vmul.f32 %v6094_v41, %v9507_v46  ;;  %v1567_v20 = vpop.permute.xlu1 %1566  ;;  %vm1970_vm14 = vmand %vm1842_vm9, %vm1906_vm11  ;;  %v9512_v46 = vld [vmem:[#allocation37_spill] sm:$0xff] }
 0x210   : > { %v2249_v10 = vsel %vm2113_vm0, %v4914_v50, inf  ;;  %v2246_v45 = vsel %vm2113_vm0, %v4913_v0, inf  ;;  %v4916_v22 = vsel %vm1968_vm8, 1.0, %v9400_v39  ;;  %v7263_v7 = vmul.f32 5.0, %v1718_v55  ;;  %v832_v50 = vpop.permute.xlu0 %831  ;;  %vm1969_vm15 = vmand %vm1841_vm12, %vm1905_vm13 }
 0x211   : > { %v1720_v4 = vadd.f32 %v1656_v13, %v9508_v12  ;;  %v1658_v33 = vmul.f32 %v6268_v25, %v1559_v52  ;;  %2250 = vmin.xlane.f32.xlu0 %v2249_v10  ;;  %2247 = vmin.xlane.f32.xlu1 %v2246_v45  ;;  %v4915_v8 = vsel %vm7249_vm10, 1.0, %v9400_v39  ;;  %v1321_v31 = vadd.f32 %v1257_v21, %v921_v38  ;;  %v9510_v21 = vld [vmem:[#allocation6_spill] sm:$0xff] }
 0x212   : > { %v923_v55 = vmul.f32 %v9484_v24, %v822_v1  ;;  %vm1844_vm1 = vcmp.le.f32.partialorder %v7242_v56, 1.0  ;;  %vm1908_vm2 = vcmp.ge.f32.partialorder %v7242_v56, -1.0  ;;  %v7281_v12 = vmul.f32 5.0, %v1717_v49 }
 0x213   : > { %v1719_v52 = vadd.f32 %v7159_v44, %v1319_v57  ;;  %vm1843_vm3 = vcmp.le.f32.partialorder %v7240_v61, 1.0  ;;  %vm1907_vm4 = vcmp.ge.f32.partialorder %v7240_v61, -1.0  ;;  %v1659_v13 = vmul.f32 %v6268_v25, %v9510_v21  ;;  %vm7297_vm5 = vmand %vm1844_vm1, %vm1908_vm2 }
 0x214   : > { %9509 = vst [vmem:[#allocation69_spill] sm:$0xff] %v7281_v12  ;;  %v2255_v1 = vsel %vm2113_vm0, %v4916_v22, inf  ;;  %v2252_v0 = vsel %vm2113_vm0, %v4915_v8, inf  ;;  %v4918_v38 = vsel %vm1970_vm14, 1.0, %v9400_v39  ;;  %v7291_v34 = vmul.f32 5.0, %v1720_v4  ;;  %vm1971_vm7 = vmand %vm1843_vm3, %vm1907_vm4  ;;  %v1575_v8 = vpop.permute.xlu1 %1574 }
 0x215   : > { %v1722_v49 = vadd.f32 %v1658_v33, %v9512_v46  ;;  %2256 = vmin.xlane.f32.xlu0 %v2255_v1  ;;  %2253 = vmin.xlane.f32.xlu1 %v2252_v0  ;;  %v4917_v44 = vsel %vm1969_vm15, 1.0, %v9400_v39  ;;  %vm1846_vm6 = vcmp.le.f32.partialorder %v7263_v7, 1.0  ;;  %v1721_v10 = vadd.f32 %v1657_v17, %v1321_v31  ;;  %v9515_v17 = vld [vmem:[#allocation12_spill] sm:$0xff]  ;;  %v9518_v46 = vld [vmem:[#allocation38_spill] sm:$0xff] }
 0x216   : > { %9511 = vst [vmem:[#allocation70_spill] sm:$0xff] %v7291_v34  ;;  %v1323_v45 = vadd.f32 %v1259_v53, %v923_v55  ;;  %v1660_v22 = vmul.f32 %v6268_v25, %v1567_v20  ;;  %vm1910_vm8 = vcmp.ge.f32.partialorder %v7263_v7, -1.0  ;;  %v7308_v4 = vmul.f32 5.0, %v1719_v52  ;;  %v842_v20 = vpop.permute.xlu0 %841 }
 0x217   : > { %v925_v33 = vmul.f32 %v9484_v24, %v832_v50  ;;  %vm1845_vm9 = vcmp.le.f32.partialorder %v7281_v12, 1.0  ;;  %vm1909_vm10 = vcmp.ge.f32.partialorder %v7281_v12, -1.0  ;;  %v1261_v53 = vmul.f32 %v6094_v41, %v9515_v17  ;;  %vm7327_vm11 = vmand %vm1846_vm6, %vm1910_vm8 }
 0x218   : > { %v2261_v31 = vsel %vm2113_vm0, %v4918_v38, inf  ;;  %v2258_v55 = vsel %vm2113_vm0, %v4917_v44, inf  ;;  %v4920_v52 = vsel %vm7297_vm5, 1.0, %v9400_v39  ;;  %v7320_v21 = vmul.f32 5.0, %v1722_v49  ;;  %vm1973_vm14 = vmand %vm1845_vm9, %vm1909_vm10 }
 0x219   : > { %2262 = vmin.xlane.f32.xlu0 %v2261_v31  ;;  %2259 = vmin.xlane.f32.xlu1 %v2258_v55  ;;  %v4919_v50 = vsel %vm1971_vm7, 1.0, %v9400_v39  ;;  %vm1848_vm12 = vcmp.le.f32.partialorder %v7291_v34, 1.0  ;;  %vm1912_vm13 = vcmp.ge.f32.partialorder %v7291_v34, -1.0  ;;  %v7333_v0 = vmul.f32 5.0, %v1721_v10  ;;  %v9519_v31 = vld [vmem:[#allocation39_spill] sm:$0xff]  ;;  %v9520_v10 = vld [vmem:[#allocation40_spill] sm:$0xff] }
 0x21a   : > { %v1723_v38 = vadd.f32 %v1659_v13, %v1323_v45  ;;  %v1724_v49 = vadd.f32 %v1660_v22, %v9518_v46  ;;  %v1662_v44 = vmul.f32 %v6268_v25, %v1575_v8  ;;  %v1325_v57 = vadd.f32 %v1261_v53, %v925_v33  ;;  %v9521_v13 = vld [vmem:[#allocation7_spill] sm:$0xff]  ;;  %vm7360_vm2 = vmand %vm1848_vm12, %vm1912_vm13 }
 0x21b   : > { %v927_v17 = vmul.f32 %v9484_v24, %v842_v20  ;;  %vm1847_vm15 = vcmp.le.f32.partialorder %v7308_v4, 1.0  ;;  %vm1911_vm1 = vcmp.ge.f32.partialorder %v7308_v4, -1.0  ;;  %v1326_v55 = vadd.f32 %v9520_v10, %v9519_v31  ;;  %v9522_v46 = vld [vmem:[#allocation23_spill] sm:$0xff] }
 0x21c   : > { %v1661_v45 = vmul.f32 %v6268_v25, %v9521_v13  ;;  %v2267_v22 = vsel %vm2113_vm0, %v4920_v52, inf  ;;  %v2264_v8 = vsel %vm2113_vm0, %v4919_v50, inf  ;;  %v1263_v12 = vmul.f32 %v6094_v41, %v9522_v46  ;;  %vm1975_vm4 = vmand %vm1847_vm15, %vm1911_vm1 }
 0x21d   : > { %2268 = vmin.xlane.f32.xlu0 %v2267_v22  ;;  %2265 = vmin.xlane.f32.xlu1 %v2264_v8  ;;  %v4922_v33 = vsel %vm7327_vm11, 1.0, %v9400_v39  ;;  %v4921_v53 = vsel %vm1973_vm14, 1.0, %v9400_v39  ;;  %vm1850_vm3 = vcmp.le.f32.partialorder %v7320_v21, 1.0  ;;  %v7365_v52 = vmul.f32 5.0, %v1723_v38 }
 0x21e   : > { %v7367_v50 = vmul.f32 5.0, %v1724_v49  ;;  %v1726_v31 = vadd.f32 %v1662_v44, %v1326_v55  ;;  %vm1914_vm5 = vcmp.ge.f32.partialorder %v7320_v21, -1.0  ;;  %v1725_v1 = vadd.f32 %v1661_v45, %v1325_v57  ;;  %v9525_v49 = vld [vmem:[#allocation24_spill] sm:$0xff] }
 0x21f   : > { %v1327_v10 = vadd.f32 %v1263_v12, %v927_v17  ;;  %vm1849_vm6 = vcmp.le.f32.partialorder %v7333_v0, 1.0  ;;  %vm1913_vm7 = vcmp.ge.f32.partialorder %v7333_v0, -1.0  ;;  %v2273_v13 = vsel %vm2113_vm0, %v4922_v33, inf  ;;  %vm1978_vm8 = vmand %vm1850_vm3, %vm1914_vm5 }
 0x220   : > { %v2270_v38 = vsel %vm2113_vm0, %v4921_v53, inf  ;;  %v1663_v44 = vmul.f32 %v6268_v25, %v9525_v49  ;;  %v4924_v55 = vsel %vm7360_vm2, 1.0, %v9400_v39  ;;  %v4923_v57 = vsel %vm1975_vm4, 1.0, %v9400_v39  ;;  %vm1977_vm9 = vmand %vm1849_vm6, %vm1913_vm7 }
 0x221   : > { %2274 = vmin.xlane.f32.xlu0 %v2273_v13  ;;  %2271 = vmin.xlane.f32.xlu1 %v2270_v38  ;;  %v7386_v12 = vmul.f32 5.0, %v1726_v31  ;;  %vm1852_vm10 = vcmp.le.f32.partialorder %v7367_v50, 1.0  ;;  %vm1916_vm11 = vcmp.ge.f32.partialorder %v7367_v50, -1.0  ;;  %v7390_v17 = vmul.f32 5.0, %v1725_v1 }
 0x222   : > { %v1727_v45 = vadd.f32 %v1663_v44, %v1327_v10  ;;  %vm1851_vm12 = vcmp.le.f32.partialorder %v7365_v52, 1.0  ;;  %vm1915_vm13 = vcmp.ge.f32.partialorder %v7365_v52, -1.0  ;;  %v2279_v22 = vsel %vm2113_vm0, %v4924_v55, inf  ;;  %vm1980_vm14 = vmand %vm1852_vm10, %vm1916_vm11 }
 0x223   : > { %v2276_v8 = vsel %vm2113_vm0, %v4923_v57, inf  ;;  %v4926_v46 = vsel %vm1978_vm8, 1.0, %v9400_v39  ;;  %v4925_v33 = vsel %vm1977_vm9, 1.0, %v9400_v39  ;;  %vm1979_vm15 = vmand %vm1851_vm12, %vm1915_vm13  ;;  %vm1854_vm1 = vcmp.le.f32.partialorder %v7386_v12, 1.0 }
 0x224   : > { %vm1918_vm2 = vcmp.ge.f32.partialorder %v7386_v12, -1.0  ;;  %v7400_v53 = vmul.f32 5.0, %v1727_v45  ;;  %vm1853_vm3 = vcmp.le.f32.partialorder %v7390_v17, 1.0  ;;  %vm1917_vm4 = vcmp.ge.f32.partialorder %v7390_v17, -1.0 }
 0x225   : > { %2280 = vmin.xlane.f32.xlu0 %v2279_v22  ;;  %2277 = vmin.xlane.f32.xlu1 %v2276_v8  ;;  %v2285_v20 = vsel %vm2113_vm0, %v4926_v46, inf  ;;  %v2282_v31 = vsel %vm2113_vm0, %v4925_v33, inf  ;;  %v4928_v1 = vsel %vm1980_vm14, 1.0, %v9400_v39  ;;  %v4927_v10 = vsel %vm1979_vm15, 1.0, %v9400_v39  ;;  %vm1982_vm5 = vmand %vm1854_vm1, %vm1918_vm2  ;;  %v7418_v8 = vpop.permute.xlu1 %1582  ;;  %v9526_v46 = vld [vmem:[#allocation10_spill] sm:$0xff] }
 0x226   : > { %vm1981_vm6 = vmand %vm1853_vm3, %vm1917_vm4  ;;  %vm1855_vm7 = vcmp.le.f32.partialorder %v7400_v53, 1.0  ;;  %vm1919_vm8 = vcmp.ge.f32.partialorder %v7400_v53, -1.0  ;;  %v2291_v13 = vsel %vm2113_vm0, %v4928_v1, inf  ;;  %v2288_v38 = vsel %vm2113_vm0, %v4927_v10, inf  ;;  %v9530_v1 = vld [vmem:[#allocation42_spill] sm:$0xff] }
 0x227   : > { %v4930_v49 = vsel %vm1982_vm5, 1.0, %v9400_v39  ;;  %v4929_v44 = vsel %vm1981_vm6, 1.0, %v9400_v39  ;;  %vm1983_vm9 = vmand %vm1855_vm7, %vm1919_vm8  ;;  %vm2307_vm10 = vcmask 64512   ;;  %vm4504_vm14 = vcmask 523264  }
 0x228   : > { %v2297_v55 = vsel %vm2113_vm0, %v4930_v49, inf  ;;  %v2294_v57 = vsel %vm2113_vm0, %v4929_v44, inf  ;;  %v4931_v45 = vsel %vm1983_vm9, 1.0, %v9400_v39  ;;  %v9534_v49 = vld [vmem:[#allocation46_spill] sm:$0xff] }
 0x229   : > { %2286 = vmin.xlane.f32.xlu0 %v2285_v20  ;;  %2283 = vmin.xlane.f32.xlu1 %v2282_v31  ;;  %v2300_v22 = vsel %vm2113_vm0, %v4931_v45, inf  ;;  %v9528_v20 = vld [vmem:[#allocation41_spill] sm:$0xff] }
 0x22d   : > { %2292 = vmin.xlane.f32.xlu0 %v2291_v13  ;;  %2289 = vmin.xlane.f32.xlu1 %v2288_v38  ;;  %v9532_v13 = vld [vmem:[#allocation43_spill] sm:$0xff] }
 0x231   : > { %2298 = vmin.xlane.f32.xlu0 %v2297_v55  ;;  %2295 = vmin.xlane.f32.xlu1 %v2294_v57  ;;  %v9536_v55 = vld [vmem:[#allocation45_spill] sm:$0xff] }
 0x235   : > { %2301 = vmin.xlane.f32.xlu1 %v2300_v22 }
 0x246   : > { %846 = vperm.xlu1 %5187, %v9526_v46  }
 0x24a   : > { %v7421_v33 = vpop.xlane.xlu1 %2118  ;;  %2887 = vperm.xlu1 %5187, %v9528_v20  }
 0x24b   : > { %9527 = vst [vmem:[#allocation71_spill] sm:$0xff] %v7421_v33 }
 0x24e   : > { %v7424_v31 = vpop.xlane.xlu1 %2127  ;;  %2897 = vperm.xlu1 %5187, %v9530_v1  }
 0x24f   : > { %9529 = vst [vmem:[#allocation72_spill] sm:$0xff] %v7424_v31 }
 0x252   : > { %v7427_v10 = vpop.xlane.xlu1 %2133  ;;  %2902 = vperm.xlu1 %5187, %v9532_v13  }
 0x253   : > { %9531 = vst [vmem:[#allocation74_spill] sm:$0xff] %v7427_v10  ;;  %v359_v10 = vld [vmem:[%s7470_s18 + $0x48] sm:$0xff] }
 0x256   : > { %v7430_v38 = vpop.xlane.xlu1 %2139  ;;  %2907 = vperm.xlu1 %5187, %v9534_v49  }
 0x257   : > { %9533 = vst [vmem:[#allocation75_spill] sm:$0xff] %v7430_v38 }
 0x25a   : > { %v7433_v44 = vpop.xlane.xlu1 %2145  ;;  %2912 = vperm.xlu1 %5187, %v9536_v55  }
 0x25b   : > { %9535 = vst [vmem:[#allocation76_spill] sm:$0xff] %v7433_v44 }
 0x25e   : > { %v7436_v57 = vpop.xlane.xlu1 %2151  ;;  %2917 = vperm.xlu1 %5187, %v6486_v29  }
 0x25f   : > { %9537 = vst [vmem:[#allocation77_spill] sm:$0xff] %v7436_v57 }
 0x262   : > { %v7439_v45 = vpop.xlane.xlu1 %2157  ;;  %2922 = vperm.xlu1 %5187, %v6467_v3  }
 0x263   : > { %9538 = vst [vmem:[#allocation15_spill] sm:$0xff] %v7439_v45 }
 0x266   : > { %v7442_v22 = vpop.xlane.xlu1 %2163  ;;  %2927 = vperm.xlu1 %5187, %v6510_v40  }
 0x267   : > { %9539 = vst [vmem:[#allocation78_spill] sm:$0xff] %v7442_v22 }
 0x26a   : > { %v7445_v46 = vpop.xlane.xlu1 %2169  ;;  %2932 = vperm.xlu1 %5187, %v6501_v30  }
 0x26b   : > { %9540 = vst [vmem:[#allocation79_spill] sm:$0xff] %v7445_v46 }
 0x26e   : > { %v7448_v44 = vpop.xlane.xlu1 %2175  ;;  %2942 = vperm.xlu1 %5187, %v6546_v54  }
 0x26f   : > { %9541 = vst [vmem:[#allocation80_spill] sm:$0xff] %v7448_v44 }
 0x272   : > { %v7451_v57 = vpop.xlane.xlu1 %2181  ;;  %2952 = vperm.xlu1 %5187, %v6569_v59  }
 0x273   : > { %9542 = vst [vmem:[#allocation81_spill] sm:$0xff] %v7451_v57  ;;  %v352_v57 = vld [vmem:[%s7470_s18 + $0x10] sm:$0xff] }
 0x276   : > { %v7454_v45 = vpop.xlane.xlu1 %2187  ;;  %2962 = vperm.xlu1 %5187, %v6604_v43  }
 0x277   : > { %9543 = vst [vmem:[#allocation19_spill] sm:$0xff] %v7454_v45 }
 0x27a   : > { %v7457_v38 = vpop.xlane.xlu1 %2193  ;;  %2972 = vperm.xlu1 %5187, %v6639_v6  }
 0x27b   : > { %9544 = vst [vmem:[#allocation82_spill] sm:$0xff] %v7457_v38 }
 0x27e   : > { %v7460_v22 = vpop.xlane.xlu1 %2199  ;;  %2982 = vperm.xlu1 %5187, %v6686_v37  }
 0x27f   : > { %9545 = vst [vmem:[#allocation83_spill] sm:$0xff] %v7460_v22  ;;  %v2306_v22 = vld [vmem:[%s8981_s5] sm:$0xff] }
 0x280   : > { %5068 = vmatprep.subr.mxu0 %v2306_v22  ;;  %5166 = vmatprep.subr.mxu1 %v2306_v22 }
 0x281   : > { %5069 = vmatpush3.msra.mxu0 %v2306_v22  ;;  %5167 = vmatpush3.msra.mxu1 %v2306_v22  ;;  %v353_v22 = vld [vmem:[%s7470_s18 + $0x18] sm:$0xff] }
 0x282   : > { %v7463_v46 = vpop.xlane.xlu1 %2205  ;;  %2992 = vperm.xlu1 %5187, %v6709_v11  }
 0x283   : > { %9546 = vst [vmem:[#allocation84_spill] sm:$0xff] %v7463_v46  ;;  %v350_v46 = vld [vmem:[%s7470_s18] sm:$0xff] }
 0x284   : > { %5070 = vmatprep.mubr.msk.f32.mxu0 %vm2307_vm10, %v350_v46 }
 0x286   : > { %v7472_v38 = vpop.xlane.xlu1 %2211  ;;  %3002 = vperm.xlu1 %5187, %v6744_v26  }
 0x287   : > { %9547 = vst [vmem:[#allocation85_spill] sm:$0xff] %v7472_v38  ;;  %v351_v38 = vld [vmem:[%s7470_s18 + $0x8] sm:$0xff] }
 0x288   : > { %5071 = vmatmul.mubr.msk.f32.vlgmr.msra.gmra.mrb[0].mxu0 %vm2307_vm10, %v351_v38  ;;  %v354_v38 = vld [vmem:[%s7470_s18 + $0x20] sm:$0xff] }
 0x289   : > { %5073 = vmatprep.mubr.msk.f32.mxu0 %vm2307_vm10, %v352_v57 }
 0x28a   : > { %v7479_v45 = vpop.xlane.xlu1 %2217  ;;  %3012 = vperm.xlu1 %5187, %v6779_v32  }
 0x28b   : > { %9548 = vst [vmem:[#allocation86_spill] sm:$0xff] %v7479_v45 }
 0x28c   : > { %5074 = vmatmul.mubr.msk.f32.gmra.mrb[2].mxu0 %vm2307_vm10, %v353_v22  ;;  %v356_v22 = vld [vmem:[%s7470_s18 + $0x30] sm:$0xff] }
 0x28d   : > { %5076 = vmatprep.mubr.msk.f32.mxu0 %vm2307_vm10, %v354_v38  ;;  %v358_v38 = vld [vmem:[%s7470_s18 + $0x40] sm:$0xff] }
 0x28e   : > { %v7486_v44 = vpop.xlane.xlu1 %2223  ;;  %3022 = vperm.xlu1 %5187, %v6826_v16  }
 0x28f   : > { %9549 = vst [vmem:[#allocation87_spill] sm:$0xff] %v7486_v44  ;;  %v355_v44 = vld [vmem:[%s7470_s18 + $0x28] sm:$0xff] }
 0x290   : > { %5077 = vmatmul.mubr.msk.f32.gmra.mrb[4].mxu0 %vm2307_vm10, %v355_v44 }
 0x291   : > { %5079 = vmatprep.mubr.msk.f32.mxu0 %vm2307_vm10, %v356_v22  ;;  %v360_v22 = vld [vmem:[%s7470_s18 + $0x50] sm:$0xff] }
 0x292   : > { %v7492_v45 = vpop.xlane.xlu1 %2229  ;;  %3032 = vperm.xlu1 %5187, %v6849_v9  }
 0x293   : > { %9550 = vst [vmem:[#allocation20_spill] sm:$0xff] %v7492_v45  ;;  %v357_v45 = vld [vmem:[%s7470_s18 + $0x38] sm:$0xff] }
 0x294   : > { %5080 = vmatmul.mubr.msk.f32.gmra.mrb[6].mxu0 %vm2307_vm10, %v357_v45  ;;  %v361_v45 = vld [vmem:[%s7470_s18 + $0x58] sm:$0xff] }
 0x295   : > { %5082 = vmatprep.mubr.msk.f32.mxu0 %vm2307_vm10, %v358_v38  ;;  %v363_v38 = vld [vmem:[%s7470_s18 + $0x68] sm:$0xff] }
 0x296   : > { %v7495_v46 = vpop.xlane.xlu1 %2235  ;;  %3042 = vperm.xlu1 %5187, %v6884_v58  }
 0x297   : > { %9551 = vst [vmem:[#allocation88_spill] sm:$0xff] %v7495_v46 }
 0x298   : > { %5083 = vmatmul.mubr.msk.f32.gmra.mrb[8].mxu0 %vm2307_vm10, %v359_v10  ;;  %v362_v10 = vld [vmem:[%s7470_s18 + $0x60] sm:$0xff] }
 0x299   : > { %5085 = vmatprep.mubr.msk.f32.mxu0 %vm2307_vm10, %v360_v22  ;;  %v364_v22 = vld [vmem:[%s7470_s18 + $0x70] sm:$0xff] }
 0x29a   : > { %v7502_v57 = vpop.xlane.xlu1 %2241  ;;  %3052 = vperm.xlu1 %5187, %v6919_v42  }
 0x29b   : > { %9552 = vst [vmem:[#allocation89_spill] sm:$0xff] %v7502_v57 }
 0x29c   : > { %5086 = vmatmul.mubr.msk.f32.gmra.mrb[10].mxu0 %vm2307_vm10, %v361_v45  ;;  %v365_v45 = vld [vmem:[%s7470_s18 + $0x78] sm:$0xff] }
 0x29d   : > { %5088 = vmatprep.mubr.msk.f32.mxu0 %vm2307_vm10, %v362_v10  ;;  %v366_v10 = vld [vmem:[%s7470_s18 + $0x80] sm:$0xff] }
 0x29e   : > { %v7509_v46 = vpop.xlane.xlu1 %2247  ;;  %3062 = vperm.xlu1 %5187, %v6966_v35  }
 0x29f   : > { %9553 = vst [vmem:[#allocation90_spill] sm:$0xff] %v7509_v46  ;;  %v7523_v46 = vpop.xlane.xlu0 %2115 }
 0x2a0   : > { %9555 = vst [vmem:[#allocation92_spill] sm:$0xff] %v7523_v46  ;;  %5089 = vmatmul.mubr.msk.f32.gmra.mrb[12].mxu0 %vm2307_vm10, %v363_v38  ;;  %v367_v38 = vld [vmem:[%s7470_s18 + $0x88] sm:$0xff] }
 0x2a1   : > { %5091 = vmatprep.mubr.msk.f32.mxu0 %vm2307_vm10, %v364_v22 }
 0x2a2   : > { %v7516_v44 = vpop.xlane.xlu1 %2253  ;;  %3072 = vperm.xlu1 %5187, %v6989_v51  }
 0x2a3   : > { %9554 = vst [vmem:[#allocation91_spill] sm:$0xff] %v7516_v44  ;;  %v7537_v31 = vpop.xlane.xlu0 %2121 }
 0x2a4   : > { %9558 = vst [vmem:[#allocation94_spill] sm:$0xff] %v7537_v31  ;;  %5092 = vmatmul.mubr.msk.f32.gmra.mrb[14].mxu0 %vm2307_vm10, %v365_v45  ;;  %v368_v45 = vld [vmem:[%s7470_s18 + $0x90] sm:$0xff]  ;;  %v369_v31 = vld [vmem:[%s7470_s18 + $0x98] sm:$0xff] }
 0x2a5   : > { %5094 = vmatprep.mubr.msk.f32.mxu0 %vm2307_vm10, %v366_v10  ;;  %v384_v10 = vld [vmem:[%s7470_s18 + $0x110] sm:$0xff] }
 0x2a6   : > { %v7525_v57 = vpop.xlane.xlu1 %2259  ;;  %3082 = vperm.xlu1 %5187, %v7024_v63  }
 0x2a7   : > { %9556 = vst [vmem:[#allocation21_spill] sm:$0xff] %v7525_v57  ;;  %v7549_v33 = vpop.xlane.xlu0 %2124 }
 0x2a8   : > { %5095 = vmatmul.mubr.msk.f32.gmra.mrb[16].mxu0 %vm2307_vm10, %v367_v38  ;;  %9560 = vst [vmem:[#allocation22_spill] sm:$0xff] %v7549_v33  ;;  %v371_v33 = vld [vmem:[%s7470_s18 + $0xa8] sm:$0xff] }
 0x2a9   : > { %5097 = vmatprep.mubr.msk.f32.mxu0 %vm2307_vm10, %v368_v45  ;;  %v372_v45 = vld [vmem:[%s7470_s18 + $0xb0] sm:$0xff] }
 0x2aa   : > { %v7532_v44 = vpop.xlane.xlu1 %2265  ;;  %3092 = vperm.xlu1 %5187, %v7059_v19  }
 0x2ab   : > { %9557 = vst [vmem:[#allocation93_spill] sm:$0xff] %v7532_v44  ;;  %v382_v44 = vld [vmem:[%s7470_s18 + $0x100] sm:$0xff]  ;;  %v7569_v46 = vpop.xlane.xlu0 %2130 }
 0x2ac   : > { %5118 = vmatprep.mubr.msk.f32.mxu1 %vm2307_vm10, %v382_v44  ;;  %5098 = vmatmul.mubr.msk.f32.gmra.mrb[18].mxu0 %vm2307_vm10, %v369_v31  ;;  %v370_v44 = vld [vmem:[%s7470_s18 + $0xa0] sm:$0xff]  ;;  %9563 = vst [vmem:[#allocation11_spill] sm:$0xff] %v7569_v46 }
 0x2ad   : > { %5100 = vmatprep.mubr.msk.f32.mxu0 %vm2307_vm10, %v370_v44  ;;  %v386_v31 = vld [vmem:[%s7470_s18 + $0x120] sm:$0xff] }
 0x2ae   : > { %v7541_v57 = vpop.xlane.xlu1 %2271  ;;  %3102 = vperm.xlu1 %5187, %v7106_v60  }
 0x2af   : > { %9559 = vst [vmem:[#allocation95_spill] sm:$0xff] %v7541_v57  ;;  %v383_v57 = vld [vmem:[%s7470_s18 + $0x108] sm:$0xff] }
 0x2b0   : > { %5119 = vmatmul.mubr.msk.f32.vlgmr.msra.gmra.mrb[0].mxu1 %vm2307_vm10, %v383_v57  ;;  %5101 = vmatmul.mubr.msk.f32.gmra.mrb[20].mxu0 %vm2307_vm10, %v371_v33  ;;  %v388_v33 = vld [vmem:[%s7470_s18 + $0x130] sm:$0xff] }
 0x2b1   : > { %5121 = vmatprep.mubr.msk.f32.mxu1 %vm2307_vm10, %v384_v10  ;;  %v387_v10 = vld [vmem:[%s7470_s18 + $0x128] sm:$0xff]  ;;  %5103 = vmatprep.mubr.msk.f32.mxu0 %vm2307_vm10, %v372_v45 }
 0x2b2   : > { %v7551_v22 = vpop.xlane.xlu1 %2277  ;;  %3112 = vperm.xlu1 %5187, %v7129_v23   ;;  %v375_v45 = vld [vmem:[%s7470_s18 + $0xc8] sm:$0xff] }
 0x2b3   : > { %9561 = vst [vmem:[#allocation96_spill] sm:$0xff] %v7551_v22  ;;  %v385_v22 = vld [vmem:[%s7470_s18 + $0x118] sm:$0xff] }
 0x2b4   : > { %5122 = vmatmul.mubr.msk.f32.gmra.mrb[2].mxu1 %vm2307_vm10, %v385_v22  ;;  %v7586_v22 = vpop.xlane.xlu0 %2136 }
 0x2b5   : > { %5124 = vmatprep.mubr.msk.f32.mxu1 %vm2307_vm10, %v386_v31  ;;  %9565 = vst [vmem:[#allocation14_spill] sm:$0xff] %v7586_v22  ;;  %v374_v31 = vld [vmem:[%s7470_s18 + $0xc0] sm:$0xff]  ;;  %v377_v22 = vld [vmem:[%s7470_s18 + $0xd8] sm:$0xff] }
 0x2b6   : > { %v7562_v38 = vpop.xlane.xlu1 %2283  ;;  %3122 = vperm.xlu1 %5187, %v7164_v48  }
 0x2b7   : > { %9562 = vst [vmem:[#allocation97_spill] sm:$0xff] %v7562_v38  ;;  %v373_v38 = vld [vmem:[%s7470_s18 + $0xb8] sm:$0xff] }
 0x2b8   : > { %5125 = vmatmul.mubr.msk.f32.gmra.mrb[4].mxu1 %vm2307_vm10, %v387_v10  ;;  %5104 = vmatmul.mubr.msk.f32.gmra.mrb[22].mxu0 %vm2307_vm10, %v373_v38  ;;  %v390_v38 = vld [vmem:[%s7470_s18 + $0x140] sm:$0xff]  ;;  %v7606_v46 = vpop.xlane.xlu0 %2142 }
 0x2b9   : > { %5127 = vmatprep.mubr.msk.f32.mxu1 %vm2307_vm10, %v388_v33  ;;  %5106 = vmatprep.mubr.msk.f32.mxu0 %vm2307_vm10, %v374_v31  ;;  %v376_v33 = vld [vmem:[%s7470_s18 + $0xd0] sm:$0xff]  ;;  %9568 = vst [vmem:[#allocation101_spill] sm:$0xff] %v7606_v46  ;;  %v378_v46 = vld [vmem:[%s7470_s18 + $0xe0] sm:$0xff] }
 0x2ba   : > { %v7575_v57 = vpop.xlane.xlu1 %2289  ;;  %3132 = vperm.xlu1 %5187, %v7197_v47  }
 0x2bb   : > { %9564 = vst [vmem:[#allocation98_spill] sm:$0xff] %v7575_v57  ;;  %v389_v57 = vld [vmem:[%s7470_s18 + $0x138] sm:$0xff] }
 0x2bc   : > { %5128 = vmatmul.mubr.msk.f32.gmra.mrb[6].mxu1 %vm2307_vm10, %v389_v57  ;;  %5107 = vmatmul.mubr.msk.f32.gmra.mrb[24].mxu0 %vm2307_vm10, %v375_v45  ;;  %v392_v57 = vld [vmem:[%s7470_s18 + $0x150] sm:$0xff]  ;;  %v9569_v45 = vld [vmem:[#allocation73_spill] sm:$0xff] }
 0x2bd   : > { %5130 = vmatprep.mubr.msk.f32.mxu1 %vm2307_vm10, %v390_v38  ;;  %5109 = vmatprep.mubr.msk.f32.mxu0 %vm2307_vm10, %v376_v33  ;;  %v1264_v38 = vmul.f32 %v6094_v41, %v9569_v45  ;;  %v393_v33 = vld [vmem:[%s7470_s18 + $0x158] sm:$0xff]  ;;  %v394_v41 = vld [vmem:[%s7470_s18 + $0x160] sm:$0xff]  ;;  %v7626_v45 = vpop.xlane.xlu0 %2148 }
 0x2be   : > { %v7588_v44 = vpop.xlane.xlu1 %2295  ;;  %3142 = vperm.xlu1 %5187, %v7242_v56   ;;  %9570 = vst [vmem:[#allocation102_spill] sm:$0xff] %v7626_v45 }
 0x2bf   : > { %9566 = vst [vmem:[#allocation99_spill] sm:$0xff] %v7588_v44  ;;  %v391_v44 = vld [vmem:[%s7470_s18 + $0x148] sm:$0xff] }
 0x2c0   : > { %5131 = vmatmul.mubr.msk.f32.gmra.mrb[8].mxu1 %vm2307_vm10, %v391_v44  ;;  %5110 = vmatmul.mubr.msk.f32.gmra.mrb[26].mxu0 %vm2307_vm10, %v377_v22  ;;  %v379_v44 = vld [vmem:[%s7470_s18 + $0xe8] sm:$0xff]  ;;  %v1664_v22 = vmul.f32 %v6268_v25, %v7418_v8  ;;  %v396_v8 = vld [vmem:[%s7470_s18 + $0x170] sm:$0xff] }
 0x2c1   : > { %5133 = vmatprep.mubr.msk.f32.mxu1 %vm2307_vm10, %v392_v57  ;;  %5112 = vmatprep.mubr.msk.f32.mxu0 %vm2307_vm10, %v378_v46 }
 0x2c2   : > { %3152 = vperm.xlu1 %5187, %v7263_v7   ;;  %v7600_v10 = vpop.xlane.xlu1 %2301 }
 0x2c3   : > { %9567 = vst [vmem:[#allocation100_spill] sm:$0xff] %v7600_v10 }
 0x2c4   : > { %5134 = vmatmul.mubr.msk.f32.gmra.mrb[10].mxu1 %vm2307_vm10, %v393_v33  ;;  %5113 = vmatmul.mubr.msk.f32.gmra.mrb[28].mxu0 %vm2307_vm10, %v379_v44  ;;  %v395_v33 = vld [vmem:[%s7470_s18 + $0x168] sm:$0xff]  ;;  %v7648_v44 = vpop.xlane.xlu0 %2154 }
 0x2c5   : > { %5136 = vmatprep.mubr.msk.f32.mxu1 %vm2307_vm10, %v394_v41  ;;  %9571 = vst [vmem:[#allocation67_spill] sm:$0xff] %v7648_v44 }
 0x2c6   : > { %3162 = vperm.xlu1 %5187, %v7291_v34   ;;  %v847_v31 = vpop.permute.xlu1 %846  ;;  %v381_v34 = vld [vmem:[%s7470_s18 + $0xf8] sm:$0xff] }
 0x2c7   : > { %v928_v10 = vmul.f32 %v9484_v24, %v847_v31  ;;  %v380_v31 = vld [vmem:[%s7470_s18 + $0xf0] sm:$0xff] }
 0x2c8   : > { %5115 = vmatprep.mubr.msk.f32.mxu0 %vm2307_vm10, %v380_v31  ;;  %5137 = vmatmul.mubr.msk.f32.gmra.mrb[12].mxu1 %vm2307_vm10, %v395_v33  ;;  %v400_v31 = vld [vmem:[%s7470_s18 + $0x190] sm:$0xff]  ;;  %v7661_v33 = vpop.xlane.xlu0 %2160 }
 0x2c9   : > { %v1328_v57 = vadd.f32 %v1264_v38, %v928_v10  ;;  %5116 = vmatmul.mubr.msk.f32.gmra.mrb[30].mxu0 %vm2307_vm10, %v381_v34  ;;  %5139 = vmatprep.mubr.msk.f32.mxu1 %vm2307_vm10, %v396_v8  ;;  %v397_v38 = vld [vmem:[%s7470_s18 + $0x178] sm:$0xff]  ;;  %9572 = vst [vmem:[#allocation103_spill] sm:$0xff] %v7661_v33 }
 0x2ca   : > { %3172 = vperm.xlu1 %5187, %v7320_v21   ;;  %v7629_v24 = vpop.permute.xlu1 %2887  ;;  %v401_v8 = vld [vmem:[%s7470_s18 + $0x198] sm:$0xff] }
 0x2cb   : > { %v1728_v46 = vadd.f32 %v1664_v22, %v1328_v57  ;;  %v398_v22 = vld [vmem:[%s7470_s18 + $0x180] sm:$0xff] }
 0x2cc   : > { %5140 = vmatmul.mubr.msk.f32.gmra.mrb[14].mxu1 %vm2307_vm10, %v397_v38  ;;  %v9574_v38 = vmov 1  }
 0x2cd   : > { %v7637_v25 = vmul.f32 5.0, %v1728_v46  ;;  %5142 = vmatprep.mubr.msk.f32.mxu1 %vm2307_vm10, %v398_v22  ;;  %v399_v46 = vld [vmem:[%s7470_s18 + $0x188] sm:$0xff]  ;;  %v9575_v22 = vld [vmem:[#allocation44_spill] sm:$0xff] }
 0x2ce   : > { %3182 = vperm.xlu1 %5187, %v7367_v50   ;;  %v7642_v10 = vpop.permute.xlu1 %2897 }
 0x2cf   : > { %vm1856_vm11 = vcmp.le.f32.partialorder %v7637_v25, 1.0  ;;  %vm1920_vm12 = vcmp.ge.f32.partialorder %v7637_v25, -1.0 }
 0x2d0   : > { %vm1984_vm13 = vmand %vm1856_vm11, %vm1920_vm12  ;;  %5143 = vmatmul.mubr.msk.f32.gmra.mrb[16].mxu1 %vm2307_vm10, %v399_v46  ;;  %v402_v46 = vld [vmem:[%s7470_s18 + $0x1a0] sm:$0xff] }
 0x2d1   : > { %v4932_v34 = vsel %vm1984_vm13, 1.0, %v9400_v39  ;;  %5145 = vmatprep.mubr.msk.f32.mxu1 %vm2307_vm10, %v400_v31  ;;  %v403_v31 = vld [vmem:[%s7470_s18 + $0x1a8] sm:$0xff] }
 0x2d2   : > { %3192 = vperm.xlu1 %5187, %v7386_v12   ;;  %v7654_v57 = vpop.permute.xlu1 %2902  ;;  %v2303_v41 = vsel %vm2113_vm0, %v4932_v34, inf }
 0x2d3   : > { %2304 = vmin.xlane.f32.xlu0 %v2303_v41  ;;  %v7673_v41 = vpop.xlane.xlu0 %2166 }
 0x2d4   : > { %5146 = vmatmul.mubr.msk.f32.gmra.mrb[18].mxu1 %vm2307_vm10, %v401_v8  ;;  %9576 = vst [vmem:[#allocation104_spill] sm:$0xff] %v7673_v41 }
 0x2d5   : > { %5148 = vmatprep.mubr.msk.f32.mxu1 %vm2307_vm10, %v402_v46 }
 0x2d6   : > { %3202 = vperm.xlu1 %5187, %v7637_v25   ;;  %v7664_v39 = vpop.permute.xlu1 %2907 }
 0x2d7   : > { %9573 = vst [vmem:[#allocation25_spill] sm:$0xff] %v7664_v39  ;;  %v7681_v39 = vpop.xlane.xlu0 %2172 }
 0x2d8   : > { %9578 = vst [vmem:[#allocation105_spill] sm:$0xff] %v7681_v39  ;;  %5149 = vmatmul.mubr.msk.f32.gmra.mrb[20].mxu1 %vm2307_vm10, %v403_v31  ;;  %v405_v39 = vld [vmem:[%s7470_s18 + $0x1b8] sm:$0xff] }
 0x2da   : > { %5189 = vset.pattern.permute.xlu1 %v9574_v38  ;;  %v7670_v34 = vpop.permute.xlu1 %2912 }
 0x2db   : > { %3278 = vperm.xlu1 %5189, %v9575_v22   ;;  %v7690_v46 = vpop.xlane.xlu0 %2178 }
 0x2dc   : > { %9580 = vst [vmem:[#allocation106_spill] sm:$0xff] %v7690_v46  ;;  %v406_v46 = vld [vmem:[%s7470_s18 + $0x1c0] sm:$0xff] }
 0x2de   : > { %v7677_v33 = vpop.permute.xlu1 %2917 }
 0x2df   : > { %9577 = vst [vmem:[#allocation26_spill] sm:$0xff] %v7677_v33  ;;  %3282 = vperm.xlu1 %5189, %v9530_v1   ;;  %v404_v33 = vld [vmem:[%s7470_s18 + $0x1b0] sm:$0xff]  ;;  %v7701_v31 = vpop.xlane.xlu0 %2184 }
 0x2e0   : > { %5151 = vmatprep.mubr.msk.f32.mxu1 %vm2307_vm10, %v404_v33  ;;  %9582 = vst [vmem:[#allocation16_spill] sm:$0xff] %v7701_v31  ;;  %v407_v33 = vld [vmem:[%s7470_s18 + $0x1c8] sm:$0xff]  ;;  %v9586_v31 = vld [vmem:[#allocation9_spill] sm:$0xff] }
 0x2e1   : > { %5152 = vmatmul.mubr.msk.f32.gmra.mrb[22].mxu1 %vm2307_vm10, %v405_v39 }
 0x2e2   : > { %v7683_v8 = vpop.permute.xlu1 %2922  ;;  %5154 = vmatprep.mubr.msk.f32.mxu1 %vm2307_vm10, %v406_v46  ;;  %v9588_v46 = vld [vmem:[#allocation49_spill] sm:$0xff] }
 0x2e3   : > { %3290 = vperm.xlu1 %5189, %v9534_v49   ;;  %v7714_v39 = vpop.xlane.xlu0 %2190 }
 0x2e4   : > { %9585 = vst [vmem:[#allocation108_spill] sm:$0xff] %v7714_v39  ;;  %v9591_v39 = vld [vmem:[#allocation50_spill] sm:$0xff] }
 0x2e5   : > { %5155 = vmatmul.mubr.msk.f32.gmra.mrb[24].mxu1 %vm2307_vm10, %v407_v33 }
 0x2e6   : > { %v7687_v44 = vpop.permute.xlu1 %2927 }
 0x2e7   : > { %9579 = vst [vmem:[#allocation27_spill] sm:$0xff] %v7687_v44  ;;  %3298 = vperm.xlu1 %5189, %v6486_v29  }
 0x2e9   : > { %2892 = vperm.xlu0 %5186, %v9575_v22  }
 0x2ea   : > { %v7696_v41 = vpop.permute.xlu1 %2932 }
 0x2eb   : > { %9581 = vst [vmem:[#allocation28_spill] sm:$0xff] %v7696_v41  ;;  %3306 = vperm.xlu1 %5189, %v6510_v40  }
 0x2ed   : > { %2937 = vperm.xlu0 %5186, %v6544_v5  }
 0x2ee   : > { %v7703_v44 = vpop.permute.xlu1 %2942 }
 0x2ef   : > { %9583 = vst [vmem:[#allocation107_spill] sm:$0xff] %v7703_v44  ;;  %3314 = vperm.xlu1 %5189, %v6544_v5   ;;  %v408_v44 = vld [vmem:[%s7470_s18 + $0x1d0] sm:$0xff]  ;;  %v7724_v5 = vpop.xlane.xlu0 %2196 }
 0x2f0   : > { %5157 = vmatprep.mubr.msk.f32.mxu1 %vm2307_vm10, %v408_v44  ;;  %9589 = vst [vmem:[#allocation109_spill] sm:$0xff] %v7724_v5  ;;  %v9594_v5 = vld [vmem:[#allocation51_spill] sm:$0xff] }
 0x2f1   : > { %2947 = vperm.xlu0 %5186, %v6592_v36  }
 0x2f2   : > { %v7710_v45 = vpop.permute.xlu1 %2952 }
 0x2f3   : > { %9584 = vst [vmem:[#allocation29_spill] sm:$0xff] %v7710_v45  ;;  %3322 = vperm.xlu1 %5189, %v6592_v36   ;;  %v409_v45 = vld [vmem:[%s7470_s18 + $0x1d8] sm:$0xff]  ;;  %v7736_v44 = vpop.xlane.xlu0 %2202 }
 0x2f4   : > { %5158 = vmatmul.mubr.msk.f32.gmra.mrb[26].mxu1 %vm2307_vm10, %v409_v45  ;;  %9593 = vst [vmem:[#allocation32_spill] sm:$0xff] %v7736_v44  ;;  %v412_v45 = vld [vmem:[%s7470_s18 + $0x1f0] sm:$0xff] }
 0x2f5   : > { %2957 = vperm.xlu0 %5186, %v9586_v31  }
 0x2f6   : > { %v7718_v41 = vpop.permute.xlu1 %2962 }
 0x2f7   : > { %9587 = vst [vmem:[#allocation30_spill] sm:$0xff] %v7718_v41  ;;  %3330 = vperm.xlu1 %5189, %v9586_v31   ;;  %v410_v41 = vld [vmem:[%s7470_s18 + $0x1e0] sm:$0xff]  ;;  %v411_v31 = vld [vmem:[%s7470_s18 + $0x1e8] sm:$0xff] }
 0x2f8   : > { %5160 = vmatprep.mubr.msk.f32.mxu1 %vm2307_vm10, %v410_v41  ;;  %v413_v41 = vld [vmem:[%s7470_s18 + $0x1f8] sm:$0xff] }
 0x2f9   : > { %2967 = vperm.xlu0 %5186, %v9588_v46   ;;  %5161 = vmatmul.mubr.msk.f32.gmra.mrb[28].mxu1 %vm2307_vm10, %v411_v31 }
 0x2fa   : > { %v7726_v33 = vpop.permute.xlu1 %2972  ;;  %5163 = vmatprep.mubr.msk.f32.mxu1 %vm2307_vm10, %v412_v45  ;;  %v9602_v45 = vld [vmem:[#allocation54_spill] sm:$0xff] }
 0x2fb   : > { %9590 = vst [vmem:[#allocation31_spill] sm:$0xff] %v7726_v33  ;;  %3338 = vperm.xlu1 %5189, %v9588_v46  }
 0x2fd   : > { %2977 = vperm.xlu0 %5186, %v9591_v39   ;;  %5164 = vmatmul.mubr.msk.f32.gmra.mrb[30].mxu1 %vm2307_vm10, %v413_v41 }
 0x2fe   : > { %v7732_v36 = vpop.permute.xlu1 %2982 }
 0x2ff   : > { %9592 = vst [vmem:[#allocation110_spill] sm:$0xff] %v7732_v36  ;;  %3346 = vperm.xlu1 %5189, %v9591_v39   ;;  %v7746_v36 = vpop.xlane.xlu0 %2208 }
 0x300   : > { %9596 = vst [vmem:[#allocation112_spill] sm:$0xff] %v7746_v36 }
 0x301   : > { %2987 = vperm.xlu0 %5186, %v9594_v5  }
 0x302   : > { %v7740_v33 = vpop.permute.xlu1 %2992 }
 0x303   : > { %9595 = vst [vmem:[#allocation111_spill] sm:$0xff] %v7740_v33  ;;  %3354 = vperm.xlu1 %5189, %v9594_v5   ;;  %v7758_v31 = vpop.xlane.xlu0 %2214  ;;  %v9600_v33 = vld [vmem:[#allocation53_spill] sm:$0xff] }
 0x304   : > { %9599 = vst [vmem:[#allocation18_spill] sm:$0xff] %v7758_v31 }
 0x305   : > { %2997 = vperm.xlu0 %5186, %v6767_v62  }
 0x306   : > { %v7748_v46 = vpop.permute.xlu1 %3002 }
 0x307   : > { %9597 = vst [vmem:[#allocation113_spill] sm:$0xff] %v7748_v46  ;;  %3362 = vperm.xlu1 %5189, %v6767_v62   ;;  %v7765_v46 = vpop.xlane.xlu0 %2220 }
 0x308   : > { %9603 = vst [vmem:[#allocation33_spill] sm:$0xff] %v7765_v46 }
 0x309   : > { %3007 = vperm.xlu0 %5186, %v6790_v28  }
 0x30a   : > { %v7754_v44 = vpop.permute.xlu1 %3012 }
 0x30b   : > { %9598 = vst [vmem:[#allocation114_spill] sm:$0xff] %v7754_v44  ;;  %3370 = vperm.xlu1 %5189, %v6790_v28   ;;  %v9605_v44 = vld [vmem:[#allocation55_spill] sm:$0xff]  ;;  %v7774_v31 = vpop.xlane.xlu0 %2226 }
 0x30c   : > { %9607 = vst [vmem:[#allocation5_spill] sm:$0xff] %v7774_v31 }
 0x30d   : > { %3017 = vperm.xlu0 %5186, %v9600_v33  }
 0x30e   : > { %v7761_v36 = vpop.permute.xlu1 %3022 }
 0x30f   : > { %9601 = vst [vmem:[#allocation4_spill] sm:$0xff] %v7761_v36  ;;  %3378 = vperm.xlu1 %5189, %v9600_v33   ;;  %v7781_v46 = vpop.xlane.xlu0 %2232 }
 0x310   : > { %9609 = vst [vmem:[#allocation13_spill] sm:$0xff] %v7781_v46 }
 0x311   : > { %3027 = vperm.xlu0 %5186, %v9602_v45  }
 0x312   : > { %v7767_v62 = vpop.permute.xlu1 %3032 }
 0x313   : > { %9604 = vst [vmem:[#allocation115_spill] sm:$0xff] %v7767_v62  ;;  %3386 = vperm.xlu1 %5189, %v9602_v45   ;;  %v7790_v31 = vpop.xlane.xlu0 %2238 }
 0x314   : > { %9612 = vst [vmem:[#allocation8_spill] sm:$0xff] %v7790_v31 }
 0x315   : > { %3037 = vperm.xlu0 %5186, %v9605_v44  }
 0x316   : > { %v7771_v41 = vpop.permute.xlu1 %3042 }
 0x317   : > { %9606 = vst [vmem:[#allocation34_spill] sm:$0xff] %v7771_v41  ;;  %3394 = vperm.xlu1 %5189, %v9605_v44   ;;  %v7797_v46 = vpop.xlane.xlu0 %2244 }
 0x318   : > { %9615 = vst [vmem:[#allocation37_spill] sm:$0xff] %v7797_v46 }
 0x319   : > { %3047 = vperm.xlu0 %5186, %v6930_v27  }
 0x31a   : > { %v7777_v36 = vpop.permute.xlu1 %3052 }
 0x31b   : > { %9608 = vst [vmem:[#allocation35_spill] sm:$0xff] %v7777_v36  ;;  %3402 = vperm.xlu1 %5189, %v6930_v27   ;;  %v9614_v27 = vld [vmem:[#allocation61_spill] sm:$0xff]  ;;  %v7806_v31 = vpop.xlane.xlu0 %2250 }
 0x31c   : > { %9619 = vst [vmem:[#allocation39_spill] sm:$0xff] %v7806_v31 }
 0x31d   : > { %3057 = vperm.xlu0 %5186, %v6964_v14  }
 0x31e   : > { %v7783_v62 = vpop.permute.xlu1 %3062 }
 0x31f   : > { %9610 = vst [vmem:[#allocation36_spill] sm:$0xff] %v7783_v62  ;;  %3410 = vperm.xlu1 %5189, %v6964_v14   ;;  %v9617_v14 = vld [vmem:[#allocation62_spill] sm:$0xff]  ;;  %v7813_v46 = vpop.xlane.xlu0 %2256 }
 0x320   : > { %9623 = vst [vmem:[#allocation7_spill] sm:$0xff] %v7813_v46 }
 0x321   : > { %3067 = vperm.xlu0 %5186, %v7012_v15  }
 0x322   : > { %v7787_v41 = vpop.permute.xlu1 %3072 }
 0x323   : > { %9611 = vst [vmem:[#allocation17_spill] sm:$0xff] %v7787_v41  ;;  %3418 = vperm.xlu1 %5189, %v7012_v15   ;;  %v9620_v15 = vld [vmem:[#allocation65_spill] sm:$0xff]  ;;  %v7822_v31 = vpop.xlane.xlu0 %2262 }
 0x324   : > { %9626 = vst [vmem:[#allocation10_spill] sm:$0xff] %v7822_v31 }
 0x325   : > { %3077 = vperm.xlu0 %5186, %v7047_v2  }
 0x326   : > { %v7793_v36 = vpop.permute.xlu1 %3082 }
 0x327   : > { %9613 = vst [vmem:[#allocation6_spill] sm:$0xff] %v7793_v36  ;;  %3426 = vperm.xlu1 %5189, %v7047_v2   ;;  %v9622_v2 = vld [vmem:[#allocation68_spill] sm:$0xff]  ;;  %v7829_v46 = vpop.xlane.xlu0 %2268 }
 0x328   : > { %9629 = vst [vmem:[#allocation42_spill] sm:$0xff] %v7829_v46 }
 0x329   : > { %3087 = vperm.xlu0 %5186, %v9614_v27  }
 0x32a   : > { %v7799_v62 = vpop.permute.xlu1 %3092 }
 0x32b   : > { %9616 = vst [vmem:[#allocation12_spill] sm:$0xff] %v7799_v62  ;;  %3434 = vperm.xlu1 %5189, %v9614_v27   ;;  %v7838_v31 = vpop.xlane.xlu0 %2274 }
 0x32c   : > { %9632 = vst [vmem:[#allocation45_spill] sm:$0xff] %v7838_v31 }
 0x32d   : > { %3097 = vperm.xlu0 %5186, %v9617_v14  }
 0x32e   : > { %v7803_v41 = vpop.permute.xlu1 %3102 }
 0x32f   : > { %9618 = vst [vmem:[#allocation38_spill] sm:$0xff] %v7803_v41  ;;  %3442 = vperm.xlu1 %5189, %v9617_v14   ;;  %v7845_v46 = vpop.xlane.xlu0 %2280 }
 0x330   : > { %9634 = vst [vmem:[#allocation44_spill] sm:$0xff] %v7845_v46 }
 0x331   : > { %3107 = vperm.xlu0 %5186, %v9620_v15  }
 0x332   : > { %v7809_v36 = vpop.permute.xlu1 %3112 }
 0x333   : > { %9621 = vst [vmem:[#allocation40_spill] sm:$0xff] %v7809_v36  ;;  %3450 = vperm.xlu1 %5189, %v9620_v15   ;;  %v9628_v15 = vld [vmem:[#allocation69_spill] sm:$0xff]  ;;  %v7854_v31 = vpop.xlane.xlu0 %2286 }
 0x334   : > { %9637 = vst [vmem:[#allocation53_spill] sm:$0xff] %v7854_v31 }
 0x335   : > { %3117 = vperm.xlu0 %5186, %v9622_v2  }
 0x336   : > { %v7815_v62 = vpop.permute.xlu1 %3122 }
 0x337   : > { %9624 = vst [vmem:[#allocation23_spill] sm:$0xff] %v7815_v62  ;;  %3458 = vperm.xlu1 %5189, %v9622_v2   ;;  %v7861_v46 = vpop.xlane.xlu0 %2292 }
 0x338   : > { %9639 = vst [vmem:[#allocation55_spill] sm:$0xff] %v7861_v46 }
 0x339   : > { %3127 = vperm.xlu0 %5186, %v7208_v18  }
 0x33a   : > { %v7819_v41 = vpop.permute.xlu1 %3132 }
 0x33b   : > { %9625 = vst [vmem:[#allocation24_spill] sm:$0xff] %v7819_v41  ;;  %3466 = vperm.xlu1 %5189, %v7208_v18   ;;  %v7871_v31 = vpop.xlane.xlu0 %2298 }
 0x33c   : > { %9642 = vst [vmem:[#allocation117_spill] sm:$0xff] %v7871_v31 }
 0x33d   : > { %3137 = vperm.xlu0 %5186, %v7240_v61  }
 0x33e   : > { %v7825_v36 = vpop.permute.xlu1 %3142 }
 0x33f   : > { %9627 = vst [vmem:[#allocation41_spill] sm:$0xff] %v7825_v36  ;;  %3474 = vperm.xlu1 %5189, %v7240_v61   ;;  %v9641_v36 = vmov 2  }
 0x341   : > { %3147 = vperm.xlu0 %5186, %v9628_v15  }
 0x342   : > { %v7831_v62 = vpop.permute.xlu1 %3152 }
 0x343   : > { %9630 = vst [vmem:[#allocation43_spill] sm:$0xff] %v7831_v62  ;;  %3482 = vperm.xlu1 %5189, %v9628_v15  }
 0x345   : > { %3157 = vperm.xlu0 %5186, %v7308_v4  }
 0x346   : > { %v7835_v2 = vpop.permute.xlu1 %3162 }
 0x347   : > { %9631 = vst [vmem:[#allocation46_spill] sm:$0xff] %v7835_v2  ;;  %3490 = vperm.xlu1 %5189, %v7308_v4  }
 0x349   : > { %3167 = vperm.xlu0 %5186, %v7333_v0  }
 0x34a   : > { %v7841_v14 = vpop.permute.xlu1 %3172 }
 0x34b   : > { %9633 = vst [vmem:[#allocation73_spill] sm:$0xff] %v7841_v14  ;;  %3498 = vperm.xlu1 %5189, %v7333_v0  }
 0x34d   : > { %3177 = vperm.xlu0 %5186, %v7365_v52  }
 0x34e   : > { %v7847_v62 = vpop.permute.xlu1 %3182 }
 0x34f   : > { %9635 = vst [vmem:[#allocation50_spill] sm:$0xff] %v7847_v62  ;;  %3506 = vperm.xlu1 %5189, %v7365_v52  }
 0x351   : > { %3187 = vperm.xlu0 %5186, %v7390_v17  }
 0x352   : > { %v7851_v2 = vpop.permute.xlu1 %3192 }
 0x353   : > { %9636 = vst [vmem:[#allocation51_spill] sm:$0xff] %v7851_v2  ;;  %3514 = vperm.xlu1 %5189, %v7390_v17  }
 0x355   : > { %3197 = vperm.xlu0 %5186, %v7400_v53  }
 0x356   : > { %v7857_v14 = vpop.permute.xlu1 %3202 }
 0x357   : > { %9638 = vst [vmem:[#allocation54_spill] sm:$0xff] %v7857_v14  ;;  %3522 = vperm.xlu1 %5189, %v7400_v53  }
 0x359   : > { %5188 = vset.pattern.permute.xlu0 %v9574_v38 }
 0x35a   : > { %v7863_v62 = vpop.permute.xlu1 %3278  ;;  %3274 = vperm.xlu0 %5188, %v9528_v20  }
 0x35b   : > { %9640 = vst [vmem:[#allocation69_spill] sm:$0xff] %v7863_v62  ;;  %5190 = vset.pattern.permute.xlu1 %v9641_v36  ;;  %v7874_v14 = vpop.f32.mrb[0].mxu0 }
 0x35c   : > { %3662 = vperm.xlu1 %5190, %v9528_v20   ;;  %9643 = vst [vmem:[#allocation118_spill] sm:$0xff] %v7874_v14  ;;  %v7876_v38 = vpop.f32.mrb[1].mxu0 }
 0x35e   : > { %v7868_v2 = vpop.permute.xlu1 %3282  ;;  %3286 = vperm.xlu0 %5188, %v9532_v13  }
 0x35f   : > { %v7884_v20 = vpop.f32.mrb[2].mxu0 }
 0x360   : > { %3670 = vperm.xlu1 %5190, %v9530_v1   ;;  %v7881_v62 = vpop.xlane.xlu0 %2304  ;;  %v7889_v31 = vpop.f32.mrb[3].mxu0 }
 0x361   : > { %9645 = vst [vmem:[#allocation120_spill] sm:$0xff] %v7881_v62 }
 0x362   : > { %v7878_v46 = vpop.permute.xlu1 %3290  ;;  %3294 = vperm.xlu0 %5188, %v9536_v55  }
 0x363   : > { %9644 = vst [vmem:[#allocation119_spill] sm:$0xff] %v7878_v46 }
 0x364   : > { %3674 = vperm.xlu1 %5190, %v9532_v13  }
 0x366   : > { %v7886_v41 = vpop.permute.xlu1 %3298  ;;  %3302 = vperm.xlu0 %5188, %v6467_v3  }
 0x367   : > { %9646 = vst [vmem:[#allocation121_spill] sm:$0xff] %v7886_v41  ;;  %v7903_v41 = vpop.f32.mrb[4].mxu0 }
 0x368   : > { %3682 = vperm.xlu1 %5190, %v9536_v55   ;;  %v7892_v1 = vpop.permute.xlu0 %2892  ;;  %v7908_v55 = vpop.f32.mrb[5].mxu0 }
 0x369   : > { %9647 = vst [vmem:[#allocation122_spill] sm:$0xff] %v7892_v1  ;;  %9652 = vst [vmem:[#allocation127_spill] sm:$0xff] %v7908_v55 }
 0x36a   : > { %v7894_v14 = vpop.permute.xlu1 %3306  ;;  %3310 = vperm.xlu0 %5188, %v6501_v30  }
 0x36b   : > { %9648 = vst [vmem:[#allocation123_spill] sm:$0xff] %v7894_v14  ;;  %v7913_v14 = vpop.f32.mrb[6].mxu0 }
 0x36c   : > { %3690 = vperm.xlu1 %5190, %v6467_v3   ;;  %v7898_v62 = vpop.permute.xlu0 %2937 }
 0x36d   : > { %9649 = vst [vmem:[#allocation124_spill] sm:$0xff] %v7898_v62  ;;  %v7918_v62 = vpop.f32.mrb[7].mxu0 }
 0x36e   : > { %v7900_v13 = vpop.permute.xlu1 %3314  ;;  %3318 = vperm.xlu0 %5188, %v6546_v54   ;;  %9655 = vst [vmem:[#allocation130_spill] sm:$0xff] %v7918_v62 }
 0x36f   : > { %9650 = vst [vmem:[#allocation125_spill] sm:$0xff] %v7900_v13 }
 0x370   : > { %3698 = vperm.xlu1 %5190, %v6501_v30   ;;  %v7906_v46 = vpop.permute.xlu0 %2947  ;;  %v7923_v30 = vpop.f32.mrb[8].mxu0 }
 0x371   : > { %9651 = vst [vmem:[#allocation126_spill] sm:$0xff] %v7906_v46 }
 0x372   : > { %v7910_v1 = vpop.permute.xlu1 %3322  ;;  %3326 = vperm.xlu0 %5188, %v6569_v59  }
 0x373   : > { %9653 = vst [vmem:[#allocation128_spill] sm:$0xff] %v7910_v1  ;;  %v7928_v1 = vpop.f32.mrb[9].mxu0 }
 0x374   : > { %3706 = vperm.xlu1 %5190, %v6546_v54   ;;  %v7916_v3 = vpop.permute.xlu0 %2957  ;;  %9658 = vst [vmem:[#allocation133_spill] sm:$0xff] %v7928_v1  ;;  %v7933_v54 = vpop.f32.mrb[10].mxu0 }
 0x375   : > { %9654 = vst [vmem:[#allocation129_spill] sm:$0xff] %v7916_v3 }
 0x376   : > { %v7920_v13 = vpop.permute.xlu1 %3330  ;;  %3334 = vperm.xlu0 %5188, %v6604_v43  }
 0x377   : > { %9656 = vst [vmem:[#allocation131_spill] sm:$0xff] %v7920_v13  ;;  %v7938_v13 = vpop.f32.mrb[11].mxu0 }
 0x378   : > { %3714 = vperm.xlu1 %5190, %v6569_v59   ;;  %v7926_v46 = vpop.permute.xlu0 %2967  ;;  %9661 = vst [vmem:[#allocation136_spill] sm:$0xff] %v7938_v13  ;;  %v7943_v59 = vpop.f32.mrb[12].mxu0 }
 0x379   : > { %9657 = vst [vmem:[#allocation132_spill] sm:$0xff] %v7926_v46 }
 0x37a   : > { %v7930_v55 = vpop.permute.xlu1 %3338  ;;  %3342 = vperm.xlu0 %5188, %v6639_v6  }
 0x37b   : > { %9659 = vst [vmem:[#allocation134_spill] sm:$0xff] %v7930_v55  ;;  %v7948_v55 = vpop.f32.mrb[13].mxu0 }
 0x37c   : > { %3722 = vperm.xlu1 %5190, %v6604_v43   ;;  %v7936_v3 = vpop.permute.xlu0 %2977  ;;  %9664 = vst [vmem:[#allocation139_spill] sm:$0xff] %v7948_v55  ;;  %v7953_v43 = vpop.f32.mrb[14].mxu0 }
 0x37d   : > { %9660 = vst [vmem:[#allocation135_spill] sm:$0xff] %v7936_v3 }
 0x37e   : > { %v7940_v62 = vpop.permute.xlu1 %3346  ;;  %3350 = vperm.xlu0 %5188, %v6686_v37  }
 0x37f   : > { %9662 = vst [vmem:[#allocation137_spill] sm:$0xff] %v7940_v62  ;;  %v7958_v62 = vpop.f32.mrb[15].mxu0 }
 0x380   : > { %3730 = vperm.xlu1 %5190, %v6639_v6   ;;  %v7946_v46 = vpop.permute.xlu0 %2987  ;;  %9667 = vst [vmem:[#allocation142_spill] sm:$0xff] %v7958_v62  ;;  %v7963_v6 = vpop.f32.mrb[16].mxu0 }
 0x381   : > { %9663 = vst [vmem:[#allocation138_spill] sm:$0xff] %v7946_v46 }
 0x382   : > { %v7950_v1 = vpop.permute.xlu1 %3354  ;;  %3358 = vperm.xlu0 %5188, %v6709_v11  }
 0x383   : > { %9665 = vst [vmem:[#allocation140_spill] sm:$0xff] %v7950_v1  ;;  %v7968_v1 = vpop.f32.mrb[17].mxu0 }
 0x384   : > { %3738 = vperm.xlu1 %5190, %v6686_v37   ;;  %v7956_v3 = vpop.permute.xlu0 %2997  ;;  %9670 = vst [vmem:[#allocation145_spill] sm:$0xff] %v7968_v1  ;;  %v7973_v37 = vpop.f32.mrb[18].mxu0 }
 0x385   : > { %9666 = vst [vmem:[#allocation141_spill] sm:$0xff] %v7956_v3 }
 0x386   : > { %v7960_v13 = vpop.permute.xlu1 %3362  ;;  %3366 = vperm.xlu0 %5188, %v6744_v26  }
 0x387   : > { %9668 = vst [vmem:[#allocation143_spill] sm:$0xff] %v7960_v13  ;;  %v7978_v13 = vpop.f32.mrb[19].mxu0 }
 0x388   : > { %3746 = vperm.xlu1 %5190, %v6709_v11   ;;  %v7966_v46 = vpop.permute.xlu0 %3007  ;;  %9673 = vst [vmem:[#allocation148_spill] sm:$0xff] %v7978_v13  ;;  %v7983_v11 = vpop.f32.mrb[20].mxu0 }
 0x389   : > { %9669 = vst [vmem:[#allocation144_spill] sm:$0xff] %v7966_v46 }
 0x38a   : > { %v7970_v55 = vpop.permute.xlu1 %3370  ;;  %3374 = vperm.xlu0 %5188, %v6779_v32  }
 0x38b   : > { %9671 = vst [vmem:[#allocation146_spill] sm:$0xff] %v7970_v55  ;;  %v7988_v55 = vpop.f32.mrb[21].mxu0 }
 0x38c   : > { %3754 = vperm.xlu1 %5190, %v6744_v26   ;;  %v7976_v3 = vpop.permute.xlu0 %3017  ;;  %9676 = vst [vmem:[#allocation151_spill] sm:$0xff] %v7988_v55  ;;  %v7993_v26 = vpop.f32.mrb[22].mxu0 }
 0x38d   : > { %9672 = vst [vmem:[#allocation147_spill] sm:$0xff] %v7976_v3 }
 0x38e   : > { %v7980_v62 = vpop.permute.xlu1 %3378  ;;  %3382 = vperm.xlu0 %5188, %v6826_v16  }
 0x38f   : > { %9674 = vst [vmem:[#allocation149_spill] sm:$0xff] %v7980_v62  ;;  %v7998_v62 = vpop.f32.mrb[23].mxu0 }
 0x390   : > { %3762 = vperm.xlu1 %5190, %v6779_v32   ;;  %v7986_v46 = vpop.permute.xlu0 %3027  ;;  %9679 = vst [vmem:[#allocation154_spill] sm:$0xff] %v7998_v62  ;;  %v8003_v32 = vpop.f32.mrb[24].mxu0 }
 0x391   : > { %9675 = vst [vmem:[#allocation150_spill] sm:$0xff] %v7986_v46 }
 0x392   : > { %v7990_v1 = vpop.permute.xlu1 %3386  ;;  %3390 = vperm.xlu0 %5188, %v6849_v9  }
 0x393   : > { %9677 = vst [vmem:[#allocation152_spill] sm:$0xff] %v7990_v1  ;;  %v8008_v1 = vpop.f32.mrb[25].mxu0 }
 0x394   : > { %3770 = vperm.xlu1 %5190, %v6826_v16   ;;  %v7996_v3 = vpop.permute.xlu0 %3037  ;;  %9682 = vst [vmem:[#allocation157_spill] sm:$0xff] %v8008_v1  ;;  %v8013_v16 = vpop.f32.mrb[26].mxu0 }
 0x395   : > { %9678 = vst [vmem:[#allocation153_spill] sm:$0xff] %v7996_v3  ;;  %v8015_v3 = vpop.f32.mrb[0].mxu1  ;;  %v8022_v27 = vpop.f32.mrb[27].mxu0 }
 0x396   : > { %v8000_v13 = vpop.permute.xlu1 %3394  ;;  %3398 = vperm.xlu0 %5188, %v6884_v58   ;;  %9684 = vst [vmem:[#allocation159_spill] sm:$0xff] %v8015_v3  ;;  %v8020_v62 = vpop.f32.mrb[1].mxu1  ;;  %9687 = vst [vmem:[#allocation162_spill] sm:$0xff] %v8022_v27 }
 0x397   : > { %9680 = vst [vmem:[#allocation155_spill] sm:$0xff] %v8000_v13  ;;  %9686 = vst [vmem:[#allocation161_spill] sm:$0xff] %v8020_v62 }
 0x398   : > { %3778 = vperm.xlu1 %5190, %v6849_v9   ;;  %v8006_v46 = vpop.permute.xlu0 %3047  ;;  %v8024_v9 = vpop.f32.mrb[2].mxu1 }
 0x399   : > { %9681 = vst [vmem:[#allocation156_spill] sm:$0xff] %v8006_v46  ;;  %9688 = vst [vmem:[#allocation163_spill] sm:$0xff] %v8024_v9  ;;  %v8031_v1 = vpop.f32.mrb[3].mxu1 }
 0x39a   : > { %v8010_v55 = vpop.permute.xlu1 %3402  ;;  %3406 = vperm.xlu0 %5188, %v6919_v42   ;;  %9690 = vst [vmem:[#allocation165_spill] sm:$0xff] %v8031_v1 }
 0x39b   : > { %9683 = vst [vmem:[#allocation158_spill] sm:$0xff] %v8010_v55  ;;  %v8029_v55 = vpop.f32.mrb[28].mxu0 }
 0x39c   : > { %3786 = vperm.xlu1 %5190, %v6884_v58   ;;  %v8018_v13 = vpop.permute.xlu0 %3057  ;;  %v8036_v58 = vpop.f32.mrb[4].mxu1 }
 0x39d   : > { %9685 = vst [vmem:[#allocation160_spill] sm:$0xff] %v8018_v13  ;;  %9692 = vst [vmem:[#allocation167_spill] sm:$0xff] %v8036_v58  ;;  %v8038_v13 = vpop.f32.mrb[5].mxu1  ;;  %v8040_v62 = vpop.f32.mrb[29].mxu0 }
 0x39e   : > { %v8026_v46 = vpop.permute.xlu1 %3410  ;;  %3414 = vperm.xlu0 %5188, %v6966_v35   ;;  %9693 = vst [vmem:[#allocation168_spill] sm:$0xff] %v8038_v13  ;;  %9694 = vst [vmem:[#allocation169_spill] sm:$0xff] %v8040_v62  ;;  %v8045_v9 = vpop.f32.mrb[6].mxu1 }
 0x39f   : > { %9689 = vst [vmem:[#allocation164_spill] sm:$0xff] %v8026_v46  ;;  %9696 = vst [vmem:[#allocation171_spill] sm:$0xff] %v8045_v9  ;;  %v8047_v46 = vpop.f32.mrb[30].mxu0  ;;  %v8049_v35 = vpop.f32.mrb[7].mxu1 }
 0x3a0   : > { %3794 = vperm.xlu1 %5190, %v6919_v42   ;;  %v8034_v3 = vpop.permute.xlu0 %3067  ;;  %9697 = vst [vmem:[#allocation172_spill] sm:$0xff] %v8049_v35  ;;  %v8054_v1 = vpop.f32.mrb[8].mxu1 }
 0x3a1   : > { %9691 = vst [vmem:[#allocation166_spill] sm:$0xff] %v8034_v3  ;;  %9699 = vst [vmem:[#allocation174_spill] sm:$0xff] %v8054_v1  ;;  %v8056_v58 = vpop.f32.mrb[9].mxu1 }
 0x3a2   : > { %v8042_v27 = vpop.permute.xlu1 %3418  ;;  %3422 = vperm.xlu0 %5188, %v6989_v51   ;;  %9700 = vst [vmem:[#allocation175_spill] sm:$0xff] %v8056_v58  ;;  %v8061_v3 = vpop.f32.mrb[10].mxu1 }
 0x3a3   : > { %9695 = vst [vmem:[#allocation170_spill] sm:$0xff] %v8042_v27  ;;  %9702 = vst [vmem:[#allocation177_spill] sm:$0xff] %v8061_v3  ;;  %v8063_v27 = vpop.f32.mrb[11].mxu1 }
 0x3a4   : > { %3858 = vperm.xlu1 %5190, %v7197_v47   ;;  %v8052_v42 = vpop.permute.xlu0 %3077  ;;  %9703 = vst [vmem:[#allocation178_spill] sm:$0xff] %v8063_v27  ;;  %v8068_v35 = vpop.f32.mrb[12].mxu1 }
 0x3a5   : > { %9698 = vst [vmem:[#allocation173_spill] sm:$0xff] %v8052_v42  ;;  %9705 = vst [vmem:[#allocation180_spill] sm:$0xff] %v8068_v35  ;;  %v8070_v62 = vpop.f32.mrb[13].mxu1 }
 0x3a6   : > { %v8058_v13 = vpop.permute.xlu1 %3426  ;;  %3430 = vperm.xlu0 %5188, %v7024_v63   ;;  %9706 = vst [vmem:[#allocation181_spill] sm:$0xff] %v8070_v62  ;;  %v8075_v1 = vpop.f32.mrb[14].mxu1 }
 0x3a7   : > { %9701 = vst [vmem:[#allocation176_spill] sm:$0xff] %v8058_v13  ;;  %9708 = vst [vmem:[#allocation183_spill] sm:$0xff] %v8075_v1  ;;  %v8077_v58 = vpop.f32.mrb[15].mxu1 }
 0x3a8   : > { %3862 = vperm.xlu1 %5190, %v7240_v61   ;;  %v8066_v9 = vpop.permute.xlu0 %3087  ;;  %9709 = vst [vmem:[#allocation184_spill] sm:$0xff] %v8077_v58  ;;  %v8082_v27 = vpop.f32.mrb[16].mxu1 }
 0x3a9   : > { %9704 = vst [vmem:[#allocation179_spill] sm:$0xff] %v8066_v9  ;;  %9711 = vst [vmem:[#allocation186_spill] sm:$0xff] %v8082_v27  ;;  %v8084_v61 = vpop.f32.mrb[17].mxu1 }
 0x3aa   : > { %v8072_v42 = vpop.permute.xlu1 %3434  ;;  %3438 = vperm.xlu0 %5188, %v7059_v19   ;;  %9712 = vst [vmem:[#allocation187_spill] sm:$0xff] %v8084_v61  ;;  %v8089_v35 = vpop.f32.mrb[18].mxu1 }
 0x3ab   : > { %9707 = vst [vmem:[#allocation182_spill] sm:$0xff] %v8072_v42  ;;  %9714 = vst [vmem:[#allocation189_spill] sm:$0xff] %v8089_v35  ;;  %v8091_v62 = vpop.f32.mrb[19].mxu1  ;;  %v9739_v35 = vld [vmem:[#allocation116_spill] sm:$0xff] }
 0x3ac   : > { %3866 = vperm.xlu1 %5190, %v7242_v56   ;;  %v8080_v3 = vpop.permute.xlu0 %3097  ;;  %v8102_v42 = vpop.f32.mrb[20].mxu1 }
 0x3ad   : > { %9710 = vst [vmem:[#allocation185_spill] sm:$0xff] %v8080_v3  ;;  %9718 = vst [vmem:[#allocation193_spill] sm:$0xff] %v8102_v42  ;;  %v8107_v13 = vpop.f32.mrb[21].mxu1 }
 0x3ae   : > { %v8086_v9 = vpop.permute.xlu1 %3442  ;;  %3446 = vperm.xlu0 %5188, %v7106_v60  }
 0x3af   : > { %9713 = vst [vmem:[#allocation188_spill] sm:$0xff] %v8086_v9 }
 0x3b0   : > { %3870 = vperm.xlu1 %5190, %v9628_v15   ;;  %v8094_v1 = vpop.permute.xlu0 %3107 }
 0x3b1   : > { %9715 = vst [vmem:[#allocation190_spill] sm:$0xff] %v8094_v1 }
 0x3b2   : > { %v8096_v58 = vpop.permute.xlu1 %3450  ;;  %3454 = vperm.xlu0 %5188, %v7129_v23  }
 0x3b3   : > { %9716 = vst [vmem:[#allocation191_spill] sm:$0xff] %v8096_v58  ;;  %v9722_v58 = vld [vmem:[#allocation70_spill] sm:$0xff] }
 0x3b4   : > { %3874 = vperm.xlu1 %5190, %v7263_v7   ;;  %v8100_v3 = vpop.permute.xlu0 %3117 }
 0x3b5   : > { %9717 = vst [vmem:[#allocation192_spill] sm:$0xff] %v8100_v3  ;;  %v8118_v3 = vpop.f32.mrb[22].mxu1 }
 0x3b6   : > { %v8104_v9 = vpop.permute.xlu1 %3458  ;;  %3462 = vperm.xlu0 %5188, %v7164_v48   ;;  %9723 = vst [vmem:[#allocation70_spill] sm:$0xff] %v8118_v3 }
 0x3b7   : > { %9719 = vst [vmem:[#allocation194_spill] sm:$0xff] %v8104_v9  ;;  %v8123_v9 = vpop.f32.mrb[23].mxu1 }
 0x3b8   : > { %3878 = vperm.xlu1 %5190, %v7308_v4   ;;  %v8110_v15 = vpop.permute.xlu0 %3127 }
 0x3b9   : > { %9720 = vst [vmem:[#allocation195_spill] sm:$0xff] %v8110_v15 }
 0x3ba   : > { %v8112_v1 = vpop.permute.xlu1 %3466  ;;  %3470 = vperm.xlu0 %5188, %v7197_v47  }
 0x3bb   : > { %9721 = vst [vmem:[#allocation196_spill] sm:$0xff] %v8112_v1  ;;  %v8134_v1 = vpop.f32.mrb[24].mxu1 }
 0x3bc   : > { %3882 = vperm.xlu1 %5190, %v9722_v58   ;;  %v8116_v61 = vpop.permute.xlu0 %3137  ;;  %9724 = vst [vmem:[#allocation197_spill] sm:$0xff] %v8134_v1 }
 0x3be   : > { %v8120_v23 = vpop.permute.xlu1 %3474  ;;  %3478 = vperm.xlu0 %5188, %v7242_v56   ;;  %v8139_v56 = vpop.f32.mrb[25].mxu1 }
 0x3bf   : > { %9725 = vst [vmem:[#allocation198_spill] sm:$0xff] %v8139_v56 }
 0x3c0   : > { %3886 = vperm.xlu1 %5190, %v7333_v0   ;;  %v8126_v4 = vpop.permute.xlu0 %3147 }
 0x3c2   : > { %v8128_v15 = vpop.permute.xlu1 %3482  ;;  %3486 = vperm.xlu0 %5188, %v7263_v7  }
 0x3c4   : > { %3890 = vperm.xlu1 %5190, %v7320_v21   ;;  %v8132_v47 = vpop.permute.xlu0 %3157 }
 0x3c6   : > { %v8136_v48 = vpop.permute.xlu1 %3490  ;;  %3494 = vperm.xlu0 %5188, %v9722_v58  }
 0x3c7   : > { %v8150_v42 = vpop.f32.mrb[26].mxu1 }
 0x3c8   : > { %3894 = vperm.xlu1 %5190, %v7365_v52   ;;  %v8142_v0 = vpop.permute.xlu0 %3167  ;;  %9728 = vst [vmem:[#allocation201_spill] sm:$0xff] %v8150_v42  ;;  %v8155_v58 = vpop.f32.mrb[27].mxu1 }
 0x3c9   : > { %9726 = vst [vmem:[#allocation199_spill] sm:$0xff] %v8142_v0  ;;  %9730 = vst [vmem:[#allocation203_spill] sm:$0xff] %v8155_v58 }
 0x3ca   : > { %v8144_v3 = vpop.permute.xlu1 %3498  ;;  %3502 = vperm.xlu0 %5188, %v7320_v21   ;;  %v419_v21 = vld [vmem:[%s8980_s4] sm:$0x7] }
 0x3cc   : > { %3898 = vperm.xlu1 %5190, %v7367_v50   ;;  %v8148_v7 = vpop.permute.xlu0 %3177 }
 0x3cd   : > { %9727 = vst [vmem:[#allocation200_spill] sm:$0xff] %v8148_v7  ;;  %v8169_v7 = vpop.f32.mrb[28].mxu1 }
 0x3ce   : > { %v8152_v1 = vpop.permute.xlu1 %3506  ;;  %3510 = vperm.xlu0 %5188, %v7367_v50   ;;  %9734 = vst [vmem:[#allocation207_spill] sm:$0xff] %v8169_v7  ;;  %v9735_v50 = vld [vmem:[#allocation3_spill] sm:$0xff] }
 0x3cf   : > { %9729 = vst [vmem:[#allocation202_spill] sm:$0xff] %v8152_v1  ;;  %v8172_v58 = vrot.slane %v419_v21, %v9735_v50 }
 0x3d0   : > { %3902 = vperm.xlu1 %5190, %v7390_v17   ;;  %v8158_v52 = vpop.permute.xlu0 %3187 }
 0x3d1   : > { %9731 = vst [vmem:[#allocation204_spill] sm:$0xff] %v8158_v52  ;;  %v9738_v52 = vld [vmem:[#allocation2_spill] sm:$0xff]  ;;  %v3209_v7 = vmul.f32 %v8172_v58, %v7629_v24  ;;  %v3211_v24 = vmul.f32 %v8172_v58, %v7642_v10  ;;  %v3212_v10 = vmul.f32 %v8172_v58, %v7654_v57 }
 0x3d2   : > { %v8160_v56 = vpop.permute.xlu1 %3514  ;;  %3518 = vperm.xlu0 %5188, %v7386_v12   ;;  %v8180_v1 = vrot.slane %v419_v21, %v9738_v52 }
 0x3d3   : > { %9732 = vst [vmem:[#allocation205_spill] sm:$0xff] %v8160_v56  ;;  %v8177_v56 = vpop.f32.mrb[29].mxu1 }
 0x3d4   : > { %3906 = vperm.xlu1 %5190, %v7386_v12   ;;  %v8167_v42 = vpop.permute.xlu0 %3197  ;;  %9737 = vst [vmem:[#allocation208_spill] sm:$0xff] %v8177_v56  ;;  %v8184_v12 = vrot.slane %v419_v21, %v9739_v35  ;;  %v3535_v52 = vmul.f32 %v8180_v1, %v7868_v2  ;;  %v8195_v21 = vpop.f32.mrb[30].mxu1 }
 0x3d5   : > { %9733 = vst [vmem:[#allocation206_spill] sm:$0xff] %v8167_v42  ;;  %9740 = vst [vmem:[#allocation2_spill] sm:$0xff] %v8195_v21  ;;  %v8199_v60 = vpop.f32.mrb[31].mxu1 }
 0x3d6   : > { %v8174_v17 = vpop.permute.xlu1 %3522  ;;  %3526 = vperm.xlu0 %5188, %v7637_v25   ;;  %9741 = vst [vmem:[#allocation116_spill] sm:$0xff] %v8199_v60 }
 0x3d7   : > { %9736 = vst [vmem:[#allocation3_spill] sm:$0xff] %v8174_v17 }
 0x3d8   : > { %3910 = vperm.xlu1 %5190, %v7400_v53  }
 0x3d9   : > { %v3275_v42 = vpop.permute.xlu0 %3274 }
 0x3da   : > { %v3533_v50 = vmul.f32 %v8180_v1, %v3275_v42  ;;  %5191 = vset.pattern.permute.xlu0 %v9641_v36  ;;  %v8204_v36 = vld [vmem:[%s8982_s6] ss:$0 sm:$0xff] }
 0x3db   : > { %v3663_v17 = vpop.permute.xlu1 %3662  ;;  %3666 = vperm.xlu0 %5191, %v9575_v22   ;;  %v3599_v22 = vadd.f32 %v3535_v52, %v3211_v24  ;;  %v3214_v24 = vmul.f32 %v8172_v58, %v7670_v34 }
 0x3dc   : > { %v3597_v56 = vadd.f32 %v3533_v50, %v3209_v7  ;;  %v3921_v53 = vmul.f32 %v8184_v12, %v3663_v17  ;;  %3914 = vperm.xlu1 %5190, %v7637_v25  }
 0x3dd   : > { %v3287_v35 = vpop.permute.xlu0 %3286 }
 0x3de   : > { %v3985_v42 = vadd.f32 %v3921_v53, %v3597_v56  ;;  %v3536_v25 = vmul.f32 %v8180_v1, %v3287_v35 }
 0x3df   : > { %v3671_v2 = vpop.permute.xlu1 %3670  ;;  %3678 = vperm.xlu0 %5191, %v9534_v49  }
 0x3e0   : > { %v4049_v7 = vadd.f32 %v3985_v42, %v7876_v38  ;;  %v3923_v17 = vmul.f32 %v8184_v12, %v3671_v2  ;;  %v3600_v49 = vadd.f32 %v3536_v25, %v3212_v10 }
 0x3e1   : > { %v3295_v50 = vpop.permute.xlu0 %3294 }
 0x3e2   : > { %v4120_v56 = vadd.f32 %v8204_v36, %v4049_v7  ;;  %v3987_v53 = vadd.f32 %v3923_v17, %v3599_v22  ;;  %v3538_v21 = vmul.f32 %v8180_v1, %v3295_v50  ;;  %v9742_v7 = vld [vmem:[#allocation92_spill] sm:$0xff]  ;;  %v9743_v50 = vld [vmem:[#allocation94_spill] sm:$0xff] }
 0x3e3   : > { %v3675_v60 = vpop.permute.xlu1 %3674  ;;  %3686 = vperm.xlu0 %5191, %v6486_v29   ;;  %vm4248_vm0 = vcmp.gt.f32.partialorder %v9742_v7, 0.0  ;;  %vm4250_vm15 = vcmp.gt.f32.partialorder %v9743_v50, 0.0 }
 0x3e4   : > { %v4184_v52 = vmax.f32 %v4120_v56, 0.0  ;;  %v4051_v35 = vadd.f32 %v3987_v53, %v7889_v31  ;;  %v3924_v38 = vmul.f32 %v8184_v12, %v3675_v60  ;;  %v3602_v22 = vadd.f32 %v3538_v21, %v3214_v24 }
 0x3e5   : > { %v3303_v42 = vpop.permute.xlu0 %3302  ;;  %v3216_v21 = vmul.f32 %v8172_v58, %v7683_v8 }
 0x3e6   : > { %v4122_v57 = vadd.f32 %v8204_v36, %v4051_v35  ;;  %v3988_v2 = vadd.f32 %v3924_v38, %v3600_v49  ;;  %v4440_v29 = vsel %vm4248_vm0, %v4184_v52, -1e+30  ;;  %v3540_v34 = vmul.f32 %v8180_v1, %v3303_v42  ;;  %v9744_v38 = vld [vmem:[#allocation47_spill] sm:$0xff] }
 0x3e7   : > { %v3683_v17 = vpop.permute.xlu1 %3682  ;;  %3694 = vperm.xlu0 %5191, %v6510_v40   ;;  %v4505_v40 = vsel %vm4504_vm14, %v4440_v29, -inf }
 0x3e8   : > { %v4186_v25 = vmax.f32 %v4122_v57, 0.0  ;;  %v4052_v31 = vadd.f32 %v7884_v20, %v3988_v2  ;;  %v3926_v60 = vmul.f32 %v8184_v12, %v3683_v17  ;;  %v9745_v2 = vld [vmem:[#allocation22_spill] sm:$0xff]  ;;  %v9746_v17 = vld [vmem:[#allocation28_spill] sm:$0xff] }
 0x3e9   : > { %v3311_v10 = vpop.permute.xlu0 %3310  ;;  %vm4251_vm1 = vcmp.gt.f32.partialorder %v9745_v2, 0.0 }
 0x3ea   : > { %v4442_v56 = vsel %vm4250_vm15, %v4186_v25, -1e+30  ;;  %v4123_v53 = vadd.f32 %v8204_v36, %v4052_v31  ;;  %v3990_v49 = vadd.f32 %v3926_v60, %v3602_v22  ;;  %v3542_v20 = vmul.f32 %v8180_v1, %v3311_v10 }
 0x3eb   : > { %v4508_v52 = vsel %vm4504_vm14, %v4442_v56, -inf  ;;  %v3691_v35 = vpop.permute.xlu1 %3690  ;;  %3702 = vperm.xlu0 %5191, %v9744_v38   ;;  %v3218_v22 = vmul.f32 %v8172_v58, %v9746_v17  ;;  %v3604_v25 = vadd.f32 %v3540_v34, %v3216_v21  ;;  %v9748_v34 = vld [vmem:[#allocation11_spill] sm:$0xff] }
 0x3ec   : > { %v4507_v24 = vmax.f32 %v4505_v40, %v4508_v52  ;;  %v4187_v57 = vmax.f32 %v4123_v53, 0.0  ;;  %v4054_v42 = vadd.f32 %v7903_v41, %v3990_v49  ;;  %v3928_v8 = vmul.f32 %v8184_v12, %v3691_v35  ;;  %v9747_v53 = vld [vmem:[#allocation48_spill] sm:$0xff] }
 0x3ed   : > { %v3319_v29 = vpop.permute.xlu0 %3318  ;;  %v3606_v56 = vadd.f32 %v3542_v20, %v3218_v22  ;;  %vm4253_vm2 = vcmp.gt.f32.partialorder %v9748_v34, 0.0 }
 0x3ee   : > { %v4443_v31 = vsel %vm4251_vm1, %v4187_v57, -1e+30  ;;  %v4125_v60 = vadd.f32 %v8204_v36, %v4054_v42  ;;  %v3992_v38 = vadd.f32 %v3928_v8, %v3604_v25  ;;  %v3544_v52 = vmul.f32 %v8180_v1, %v3319_v29  ;;  %v9749_v57 = vld [vmem:[#allocation107_spill] sm:$0xff]  ;;  %v9750_v8 = vld [vmem:[#allocation9_spill] sm:$0xff] }
 0x3ef   : > { %v4510_v10 = vsel %vm4504_vm14, %v4443_v31, -inf  ;;  %v3699_v40 = vpop.permute.xlu1 %3698  ;;  %3710 = vperm.xlu0 %5191, %v9747_v53   ;;  %v3220_v42 = vmul.f32 %v8172_v58, %v9749_v57  ;;  %v9751_v57 = vld [vmem:[#allocation14_spill] sm:$0xff] }
 0x3f0   : > { %v4509_v41 = vmax.f32 %v4507_v24, %v4510_v10  ;;  %v4189_v49 = vmax.f32 %v4125_v60, 0.0  ;;  %v3930_v17 = vmul.f32 %v8184_v12, %v3699_v40  ;;  %v4056_v21 = vadd.f32 %v7913_v14, %v3992_v38 }
 0x3f1   : > { %v3327_v35 = vpop.permute.xlu0 %3326  ;;  %v3608_v60 = vadd.f32 %v3544_v52, %v3220_v42  ;;  %vm4255_vm3 = vcmp.gt.f32.partialorder %v9751_v57, 0.0  ;;  %v9753_v42 = vld [vmem:[#allocation49_spill] sm:$0xff] }
 0x3f2   : > { %v4445_v31 = vsel %vm4253_vm2, %v4189_v49, -1e+30  ;;  %v3994_v20 = vadd.f32 %v3930_v17, %v3606_v56  ;;  %v4127_v25 = vadd.f32 %v8204_v36, %v4056_v21  ;;  %v3546_v38 = vmul.f32 %v8180_v1, %v3327_v35  ;;  %v9752_v17 = vld [vmem:[#allocation29_spill] sm:$0xff] }
 0x3f3   : > { %v4514_v22 = vsel %vm4504_vm14, %v4445_v31, -inf  ;;  %v3707_v24 = vpop.permute.xlu1 %3706  ;;  %3718 = vperm.xlu0 %5191, %v9750_v8   ;;  %v3222_v21 = vmul.f32 %v8172_v58, %v9752_v17 }
 0x3f4   : > { %v4511_v29 = vmax.f32 %v4509_v41, %v4514_v22  ;;  %v4058_v10 = vadd.f32 %v7923_v30, %v3994_v20  ;;  %v3932_v40 = vmul.f32 %v8184_v12, %v3707_v24  ;;  %v4191_v14 = vmax.f32 %v4127_v25, 0.0  ;;  %v9754_v30 = vld [vmem:[#allocation101_spill] sm:$0xff]  ;;  %v9755_v25 = vld [vmem:[#allocation30_spill] sm:$0xff] }
 0x3f5   : > { %v3335_v53 = vpop.permute.xlu0 %3334  ;;  %vm4257_vm4 = vcmp.gt.f32.partialorder %v9754_v30, 0.0  ;;  %v3224_v24 = vmul.f32 %v8172_v58, %v9755_v25 }
 0x3f6   : > { %v4129_v56 = vadd.f32 %v8204_v36, %v4058_v10  ;;  %v3996_v49 = vadd.f32 %v3932_v40, %v3608_v60  ;;  %v4447_v31 = vsel %vm4255_vm3, %v4191_v14, -1e+30  ;;  %v3548_v41 = vmul.f32 %v8180_v1, %v3335_v53 }
 0x3f7   : > { %v3715_v52 = vpop.permute.xlu1 %3714  ;;  %3726 = vperm.xlu0 %5191, %v9753_v42   ;;  %v4518_v20 = vsel %vm4504_vm14, %v4447_v31, -inf  ;;  %v3610_v60 = vadd.f32 %v3546_v38, %v3222_v21  ;;  %v9756_v38 = vld [vmem:[#allocation102_spill] sm:$0xff] }
 0x3f8   : > { %v4193_v35 = vmax.f32 %v4129_v56, 0.0  ;;  %v4060_v22 = vadd.f32 %v7933_v54, %v3996_v49  ;;  %v4513_v8 = vmax.f32 %v4511_v29, %v4518_v20  ;;  %v3934_v10 = vmul.f32 %v8184_v12, %v3715_v52  ;;  %v9757_v52 = vld [vmem:[#allocation31_spill] sm:$0xff] }
 0x3f9   : > { %v3343_v40 = vpop.permute.xlu0 %3342  ;;  %v3612_v42 = vadd.f32 %v3548_v41, %v3224_v24  ;;  %vm4259_vm5 = vcmp.gt.f32.partialorder %v9756_v38, 0.0  ;;  %v3226_v20 = vmul.f32 %v8172_v58, %v9757_v52 }
 0x3fa   : > { %v4449_v14 = vsel %vm4257_vm4, %v4193_v35, -1e+30  ;;  %v4131_v53 = vadd.f32 %v8204_v36, %v4060_v22  ;;  %v3998_v27 = vadd.f32 %v3934_v10, %v3610_v60  ;;  %v3550_v49 = vmul.f32 %v8180_v1, %v3343_v40  ;;  %v9758_v40 = vld [vmem:[#allocation67_spill] sm:$0xff] }
 0x3fb   : > { %v4522_v17 = vsel %vm4504_vm14, %v4449_v14, -inf  ;;  %v3723_v0 = vpop.permute.xlu1 %3722  ;;  %3734 = vperm.xlu0 %5191, %v9591_v39   ;;  %vm4261_vm6 = vcmp.gt.f32.partialorder %v9758_v40, 0.0 }
 0x3fc   : > { %v4515_v56 = vmax.f32 %v4513_v8, %v4522_v17  ;;  %v4195_v54 = vmax.f32 %v4131_v53, 0.0  ;;  %v3936_v29 = vmul.f32 %v8184_v12, %v3723_v0  ;;  %v4062_v21 = vadd.f32 %v7943_v59, %v3998_v27  ;;  %v9759_v17 = vld [vmem:[#allocation110_spill] sm:$0xff] }
 0x3fd   : > { %v3351_v31 = vpop.permute.xlu0 %3350  ;;  %v3614_v8 = vadd.f32 %v3550_v49, %v3226_v20 }
 0x3fe   : > { %v4451_v35 = vsel %vm4259_vm5, %v4195_v54, -1e+30  ;;  %v4000_v41 = vadd.f32 %v3936_v29, %v3612_v42  ;;  %v4133_v39 = vadd.f32 %v8204_v36, %v4062_v21  ;;  %v3552_v59 = vmul.f32 %v8180_v1, %v3351_v31  ;;  %v9761_v31 = vld [vmem:[#allocation103_spill] sm:$0xff] }
 0x3ff   : > { %v4526_v22 = vsel %vm4504_vm14, %v4451_v35, -inf  ;;  %v3731_v25 = vpop.permute.xlu1 %3730  ;;  %3742 = vperm.xlu0 %5191, %v9594_v5   ;;  %v3228_v42 = vmul.f32 %v8172_v58, %v9759_v17  ;;  %vm4263_vm7 = vcmp.gt.f32.partialorder %v9761_v31, 0.0 }
 0x400   : > { %v4517_v24 = vmax.f32 %v4515_v56, %v4526_v22  ;;  %v4064_v0 = vadd.f32 %v7953_v43, %v4000_v41  ;;  %v3938_v60 = vmul.f32 %v8184_v12, %v3731_v25  ;;  %v4197_v27 = vmax.f32 %v4133_v39, 0.0  ;;  %v9760_v56 = vld [vmem:[#allocation52_spill] sm:$0xff]  ;;  %v9762_v22 = vld [vmem:[#allocation111_spill] sm:$0xff] }
 0x401   : > { %v3359_v10 = vpop.permute.xlu0 %3358  ;;  %v3616_v20 = vadd.f32 %v3552_v59, %v3228_v42  ;;  %v3230_v39 = vmul.f32 %v8172_v58, %v9762_v22  ;;  %v9763_v42 = vld [vmem:[#allocation113_spill] sm:$0xff] }
 0x402   : > { %v4135_v14 = vadd.f32 %v8204_v36, %v4064_v0  ;;  %v4002_v53 = vadd.f32 %v3938_v60, %v3614_v8  ;;  %v4453_v54 = vsel %vm4261_vm6, %v4197_v27, -1e+30  ;;  %v3554_v29 = vmul.f32 %v8180_v1, %v3359_v10 }
 0x403   : > { %v3739_v5 = vpop.permute.xlu1 %3738  ;;  %3750 = vperm.xlu0 %5191, %v9760_v56   ;;  %v4530_v43 = vsel %vm4504_vm14, %v4453_v54, -inf  ;;  %v3232_v54 = vmul.f32 %v8172_v58, %v9763_v42 }
 0x404   : > { %v4199_v49 = vmax.f32 %v4135_v14, 0.0  ;;  %v4066_v21 = vadd.f32 %v7963_v6, %v4002_v53  ;;  %v4519_v52 = vmax.f32 %v4517_v24, %v4530_v43  ;;  %v3940_v35 = vmul.f32 %v8184_v12, %v3739_v5 }
 0x405   : > { %v3367_v41 = vpop.permute.xlu0 %3366  ;;  %v3618_v10 = vadd.f32 %v3554_v29, %v3230_v39 }
 0x406   : > { %v4455_v25 = vsel %vm4263_vm7, %v4199_v49, -1e+30  ;;  %v4137_v8 = vadd.f32 %v8204_v36, %v4066_v21  ;;  %v4004_v60 = vadd.f32 %v3940_v35, %v3616_v20  ;;  %v3556_v24 = vmul.f32 %v8180_v1, %v3367_v41  ;;  %v9765_v41 = vld [vmem:[#allocation105_spill] sm:$0xff] }
 0x407   : > { %v4534_v0 = vsel %vm4504_vm14, %v4455_v25, -inf  ;;  %v3747_v27 = vpop.permute.xlu1 %3746  ;;  %3758 = vperm.xlu0 %5191, %v6790_v28   ;;  %v9764_v28 = vld [vmem:[#allocation104_spill] sm:$0xff]  ;;  %vm4267_vm9 = vcmp.gt.f32.partialorder %v9765_v41, 0.0  ;;  %v9766_v25 = vld [vmem:[#allocation106_spill] sm:$0xff] }
 0x408   : > { %v8295_v6 = vmax.f32 %v4519_v52, %v4534_v0  ;;  %v3942_v59 = vmul.f32 %v8184_v12, %v3747_v27  ;;  %v4201_v14 = vmax.f32 %v4137_v8, 0.0  ;;  %v4068_v53 = vadd.f32 %v7973_v37, %v4004_v60 }
 0x409   : > { %v3375_v17 = vpop.permute.xlu0 %3374  ;;  %vm4265_vm8 = vcmp.gt.f32.partialorder %v9764_v28, 0.0  ;;  %v3620_v49 = vadd.f32 %v3556_v24, %v3232_v54  ;;  %vm4269_vm10 = vcmp.gt.f32.partialorder %v9766_v25, 0.0 }
 0x40a   : > { %v4006_v5 = vadd.f32 %v3942_v59, %v3618_v10  ;;  %v4139_v56 = vadd.f32 %v8204_v36, %v4068_v53  ;;  %v4457_v52 = vsel %vm4265_vm8, %v4201_v14, -1e+30  ;;  %v3558_v37 = vmul.f32 %v8180_v1, %v3375_v17  ;;  %v9768_v14 = vld [vmem:[#allocation4_spill] sm:$0xff] }
 0x40b   : > { %v3755_v43 = vpop.permute.xlu1 %3754  ;;  %3766 = vperm.xlu0 %5191, %v9600_v33   ;;  %v9767_v33 = vld [vmem:[#allocation114_spill] sm:$0xff]  ;;  %v4543_v27 = vsel %vm4504_vm14, %v4457_v52, -inf  ;;  %v3236_v53 = vmul.f32 %v8172_v58, %v9768_v14 }
 0x40c   : > { %v4070_v29 = vadd.f32 %v7983_v11, %v4006_v5  ;;  %v3944_v21 = vmul.f32 %v8184_v12, %v3755_v43  ;;  %v4203_v20 = vmax.f32 %v4139_v56, 0.0  ;;  %v3234_v8 = vmul.f32 %v8172_v58, %v9767_v33 }
 0x40d   : > { %v3383_v35 = vpop.permute.xlu0 %3382 }
 0x40e   : > { %v4141_v22 = vadd.f32 %v8204_v36, %v4070_v29  ;;  %v4008_v39 = vadd.f32 %v3944_v21, %v3620_v49  ;;  %v4459_v0 = vsel %vm4267_vm9, %v4203_v20, -1e+30  ;;  %v3560_v11 = vmul.f32 %v8180_v1, %v3383_v35 }
 0x40f   : > { %v3763_v60 = vpop.permute.xlu1 %3762  ;;  %3774 = vperm.xlu0 %5191, %v9602_v45   ;;  %v4547_v10 = vsel %vm4504_vm14, %v4459_v0, -inf  ;;  %v3622_v42 = vadd.f32 %v3558_v37, %v3234_v8  ;;  %v9769_v45 = vld [vmem:[#allocation71_spill] sm:$0xff] }
 0x410   : > { %v4205_v24 = vmax.f32 %v4141_v22, 0.0  ;;  %v4072_v59 = vadd.f32 %v7993_v26, %v4008_v39  ;;  %v4544_v17 = vmax.f32 %v4547_v10, %v4543_v27  ;;  %v3946_v54 = vmul.f32 %v8184_v12, %v3763_v60  ;;  %v9770_v39 = vld [vmem:[#allocation16_spill] sm:$0xff]  ;;  %v9771_v0 = vld [vmem:[#allocation115_spill] sm:$0xff] }
 0x411   : > { %v3391_v5 = vpop.permute.xlu0 %3390  ;;  %v4653_v49 = vadd.f32 %v9769_v45, %v9742_v7  ;;  %v3624_v21 = vadd.f32 %v3560_v11, %v3236_v53  ;;  %vm4271_vm11 = vcmp.gt.f32.partialorder %v9770_v39, 0.0  ;;  %v3238_v7 = vmul.f32 %v8172_v58, %v9771_v0 }
 0x412   : > { %v4461_v56 = vsel %vm4269_vm10, %v4205_v24, -1e+30  ;;  %v4143_v43 = vadd.f32 %v8204_v36, %v4072_v59  ;;  %v4010_v52 = vadd.f32 %v3946_v54, %v3622_v42  ;;  %v3562_v37 = vmul.f32 %v8180_v1, %v3391_v5  ;;  %v9772_v59 = vld [vmem:[#allocation56_spill] sm:$0xff] }
 0x413   : > { %v4551_v29 = vsel %vm4504_vm14, %v4461_v56, -inf  ;;  %v3771_v20 = vpop.permute.xlu1 %3770  ;;  %3782 = vperm.xlu0 %5191, %v9605_v44   ;;  %v4654_v27 = vadd.f32 %v4653_v49, %v9743_v50  ;;  %v8339_v56 = vpop.f32.mrb[31].mxu0  ;;  %v9773_v50 = vld [vmem:[#allocation108_spill] sm:$0xff] }
 0x414   : > { %v4546_v26 = vmax.f32 %v4544_v17, %v4551_v29  ;;  %v4207_v35 = vmax.f32 %v4143_v43, 0.0  ;;  %v3948_v22 = vmul.f32 %v8184_v12, %v3771_v20  ;;  %v4074_v33 = vadd.f32 %v8003_v32, %v4010_v52 }
 0x415   : > { %v3399_v8 = vpop.permute.xlu0 %3398  ;;  %v3626_v53 = vadd.f32 %v3562_v37, %v3238_v7  ;;  %vm4273_vm12 = vcmp.gt.f32.partialorder %v9773_v50, 0.0  ;;  %v4655_v29 = vadd.f32 %v4654_v27, %v9745_v2 }
 0x416   : > { %v4463_v60 = vsel %vm4271_vm11, %v4207_v35, -1e+30  ;;  %v4012_v11 = vadd.f32 %v3948_v22, %v3624_v21  ;;  %v4145_v10 = vadd.f32 %v8204_v36, %v4074_v33  ;;  %v3564_v54 = vmul.f32 %v8180_v1, %v3399_v8  ;;  %v9774_v21 = vld [vmem:[#allocation34_spill] sm:$0xff]  ;;  %v9775_v33 = vld [vmem:[#allocation109_spill] sm:$0xff] }
 0x417   : > { %v4555_v44 = vsel %vm4504_vm14, %v4463_v60, -inf  ;;  %v3779_v24 = vpop.permute.xlu1 %3778  ;;  %3790 = vperm.xlu0 %5191, %v9772_v59   ;;  %v3240_v52 = vmul.f32 %v8172_v58, %v9774_v21  ;;  %vm4275_vm13 = vcmp.gt.f32.partialorder %v9775_v33, 0.0  ;;  %v9776_v60 = vld [vmem:[#allocation35_spill] sm:$0xff] }
 0x418   : > { %v4548_v14 = vmax.f32 %v4546_v26, %v4555_v44  ;;  %v4076_v17 = vadd.f32 %v8013_v16, %v4012_v11  ;;  %v3950_v32 = vmul.f32 %v8184_v12, %v3779_v24  ;;  %v4209_v42 = vmax.f32 %v4145_v10, 0.0  ;;  %v9777_v44 = vld [vmem:[#allocation72_spill] sm:$0xff] }
 0x419   : > { %v3407_v5 = vpop.permute.xlu0 %3406  ;;  %v3628_v0 = vadd.f32 %v3564_v54, %v3240_v52  ;;  %v3242_v11 = vmul.f32 %v8172_v58, %v9776_v60  ;;  %v4656_v10 = vadd.f32 %v4655_v29, %v9777_v44  ;;  %v9779_v54 = vld [vmem:[#allocation32_spill] sm:$0xff]  ;;  %v9785_v60 = vld [vmem:[#allocation74_spill] sm:$0xff] }
 0x41a   : > { %v4147_v43 = vadd.f32 %v8204_v36, %v4076_v17  ;;  %v4014_v49 = vadd.f32 %v3950_v32, %v3626_v53  ;;  %v4465_v20 = vsel %vm4273_vm12, %v4209_v42, -1e+30  ;;  %v3566_v37 = vmul.f32 %v8180_v1, %v3407_v5  ;;  %v9778_v53 = vld [vmem:[#allocation57_spill] sm:$0xff] }
 0x41b   : > { %v3787_v16 = vpop.permute.xlu1 %3786  ;;  %3854 = vperm.xlu0 %5191, %v7208_v18   ;;  %v4559_v26 = vsel %vm4504_vm14, %v4465_v20, -inf  ;;  %vm4277_vm0 = vcmp.gt.f32.partialorder %v9779_v54, 0.0  ;;  %v4657_v29 = vadd.f32 %v4656_v10, %v9748_v34  ;;  %v9784_v34 = vld [vmem:[#allocation112_spill] sm:$0xff]  ;;  %v9786_v10 = vld [vmem:[#allocation59_spill] sm:$0xff]  ;;  %vm4249_vm12 = vcmp.gt.f32.partialorder %v9769_v45, 0.0 }
 0x41c   : > { %v4211_v35 = vmax.f32 %v4147_v43, 0.0  ;;  %v4078_v22 = vadd.f32 %v8029_v55, %v4014_v49  ;;  %v4550_v8 = vmax.f32 %v4548_v14, %v4559_v26  ;;  %v3952_v2 = vmul.f32 %v8184_v12, %v3787_v16  ;;  %v9781_v26 = vld [vmem:[#allocation58_spill] sm:$0xff] }
 0x41d   : > { %v8352_v7 = vpop.permute.xlu0 %3414  ;;  %v3630_v17 = vadd.f32 %v3566_v37, %v3242_v11  ;;  %vm4279_vm15 = vcmp.gt.f32.partialorder %v9784_v34, 0.0  ;;  %v4658_v11 = vadd.f32 %v4657_v29, %v9785_v60 }
 0x41e   : > { %v4467_v27 = vsel %vm4275_vm13, %v4211_v35, -1e+30  ;;  %v4149_v18 = vadd.f32 %v8204_v36, %v4078_v22  ;;  %v4016_v59 = vadd.f32 %v3952_v2, %v3628_v0  ;;  %v3583_v35 = vmul.f32 %v8180_v1, %v8120_v23 }
 0x41f   : > { %v4563_v24 = vsel %vm4504_vm14, %v4467_v27, -inf  ;;  %v3795_v55 = vpop.permute.xlu1 %3794  ;;  %3798 = vperm.xlu0 %5191, %v9778_v53   ;;  %v3259_v2 = vmul.f32 %v8172_v58, %v8116_v61 }
 0x420   : > { %v4552_v14 = vmax.f32 %v4550_v8, %v4563_v24  ;;  %v4213_v32 = vmax.f32 %v4149_v18, 0.0  ;;  %v3954_v42 = vmul.f32 %v8184_v12, %v3795_v55  ;;  %v4080_v5 = vadd.f32 %v8047_v46, %v4016_v59  ;;  %v9782_v46 = vld [vmem:[#allocation159_spill] sm:$0xff]  ;;  %v9787_v55 = vld [vmem:[#allocation78_spill] sm:$0xff] }
 0x421   : > { %v8363_v43 = vpop.permute.xlu0 %3422  ;;  %v3647_v23 = vadd.f32 %v3583_v35, %v3259_v2  ;;  %v4674_v53 = vadd.f32 %v9764_v28, %v9787_v55  ;;  %v3261_v28 = vmul.f32 %v8172_v58, %v8126_v4 }
 0x422   : > { %9780 = vst [vmem:[#allocation92_spill] sm:$0xff] %v8363_v43  ;;  %v4469_v49 = vsel %vm4277_vm0, %v4213_v32, -1e+30  ;;  %v4018_v21 = vadd.f32 %v3954_v42, %v3630_v17  ;;  %v4151_v20 = vadd.f32 %v8204_v36, %v4080_v5  ;;  %v4659_v32 = vadd.f32 %v4658_v11, %v9751_v57  ;;  %v9789_v42 = vld [vmem:[#allocation79_spill] sm:$0xff] }
 0x423   : > { %v4567_v52 = vsel %vm4504_vm14, %v4469_v49, -inf  ;;  %v8368_v16 = vpop.permute.xlu1 %3858  ;;  %3802 = vperm.xlu0 %5191, %v9781_v26   ;;  %v4675_v5 = vadd.f32 %v4674_v53, %v9789_v42  ;;  %v3263_v53 = vmul.f32 %v8172_v58, %v8132_v47  ;;  %v9800_v47 = vld [vmem:[#allocation24_spill] sm:$0xff]  ;;  %vm4252_vm0 = vcmp.gt.f32.partialorder %v9777_v44, 0.0 }
 0x424   : > { %v8373_v37 = vmax.f32 %v4552_v14, %v4567_v52  ;;  %v8376_v22 = vadd.f32 %v9782_v46, %v4018_v21  ;;  %v4215_v8 = vmax.f32 %v4151_v20, 0.0  ;;  %v3585_v21 = vmul.f32 %v8180_v1, %v8128_v15  ;;  %v9791_v20 = vld [vmem:[#allocation75_spill] sm:$0xff]  ;;  %v9792_v46 = vld [vmem:[#allocation60_spill] sm:$0xff] }
 0x425   : > { %v8378_v0 = vpop.permute.xlu0 %3430  ;;  %v4660_v26 = vadd.f32 %v4659_v32, %v9791_v20  ;;  %v4676_v35 = vadd.f32 %v4675_v5, %v9765_v41  ;;  %v3587_v41 = vmul.f32 %v8180_v1, %v8136_v48  ;;  %v9796_v32 = vld [vmem:[#allocation76_spill] sm:$0xff] }
 0x426   : > { %9783 = vst [vmem:[#allocation94_spill] sm:$0xff] %v8378_v0  ;;  %v4471_v27 = vsel %vm4279_vm15, %v4215_v8, -1e+30  ;;  %v3649_v8 = vadd.f32 %v3585_v21, %v3261_v28  ;;  %v9797_v21 = vld [vmem:[#allocation93_spill] sm:$0xff] }
 0x427   : > { %v3863_v18 = vpop.permute.xlu1 %3862  ;;  %3806 = vperm.xlu0 %5191, %v9786_v10   ;;  %v8386_v24 = vsel %vm4504_vm14, %v4471_v27, -inf  ;;  %v4661_v11 = vadd.f32 %v4660_v26, %v9754_v30  ;;  %v9794_v27 = vld [vmem:[#allocation80_spill] sm:$0xff]  ;;  %vm4298_vm1 = vcmp.gt.f32.partialorder %v9797_v21, 0.0  ;;  %v3651_v48 = vadd.f32 %v3587_v41, %v3263_v53 }
 0x428   : > { %v3971_v59 = vmul.f32 %v8184_v12, %v3863_v18  ;;  %v4677_v18 = vadd.f32 %v4676_v35, %v9794_v27  ;;  %v9799_v35 = vld [vmem:[#allocation95_spill] sm:$0xff] }
 0x429   : > { %v8393_v17 = vpop.permute.xlu0 %3438  ;;  %v4662_v30 = vadd.f32 %v4661_v11, %v9796_v32  ;;  %vm4300_vm2 = vcmp.gt.f32.partialorder %v9799_v35, 0.0 }
 0x42a   : > { %9788 = vst [vmem:[#allocation47_spill] sm:$0xff] %v8393_v17  ;;  %v4035_v61 = vadd.f32 %v3971_v59, %v3647_v23  ;;  %v4678_v5 = vadd.f32 %v4677_v18, %v9766_v25 }
 0x42b   : > { %v3867_v49 = vpop.permute.xlu1 %3866  ;;  %3810 = vperm.xlu0 %5191, %v6989_v51  }
 0x42c   : > { %v4099_v29 = vadd.f32 %v4035_v61, %v8091_v62 }
 0x42d   : > { %v8401_v52 = vpop.permute.xlu0 %3446 }
 0x42e   : > { %9790 = vst [vmem:[#allocation22_spill] sm:$0xff] %v8401_v52  ;;  %v4170_v51 = vadd.f32 %v8204_v36, %v4099_v29  ;;  %v9798_v29 = vld [vmem:[#allocation61_spill] sm:$0xff] }
 0x42f   : > { %v3871_v57 = vpop.permute.xlu1 %3870  ;;  %3814 = vperm.xlu0 %5191, %v9792_v46   ;;  %v3258_v46 = vmul.f32 %v8172_v58, %v9800_v47 }
 0x430   : > { %v3973_v2 = vmul.f32 %v8184_v12, %v3871_v57  ;;  %v4234_v10 = vmax.f32 %v4170_v51, 0.0 }
 0x431   : > { %v8410_v15 = vpop.permute.xlu0 %3454 }
 0x432   : > { %9793 = vst [vmem:[#allocation28_spill] sm:$0xff] %v8410_v15  ;;  %v4037_v62 = vadd.f32 %v3973_v2, %v3649_v8  ;;  %v4490_v28 = vsel %vm4298_vm1, %v4234_v10, -1e+30  ;;  %v4663_v2 = vadd.f32 %v4662_v30, %v9756_v38  ;;  %v9802_v30 = vld [vmem:[#allocation41_spill] sm:$0xff] }
 0x433   : > { %v3875_v4 = vpop.permute.xlu1 %3874  ;;  %3818 = vperm.xlu0 %5191, %v7024_v63   ;;  %v4619_v18 = vsel %vm4504_vm14, %v4490_v28, -inf }
 0x434   : > { %v4101_v23 = vadd.f32 %v4037_v62, %v8107_v13  ;;  %v9801_v62 = vld [vmem:[#allocation81_spill] sm:$0xff] }
 0x435   : > { %v8418_v59 = vpop.permute.xlu0 %3462  ;;  %v4679_v11 = vadd.f32 %v4678_v5, %v9801_v62  ;;  %v3260_v5 = vmul.f32 %v8172_v58, %v9802_v30 }
 0x436   : > { %9795 = vst [vmem:[#allocation48_spill] sm:$0xff] %v8418_v59  ;;  %v4172_v61 = vadd.f32 %v8204_v36, %v4101_v23  ;;  %v3970_v23 = vmul.f32 %v8184_v12, %v8368_v16 }
 0x437   : > { %v3879_v63 = vpop.permute.xlu1 %3878  ;;  %3822 = vperm.xlu0 %5191, %v9798_v29   ;;  %v3589_v29 = vmul.f32 %v8180_v1, %v8144_v3  ;;  %v4680_v16 = vadd.f32 %v4679_v11, %v9770_v39  ;;  %v9805_v3 = vld [vmem:[#allocation62_spill] sm:$0xff]  ;;  %v9808_v39 = vld [vmem:[#allocation43_spill] sm:$0xff] }
 0x438   : > { %v4236_v26 = vmax.f32 %v4172_v61, 0.0  ;;  %v3975_v13 = vmul.f32 %v8184_v12, %v3879_v63  ;;  %v3262_v11 = vmul.f32 %v8172_v58, %v9808_v39 }
 0x439   : > { %v3471_v57 = vpop.permute.xlu0 %3470 }
 0x43a   : > { %v4492_v8 = vsel %vm4300_vm2, %v4236_v26, -1e+30  ;;  %v3582_v51 = vmul.f32 %v8180_v1, %v3471_v57  ;;  %v4039_v25 = vadd.f32 %v3975_v13, %v3651_v48  ;;  %v9804_v57 = vld [vmem:[#allocation199_spill] sm:$0xff]  ;;  %vm4254_vm2 = vcmp.gt.f32.partialorder %v9785_v60, 0.0 }
 0x43b   : > { %v4623_v41 = vsel %vm4504_vm14, %v4492_v8, -inf  ;;  %v3883_v10 = vpop.permute.xlu1 %3882  ;;  %3826 = vperm.xlu0 %5191, %v7059_v19   ;;  %v9803_v19 = vld [vmem:[#allocation77_spill] sm:$0xff]  ;;  %v3265_v47 = vmul.f32 %v8172_v58, %v9804_v57  ;;  %v9806_v8 = vld [vmem:[#allocation186_spill] sm:$0xff] }
 0x43c   : > { %v4620_v53 = vmax.f32 %v4623_v41, %v4619_v18  ;;  %v3646_v61 = vadd.f32 %v3582_v51, %v3258_v46  ;;  %v4103_v63 = vadd.f32 %v4039_v25, %v8123_v9  ;;  %v4664_v13 = vadd.f32 %v4663_v2, %v9803_v19 }
 0x43d   : > { %v3479_v38 = vpop.permute.xlu0 %3478  ;;  %v3972_v9 = vmul.f32 %v8184_v12, %v3867_v49  ;;  %v3653_v2 = vadd.f32 %v3589_v29, %v3265_v47  ;;  %v3974_v29 = vmul.f32 %v8184_v12, %v3875_v4 }
 0x43e   : > { %v4034_v48 = vadd.f32 %v3970_v23, %v3646_v61  ;;  %v4174_v28 = vadd.f32 %v8204_v36, %v4103_v63  ;;  %v3584_v26 = vmul.f32 %v8180_v1, %v3479_v38  ;;  %v9807_v23 = vld [vmem:[#allocation96_spill] sm:$0xff]  ;;  %v8461_v30 = vadd.f32 %v4664_v13, %v9758_v40  ;;  %v9814_v40 = vld [vmem:[#allocation202_spill] sm:$0xff] }
 0x43f   : > { %v3887_v46 = vpop.permute.xlu1 %3886  ;;  %3830 = vperm.xlu0 %5191, %v9805_v3   ;;  %vm4302_vm3 = vcmp.gt.f32.partialorder %v9807_v23, 0.0  ;;  %v9811_v3 = vld [vmem:[#allocation189_spill] sm:$0xff]  ;;  %v3591_v13 = vmul.f32 %v8180_v1, %v9814_v40 }
 0x440   : > { %v8453_v51 = vadd.f32 %v9806_v8, %v4034_v48  ;;  %v4238_v25 = vmax.f32 %v4174_v28, 0.0  ;;  %v3648_v18 = vadd.f32 %v3584_v26, %v3260_v5  ;;  %v3977_v41 = vmul.f32 %v8184_v12, %v3887_v46  ;;  %v9809_v48 = vld [vmem:[#allocation19_spill] sm:$0xff] }
 0x441   : > { %v3487_v61 = vpop.permute.xlu0 %3486  ;;  %v8464_v57 = vadd.f32 %v4680_v16, %v9809_v48  ;;  %v9810_v46 = vld [vmem:[#allocation63_spill] sm:$0xff]  ;;  %v9815_v16 = vld [vmem:[#allocation198_spill] sm:$0xff] }
 0x442   : > { %v4494_v63 = vsel %vm4302_vm3, %v4238_v25, -1e+30  ;;  %v4036_v38 = vadd.f32 %v3972_v9, %v3648_v18  ;;  %v3586_v49 = vmul.f32 %v8180_v1, %v3487_v61  ;;  %v4041_v28 = vadd.f32 %v3977_v41, %v3653_v2  ;;  %v9812_v25 = vld [vmem:[#allocation42_spill] sm:$0xff]  ;;  %v9813_v18 = vld [vmem:[#allocation45_spill] sm:$0xff] }
 0x443   : > { %v4627_v5 = vsel %vm4504_vm14, %v4494_v63, -inf  ;;  %v3891_v26 = vpop.permute.xlu1 %3890  ;;  %3834 = vperm.xlu0 %5191, %v9810_v46   ;;  %vm4299_vm4 = vcmp.gt.f32.partialorder %v9812_v25, 0.0  ;;  %vm4301_vm5 = vcmp.gt.f32.partialorder %v9813_v18, 0.0  ;;  %v9816_v41 = vld [vmem:[#allocation46_spill] sm:$0xff]  ;;  %vm4256_vm3 = vcmp.gt.f32.partialorder %v9791_v20, 0.0 }
 0x444   : > { %v4622_v47 = vmax.f32 %v4620_v53, %v4627_v5  ;;  %v4100_v8 = vadd.f32 %v9811_v3, %v4036_v38  ;;  %v3650_v9 = vadd.f32 %v3586_v49, %v3262_v11  ;;  %v4105_v61 = vadd.f32 %v4041_v28, %v9815_v16  ;;  %v9817_v38 = vld [vmem:[#allocation97_spill] sm:$0xff]  ;;  %v9818_v11 = vld [vmem:[#allocation200_spill] sm:$0xff] }
 0x445   : > { %v3495_v39 = vpop.permute.xlu0 %3494  ;;  %v3264_v2 = vmul.f32 %v8172_v58, %v9816_v41  ;;  %vm4304_vm6 = vcmp.gt.f32.partialorder %v9817_v38, 0.0  ;;  %v3267_v49 = vmul.f32 %v8172_v58, %v9818_v11  ;;  %v3976_v5 = vmul.f32 %v8184_v12, %v3883_v10  ;;  %v9819_v28 = vld [vmem:[#allocation65_spill] sm:$0xff]  ;;  %v9835_v38 = vld [vmem:[#allocation3_spill] sm:$0xff] }
 0x446   : > { %v4171_v63 = vadd.f32 %v8204_v36, %v4100_v8  ;;  %v4038_v4 = vadd.f32 %v3974_v29, %v3650_v9  ;;  %v3588_v53 = vmul.f32 %v8180_v1, %v3495_v39  ;;  %v4176_v46 = vadd.f32 %v8204_v36, %v4105_v61  ;;  %v9820_v16 = vld [vmem:[#allocation193_spill] sm:$0xff]  ;;  %v9821_v8 = vld [vmem:[#allocation44_spill] sm:$0xff] }
 0x447   : > { %v3895_v3 = vpop.permute.xlu1 %3894  ;;  %3838 = vperm.xlu0 %5191, %v9819_v28   ;;  %vm4303_vm7 = vcmp.gt.f32.partialorder %v9821_v8, 0.0  ;;  %v9822_v9 = vld [vmem:[#allocation25_spill] sm:$0xff]  ;;  %v3655_v59 = vadd.f32 %v3591_v13, %v3267_v49  ;;  %v9826_v49 = vld [vmem:[#allocation64_spill] sm:$0xff] }
 0x448   : > { %v4235_v40 = vmax.f32 %v4171_v63, 0.0  ;;  %v4102_v41 = vadd.f32 %v9820_v16, %v4038_v4  ;;  %v3652_v14 = vadd.f32 %v3588_v53, %v3264_v2  ;;  %v3979_v29 = vmul.f32 %v8184_v12, %v3895_v3  ;;  %v9823_v11 = vld [vmem:[#allocation73_spill] sm:$0xff]  ;;  %v9824_v3 = vld [vmem:[#allocation50_spill] sm:$0xff]  ;;  %v9825_v16 = vld [vmem:[#allocation51_spill] sm:$0xff] }
 0x449   : > { %v8490_v39 = vmul.f32 %v8172_v58, %v9822_v9  ;;  %v3266_v10 = vmul.f32 %v8172_v58, %v9823_v11  ;;  %v4240_v61 = vmax.f32 %v4176_v46, 0.0  ;;  %v3503_v15 = vpop.permute.xlu0 %3502  ;;  %v3268_v28 = vmul.f32 %v8172_v58, %v9824_v3  ;;  %v9827_v46 = vld [vmem:[#allocation204_spill] sm:$0xff] }
 0x44a   : > { %v4491_v63 = vsel %vm4299_vm4, %v4235_v40, -1e+30  ;;  %v4173_v4 = vadd.f32 %v8204_v36, %v4102_v41  ;;  %v4040_v2 = vadd.f32 %v3976_v5, %v3652_v14  ;;  %v3590_v53 = vmul.f32 %v8180_v1, %v3503_v15  ;;  %v9828_v14 = vld [vmem:[#allocation70_spill] sm:$0xff]  ;;  %v9829_v15 = vld [vmem:[#allocation205_spill] sm:$0xff] }
 0x44b   : > { %v3270_v9 = vmul.f32 %v8172_v58, %v9825_v16  ;;  %v4621_v52 = vsel %vm4504_vm14, %v4491_v63, -inf  ;;  %v4043_v11 = vadd.f32 %v3979_v29, %v3655_v59  ;;  %v3899_v13 = vpop.permute.xlu1 %3898  ;;  %3842 = vperm.xlu0 %5191, %v9826_v49   ;;  %v3269_v40 = vmul.f32 %v8172_v58, %v9827_v46  ;;  %v9830_v16 = vld [vmem:[#allocation203_spill] sm:$0xff]  ;;  %v9831_v59 = vld [vmem:[#allocation53_spill] sm:$0xff]  ;;  %v9832_v29 = vld [vmem:[#allocation98_spill] sm:$0xff] }
 0x44c   : > { %v4624_v17 = vmax.f32 %v4622_v47, %v4621_v52  ;;  %v4237_v41 = vmax.f32 %v4173_v4, 0.0  ;;  %v4104_v5 = vadd.f32 %v9828_v14, %v4040_v2  ;;  %v3593_v0 = vmul.f32 %v8180_v1, %v9829_v15  ;;  %v9833_v46 = vld [vmem:[#allocation68_spill] sm:$0xff] }
 0x44d   : > { %v3978_v3 = vmul.f32 %v8184_v12, %v3891_v26  ;;  %v3654_v23 = vadd.f32 %v3590_v53, %v3266_v10  ;;  %v4107_v43 = vadd.f32 %v4043_v11, %v9830_v16  ;;  %v3511_v63 = vpop.permute.xlu0 %3510  ;;  %vm4305_vm8 = vcmp.gt.f32.partialorder %v9831_v59, 0.0 }
 0x44e   : > { %vm4306_vm9 = vcmp.gt.f32.partialorder %v9832_v29, 0.0  ;;  %v4493_v49 = vsel %vm4301_vm5, %v4237_v41, -1e+30  ;;  %v4496_v52 = vsel %vm4304_vm6, %v4240_v61, -1e+30  ;;  %v4175_v47 = vadd.f32 %v8204_v36, %v4104_v5  ;;  %v9834_v61 = vld [vmem:[#allocation55_spill] sm:$0xff] }
 0x44f   : > { %v3592_v4 = vmul.f32 %v8180_v1, %v3511_v63  ;;  %v4625_v26 = vsel %vm4504_vm14, %v4493_v49, -inf  ;;  %v4042_v10 = vadd.f32 %v3978_v3, %v3654_v23  ;;  %v4178_v2 = vadd.f32 %v8204_v36, %v4107_v43  ;;  %v3903_v11 = vpop.permute.xlu1 %3902  ;;  %3846 = vperm.xlu0 %5191, %v9833_v46   ;;  %v9836_v3 = vld [vmem:[#allocation197_spill] sm:$0xff] }
 0x450   : > { %v3980_v53 = vmul.f32 %v8184_v12, %v3899_v13  ;;  %v4626_v14 = vmax.f32 %v4624_v17, %v4625_v26  ;;  %v4239_v15 = vmax.f32 %v4175_v47, 0.0  ;;  %v3981_v16 = vmul.f32 %v8184_v12, %v3903_v11  ;;  %v9837_v13 = vld [vmem:[#allocation99_spill] sm:$0xff] }
 0x451   : > { %v3656_v41 = vadd.f32 %v3592_v4, %v3268_v28  ;;  %vm4307_vm10 = vcmp.gt.f32.partialorder %v9834_v61, 0.0  ;;  %v3657_v5 = vadd.f32 %v3593_v0, %v3269_v40  ;;  %v3595_v63 = vmul.f32 %v8180_v1, %v9835_v38  ;;  %v3519_v49 = vpop.permute.xlu0 %3518 }
 0x452   : > { %v4631_v23 = vsel %vm4504_vm14, %v4496_v52, -inf  ;;  %v4106_v43 = vadd.f32 %v9836_v3, %v4042_v10  ;;  %vm4308_vm11 = vcmp.gt.f32.partialorder %v9837_v13, 0.0  ;;  %v4495_v17 = vsel %vm4303_vm7, %v4239_v15, -1e+30  ;;  %v9838_v52 = vld [vmem:[#allocation66_spill] sm:$0xff] }
 0x453   : > { %v4628_v18 = vmax.f32 %v4626_v14, %v4631_v23  ;;  %v4044_v28 = vadd.f32 %v3980_v53, %v3656_v41  ;;  %v3594_v47 = vmul.f32 %v8180_v1, %v3519_v49  ;;  %v4629_v4 = vsel %vm4504_vm14, %v4495_v17, -inf  ;;  %v3907_v26 = vpop.permute.xlu1 %3906  ;;  %3850 = vperm.xlu0 %5191, %v9838_v52   ;;  %v9839_v10 = vld [vmem:[#allocation206_spill] sm:$0xff]  ;;  %v9840_v14 = vld [vmem:[#allocation201_spill] sm:$0xff]  ;;  %v9842_v49 = vld [vmem:[#allocation208_spill] sm:$0xff] }
 0x454   : > { %v4177_v0 = vadd.f32 %v8204_v36, %v4106_v43  ;;  %v4242_v40 = vmax.f32 %v4178_v2, 0.0  ;;  %v4045_v38 = vadd.f32 %v3981_v16, %v3657_v5  ;;  %v3271_v11 = vmul.f32 %v8172_v58, %v9839_v10  ;;  %v9841_v15 = vld [vmem:[#allocation54_spill] sm:$0xff]  ;;  %v9843_v16 = vld [vmem:[#allocation69_spill] sm:$0xff] }
 0x455   : > { %v4630_v46 = vmax.f32 %v4628_v18, %v4629_v4  ;;  %v4108_v23 = vadd.f32 %v9840_v14, %v4044_v28  ;;  %v3658_v3 = vadd.f32 %v3594_v47, %v3270_v9  ;;  %v3272_v53 = vmul.f32 %v8172_v58, %v9841_v15  ;;  %v3527_v2 = vpop.permute.xlu0 %3526  ;;  %v9844_v52 = vld [vmem:[#allocation122_spill] sm:$0xff] }
 0x456   : > { %v4241_v41 = vmax.f32 %v4177_v0, 0.0  ;;  %v4109_v17 = vadd.f32 %v4045_v38, %v9842_v49  ;;  %v3982_v43 = vmul.f32 %v8184_v12, %v3907_v26  ;;  %v3534_v5 = vmul.f32 %v8180_v1, %v9843_v16 }
 0x457   : > { %v3210_v8 = vmul.f32 %v8172_v58, %v9844_v52  ;;  %v3659_v10 = vadd.f32 %v3595_v63, %v3271_v11  ;;  %v4179_v18 = vadd.f32 %v8204_v36, %v4108_v23  ;;  %v4498_v28 = vsel %vm4306_vm9, %v4242_v40, -1e+30  ;;  %v3911_v0 = vpop.permute.xlu1 %3910  ;;  %v9845_v63 = vld [vmem:[#allocation119_spill] sm:$0xff] }
 0x458   : > { %v4497_v9 = vsel %vm4305_vm8, %v4241_v41, -1e+30  ;;  %v4180_v47 = vadd.f32 %v8204_v36, %v4109_v17  ;;  %v4046_v4 = vadd.f32 %v3982_v43, %v3658_v3  ;;  %v3596_v14 = vmul.f32 %v8180_v1, %v3527_v2  ;;  %v9846_v41 = vld [vmem:[#allocation207_spill] sm:$0xff] }
 0x459   : > { %v4633_v38 = vsel %vm4504_vm14, %v4497_v9, -inf  ;;  %v4243_v26 = vmax.f32 %v4179_v18, 0.0  ;;  %v3983_v15 = vmul.f32 %v8184_v12, %v3911_v0  ;;  %v3537_v11 = vmul.f32 %v8180_v1, %v9845_v63 }
 0x45a   : > { %v4632_v23 = vmax.f32 %v4630_v46, %v4633_v38  ;;  %v4244_v49 = vmax.f32 %v4180_v47, 0.0  ;;  %v4110_v16 = vadd.f32 %v9846_v41, %v4046_v4  ;;  %v3598_v52 = vadd.f32 %v3534_v5, %v3210_v8  ;;  %v3667_v17 = vpop.permute.xlu0 %3666  ;;  %v9847_v8 = vld [vmem:[#allocation116_spill] sm:$0xff]  ;;  %v9848_v38 = vld [vmem:[#allocation117_spill] sm:$0xff] }
 0x45b   : > { %v4635_v40 = vsel %vm4504_vm14, %v4498_v28, -inf  ;;  %v4499_v3 = vsel %vm4307_vm10, %v4243_v26, -1e+30  ;;  %v4047_v43 = vadd.f32 %v3983_v15, %v3659_v10  ;;  %v3915_v46 = vpop.permute.xlu1 %3914  ;;  %v3660_v47 = vadd.f32 %v3596_v14, %v3272_v53  ;;  %v9849_v41 = vld [vmem:[#allocation121_spill] sm:$0xff] }
 0x45c   : > { %v4634_v18 = vmax.f32 %v4632_v23, %v4635_v40  ;;  %v4637_v2 = vsel %vm4504_vm14, %v4499_v3, -inf  ;;  %v4500_v9 = vsel %vm4308_vm11, %v4244_v49, -1e+30  ;;  %v4181_v0 = vadd.f32 %v8204_v36, %v4110_v16 }
 0x45d   : > { %v3922_v4 = vmul.f32 %v8184_v12, %v3667_v17  ;;  %v4111_v5 = vadd.f32 %v4047_v43, %v9847_v8  ;;  %v3984_v28 = vmul.f32 %v8184_v12, %v3915_v46  ;;  %vm4309_vm13 = vcmp.gt.f32.partialorder %v9848_v38, 0.0  ;;  %v9854_v8 = vld [vmem:[#allocation123_spill] sm:$0xff] }
 0x45e   : > { %v3601_v10 = vadd.f32 %v3537_v11, %v8490_v39  ;;  %v4636_v26 = vmax.f32 %v4634_v18, %v4637_v2  ;;  %v4245_v15 = vmax.f32 %v4181_v0, 0.0  ;;  %v4639_v63 = vsel %vm4504_vm14, %v4500_v9, -inf  ;;  %v3679_v14 = vpop.permute.xlu0 %3678  ;;  %v9850_v11 = vld [vmem:[#allocation118_spill] sm:$0xff]  ;;  %v9852_v9 = vld [vmem:[#allocation100_spill] sm:$0xff] }
 0x45f   : > { %v3986_v23 = vadd.f32 %v3922_v4, %v3598_v52  ;;  %v4182_v49 = vadd.f32 %v8204_v36, %v4111_v5  ;;  %v4048_v53 = vadd.f32 %v3984_v28, %v3660_v47  ;;  %v3539_v16 = vmul.f32 %v8180_v1, %v9849_v41  ;;  %v9851_v2 = vld [vmem:[#allocation2_spill] sm:$0xff] }
 0x460   : > { %v4638_v40 = vmax.f32 %v4636_v26, %v4639_v63  ;;  %v4501_v3 = vsel %vm4309_vm13, %v4245_v15, -1e+30  ;;  %v3925_v17 = vmul.f32 %v8184_v12, %v3679_v14  ;;  %vm4310_vm15 = vcmp.gt.f32.partialorder %v9852_v9, 0.0  ;;  %v9853_v0 = vld [vmem:[#allocation26_spill] sm:$0xff] }
 0x461   : > { %v4641_v39 = vsel %vm4504_vm14, %v4501_v3, -inf  ;;  %v4050_v43 = vadd.f32 %v9850_v11, %v3986_v23  ;;  %v4246_v18 = vmax.f32 %v4182_v49, 0.0  ;;  %v4112_v52 = vadd.f32 %v9851_v2, %v4048_v53  ;;  %v9855_v53 = vld [vmem:[#allocation127_spill] sm:$0xff] }
 0x462   : > { %v3215_v46 = vmul.f32 %v8172_v58, %v9853_v0  ;;  %v4640_v47 = vmax.f32 %v4638_v40, %v4641_v39  ;;  %v3989_v4 = vadd.f32 %v3925_v17, %v3601_v10  ;;  %v3541_v5 = vmul.f32 %v8180_v1, %v9854_v8  ;;  %v3687_v63 = vpop.permute.xlu0 %3686  ;;  %v9856_v3 = vld [vmem:[#allocation27_spill] sm:$0xff] }
 0x463   : > { %v4121_v28 = vadd.f32 %v8204_v36, %v4050_v43  ;;  %v4502_v26 = vsel %vm4310_vm15, %v4246_v18, -1e+30  ;;  %v4183_v15 = vadd.f32 %v8204_v36, %v4112_v52  ;;  %v3927_v41 = vmul.f32 %v8184_v12, %v3687_v63  ;;  %v9857_v43 = vld [vmem:[#allocation120_spill] sm:$0xff]  ;;  %v8601_v36 = vld [vmem:[%s8982_s6] ss:$0 sm:$0xff]  ;;  %v9858_v52 = vld [vmem:[#allocation125_spill] sm:$0xff] }
 0x464   : > { %v3603_v23 = vadd.f32 %v3539_v16, %v3215_v46  ;;  %v4643_v49 = vsel %vm4504_vm14, %v4502_v26, -inf  ;;  %v4053_v14 = vadd.f32 %v3989_v4, %v9855_v53  ;;  %v3217_v40 = vmul.f32 %v8172_v58, %v9856_v3 }
 0x465   : > { %v4185_v10 = vmax.f32 %v4121_v28, 0.0  ;;  %v8593_v17 = vmax.f32 %v4640_v47, %v4643_v49  ;;  %v4247_v39 = vmax.f32 %v4183_v15, 0.0  ;;  %v4682_v11 = vadd.f32 %v8464_v57, %v9773_v50  ;;  %v9859_v28 = vld [vmem:[#allocation130_spill] sm:$0xff]  ;;  %v9860_v15 = vld [vmem:[#allocation124_spill] sm:$0xff] }
 0x466   : > { %vm4311_vm1 = vcmp.gt.f32.partialorder %v9857_v43, 0.0  ;;  %v4124_v16 = vadd.f32 %v8601_v36, %v4053_v14  ;;  %v3991_v18 = vadd.f32 %v3927_v41, %v3603_v23  ;;  %v3605_v2 = vadd.f32 %v3541_v5, %v3217_v40  ;;  %v3695_v4 = vpop.permute.xlu0 %3694  ;;  %v9861_v49 = vld [vmem:[#allocation82_spill] sm:$0xff] }
 0x467   : > { %v3543_v0 = vmul.f32 %v8180_v1, %v9858_v52  ;;  %v4441_v46 = vsel %vm4249_vm12, %v4185_v10, -1e+30  ;;  %v4503_v47 = vsel %vm4311_vm1, %v4247_v39, -1e+30  ;;  %v3219_v63 = vmul.f32 %v8172_v58, %v9860_v15 }
 0x468   : > { %v4506_v50 = vsel %vm4504_vm14, %v4441_v46, -inf  ;;  %v8610_v57 = vsel %vm4504_vm14, %v4503_v47, -inf  ;;  %v4188_v8 = vmax.f32 %v4124_v16, 0.0  ;;  %v4055_v26 = vadd.f32 %v3991_v18, %v9859_v28  ;;  %v9862_v16 = vld [vmem:[#allocation128_spill] sm:$0xff]  ;;  %v9864_v47 = vld [vmem:[#allocation133_spill] sm:$0xff] }
 0x469   : > { %v4523_v5 = vmax.f32 %v8295_v6, %v4506_v50  ;;  %v4644_v23 = vmax.f32 %v8593_v17, %v8610_v57  ;;  %v3929_v45 = vmul.f32 %v8184_v12, %v3695_v4  ;;  %v4683_v53 = vadd.f32 %v4682_v11, %v9861_v49  ;;  %v9863_v11 = vld [vmem:[#allocation15_spill] sm:$0xff]  ;;  %v9865_v50 = vld [vmem:[#allocation126_spill] sm:$0xff]  ;;  %v9923_v17 = vld [vmem:[#allocation20_spill] sm:$0xff] }
 0x46a   : > { %v4444_v14 = vsel %vm4252_vm0, %v4188_v8, -1e+30  ;;  %v4126_v41 = vadd.f32 %v8601_v36, %v4055_v26  ;;  %v3607_v3 = vadd.f32 %v3543_v0, %v3219_v63  ;;  %v3703_v39 = vpop.permute.xlu0 %3702  ;;  %v3545_v6 = vmul.f32 %v8180_v1, %v9862_v16  ;;  %v9866_v26 = vld [vmem:[#allocation131_spill] sm:$0xff] }
 0x46b   : > { %v4512_v40 = vsel %vm4504_vm14, %v4444_v14, -inf  ;;  %v3993_v10 = vadd.f32 %v3929_v45, %v3605_v2  ;;  %v3931_v46 = vmul.f32 %v8184_v12, %v3703_v39  ;;  %v4666_v44 = vadd.f32 %v8461_v30, %v9863_v11  ;;  %v9867_v30 = vld [vmem:[#allocation136_spill] sm:$0xff]  ;;  %v9869_v39 = vld [vmem:[#allocation83_spill] sm:$0xff] }
 0x46c   : > { %v4525_v18 = vmax.f32 %v4523_v5, %v4512_v40  ;;  %v4190_v52 = vmax.f32 %v4126_v41, 0.0  ;;  %v4684_v0 = vadd.f32 %v4683_v53, %v9775_v33  ;;  %v3221_v2 = vmul.f32 %v8172_v58, %v9865_v50  ;;  %v9868_v53 = vld [vmem:[#allocation129_spill] sm:$0xff] }
 0x46d   : > { %v4057_v4 = vadd.f32 %v3993_v10, %v9864_v47  ;;  %v3995_v28 = vadd.f32 %v3931_v46, %v3607_v3  ;;  %v3547_v15 = vmul.f32 %v8180_v1, %v9866_v26  ;;  %v4667_v33 = vadd.f32 %v4666_v44, %v9761_v31  ;;  %v9871_v44 = vld [vmem:[#allocation139_spill] sm:$0xff] }
 0x46e   : > { %v4446_v8 = vsel %vm4254_vm2, %v4190_v52, -1e+30  ;;  %v3711_v60 = vpop.permute.xlu0 %3710  ;;  %v3609_v45 = vadd.f32 %v3545_v6, %v3221_v2  ;;  %v3223_v10 = vmul.f32 %v8172_v58, %v9868_v53  ;;  %v4685_v16 = vadd.f32 %v4684_v0, %v9869_v39  ;;  %v9870_v6 = vld [vmem:[#allocation134_spill] sm:$0xff]  ;;  %v9872_v0 = vld [vmem:[#allocation132_spill] sm:$0xff] }
 0x46f   : > { %v4516_v63 = vsel %vm4504_vm14, %v4446_v8, -inf  ;;  %v4128_v5 = vadd.f32 %v8601_v36, %v4057_v4  ;;  %v4059_v41 = vadd.f32 %v3995_v28, %v9867_v30  ;;  %v3933_v40 = vmul.f32 %v8184_v12, %v3711_v60 }
 0x470   : > { %v4527_v14 = vmax.f32 %v4525_v18, %v4516_v63  ;;  %v3611_v47 = vadd.f32 %v3547_v15, %v3223_v10  ;;  %v3549_v18 = vmul.f32 %v8180_v1, %v9870_v6  ;;  %vm4258_vm4 = vcmp.gt.f32.partialorder %v9796_v32, 0.0 }
 0x471   : > { %v4192_v3 = vmax.f32 %v4128_v5, 0.0  ;;  %v4130_v52 = vadd.f32 %v8601_v36, %v4059_v41  ;;  %v3997_v46 = vadd.f32 %v3933_v40, %v3609_v45  ;;  %v4668_v20 = vrot.slane %v4667_v33, 4  ;;  %v9873_v41 = vld [vmem:[#allocation137_spill] sm:$0xff] }
 0x472   : > { %v3719_v50 = vpop.permute.xlu0 %3718  ;;  %v3225_v26 = vmul.f32 %v8172_v58, %v9872_v0  ;;  %v4686_v15 = vadd.f32 %v4685_v16, %v9779_v54  ;;  %v3551_v40 = vmul.f32 %v8180_v1, %v9873_v41  ;;  %vm4260_vm5 = vcmp.gt.f32.partialorder %v9803_v19, 0.0  ;;  %v9878_v19 = vld [vmem:[#allocation145_spill] sm:$0xff] }
 0x473   : > { %v4448_v4 = vsel %vm4256_vm3, %v4192_v3, -1e+30  ;;  %v4194_v31 = vmax.f32 %v4130_v52, 0.0  ;;  %v4061_v8 = vadd.f32 %v3997_v46, %v9871_v44  ;;  %v3935_v28 = vmul.f32 %v8184_v12, %v3719_v50  ;;  %v9874_v52 = vld [vmem:[#allocation142_spill] sm:$0xff]  ;;  %v9877_v44 = vld [vmem:[#allocation140_spill] sm:$0xff] }
 0x474   : > { %v4520_v2 = vsel %vm4504_vm14, %v4448_v4, -inf  ;;  %v3613_v30 = vadd.f32 %v3549_v18, %v3225_v26  ;;  %v4669_v54 = vadd.f32 %v4668_v20, %v4667_v33  ;;  %vm4262_vm6 = vcmp.gt.f32.partialorder %v9863_v11, 0.0 }
 0x475   : > { %v4529_v63 = vmax.f32 %v4527_v14, %v4520_v2  ;;  %v4450_v5 = vsel %vm4258_vm4, %v4194_v31, -1e+30  ;;  %v4132_v60 = vadd.f32 %v8601_v36, %v4061_v8  ;;  %v3999_v45 = vadd.f32 %v3935_v28, %v3611_v47  ;;  %v9875_v14 = vld [vmem:[#allocation135_spill] sm:$0xff]  ;;  %v9876_v47 = vld [vmem:[#allocation84_spill] sm:$0xff] }
 0x476   : > { %v4524_v53 = vsel %vm4504_vm14, %v4450_v5, -inf  ;;  %v3727_v10 = vpop.permute.xlu0 %3726  ;;  %v3227_v16 = vmul.f32 %v8172_v58, %v9875_v14  ;;  %v4687_v18 = vadd.f32 %v4686_v15, %v9876_v47  ;;  %v3553_v8 = vmul.f32 %v8180_v1, %v9877_v44  ;;  %v9879_v5 = vld [vmem:[#allocation138_spill] sm:$0xff] }
 0x477   : > { %v4531_v3 = vmax.f32 %v4529_v63, %v4524_v53  ;;  %v4196_v32 = vmax.f32 %v4132_v60, 0.0  ;;  %v4063_v46 = vadd.f32 %v3999_v45, %v9874_v52  ;;  %v3937_v6 = vmul.f32 %v8184_v12, %v3727_v10 }
 0x478   : > { %v3615_v31 = vadd.f32 %v3551_v40, %v3227_v16  ;;  %v4670_v15 = vrot.slane %v4669_v54, 2  ;;  %v3229_v60 = vmul.f32 %v8172_v58, %v9879_v5  ;;  %v4688_v45 = vadd.f32 %v4687_v18, %v9784_v34  ;;  %v9881_v16 = vld [vmem:[#allocation143_spill] sm:$0xff]  ;;  %v9886_v5 = vld [vmem:[#allocation144_spill] sm:$0xff] }
 0x479   : > { %v4452_v4 = vsel %vm4260_vm5, %v4196_v32, -1e+30  ;;  %v4134_v50 = vadd.f32 %v8601_v36, %v4063_v46  ;;  %v4001_v2 = vadd.f32 %v3937_v6, %v3613_v30  ;;  %v9880_v46 = vld [vmem:[#allocation148_spill] sm:$0xff]  ;;  %vm4264_vm7 = vcmp.gt.f32.partialorder %v9787_v55, 0.0 }
 0x47a   : > { %v4528_v28 = vsel %vm4504_vm14, %v4452_v4, -inf  ;;  %v3735_v0 = vpop.permute.xlu0 %3734  ;;  %v3617_v53 = vadd.f32 %v3553_v8, %v3229_v60  ;;  %v4671_v14 = vadd.f32 %v4670_v15, %v4669_v54  ;;  %v3555_v34 = vmul.f32 %v8180_v1, %v9881_v16  ;;  %v9883_v8 = vld [vmem:[#allocation146_spill] sm:$0xff] }
 0x47b   : > { %v4533_v26 = vmax.f32 %v4531_v3, %v4528_v28  ;;  %v4198_v63 = vmax.f32 %v4134_v50, 0.0  ;;  %v4065_v33 = vadd.f32 %v4001_v2, %v9878_v19  ;;  %v3939_v20 = vmul.f32 %v8184_v12, %v3735_v0  ;;  %v9885_v19 = vld [vmem:[#allocation151_spill] sm:$0xff] }
 0x47c   : > { %v4689_v18 = vrot.slane %v4688_v45, 4  ;;  %v3557_v28 = vmul.f32 %v8180_v1, %v9883_v8  ;;  %vm4266_vm8 = vcmp.gt.f32.partialorder %v9789_v42, 0.0  ;;  %v9884_v55 = vmax.f32 %v8373_v37, %v8386_v24  ;;  %v9887_v24 = vld [vmem:[#allocation149_spill] sm:$0xff]  ;;  %v9891_v8 = vld [vmem:[#allocation18_spill] sm:$0xff] }
 0x47d   : > { %v4454_v30 = vsel %vm4262_vm6, %v4198_v63, -1e+30  ;;  %v4136_v41 = vadd.f32 %v8601_v36, %v4065_v33  ;;  %v4003_v40 = vadd.f32 %v3939_v20, %v3615_v31  ;;  %v9882_v31 = vld [vmem:[#allocation141_spill] sm:$0xff]  ;;  %v4672_v20 = vrot.slane %v4671_v14, 1 }
 0x47e   : > { %v4532_v10 = vsel %vm4504_vm14, %v4454_v30, -inf  ;;  %v3743_v3 = vpop.permute.xlu0 %3742  ;;  %v3231_v44 = vmul.f32 %v8172_v58, %v9882_v31  ;;  %v3233_v60 = vmul.f32 %v8172_v58, %v9886_v5  ;;  %vm4268_vm9 = vcmp.gt.f32.partialorder %v9794_v27, 0.0 }
 0x47f   : > { %v8677_v32 = vmax.f32 %v4533_v26, %v4532_v10  ;;  %v4200_v52 = vmax.f32 %v4136_v41, 0.0  ;;  %v4067_v6 = vadd.f32 %v4003_v40, %v9880_v46  ;;  %v3941_v11 = vmul.f32 %v8184_v12, %v3743_v3 }
 0x480   : > { %v3619_v15 = vadd.f32 %v3555_v34, %v3231_v44  ;;  %v4690_v41 = vadd.f32 %v4689_v18, %v4688_v45  ;;  %v3621_v10 = vadd.f32 %v3557_v28, %v3233_v60  ;;  %v8703_v16 = vadd.f32 %v4672_v20, %v4671_v14  ;;  %v9888_v45 = vld [vmem:[#allocation154_spill] sm:$0xff]  ;;  %v9890_v44 = vld [vmem:[#allocation85_spill] sm:$0xff] }
 0x481   : > { %v4456_v4 = vsel %vm4264_vm7, %v4200_v52, -1e+30  ;;  %v4138_v50 = vadd.f32 %v8601_v36, %v4067_v6  ;;  %v4005_v2 = vadd.f32 %v3941_v11, %v3617_v53  ;;  %v3559_v52 = vmul.f32 %v8180_v1, %v9887_v24  ;;  %v9895_v60 = vld [vmem:[#allocation150_spill] sm:$0xff] }
 0x482   : > { %v4542_v0 = vsel %vm4504_vm14, %v4456_v4, -inf  ;;  %v3751_v26 = vpop.permute.xlu0 %3750  ;;  %v4691_v18 = vrot.slane %v4690_v41, 2  ;;  %v9889_v4 = vld [vmem:[#allocation147_spill] sm:$0xff]  ;;  %v4695_v28 = vadd.f32 %v9891_v8, %v9890_v44  ;;  %vm4270_vm10 = vcmp.gt.f32.partialorder %v9801_v62, 0.0 }
 0x483   : > { %v4558_v54 = vmax.f32 %v9884_v55, %v4542_v0  ;;  %v4202_v63 = vmax.f32 %v4138_v50, 0.0  ;;  %v4069_v33 = vadd.f32 %v4005_v2, %v9885_v19  ;;  %v3943_v30 = vmul.f32 %v8184_v12, %v3751_v26  ;;  %v9892_v0 = vld [vmem:[#allocation152_spill] sm:$0xff]  ;;  %v9893_v19 = vld [vmem:[#allocation157_spill] sm:$0xff] }
 0x484   : > { %v3235_v50 = vmul.f32 %v8172_v58, %v9889_v4  ;;  %v3561_v26 = vmul.f32 %v8180_v1, %v9892_v0  ;;  %vm4272_vm11 = vcmp.gt.f32.partialorder %v9809_v48, 0.0  ;;  %vm4274_vm12 = vcmp.gt.f32.partialorder %v9861_v49, 0.0  ;;  %v9899_v4 = vld [vmem:[#allocation153_spill] sm:$0xff] }
 0x485   : > { %v4458_v40 = vsel %vm4266_vm8, %v4202_v63, -1e+30  ;;  %v4140_v53 = vadd.f32 %v8601_v36, %v4069_v33  ;;  %v4007_v3 = vadd.f32 %v3943_v30, %v3619_v15  ;;  %v9894_v15 = vld [vmem:[#allocation86_spill] sm:$0xff]  ;;  %v3237_v30 = vmul.f32 %v8172_v58, %v9895_v60 }
 0x486   : > { %v4545_v42 = vsel %vm4504_vm14, %v4458_v40, -inf  ;;  %v3759_v37 = vpop.permute.xlu0 %3758  ;;  %v3623_v27 = vadd.f32 %v3559_v52, %v3235_v50  ;;  %v4696_v5 = vadd.f32 %v4695_v28, %v9894_v15  ;;  %vm4276_vm13 = vcmp.gt.f32.partialorder %v9869_v39, 0.0  ;;  %v9911_v39 = vld [vmem:[#allocation160_spill] sm:$0xff] }
 0x487   : > { %v4560_v46 = vmax.f32 %v4558_v54, %v4545_v42  ;;  %v4204_v6 = vmax.f32 %v4140_v53, 0.0  ;;  %v3945_v11 = vmul.f32 %v8184_v12, %v3759_v37  ;;  %v4071_v34 = vadd.f32 %v4007_v3, %v9888_v45  ;;  %v9896_v37 = vld [vmem:[#allocation155_spill] sm:$0xff] }
 0x488   : > { %v4692_v53 = vadd.f32 %v4691_v18, %v4690_v41  ;;  %v3625_v3 = vadd.f32 %v3561_v26, %v3237_v30  ;;  %v3563_v24 = vmul.f32 %v8180_v1, %v9896_v37  ;;  %v9898_v41 = vld [vmem:[#allocation33_spill] sm:$0xff]  ;;  %v3239_v50 = vmul.f32 %v8172_v58, %v9899_v4  ;;  %v9905_v37 = vld [vmem:[#allocation156_spill] sm:$0xff] }
 0x489   : > { %v4460_v2 = vsel %vm4268_vm9, %v4204_v6, -1e+30  ;;  %v4009_v31 = vadd.f32 %v3945_v11, %v3621_v10  ;;  %v4142_v14 = vadd.f32 %v8601_v36, %v4071_v34  ;;  %v9897_v11 = vld [vmem:[#allocation162_spill] sm:$0xff]  ;;  %v4697_v18 = vadd.f32 %v4696_v5, %v9898_v41 }
 0x48a   : > { %v4549_v55 = vsel %vm4504_vm14, %v4460_v2, -inf  ;;  %v3767_v54 = vpop.permute.xlu0 %3766  ;;  %vm4278_vm0 = vcmp.gt.f32.partialorder %v9876_v47, 0.0  ;;  %vm4281_vm15 = vcmp.gt.f32.partialorder %v9891_v8, 0.0  ;;  %vm4280_vm1 = vcmp.gt.f32.partialorder %v9890_v44, 0.0  ;;  %v9913_v47 = vld [vmem:[#allocation36_spill] sm:$0xff] }
 0x48b   : > { %v4562_v63 = vmax.f32 %v4560_v46, %v4549_v55  ;;  %v4073_v33 = vadd.f32 %v4009_v31, %v9893_v19  ;;  %v3947_v20 = vmul.f32 %v8184_v12, %v3767_v54  ;;  %v4206_v40 = vmax.f32 %v4142_v14, 0.0  ;;  %v9900_v55 = vld [vmem:[#allocation21_spill] sm:$0xff]  ;;  %v9901_v14 = vld [vmem:[#allocation10_spill] sm:$0xff] }
 0x48c   : > { %v4693_v31 = vrot.slane %v4692_v53, 1  ;;  %v4716_v54 = vadd.f32 %v9901_v14, %v9900_v55  ;;  %v9902_v19 = vld [vmem:[#allocation158_spill] sm:$0xff]  ;;  %vm4297_vm2 = vcmp.gt.f32.partialorder %v9901_v14, 0.0  ;;  %vm4296_vm3 = vcmp.gt.f32.partialorder %v9900_v55, 0.0 }
 0x48d   : > { %v4144_v10 = vadd.f32 %v8601_v36, %v4073_v33  ;;  %v4011_v42 = vadd.f32 %v3947_v20, %v3623_v27  ;;  %v4462_v52 = vsel %vm4270_vm10, %v4206_v40, -1e+30  ;;  %v3627_v27 = vadd.f32 %v3563_v24, %v3239_v50 }
 0x48e   : > { %v3775_v62 = vpop.permute.xlu0 %3774  ;;  %v4553_v46 = vsel %vm4504_vm14, %v4462_v52, -inf  ;;  %v3565_v33 = vmul.f32 %v8180_v1, %v9902_v19  ;;  %v3241_v24 = vmul.f32 %v8172_v58, %v9905_v37  ;;  %v4536_v52 = vrot.slane %v8677_v32, 4  ;;  %v9909_v19 = vld [vmem:[#allocation164_spill] sm:$0xff] }
 0x48f   : > { %v4208_v6 = vmax.f32 %v4144_v10, 0.0  ;;  %v4075_v45 = vadd.f32 %v4011_v42, %v9897_v11  ;;  %v3949_v34 = vmul.f32 %v8184_v12, %v3775_v62  ;;  %v4564_v2 = vmax.f32 %v4562_v63, %v4553_v46  ;;  %v9903_v63 = vld [vmem:[#allocation169_spill] sm:$0xff]  ;;  %v9904_v10 = vld [vmem:[#allocation87_spill] sm:$0xff] }
 0x490   : > { %v4698_v42 = vadd.f32 %v4697_v18, %v9904_v10  ;;  %v8749_v62 = vadd.f32 %v4693_v31, %v4692_v53  ;;  %vm4282_vm4 = vcmp.gt.f32.partialorder %v9894_v15, 0.0  ;;  %v3568_v8 = vmul.f32 %v8180_v1, %v8352_v7 }
 0x491   : > { %v4464_v28 = vsel %vm4272_vm11, %v4208_v6, -1e+30  ;;  %v4146_v0 = vadd.f32 %v8601_v36, %v4075_v45  ;;  %v4013_v26 = vadd.f32 %v3949_v34, %v3625_v3  ;;  %v4717_v3 = vadd.f32 %v4716_v54, %v9797_v21  ;;  %v9906_v34 = vld [vmem:[#allocation196_spill] sm:$0xff]  ;;  %v9908_v54 = vld [vmem:[#allocation195_spill] sm:$0xff] }
 0x492   : > { %v4557_v20 = vsel %vm4504_vm14, %v4464_v28, -inf  ;;  %v3783_v5 = vpop.permute.xlu0 %3782  ;;  %v3629_v45 = vadd.f32 %v3565_v33, %v3241_v24  ;;  %v3581_v18 = vmul.f32 %v8180_v1, %v9906_v34  ;;  %v4153_v21 = vadd.f32 %v8601_v36, %v8376_v22  ;;  %v9907_v28 = vld [vmem:[#allocation5_spill] sm:$0xff] }
 0x493   : > { %v4566_v60 = vmax.f32 %v4564_v2, %v4557_v20  ;;  %v4210_v30 = vmax.f32 %v4146_v0, 0.0  ;;  %v4077_v40 = vadd.f32 %v4013_v26, %v9903_v63  ;;  %v3951_v48 = vmul.f32 %v8184_v12, %v3783_v5 }
 0x494   : > { %v8764_v0 = vadd.f32 %v4698_v42, %v9907_v28  ;;  %v4718_v26 = vadd.f32 %v4717_v3, %v9812_v25  ;;  %v4537_v22 = vmax.f32 %v8677_v32, %v4536_v52  ;;  %v3567_v33 = vmul.f32 %v8180_v1, %v9909_v19  ;;  %v9910_v32 = vld [vmem:[#allocation161_spill] sm:$0xff] }
 0x495   : > { %v4466_v46 = vsel %vm4274_vm12, %v4210_v30, -1e+30  ;;  %v4148_v6 = vadd.f32 %v8601_v36, %v4077_v40  ;;  %v4015_v11 = vadd.f32 %v3951_v48, %v3627_v27  ;;  %v3257_v27 = vmul.f32 %v8172_v58, %v9908_v54 }
 0x496   : > { %v4561_v4 = vsel %vm4504_vm14, %v4466_v46, -inf  ;;  %v3791_v50 = vpop.permute.xlu0 %3790  ;;  %v4217_v30 = vmax.f32 %v4153_v21, 0.0  ;;  %v4169_v63 = vadd.f32 %v8601_v36, %v8453_v51  ;;  %v3243_v24 = vmul.f32 %v8172_v58, %v9911_v39 }
 0x497   : > { %v4568_v53 = vmax.f32 %v4566_v60, %v4561_v4  ;;  %v4212_v2 = vmax.f32 %v4148_v6, 0.0  ;;  %v4079_v31 = vadd.f32 %v4015_v11, %v8339_v56  ;;  %v3953_v49 = vmul.f32 %v8184_v12, %v3791_v50 }
 0x498   : > { %v3645_v60 = vadd.f32 %v3581_v18, %v3257_v27  ;;  %v4538_v52 = vrot.slane %v4537_v22, 2  ;;  %v4719_v46 = vadd.f32 %v4718_v26, %v9799_v35  ;;  %v4473_v34 = vsel %vm4281_vm15, %v4217_v30, -1e+30  ;;  %v9914_v26 = vld [vmem:[#allocation170_spill] sm:$0xff] }
 0x499   : > { %v4468_v56 = vsel %vm4276_vm13, %v4212_v2, -1e+30  ;;  %v4150_v20 = vadd.f32 %v8601_v36, %v4079_v31  ;;  %v4017_v5 = vadd.f32 %v3953_v49, %v3629_v45  ;;  %v3631_v45 = vadd.f32 %v3567_v33, %v3243_v24  ;;  %v9912_v2 = vld [vmem:[#allocation187_spill] sm:$0xff] }
 0x49a   : > { %v4565_v25 = vsel %vm4504_vm14, %v4468_v56, -inf  ;;  %v3855_v40 = vpop.permute.xlu0 %3854  ;;  %v4233_v18 = vmax.f32 %v4169_v63, 0.0  ;;  %v3244_v49 = vmul.f32 %v8172_v58, %v9913_v47  ;;  %v3569_v54 = vmul.f32 %v8180_v1, %v9914_v26  ;;  %v9921_v26 = vld [vmem:[#allocation163_spill] sm:$0xff] }
 0x49b   : > { %v4570_v48 = vmax.f32 %v4568_v53, %v4565_v25  ;;  %v4214_v42 = vmax.f32 %v4150_v20, 0.0  ;;  %v4081_v3 = vadd.f32 %v4017_v5, %v9910_v32  ;;  %v3969_v37 = vmul.f32 %v8184_v12, %v3855_v40  ;;  %v9915_v5 = vld [vmem:[#allocation166_spill] sm:$0xff]  ;;  %v9917_v32 = vld [vmem:[#allocation45_spill] sm:$0xff] }
 0x49c   : > { %v4539_v27 = vmax.f32 %v4537_v22, %v4538_v52  ;;  %v4580_v30 = vsel %vm4504_vm14, %v4473_v34, -inf  ;;  %v4489_v63 = vsel %vm4297_vm2, %v4233_v18, -1e+30  ;;  %vm4737_vm5 = vcmp.gt.f32.partialorder %v8703_v16, 0.0 }
 0x49d   : > { %v4470_v51 = vsel %vm4278_vm0, %v4214_v42, -1e+30  ;;  %v4152_v6 = vadd.f32 %v8601_v36, %v4081_v3  ;;  %v4033_v11 = vadd.f32 %v3969_v37, %v3645_v60  ;;  %v3245_v60 = vmul.f32 %v8172_v58, %v9915_v5  ;;  %v9916_v42 = vld [vmem:[#allocation165_spill] sm:$0xff] }
 0x49e   : > { %v4569_v21 = vsel %vm4504_vm14, %v4470_v51, -inf  ;;  %v3799_v4 = vpop.permute.xlu0 %3798  ;;  %vm4738_vm6 = vcmp.gt.f32.partialorder %v8749_v62, 0.0  ;;  %v4720_v3 = vadd.f32 %v4719_v46, %v9917_v32  ;;  %v3632_v37 = vadd.f32 %v3568_v8, %v3244_v49 }
 0x49f   : > { %v4572_v50 = vmax.f32 %v4570_v48, %v4569_v21  ;;  %v4216_v53 = vmax.f32 %v4152_v6, 0.0  ;;  %v4097_v31 = vadd.f32 %v4033_v11, %v9912_v2  ;;  %v3955_v35 = vmul.f32 %v8184_v12, %v3799_v4  ;;  %v9918_v11 = vld [vmem:[#allocation92_spill] sm:$0xff] }
 0x4a0   : > { %v4540_v39 = vrot.slane %v4539_v27, 1  ;;  %vm4283_vm7 = vcmp.gt.f32.partialorder %v9898_v41, 0.0  ;;  %v3633_v14 = vadd.f32 %v3569_v54, %v3245_v60  ;;  %v4617_v34 = vsel %vm4504_vm14, %v4489_v63, -inf }
 0x4a1   : > { %v4573_v19 = vrot.slane %v4572_v50, 4  ;;  %v4472_v33 = vsel %vm4280_vm1, %v4216_v53, -1e+30  ;;  %v4168_v56 = vadd.f32 %v8601_v36, %v4097_v31  ;;  %v4019_v20 = vadd.f32 %v3955_v35, %v3631_v45  ;;  %v9919_v31 = vld [vmem:[#allocation17_spill] sm:$0xff]  ;;  %v9920_v35 = vld [vmem:[#allocation176_spill] sm:$0xff] }
 0x4a2   : > { %v4579_v25 = vsel %vm4504_vm14, %v4472_v33, -inf  ;;  %v3803_v40 = vpop.permute.xlu0 %3802  ;;  %v3570_v45 = vmul.f32 %v8180_v1, %v9918_v11  ;;  %v3246_v55 = vmul.f32 %v8172_v58, %v9919_v31  ;;  %v3571_v47 = vmul.f32 %v8180_v1, %v9920_v35  ;;  %v9927_v11 = vld [vmem:[#allocation167_spill] sm:$0xff] }
 0x4a3   : > { %v4574_v7 = vmax.f32 %v4572_v50, %v4573_v19  ;;  %v4581_v22 = vmax.f32 %v4579_v25, %v4580_v30  ;;  %v4232_v48 = vmax.f32 %v4168_v56, 0.0  ;;  %v4083_v44 = vadd.f32 %v4019_v20, %v9916_v42  ;;  %v9922_v25 = vld [vmem:[#allocation168_spill] sm:$0xff] }
 0x4a4   : > { %v3956_v24 = vmul.f32 %v8184_v12, %v3803_v40  ;;  %v4541_v49 = vmax.f32 %v4539_v27, %v4540_v39  ;;  %v3634_v20 = vadd.f32 %v3570_v45, %v3246_v55  ;;  %vm4757_vm8 = vcmask 1041409   ;;  %v9931_v55 = vld [vmem:[#allocation182_spill] sm:$0xff] }
 0x4a5   : > { %v4575_v52 = vrot.slane %v4574_v7, 2  ;;  %v4488_v51 = vsel %vm4296_vm3, %v4232_v48, -1e+30  ;;  %v4154_v6 = vadd.f32 %v8601_v36, %v4083_v44  ;;  %v4700_v57 = vadd.f32 %v8764_v0, %v9923_v17  ;;  %v9925_v48 = vld [vmem:[#allocation173_spill] sm:$0xff] }
 0x4a6   : > { %v4616_v46 = vsel %vm4504_vm14, %v4488_v51, -inf  ;;  %v4020_v18 = vadd.f32 %v3956_v24, %v3632_v37  ;;  %v3807_v21 = vpop.permute.xlu0 %3806  ;;  %v3247_v42 = vmul.f32 %v8172_v58, %v9925_v48  ;;  %v4749_v32 = vsel %vm4737_vm5, %v4541_v49, 0.0 }
 0x4a7   : > { %v4576_v4 = vmax.f32 %v4574_v7, %v4575_v52  ;;  %v4618_v50 = vmax.f32 %v4616_v46, %v4617_v34  ;;  %v4218_v53 = vmax.f32 %v4154_v6, 0.0  ;;  %v3957_v2 = vmul.f32 %v8184_v12, %v3807_v21  ;;  %v9928_v34 = vld [vmem:[#allocation13_spill] sm:$0xff] }
 0x4a8   : > { %v4084_v54 = vadd.f32 %v9921_v26, %v4020_v18  ;;  %v3635_v24 = vadd.f32 %v3571_v47, %v3247_v42  ;;  %vm4284_vm9 = vcmp.gt.f32.partialorder %v9904_v10, 0.0  ;;  %v4701_v46 = vadd.f32 %v4700_v57, %v9928_v34  ;;  %v9929_v18 = vld [vmem:[#allocation6_spill] sm:$0xff] }
 0x4a9   : > { %v4577_v8 = vrot.slane %v4576_v4, 1  ;;  %v8831_v19 = vmax.f32 %v4644_v23, %v4618_v50  ;;  %v4474_v33 = vsel %vm4282_vm4, %v4218_v53, -1e+30  ;;  %v4021_v56 = vadd.f32 %v3957_v2, %v3633_v14  ;;  %v9924_v23 = vld [vmem:[#allocation96_spill] sm:$0xff]  ;;  %v9926_v14 = vld [vmem:[#allocation94_spill] sm:$0xff] }
 0x4aa   : > { %v4582_v5 = vsel %vm4504_vm14, %v4474_v33, -inf  ;;  %v4155_v60 = vadd.f32 %v8601_v36, %v4084_v54  ;;  %v3811_v30 = vpop.permute.xlu0 %3810  ;;  %v4721_v15 = vadd.f32 %v4720_v3, %v9924_v23  ;;  %v3572_v52 = vmul.f32 %v8180_v1, %v9926_v14  ;;  %v9930_v2 = vld [vmem:[#allocation44_spill] sm:$0xff]  ;;  %v9936_v23 = vld [vmem:[#allocation47_spill] sm:$0xff] }
 0x4ab   : > { %v4578_v27 = vmax.f32 %v4576_v4, %v4577_v8  ;;  %v4583_v63 = vmax.f32 %v4581_v22, %v4582_v5  ;;  %v4085_v40 = vadd.f32 %v4021_v56, %v9922_v25  ;;  %v3958_v7 = vmul.f32 %v8184_v12, %v3811_v30  ;;  %v9932_v8 = vld [vmem:[#allocation172_spill] sm:$0xff] }
 0x4ac   : > { %v4219_v44 = vmax.f32 %v4155_v60, 0.0  ;;  %v3248_v21 = vmul.f32 %v8172_v58, %v9929_v18  ;;  %v4722_v31 = vadd.f32 %v4721_v15, %v9930_v2  ;;  %v3573_v35 = vmul.f32 %v8180_v1, %v9931_v55  ;;  %v9934_v60 = vld [vmem:[#allocation179_spill] sm:$0xff]  ;;  %v9939_v14 = vld [vmem:[#allocation12_spill] sm:$0xff] }
 0x4ad   : > { %v4750_v37 = vsel %vm4738_vm6, %v4578_v27, 0.0  ;;  %v4156_v22 = vadd.f32 %v8601_v36, %v4085_v40  ;;  %v4022_v39 = vadd.f32 %v3958_v7, %v3634_v20  ;;  %vm4285_vm10 = vcmp.gt.f32.partialorder %v9907_v28, 0.0  ;;  %v9933_v20 = vld [vmem:[#allocation88_spill] sm:$0xff]  ;;  %v9935_v40 = vld [vmem:[#allocation97_spill] sm:$0xff] }
 0x4ae   : > { %v8852_v0 = vsel %vm4757_vm8, %v4750_v37, %v4749_v32  ;;  %v4475_v3 = vsel %vm4283_vm7, %v4219_v44, -1e+30  ;;  %v3815_v51 = vpop.permute.xlu0 %3814  ;;  %v3636_v47 = vadd.f32 %v3572_v52, %v3248_v21  ;;  %v4702_v5 = vadd.f32 %v4701_v46, %v9933_v20  ;;  %v9937_v32 = vld [vmem:[#allocation171_spill] sm:$0xff] }
 0x4af   : > { %v4584_v16 = vsel %vm4504_vm14, %v4475_v3, -inf  ;;  %v4220_v6 = vmax.f32 %v4156_v22, 0.0  ;;  %v4086_v62 = vadd.f32 %v9927_v11, %v4022_v39  ;;  %v3959_v45 = vmul.f32 %v8184_v12, %v3815_v51  ;;  %v9938_v39 = vld [vmem:[#allocation8_spill] sm:$0xff] }
 0x4b0   : > { %v4585_v4 = vmax.f32 %v4583_v63, %v4584_v16  ;;  %v3249_v30 = vmul.f32 %v8172_v58, %v9934_v60  ;;  %v4723_v7 = vadd.f32 %v4722_v31, %v9935_v40  ;;  %v3574_v15 = vmul.f32 %v8180_v1, %v9936_v23  ;;  %v9940_v11 = vld [vmem:[#allocation188_spill] sm:$0xff]  ;;  %v9943_v31 = vld [vmem:[#allocation185_spill] sm:$0xff] }
 0x4b1   : > { %v4476_v50 = vsel %vm4284_vm9, %v4220_v6, -1e+30  ;;  %v4157_v41 = vadd.f32 %v8601_v36, %v4086_v62  ;;  %v4023_v53 = vadd.f32 %v3959_v45, %v3635_v24  ;;  %vm4286_vm11 = vcmp.gt.f32.partialorder %v9923_v17, 0.0 }
 0x4b2   : > { %v4586_v49 = vsel %vm4504_vm14, %v4476_v50, -inf  ;;  %v3819_v26 = vpop.permute.xlu0 %3818  ;;  %v3637_v57 = vadd.f32 %v3573_v35, %v3249_v30  ;;  %v4703_v24 = vadd.f32 %v4702_v5, %v9938_v39  ;;  %v3250_v52 = vmul.f32 %v8172_v58, %v9939_v14  ;;  %v9945_v5 = vld [vmem:[#allocation174_spill] sm:$0xff] }
 0x4b3   : > { %v4587_v10 = vmax.f32 %v4585_v4, %v4586_v49  ;;  %v4221_v54 = vmax.f32 %v4157_v41, 0.0  ;;  %v4087_v33 = vadd.f32 %v4023_v53, %v9932_v8  ;;  %v3960_v56 = vmul.f32 %v8184_v12, %v3819_v26  ;;  %v9941_v4 = vld [vmem:[#allocation175_spill] sm:$0xff]  ;;  %v9942_v53 = vld [vmem:[#allocation89_spill] sm:$0xff]  ;;  %v9950_v14 = vld [vmem:[#allocation90_spill] sm:$0xff] }
 0x4b4   : > { %v4724_v6 = vadd.f32 %v4723_v7, %v9831_v59  ;;  %v3575_v62 = vmul.f32 %v8180_v1, %v9940_v11  ;;  %v3638_v45 = vadd.f32 %v3574_v15, %v3250_v52  ;;  %vm4287_vm12 = vcmp.gt.f32.partialorder %v9928_v34, 0.0  ;;  %v9948_v15 = vld [vmem:[#allocation191_spill] sm:$0xff] }
 0x4b5   : > { %v4477_v27 = vsel %vm4285_vm10, %v4221_v54, -1e+30  ;;  %v4158_v63 = vadd.f32 %v8601_v36, %v4087_v33  ;;  %v4024_v25 = vadd.f32 %v3960_v56, %v3636_v47  ;;  %v4704_v2 = vadd.f32 %v4703_v24, %v9942_v53 }
 0x4b6   : > { %v4588_v48 = vsel %vm4504_vm14, %v4477_v27, -inf  ;;  %v3823_v42 = vpop.permute.xlu0 %3822  ;;  %v3251_v59 = vmul.f32 %v8172_v58, %v9943_v31  ;;  %v4725_v49 = vadd.f32 %v4724_v6, %v9832_v29  ;;  %vm4288_vm13 = vcmp.gt.f32.partialorder %v9933_v20, 0.0  ;;  %v9946_v27 = vld [vmem:[#allocation37_spill] sm:$0xff] }
 0x4b7   : > { %v4589_v44 = vmax.f32 %v4587_v10, %v4588_v48  ;;  %v4222_v28 = vmax.f32 %v4158_v63, 0.0  ;;  %v4088_v37 = vadd.f32 %v9937_v32, %v4024_v25  ;;  %v3961_v22 = vmul.f32 %v8184_v12, %v3823_v42  ;;  %v9944_v10 = vld [vmem:[#allocation22_spill] sm:$0xff] }
 0x4b8   : > { %v3639_v26 = vadd.f32 %v3575_v62, %v3251_v59  ;;  %v3576_v54 = vmul.f32 %v8180_v1, %v9944_v10  ;;  %v4705_v63 = vadd.f32 %v4704_v2, %v9946_v27  ;;  %v9947_v25 = vld [vmem:[#allocation38_spill] sm:$0xff]  ;;  %v4726_v23 = vadd.f32 %v4725_v49, %v9834_v61  ;;  %v9954_v2 = vld [vmem:[#allocation39_spill] sm:$0xff]  ;;  %v9955_v59 = vld [vmem:[#allocation40_spill] sm:$0xff] }
 0x4b9   : > { %v4478_v3 = vsel %vm4286_vm11, %v4222_v28, -1e+30  ;;  %v4159_v51 = vadd.f32 %v8601_v36, %v4088_v37  ;;  %v4025_v16 = vadd.f32 %v3961_v22, %v3637_v57  ;;  %v3252_v29 = vmul.f32 %v8172_v58, %v9947_v25  ;;  %v9949_v37 = vld [vmem:[#allocation178_spill] sm:$0xff]  ;;  %v9959_v25 = vld [vmem:[#allocation192_spill] sm:$0xff] }
 0x4ba   : > { %v4590_v46 = vsel %vm4504_vm14, %v4478_v3, -inf  ;;  %v3827_v18 = vpop.permute.xlu0 %3826  ;;  %v3577_v48 = vmul.f32 %v8180_v1, %v9948_v15  ;;  %vm4289_vm0 = vcmp.gt.f32.partialorder %v9938_v39, 0.0  ;;  %v4706_v52 = vadd.f32 %v4705_v63, %v9950_v14  ;;  %v9951_v3 = vld [vmem:[#allocation190_spill] sm:$0xff]  ;;  %v9960_v15 = vld [vmem:[#allocation48_spill] sm:$0xff] }
 0x4bb   : > { %v4591_v21 = vmax.f32 %v4589_v44, %v4590_v46  ;;  %v4223_v17 = vmax.f32 %v4159_v51, 0.0  ;;  %v4089_v50 = vadd.f32 %v4025_v16, %v9941_v4  ;;  %v3962_v41 = vmul.f32 %v8184_v12, %v3827_v18  ;;  %v9953_v4 = vld [vmem:[#allocation177_spill] sm:$0xff] }
 0x4bc   : > { %v3640_v42 = vadd.f32 %v3576_v54, %v3252_v29  ;;  %v3253_v61 = vmul.f32 %v8172_v58, %v9951_v3  ;;  %v4727_v11 = vadd.f32 %v4726_v23, %v9837_v13  ;;  %vm4290_vm15 = vcmp.gt.f32.partialorder %v9942_v53, 0.0 }
 0x4bd   : > { %v4479_v55 = vsel %vm4287_vm12, %v4223_v17, -1e+30  ;;  %v4160_v35 = vadd.f32 %v8601_v36, %v4089_v50  ;;  %v4026_v47 = vadd.f32 %v3962_v41, %v3638_v45  ;;  %v9952_v45 = vld [vmem:[#allocation28_spill] sm:$0xff]  ;;  %v4707_v31 = vadd.f32 %v4706_v52, %v9954_v2  ;;  %v9963_v52 = vld [vmem:[#allocation23_spill] sm:$0xff] }
 0x4be   : > { %v4592_v8 = vsel %vm4504_vm14, %v4479_v55, -inf  ;;  %v3831_v33 = vpop.permute.xlu0 %3830  ;;  %v3641_v62 = vadd.f32 %v3577_v48, %v3253_v61  ;;  %v3578_v46 = vmul.f32 %v8180_v1, %v9952_v45  ;;  %v3254_v13 = vmul.f32 %v8172_v58, %v9955_v59  ;;  %v9965_v59 = vld [vmem:[#allocation183_spill] sm:$0xff] }
 0x4bf   : > { %v4593_v56 = vmax.f32 %v4591_v21, %v4592_v8  ;;  %v4224_v34 = vmax.f32 %v4160_v35, 0.0  ;;  %v4090_v60 = vadd.f32 %v9945_v5, %v4026_v47  ;;  %v3963_v30 = vmul.f32 %v8184_v12, %v3831_v33 }
 0x4c0   : > { %v4728_v49 = vadd.f32 %v4727_v11, %v9848_v38  ;;  %v3642_v54 = vadd.f32 %v3578_v46, %v3254_v13  ;;  %vm4291_vm1 = vcmp.gt.f32.partialorder %v9946_v27, 0.0  ;;  %v3255_v38 = vmul.f32 %v8172_v58, %v9959_v25  ;;  %v9964_v46 = vld [vmem:[#allocation184_spill] sm:$0xff] }
 0x4c1   : > { %v4480_v40 = vsel %vm4288_vm13, %v4224_v34, -1e+30  ;;  %v4161_v7 = vadd.f32 %v8601_v36, %v4090_v60  ;;  %v4027_v57 = vadd.f32 %v3963_v30, %v3639_v26  ;;  %v9956_v26 = vld [vmem:[#allocation194_spill] sm:$0xff]  ;;  %v9957_v34 = vld [vmem:[#allocation181_spill] sm:$0xff]  ;;  %v9958_v30 = vld [vmem:[#allocation91_spill] sm:$0xff]  ;;  %v3580_v48 = vmul.f32 %v8180_v1, %v9960_v15 }
 0x4c2   : > { %v4594_v44 = vsel %vm4504_vm14, %v4480_v40, -inf  ;;  %v3835_v28 = vpop.permute.xlu0 %3834  ;;  %v3579_v10 = vmul.f32 %v8180_v1, %v9956_v26  ;;  %v4708_v63 = vadd.f32 %v4707_v31, %v9958_v30  ;;  %vm4292_vm2 = vcmp.gt.f32.partialorder %v9950_v14, 0.0 }
 0x4c3   : > { %v4595_v32 = vmax.f32 %v4593_v56, %v4594_v44  ;;  %v4225_v20 = vmax.f32 %v4161_v7, 0.0  ;;  %v4091_v22 = vadd.f32 %v4027_v57, %v9949_v37  ;;  %v3964_v24 = vmul.f32 %v8184_v12, %v3835_v28 }
 0x4c4   : > { %v4729_v57 = vadd.f32 %v4728_v49, %v9852_v9  ;;  %v3643_v23 = vadd.f32 %v3579_v10, %v3255_v38  ;;  %v3256_v9 = vmul.f32 %v8172_v58, %v9963_v52  ;;  %vm4293_vm3 = vcmp.gt.f32.partialorder %v9954_v2, 0.0 }
 0x4c5   : > { %v4481_v51 = vsel %vm4289_vm0, %v4225_v20, -1e+30  ;;  %v4162_v16 = vadd.f32 %v8601_v36, %v4091_v22  ;;  %v4028_v6 = vadd.f32 %v3964_v24, %v3640_v42  ;;  %v9962_v22 = vld [vmem:[#allocation7_spill] sm:$0xff]  ;;  %vm4294_vm4 = vcmp.gt.f32.partialorder %v9958_v30, 0.0 }
 0x4c6   : > { %v4596_v18 = vsel %vm4504_vm14, %v4481_v51, -inf  ;;  %v3839_v21 = vpop.permute.xlu0 %3838  ;;  %v4709_v24 = vadd.f32 %v4708_v63, %v9962_v22  ;;  %v4730_v3 = vadd.f32 %v4729_v57, %v9857_v43  ;;  %vm4295_vm5 = vcmp.gt.f32.partialorder %v9962_v22, 0.0 }
 0x4c7   : > { %v4597_v17 = vmax.f32 %v4595_v32, %v4596_v18  ;;  %v4226_v39 = vmax.f32 %v4162_v16, 0.0  ;;  %v4092_v50 = vadd.f32 %v9953_v4, %v4028_v6  ;;  %v3965_v41 = vmul.f32 %v8184_v12, %v3839_v21  ;;  %v9961_v32 = vld [vmem:[#allocation180_spill] sm:$0xff] }
 0x4c8   : > { %v3644_v16 = vadd.f32 %v3580_v48, %v3256_v9  ;;  %v4710_v21 = vrot.slane %v4709_v24, 4  ;;  %v4731_v58 = vrot.slane %v4730_v3, 4  ;;  %vm4759_vm6 = vcmask 1042434  }
 0x4c9   : > { %v4482_v55 = vsel %vm4290_vm15, %v4226_v39, -1e+30  ;;  %v4163_v35 = vadd.f32 %v8601_v36, %v4092_v50  ;;  %v4029_v47 = vadd.f32 %v3965_v41, %v3641_v62  ;;  %v4647_v50 = vrot.slane %v8831_v19, 4 }
 0x4ca   : > { %v4598_v8 = vsel %vm4504_vm14, %v4482_v55, -inf  ;;  %v3843_v33 = vpop.permute.xlu0 %3842  ;;  %v4711_v55 = vadd.f32 %v4710_v21, %v4709_v24  ;;  %vm4764_vm9 = vcmask 519168  }
 0x4cb   : > { %v4599_v56 = vmax.f32 %v4597_v17, %v4598_v8  ;;  %v4227_v53 = vmax.f32 %v4163_v35, 0.0  ;;  %v4093_v5 = vadd.f32 %v4029_v47, %v9957_v34  ;;  %v3966_v60 = vmul.f32 %v8184_v12, %v3843_v33 }
 0x4cc   : > { %v4648_v49 = vmax.f32 %v8831_v19, %v4647_v50 }
 0x4cd   : > { %v4483_v29 = vsel %vm4291_vm1, %v4227_v53, -1e+30  ;;  %v4164_v40 = vadd.f32 %v8601_v36, %v4093_v5  ;;  %v4030_v7 = vadd.f32 %v3966_v60, %v3642_v54  ;;  %v4712_v54 = vrot.slane %v4711_v55, 2 }
 0x4ce   : > { %v4600_v42 = vsel %vm4504_vm14, %v4483_v29, -inf  ;;  %v3847_v44 = vpop.permute.xlu0 %3846 }
 0x4cf   : > { %v4601_v28 = vmax.f32 %v4599_v56, %v4600_v42  ;;  %v4228_v27 = vmax.f32 %v4164_v40, 0.0  ;;  %v4094_v20 = vadd.f32 %v9961_v32, %v4030_v7  ;;  %v3967_v37 = vmul.f32 %v8184_v12, %v3847_v44 }
 0x4d0   : > { %v4649_v56 = vrot.slane %v4648_v49, 2  ;;  %v4713_v5 = vadd.f32 %v4712_v54, %v4711_v55 }
 0x4d1   : > { %v4484_v61 = vsel %vm4292_vm2, %v4228_v27, -1e+30  ;;  %v4165_v1 = vadd.f32 %v8601_v36, %v4094_v20  ;;  %v4031_v51 = vadd.f32 %v3967_v37, %v3643_v23 }
 0x4d2   : > { %v4602_v6 = vsel %vm4504_vm14, %v4484_v61, -inf  ;;  %v3851_v11 = vpop.permute.xlu0 %3850  ;;  %v4650_v63 = vmax.f32 %v4648_v49, %v4649_v56  ;;  %v4714_v25 = vrot.slane %v4713_v5, 1 }
 0x4d3   : > { %v4603_v62 = vmax.f32 %v4601_v28, %v4602_v6  ;;  %v4229_v45 = vmax.f32 %v4165_v1, 0.0  ;;  %v4095_v18 = vadd.f32 %v4031_v51, %v9964_v46  ;;  %v3968_v14 = vmul.f32 %v8184_v12, %v3851_v11 }
 0x4d4   : > { %v4732_v12 = vadd.f32 %v4731_v58, %v4730_v3  ;;  %v4651_v29 = vrot.slane %v4650_v63, 1  ;;  %v4715_v7 = vadd.f32 %v4714_v25, %v4713_v5 }
 0x4d5   : > { %v4485_v17 = vsel %vm4293_vm3, %v4229_v45, -1e+30  ;;  %v4166_v43 = vadd.f32 %v8601_v36, %v4095_v18  ;;  %v4032_v39 = vadd.f32 %v3968_v14, %v3644_v16 }
 0x4d6   : > { %v4604_v4 = vsel %vm4504_vm14, %v4485_v17, -inf  ;;  %v4733_v8 = vrot.slane %v4732_v12, 2  ;;  %v4652_v15 = vmax.f32 %v4650_v63, %v4651_v29  ;;  %vm4739_vm7 = vcmp.gt.f32.partialorder %v4715_v7, 0.0 }
 0x4d7   : > { %v4605_v41 = vmax.f32 %v4603_v62, %v4604_v4  ;;  %v4230_v31 = vmax.f32 %v4166_v43, 0.0  ;;  %v4096_v13 = vadd.f32 %v9965_v59, %v4032_v39 }
 0x4d8   : > { %v4734_v60 = vadd.f32 %v4733_v8, %v4732_v12 }
 0x4d9   : > { %v4486_v35 = vsel %vm4294_vm4, %v4230_v31, -1e+30  ;;  %v4167_v2 = vadd.f32 %v8601_v36, %v4096_v13 }
 0x4da   : > { %v4606_v47 = vsel %vm4504_vm14, %v4486_v35, -inf  ;;  %v4735_v38 = vrot.slane %v4734_v60, 1 }
 0x4db   : > { %v4607_v26 = vmax.f32 %v4605_v41, %v4606_v47  ;;  %v4231_v10 = vmax.f32 %v4167_v2, 0.0 }
 0x4dc   : > { %v4736_v57 = vadd.f32 %v4735_v38, %v4734_v60 }
 0x4dd   : > { %v4487_v33 = vsel %vm4295_vm5, %v4231_v10, -1e+30 }
 0x4de   : > { %v4608_v53 = vsel %vm4504_vm14, %v4487_v33, -inf  ;;  %vm4761_vm14 = vcmask 1043459   ;;  %vm4740_vm8 = vcmp.gt.f32.partialorder %v4736_v57, 0.0 }
 0x4df   : > { %v4609_v34 = vmax.f32 %v4607_v26, %v4608_v53  ;;  %v4752_v44 = vsel %vm4740_vm8, %v4652_v15, 0.0 }
 0x4e1   : > { %v4610_v30 = vrot.slane %v4609_v34, 4 }
 0x4e3   : > { %v4611_v36 = vmax.f32 %v4609_v34, %v4610_v30 }
 0x4e5   : > { %v4612_v19 = vrot.slane %v4611_v36, 2 }
 0x4e7   : > { %v4613_v40 = vmax.f32 %v4611_v36, %v4612_v19 }
 0x4e9   : > { %v4614_v23 = vrot.slane %v4613_v40, 1 }
 0x4eb   : > { %v4615_v48 = vmax.f32 %v4613_v40, %v4614_v23 }
 0x4ed   : > { %v4751_v42 = vsel %vm4739_vm7, %v4615_v48, 0.0 }
 0x4ee   : > { %v4760_v28 = vsel %vm4759_vm6, %v4751_v42, %v8852_v0 }
 0x4ef   : > { %v4762_v27 = vsel %vm4761_vm14, %v4752_v44, %v4760_v28 }
 0x4f0   : > { %4765 = vst.msk [vmem:[%s333_s9] sm:$0xf] %vm4764_vm9, %v4762_v27 }
 0x4f1 PF: > { %s17_s24 = sadd.s32 1, %s5199_s24  }
 0x4f2   : > { %p14_p4 = scmp.ge.s32.totalorder %s17_s24, 4  }
 0x4f4   :  { %16 = sbr.rel (!%p14_p4) target bundleno = 1 (0x1), region = 87 }

// kernel: object_module_forward.11
= control target key start
LH: loop header
LB: loop body
LE: loop exit
PB: predicated region body
PF: predicated region fallthrough
CT: control target
= control target key end

     0   :  { %s3145_s0 = inlined_call_operand.vmem [shape: f32[2,4,3,384], index: 0, kind: input, shape index: {}]   ;;  %s3146_s1 = inlined_call_operand.vmem [shape: f32[2,4,384], index: 1, kind: input, shape index: {}]   ;;  %s3147_s2 = inlined_call_operand.vmem [shape: f32[2,4,32], index: 2, kind: input, shape index: {}]   ;;  %s3148_s3 = inlined_call_operand.vmem [shape: f32[2,4,3], index: 3, kind: input, shape index: {}]   ;;  %s3149_s4 = inlined_call_operand.vmem [shape: f32[2,4,3,3], index: 4, kind: input, shape index: {}]   ;;  %s3150_s5 = inlined_call_operand.vmem [shape: f32[2,4,1], index: 5, kind: input, shape index: {}]   ;;  %s3151_s6 = inlined_call_operand.vmem [shape: f32[3,64], index: 6, kind: input, shape index: {}]   ;;  %s3152_s7 = inlined_call_operand.vmem [shape: f32[3,7], index: 7, kind: input, shape index: {}]   ;;  %s3153_s8 = inlined_call_operand.vmem [shape: f32[32,7], index: 8, kind: input, shape index: {}]   ;;  %s3154_s9 = inlined_call_operand.vmem [shape: f32[1,7], index: 9, kind: input, shape index: {}]   ;;  %s3155_s10 = inlined_call_operand.vmem [shape: f32[2,4,3,128], index: 10, kind: output, shape index: {0}]   ;;  %s3156_s11 = inlined_call_operand.hbm [shape: f32[2,4,128], index: 11, kind: output, shape index: {1}]   ;;  %s3157_s12 = inlined_call_operand.hbm [shape: f32[2,4,128], index: 12, kind: output, shape index: {2}]   ;;  %s3158_s13 = inlined_call_operand.vmem [shape: f32[2,4,3,64], index: 13, kind: output, shape index: {3}]   ;;  %s3159_s14 = inlined_call_operand.vmem [shape: f32[2,4,64], index: 14, kind: output, shape index: {4}]   ;;  %s3160_s15 = inlined_call_operand.vmem [shape: f32[2,4,64], index: 15, kind: output, shape index: {5}]   ;;  %s3161_s16 = inlined_call_operand.vmem [shape: f32[2,4,3], index: 16, kind: output, shape index: {6}]   ;;  %s3162_s17 = inlined_call_operand.vmem [shape: f32[2,4,3], index: 17, kind: output, shape index: {7}]   ;;  %s3163_s18 = inlined_call_operand.vmem [shape: f32[2,4,1], index: 18, kind: output, shape index: {8}]  }
   0x1   :  { %3166 = sst [smem:[#allocation10_spill]] %s3145_s0 }
   0x2   :  { %3167 = sst [smem:[#allocation11_spill]] %s3146_s1 }
   0x3   :  { %3168 = sst [smem:[#allocation12_spill]] %s3147_s2 }
   0x4   :  { %3169 = sst [smem:[#allocation13_spill]] %s3148_s3 }
   0x5   :  { %3170 = sst [smem:[#allocation14_spill]] %s3149_s4 }
   0x6   :  { %3171 = sst [smem:[#allocation15_spill]] %s3150_s5 }
   0x7   :  { %3172 = sst [smem:[#allocation16_spill]] %s3151_s6 }
   0x8   :  { %3173 = sst [smem:[#allocation17_spill]] %s3152_s7 }
   0x9   :  { %3174 = sst [smem:[#allocation18_spill]] %s3153_s8 }
   0xa   :  { %3175 = sst [smem:[#allocation19_spill]] %s3154_s9 }
   0xb   :  { %3176 = sst [smem:[#allocation20_spill]] %s3155_s10 }
   0xc   :  { %3177 = sst [smem:[#allocation21_spill]] %s3156_s11 }
   0xd   :  { %24 = vsyncpa [#allocation3], 0 }
   0xe   :  { %26 = vsyncpa [#allocation3 + $0x1], 0 }
   0xf   :  { %27 = vsyncpa [#allocation5], 0 }
  0x10   :  { %29 = vsyncpa [#allocation5 + $0x1], 0  ;;  %s2476_s27 = smov 0   ;;  %s2478_s28 = smov 0  }
  0x11   :  { %s2480_s29 = smov 0   ;;  %s2482_s30 = smov 0  }
  0x12 LB: > { %3178 = sst [smem:[#allocation8_spill]] %s2362_s29  ;;  %s2497_s0 = sadd.s32 4294967295, %s2366_s30   ;;  %s2366_s30 = sphi %s2482_s30, %s3209_s30   ;;  %s2362_s29 = sphi %s2480_s29, %s3206_s29   ;;  %s2358_s28 = sphi %s2478_s28, %s3208_s28   ;;  %s2354_s27 = sphi %s2476_s27, %s3207_s27  }
  0x13   : > { %s2111_s19 = sadd.s32 4294967294, %s2366_s30   ;;  %s2501_s1 = sadd.s32 1, %s2366_s30  }
  0x14   : > { %s308_s20 = sadd.s32 1, %s2362_s29  ;;  %s305_s21 = ssub.s32 %s2366_s30, %s2501_s1 }
  0x15   : > { %p318_p0 = scmp.ne.s32.totalorder %s2362_s29, %s2358_s28  ;;  %p306_p1 = scmp.eq.s32.totalorder %s305_s21, 0 }
  0x16   : > { %p319_p2 = scmp.eq.s32.totalorder %s2497_s0, 1  ;;  %p324_p3 = scmp.ne.s32.totalorder %s2358_s28, %s2354_s27 }
  0x17   : > { %p325_p4 = scmp.eq.s32.totalorder %s2111_s19, 1  ;;  %p2114_p7 = scmp.ge.s32.totalorder %s2366_s30, 1 }
  0x18   : > { %s2512_s22 = scalar_select %p306_p1, %s2362_s29, %s308_s20  }
  0x19   : > { %p2514_p5 = por %p319_p2, %p318_p0  ;;  %p2518_p6 = por %p325_p4, %p324_p3 }
  0x1a   : > { %3179 = sst [smem:[#allocation9_spill]] %s2512_s22  ;;  %p582_p8 = scmp.lt.s32.totalorder %s2366_s30, 3 }
  0x1c   : > { %p583_p9 = pnand %p2114_p7, %p582_p8 }
  0x1d   : > { %s3182_s8 = sld [smem:[#allocation18_spill]] (!%p583_p9)  ;;  %v849_v3 = vlaneseq (!%p583_p9)  ;;  %v2368_v4 = vmov (!%p583_p9), 0.0|0.0   ;;  %vm2369_vm0 = vmmov (!%p583_p9), 0   ;;  %v2370_v7 = vmov (!%p583_p9), 0.0   ;;  %p693_p10 = scmp.lt.s32.totalorder (!%p583_p9), %s2497_s0, 1 }
  0x1e   : > { %586 = sbr.rel (%p583_p9) target bundleno = 600 (0x258), region = 60  ;;  %2167 = vmatprep.subr.bf16.mxu0 (!%p583_p9), %v2368_v4  ;;  %2164 = vmatprep.mubr.msk.f32.mxu0 (!%p583_p9), %vm2369_vm0, %v2370_v7  ;;  %v2371_v9 = vmov (!%p583_p9), 1   ;;  %s3183_s7 = sld [smem:[#allocation17_spill]] (!%p583_p9)  ;;  %v2372_v12 = vmov (!%p583_p9), 0   ;;  %vm775_vm1 = vcmask (!%p583_p9), 261120   ;;  %v2373_v25 = vmov (!%p583_p9), 2  }
  0x1f   : > { %v2539_v8 = vshrl.u32 (!%p583_p9), %v849_v3, 7  ;;  %2232 = vset.pattern.permute.xlu0 (!%p583_p9), %v2371_v9  ;;  %2230 = vset.pattern.permute.xlu1 (!%p583_p9), %v2372_v12  ;;  %s3184_s20 = sld [smem:[#allocation12_spill]] (!%p583_p9)  ;;  %s3185_s4 = sld [smem:[#allocation14_spill]] (!%p583_p9)  ;;  %v2374_v28 = vmov (!%p583_p9), 5   ;;  %v2375_v29 = vmov (!%p583_p9), 6   ;;  %vm1337_vm2 = vcmask (!%p583_p9), 519168  }
  0x20   : > { %s3186_s3 = sld [smem:[#allocation13_spill]] (!%p583_p9)  ;;  %s3188_s5 = sld [smem:[#allocation15_spill]] (!%p583_p9)  ;;  %v2376_v54 = vmov (!%p583_p9), 1966171168   ;;  %vm1285_vm3 = vcmask (!%p583_p9), 518144   ;;  %vm2378_vm6 = vmmov (!%p583_p9), 1  }
  0x21   : > { %v2552_v13 = vsub.s32 (!%p583_p9), 0, %v2539_v8  ;;  %v2555_v14 = vsub.s32 (!%p583_p9), 1, %v2539_v8  ;;  %v2558_v15 = vsub.s32 (!%p583_p9), 2, %v2539_v8  ;;  %v1109_v55 = vunpack.c.l.s4 (!%p583_p9), %v2376_v54  ;;  %s3189_s9 = sld [smem:[#allocation19_spill]] (!%p583_p9)  ;;  %s3190_s6 = sld [smem:[#allocation16_spill]] (!%p583_p9) }
  0x22   : > { %s3194_s10 = sld [smem:[#allocation20_spill]] (!%p583_p9)  ;;  %vm1447_vm0 = vcmask (!%p583_p9), 1041409   ;;  %s3203_s11 = sld [smem:[#allocation21_spill]] (!%p583_p9) }
  0x23   : > { %v765_v0 = vld [vmem:[%s3182_s8] sm:$0xff] (!%p583_p9)  ;;  %v766_v1 = vld [vmem:[%s3182_s8 + $0x8] sm:$0xff] (!%p583_p9)  ;;  %v767_v2 = vld [vmem:[%s3182_s8 + $0x10] sm:$0xff] (!%p583_p9)  ;;  %v1110_v57 = vunpack.c.0.s8 (!%p583_p9), %v1109_v55 }
  0x24   : > { %v2168_v5 = vpack.c.bf16 (!%p583_p9), %v766_v1, %v765_v0  ;;  %v768_v6 = vld [vmem:[%s3182_s8 + $0x18] sm:$0xff] (!%p583_p9)  ;;  %v2548_v11 = vld [vmem:[%s3183_s7] sm:$0x7] (!%p583_p9)  ;;  %s2379_s7 = smov (!%p583_p9), [#allocation2]  }
  0x25   : > { %v2171_v10 = vpack.c.bf16 %v768_v6, %v767_v2  ;;  %s2543_s24 = scalar_select %p693_p10, %s2497_s0, 1  ;;  %v852_v16 = vrot.slane %v2548_v11, %v2552_v13  ;;  %v910_v17 = vrot.slane %v2548_v11, %v2558_v15  ;;  %v879_v19 = vrot.slane %v2548_v11, %v2555_v14 }
  0x26   : > { %2169 = vmatpush3.bf16.msra.mxu0 %v2168_v5  ;;  %v2659_v60 = vsub.s32 %v1110_v57, %v2539_v8  ;;  %v961_v5 = vsub.s32 3, %v2539_v8  ;;  %v2377_v6 = vmov 4   ;;  %s2276_s8 = sshll.u32 %s2379_s7, 4  ;;  %s2277_s8 = int_to_ptr.vmem [resolvable:$false] %s2276_s8 }
  0x27   : > { %2170 = vmatprep.subr.bf16.mxu0 %v2368_v4  ;;  %s2561_s29 = sshll.u32 %s2543_s24, 2  ;;  %1292 = vbcast.lane.b32.xlu0 %v852_v16, 261  ;;  %s2574_s25 = sshll.u32 %s2543_s24, 4  ;;  %v2133_v59 = vld [vmem:[%s3189_s9] ss:$0 sm:$0xff] }
  0x28   : > { %s706_s21 = scalar_lea.vmem %s3184_s20, %s2561_s29  ;;  %1311 = vbcast.lane.b32.xlu1 %v910_v17, 261  ;;  %s715_s19 = scalar_lea.vmem %s3185_s4, %s2574_s25 }
  0x29   : > { %v755_v18 = vld [vmem:[%s706_s21] sm:$0xf]  ;;  %v758_v20 = vld [vmem:[%s715_s19 + $0x4] sm:$0x7]  ;;  %v2586_v22 = vld [vmem:[%s715_s19 + $0xc] sm:$0x7]  ;;  %s710_s26 = scalar_lea.vmem %s3186_s3, %s2561_s29  ;;  %s719_s20 = scalar_lea.vmem %s3188_s5, %s2561_s29 }
  0x2a   : > { %2172 = vmatpush3.bf16.msra.mxu0 %v2171_v10  ;;  %v2580_v21 = vld [vmem:[%s715_s19] sm:$0x7]  ;;  %v2588_v23 = vld [vmem:[%s715_s19 + $0x8] sm:$0x7]  ;;  %s2173_s22 = smul.u32 48, %s2543_s24  ;;  %s3187_s21 = sld [smem:[#allocation10_spill]] }
  0x2b   : > { %1301 = vbcast.lane.b32.xlu0 %v879_v19, 261  ;;  %v2597_v24 = vld [vmem:[%s710_s26] sm:$0xf]  ;;  %s737_s4 = scalar_lea.vmem %s3160_s15, %s2561_s29  ;;  %s2174_s19 = smul.u32 12, %s2543_s24 }
  0x2c   : > { %854 = vbcast.lane.b32.xlu1 %v852_v16, 256  ;;  %v1256_v26 = vrot.slane %v2597_v24, %v2552_v13  ;;  %v1270_v27 = vrot.slane %v2597_v24, %v2558_v15  ;;  %v761_v56 = vld [vmem:[%s719_s20] sm:$0xf]  ;;  %v1263_v16 = vrot.slane %v2597_v24, %v2555_v14  ;;  %s2900_s20 = scalar_lea.vmem %s3194_s10, %s2574_s25  ;;  %s2278_s9 = scalar_lea.vmem %s2277_s8, 128 }
  0x2d   : > { %2165 = vmatmul.mubr.msk.f32.vlgmr.msra.gmra.mrb[0].mxu0 %vm775_vm1, %v755_v18  ;;  %v1503_v58 = vsub.f32 1.0, %v761_v56  ;;  %v1277_v18 = vrot.slane %v2597_v24, %v961_v5  ;;  %vm1656_vm1 = vcmask 1045509  }
  0x2f   : > { %912 = vbcast.lane.b32.xlu0 %v910_v17, 256  ;;  %v1560_v62 = vrot.slane %v1503_v58, %v2659_v60 }
  0x30   : > { %881 = vbcast.lane.b32.xlu1 %v879_v19, 256  ;;  %s2611_s26 = scalar_lea.vmem %s3187_s21, %s2173_s22  ;;  %s733_s21 = scalar_lea.vmem %s3159_s14, %s2561_s29 }
  0x31   : > { %v2618_v33 = vld [vmem:[%s2611_s26 + $0x24] sm:$0x77]  ;;  %v2621_v34 = vld [vmem:[%s2611_s26 + $0x18] sm:$0x77]  ;;  %v2663_v1 = vrot.slane %v1560_v62, %v2659_v60  ;;  %v1561_v19 = vcombine.high %v1560_v62, %v1560_v62  ;;  %v2708_v57 = vld [vmem:[%s2611_s26 + $0xc] sm:$0x77]  ;;  %s2753_s22 = scalar_lea.vmem %s3158_s13, %s2574_s25 }
  0x32   : > { %v871_v35 = vrot.slane %v2618_v33, %v2552_v13  ;;  %v898_v36 = vrot.slane %v2618_v33, %v2555_v14  ;;  %v867_v38 = vrot.slane %v2621_v34, %v2552_v13  ;;  %v894_v40 = vrot.slane %v2621_v34, %v2555_v14  ;;  %s2985_s25 = sand.u32 1, %s2358_s28  }
  0x33   : > { %1202 = vperm.xlu0 %2232, %v758_v20   ;;  %v929_v46 = vrot.slane %v2618_v33, %v2558_v15  ;;  %v925_v47 = vrot.slane %v2621_v34, %v2558_v15  ;;  %v1581_v2 = vrot.slane %v2663_v1, %v2552_v13  ;;  %s1713_s5 = scalar_lea.sflag [#allocation3], %s2985_s25 }
  0x34   : > { %1176 = vperm.xlu1 %2230, %v758_v20  }
  0x37   : > { %2233 = vset.pattern.permute.xlu0 %v2372_v12 }
  0x38   : > { %2231 = vset.pattern.permute.xlu1 %v2371_v9  ;;  %1171 = vperm.xlu0 %2233, %v2580_v21  }
  0x39   : > { %1198 = vperm.xlu1 %2231, %v2580_v21  }
  0x3c   : > { %1186 = vperm.xlu0 %2233, %v2586_v22  }
  0x3d   : > { %2234 = vset.pattern.permute.xlu1 %v2372_v12 }
  0x3e   : > { %1181 = vperm.xlu1 %2234, %v2588_v23  }
  0x40   : > { %2239 = vset.pattern.permute.xlu0 %v2373_v25 }
  0x41   : > { %1230 = vperm.xlu0 %2239, %v758_v20   ;;  %v1633_v20 = vmul.f32 -1e+08, %v761_v56 }
  0x42   : > { %2235 = vset.pattern.permute.xlu1 %v2371_v9 }
  0x43   : > { %1206 = vperm.xlu1 %2235, %v2588_v23  }
  0x45   : > { %1258 = vbcast.lane.b32.xlu0 %v1256_v26, 256 }
  0x46   : > { %2241 = vset.pattern.permute.xlu0 %v2374_v28 }
  0x47   : > { %2236 = vset.pattern.permute.xlu1 %v2375_v29 }
  0x49   : > { %1272 = vbcast.lane.b32.xlu0 %v1270_v27, 256 }
  0x99   : > { %v2613_v31 = vpop.permute.xlu0 %1292 }
  0x9a   : > { %v2605_v30 = vpop.permute.xlu1 %1311 }
  0x9d   : > { %v2627_v37 = vpop.permute.xlu0 %1301 }
  0x9e   : > { %v2615_v32 = vpop.permute.xlu1 %854 }
  0x9f   : > { %v875_v41 = vmul.f32 %v871_v35, %v2615_v32  ;;  %v874_v43 = vmul.f32 %v867_v38, %v2615_v32 }
  0xa1   : > { %v2639_v45 = vpop.permute.xlu0 %912 }
  0xa2   : > { %v2631_v39 = vpop.permute.xlu1 %881  ;;  %v933_v49 = vmul.f32 %v929_v46, %v2639_v45  ;;  %v932_v51 = vmul.f32 %v925_v47, %v2639_v45 }
  0xa3   : > { %v902_v42 = vmul.f32 %v898_v36, %v2631_v39  ;;  %v901_v44 = vmul.f32 %v894_v40, %v2631_v39  ;;  %v762_v36 = vld [vmem:[%s3190_s6] sm:$0x7] }
  0xa4   : > { %v1297_v40 = vrot.slane %v762_v36, %v2552_v13  ;;  %v1316_v46 = vrot.slane %v762_v36, %v2558_v15 }
  0xa5   : > { %v906_v48 = vadd.f32 %v902_v42, %v875_v41  ;;  %v905_v50 = vadd.f32 %v901_v44, %v874_v43  ;;  %v1306_v41 = vrot.slane %v762_v36, %v2555_v14 }
  0xa6   : > { %v1298_v44 = vmul.f32 %v1297_v40, %v2613_v31 }
  0xa7   : > { %v2647_v52 = vadd.f32 %v933_v49, %v906_v48  ;;  %v2649_v53 = vadd.f32 %v932_v51, %v905_v50  ;;  %v1307_v47 = vmul.f32 %v1306_v41, %v2627_v37  ;;  %v1317_v50 = vmul.f32 %v1316_v46, %v2605_v30 }
  0xa8   : > { %v890_v37 = vrot.slane %v2708_v57, %v2555_v14  ;;  %v1168_v30 = vmul.f32 0.2, %v762_v36 }
  0xa9   : > { %v1308_v51 = vadd.f32 %v1307_v47, %v1298_v44 }
  0xab   : > { %v1318_v54 = vadd.f32 %v1317_v50, %v1308_v51 }
  0xad   : > { %v1331_v31 = vrot.slane %v1318_v54, %v2555_v14 }
  0xb2   : > { %v1203_v28 = vpop.permute.xlu0 %1202 }
  0xb3   : > { %v1177_v38 = vpop.permute.xlu1 %1176 }
  0xb7   : > { %v1172_v29 = vpop.permute.xlu0 %1171 }
  0xb8   : > { %v1199_v43 = vpop.permute.xlu1 %1198 }
  0xbb   : > { %v2692_v35 = vpop.permute.xlu0 %1186 }
  0xbd   : > { %v1182_v49 = vpop.permute.xlu1 %1181 }
  0xc0   : > { %v2699_v42 = vpop.permute.xlu0 %1230 }
  0xc2   : > { %v1207_v56 = vpop.permute.xlu1 %1206 }
  0xc4   : > { %v1259_v48 = vpop.permute.xlu0 %1258 }
  0xc8   : > { %v2705_v55 = vpop.permute.xlu0 %1272 }
 0x100   : > { %v845_v61 = vpop.f32.mrb[0].mxu0 }
 0x101   : > { %v846_v63 = vadd.f32 %v2133_v59, %v845_v61  ;;  %v2166_v0 = vpop.f32.mrb[1].mxu0  ;;  %v863_v59 = vrot.slane %v2708_v57, %v2552_v13 }
 0x103   : > { %1324 = vperm.xlu0 %2241, %v846_v63   ;;  %1333 = vperm.xlu1 %2236, %v846_v63   ;;  %v948_v4 = vrot.slane %v846_v63, %v2555_v14  ;;  %v1114_v10 = vrot.slane %v846_v63, %v2659_v60  ;;  %v955_v24 = vrot.slane %v846_v63, %v2558_v15 }
 0x105   : > { %v1122_v17 = vrot.slane %v1114_v10, %v2659_v60 }
 0x107   : > { %2242 = vset.pattern.permute.xlu0 %v2372_v12  ;;  %2237 = vset.pattern.permute.xlu1 %v2371_v9  ;;  %v962_v9 = vrot.slane %v846_v63, %v961_v5  ;;  %v1130_v26 = vcombine.high %v1122_v17, %v1122_v17  ;;  %v873_v5 = vmul.f32 %v863_v59, %v2615_v32 }
 0x108   : > { %1620 = vperm.xlu0 %2242, %v1503_v58   ;;  %1210 = vperm.xlu1 %2237, %v2586_v22   ;;  %v1322_v58 = vrot.slane %v1318_v54, %v2552_v13 }
 0x10c   : > { %1595 = vperm.xlu0 %2242, %v1581_v2   ;;  %2238 = vset.pattern.permute.xlu1 %v2373_v25  ;;  %v1115_v25 = vcombine.high %v1114_v10, %v1114_v10  ;;  %v1216_v10 = vrot.slane %v1168_v30, %v2555_v14 }
 0x10d   : > { %1226 = vperm.xlu1 %2238, %v2580_v21   ;;  %v2683_v21 = vrot.slane %v1561_v19, %v2659_v60 }
 0x10e   : > { %v1219_v40 = vmul.f32 %v1216_v10, %v1207_v56  ;;  %v1218_v44 = vmul.f32 %v1216_v10, %v1203_v28 }
 0x110   : > { %950 = vbcast.lane.b32.xlu0 %v948_v4, 256 }
 0x111   : > { %1234 = vperm.xlu1 %2238, %v2588_v23   ;;  %2244 = vset.pattern.permute.xlu0 %v2377_v6  ;;  %v941_v23 = vrot.slane %v846_v63, %v2552_v13 }
 0x114   : > { %964 = vbcast.lane.b32.xlu0 %v962_v9, 256  ;;  %v921_v9 = vrot.slane %v2708_v57, %v2558_v15 }
 0x115   : > { %1238 = vperm.xlu1 %2238, %v2586_v22   ;;  %v1585_v22 = vrot.slane %v2683_v21, %v2552_v13 }
 0x118   : > { %1133 = vperm.xlu0 %2244, %v1122_v17  }
 0x119   : > { %1265 = vbcast.lane.b32.xlu1 %v1263_v16, 256  ;;  %v1192_v16 = vrot.slane %v1168_v30, %v2552_v13 }
 0x11a   : > { %2240 = vset.pattern.permute.xlu1 %v2377_v6 }
 0x11b   : > { %v1193_v19 = vmul.f32 %v1192_v16, %v1172_v29  ;;  %v1195_v36 = vmul.f32 %v1192_v16, %v1182_v49  ;;  %v1194_v46 = vmul.f32 %v1192_v16, %v1177_v38 }
 0x11c   : > { %2247 = vset.pattern.permute.xlu0 %v2372_v12 }
 0x11d   : > { %1279 = vbcast.lane.b32.xlu1 %v1277_v18, 256  ;;  %v1223_v28 = vadd.f32 %v1219_v40, %v1195_v36 }
 0x121   : > { %996 = vperm.xlu1 %2240, %v2548_v11   ;;  %v1129_v11 = vrot.slane %v1115_v25, %v2659_v60  ;;  %v1244_v25 = vrot.slane %v1168_v30, %v2558_v15 }
 0x123   : > { %v1131_v27 = vcombine.high %v1129_v11, %v1129_v11 }
 0x125   : > { %2243 = vset.pattern.permute.xlu1 %v2372_v12 }
 0x126   : > { %1636 = vperm.xlu1 %2243, %v1633_v20   ;;  %v1217_v20 = vmul.f32 %v1216_v10, %v1199_v43 }
 0x12a   : > { %1599 = vperm.xlu1 %2243, %v1585_v22  }
 0x12e   : > { %943 = vbcast.lane.b32.xlu1 %v941_v23, 256  ;;  %v931_v23 = vmul.f32 %v921_v9, %v2639_v45 }
 0x12f   : > { %2245 = vset.pattern.permute.xlu1 %v2377_v6  ;;  %v900_v6 = vmul.f32 %v890_v37, %v2631_v39 }
 0x131   : > { %v904_v22 = vadd.f32 %v900_v6, %v873_v5 }
 0x132   : > { %957 = vbcast.lane.b32.xlu1 %v955_v24, 256  ;;  %v2737_v24 = vld [vmem:[%s2611_s26] sm:$0x77]  ;;  %s3165_s26 = sshll.u32 %s2497_s0, 6 }
 0x133   : > { %v859_v41 = vrot.slane %v2737_v24, %v2552_v13  ;;  %v935_v43 = vadd.f32 %v931_v23, %v904_v22  ;;  %v886_v49 = vrot.slane %v2737_v24, %v2555_v14  ;;  %v1222_v14 = vadd.f32 %v1218_v44, %v1194_v46 }
 0x134   : > { %v917_v6 = vrot.slane %v2737_v24, %v2558_v15 }
 0x135   : > { %v872_v37 = vmul.f32 %v859_v41, %v2615_v32 }
 0x136   : > { %1141 = vperm.xlu1 %2245, %v1129_v11  }
 0x13a   : > { %1149 = vperm.xlu1 %2245, %v1130_v26  }
 0x13e   : > { %1157 = vperm.xlu1 %2245, %v1131_v27   ;;  %v1221_v27 = vadd.f32 %v1217_v20, %v1193_v19  ;;  %v1196_v20 = vmul.f32 %v1192_v16, %v2692_v35  ;;  %v2800_v16 = vsub.s32 6, %v2539_v8 }
 0x142   : > { %2246 = vset.pattern.permute.xlu1 %v2372_v12 }
 0x182   : > { %v1325_v61 = vpop.permute.xlu0 %1324  ;;  %v1334_v62 = vpop.permute.xlu1 %1333 }
 0x183   : > { %v1327_v63 = vadd.f32 %v1325_v61, %v1322_v58  ;;  %v1336_v0 = vadd.f32 %v1334_v62, %v1331_v31 }
 0x185   : > { %v2139_v2 = vmul.f32 -1.442695, %v1327_v63  ;;  %v2140_v4 = vmul.f32 -1.442695, %v1336_v0  ;;  %1338 = vst.msk [vmem:[%s733_s21] sm:$0xf] %vm1337_vm2, %v1327_v63  ;;  %v1246_v63 = vmul.f32 %v1244_v25, %v2699_v42 }
 0x186   : > { %1339 = vst.msk [vmem:[%s737_s4] sm:$0xf] %vm1337_vm2, %v1336_v0  ;;  %s3191_s21 = sld [smem:[#allocation11_spill]]  ;;  %s3055_s4 = scalar_lea.hbm %s3203_s11, %s3165_s26 }
 0x187   : > { %2248 = vpow2.f32 %v2139_v2  ;;  %v2732_v17 = vpop.permute.xlu0 %1620  ;;  %v1211_v18 = vpop.permute.xlu1 %1210  ;;  %v1250_v22 = vadd.f32 %v1246_v63, %v1222_v14 }
 0x188   : > { %2250 = vpow2.f32 %v2140_v4  ;;  %v899_v4 = vmul.f32 %v886_v49, %v2631_v39  ;;  %v1220_v9 = vmul.f32 %v1216_v10, %v1211_v18 }
 0x18a   : > { %v903_v10 = vadd.f32 %v899_v4, %v872_v37  ;;  %v1224_v18 = vadd.f32 %v1220_v9, %v1196_v20  ;;  %v1624_v4 = vrot.slane %v2732_v17, 7 }
 0x18b   : > { %v2740_v11 = vpop.permute.xlu0 %1595 }
 0x18c   : > { %v1227_v26 = vpop.permute.xlu1 %1226  ;;  %s702_s3 = scalar_lea.vmem %s3191_s21, %s2174_s19  ;;  %s2115_s21 = sshll.u32 %s2985_s25, 2 }
 0x18d   : > { %v1245_v29 = vmul.f32 %v1244_v25, %v1227_v26  ;;  %v2747_v51 = vld [vmem:[%s702_s3] sm:$0xff]  ;;  %v2791_v26 = vsub.s32 4, %v2539_v8  ;;  %s3023_s3 = scalar_lea.vmem [#allocation2], %s2115_s21  ;;  %s3040_s24 = scalar_lea.vmem [#allocation4], %s2115_s21 }
 0x18e   : > { %v2765_v30 = vrot.slane %v2747_v51, %v2659_v60  ;;  %s1759_s21 = sshll.u32 %s3023_s3, 4  ;;  %s1760_s21 = int_to_ptr.vmem [resolvable:$true] %s1759_s21 }
 0x18f   : > { %v1249_v47 = vadd.f32 %v1245_v29, %v1221_v27  ;;  %v951_v50 = vpop.permute.xlu0 %950  ;;  %v2794_v27 = vsub.s32 5, %v2539_v8  ;;  %v1006_v29 = vrot.slane %v2737_v24, %v2791_v26  ;;  %v1018_v14 = vrot.slane %v2618_v33, %v2791_v26  ;;  %s2272_s6 = scalar_lea.vmem %s1760_s21, 64  ;;  %p2279_p0 = scmp.lt.s32.totalorder %s1760_s21, %s2277_s8 }
 0x190   : > { %v2757_v54 = vadd.f32 %v951_v50, %v935_v43  ;;  %v1235_v56 = vpop.permute.xlu1 %1234  ;;  %v1512_v39 = vcombine.high %v2765_v30, %v2765_v30  ;;  %v1070_v50 = vrot.slane %v2737_v24, %v2800_v16  ;;  %p2273_p11 = scmp.ne.s32.totalorder %s1760_s21, %s2272_s6  ;;  %p2280_p1 = scmp.lt.s32.totalorder %s2278_s9, %s2272_s6 }
 0x191   : > { %v2249_v58 = vpop.eup %2248  ;;  %v2759_v38 = vadd.f32 %v1259_v48, %v1249_v47  ;;  %v1247_v31 = vmul.f32 %v1244_v25, %v1235_v56  ;;  %v1030_v41 = vrot.slane %v2737_v24, %v2794_v27  ;;  %v1034_v43 = vrot.slane %v2708_v57, %v2794_v27 }
 0x192   : > { %v2251_v59 = vpop.eup %2250  ;;  %v1343_v61 = vadd.f32 1.0, %v2249_v58  ;;  %v2136_v62 = vmul.f32 -1.442695, %v2757_v54  ;;  %v2797_v35 = vrot.slane %v1512_v39, %v2659_v60  ;;  %v1010_v47 = vrot.slane %v2708_v57, %v2791_v26  ;;  %p2274_p12 = pnand %p2273_p11, %p2514_p5  ;;  %p2281_p2 = por %p2280_p1, %p2279_p0 }
 0x193   : > { %v1350_v0 = vadd.f32 1.0, %v2251_v59  ;;  %1286 = vst.msk [vmem:[%s2753_s22] sm:$0x7] %vm1285_vm3, %v2759_v38  ;;  %v1251_v48 = vadd.f32 %v1247_v31, %v1223_v28  ;;  %v965_v2 = vpop.permute.xlu0 %964  ;;  %v1074_v28 = vrot.slane %v2708_v57, %v2800_v16  ;;  %v1014_v31 = vrot.slane %v2621_v34, %v2791_v26 }
 0x194   : > { %2252 = vpow2.f32 %v2136_v62  ;;  %v2773_v32 = vadd.f32 %v965_v2, %v2647_v52  ;;  %v1239_v5 = vpop.permute.xlu1 %1238  ;;  %v1536_v46 = vrot.slane %v2797_v35, %v2552_v13  ;;  %v1528_v49 = vcombine.high %v2797_v35, %v2797_v35  ;;  %p2275_p13 = pneg %p2274_p12 }
 0x195   : > { %2254 = vrcp.f32 %v1350_v0  ;;  %v2778_v42 = vadd.f32 %v2705_v55, %v1251_v48  ;;  %v1248_v52 = vmul.f32 %v1244_v25, %v1239_v5  ;;  %v930_v55 = vmul.f32 %v917_v6, %v2639_v45 }
 0x196   : > { %v2138_v19 = vmul.f32 -1.442695, %v2773_v32  ;;  %2256 = vrcp.f32 %v1343_v61  ;;  %v1038_v59 = vrot.slane %v2621_v34, %v2794_v27  ;;  %v1078_v62 = vrot.slane %v2621_v34, %v2800_v16  ;;  %p2282_p3 = pnand %p2281_p2, %p2275_p13 }
 0x197   : > { %1288 = vst.msk [vmem:[%s2753_s22 + $0x8] sm:$0x7] %vm1285_vm3, %v2778_v42  ;;  %v1252_v45 = vadd.f32 %v1248_v52, %v1224_v18  ;;  %v2805_v36 = vadd.f32 %v930_v55, %v903_v10  ;;  %v1042_v63 = vrot.slane %v2618_v33, %v2794_v27  ;;  %v1082_v0 = vrot.slane %v2618_v33, %v2800_v16 }
 0x198   : > { %2258 = vpow2.f32 %v2138_v19  ;;  %v1266_v15 = vpop.permute.xlu1 %1265  ;;  %v1623_v2 = vrot.slane %v2732_v17, 6  ;;  %v1622_v34 = vrot.slane %v2732_v17, 5  ;;  %v2847_v5 = vrot.slane %v1528_v49, %v2552_v13 }
 0x199   : > { %v2788_v23 = vadd.f32 %v1266_v15, %v1250_v22  ;;  %v1671_v15 = vrot.slane %v2732_v17, 1  ;;  %v1673_v49 = vrot.slane %v2732_v17, 3 }
 0x19b   : > { %1287 = vst.msk [vmem:[%s2753_s22 + $0x4] sm:$0x7] %vm1285_vm3, %v2788_v23 }
 0x19c   : > { %v1280_v25 = vpop.permute.xlu1 %1279 }
 0x19d   : > { %v2807_v40 = vadd.f32 %v1280_v25, %v1252_v45  ;;  %v2866_v25 = vmul.f32 %v1623_v2, %v2757_v54 }
 0x19e   : > { %v2253_v44 = vpop.eup %2252 }
 0x19f   : > { %v2255_v56 = vpop.eup %2254  ;;  %v983_v58 = vadd.f32 1.0, %v2253_v44  ;;  %1289 = vst.msk [vmem:[%s2753_s22 + $0xc] sm:$0x7] %vm1285_vm3, %v2807_v40 }
 0x1a0   : > { %v2257_v37 = vpop.eup %2256  ;;  %v2832_v61 = vpop.permute.xlu1 %996  ;;  %vm1353_vm4 = vcmp.gt.f32.partialorder %v2255_v56, 0.5  ;;  %v2872_v56 = vmul.f32 %v2732_v17, %v2773_v32 }
 0x1a1   : > { %2260 = vrcp.f32 %v983_v58  ;;  %vm1346_vm5 = vcmp.gt.f32.partialorder %v2257_v37, 0.5  ;;  %vm1354_vm7 = vmxor %vm1353_vm4, %vm2378_vm6  ;;  %v1048_v57 = vmul.f32 %v1034_v43, %v2832_v61  ;;  %v2852_v19 = vmul.f32 %v1074_v28, %v2832_v61 }
 0x1a2   : > { %v2259_v48 = vpop.eup %2258  ;;  %vm1355_vm8 = vmand %vm1346_vm5, %vm1354_vm7  ;;  %v1049_v39 = vmul.f32 %v1038_v59, %v2832_v61  ;;  %v1024_v55 = vmul.f32 %v1010_v47, %v2832_v61  ;;  %v2863_v45 = vmul.f32 %v1078_v62, %v2832_v61  ;;  %v1025_v58 = vmul.f32 %v1014_v31, %v2832_v61 }
 0x1a3   : > { %v1356_v6 = vsel %vm1355_vm8, 1, %v2372_v12  ;;  %v2141_v9 = vsel %vm1355_vm8, 1.0, %v2370_v7  ;;  %v985_v20 = vadd.f32 1.0, %v2259_v48  ;;  %v1056_v18 = vrot.slane %v1048_v57, 1 }
 0x1a4   : > { %v1363_v52 = vrot.slane %v1356_v6, %v2659_v60  ;;  %v1498_v22 = vsel %vm1337_vm2, %v2141_v9, 0.0  ;;  %v1672_v7 = vrot.slane %v2732_v17, 2  ;;  %v1096_v47 = vrot.slane %v2852_v19, 2 }
 0x1a5   : > { %1499 = vadd.xlane.f32.xlu1 %v1498_v22  ;;  %v2858_v10 = vpop.permute.xlu1 %1636  ;;  %v1057_v28 = vrot.slane %v1049_v39, 1  ;;  %2262 = vrcp.f32 %v985_v20  ;;  %v1064_v57 = vadd.f32 %v1056_v18, %v1024_v55  ;;  %v1097_v48 = vrot.slane %v2863_v45, 2 }
 0x1a6   : > { %v1364_v43 = vcombine.high %v1363_v52, %v1363_v52  ;;  %v1371_v44 = vrot.slane %v1363_v52, %v2659_v60  ;;  %v2880_v32 = vmul.f32 %v1018_v14, %v2832_v61  ;;  %v1639_v9 = vrot.slane %v2858_v10, 6 }
 0x1a7   : > { %v1638_v19 = vrot.slane %v2858_v10, 5  ;;  %vm1449_vm2 = vcmask 1042434   ;;  %vm1660_vm4 = vcmask 1046534   ;;  %vm1451_vm6 = vcmask 1043459  }
 0x1a8   : > { %vm1381_vm9 = vcmp.ne.s32.totalorder %v1371_v44, 0  ;;  %v1378_v59 = vrot.slane %v1364_v43, %v2659_v60  ;;  %v1379_v54 = vcombine.high %v1371_v44, %v1371_v44  ;;  %v1050_v43 = vmul.f32 %v1042_v63, %v2832_v61 }
 0x1a9   : > { %v1600_v37 = vpop.permute.xlu1 %1599  ;;  %v1385_v62 = vsel %vm1381_vm9, 1, %v2372_v12  ;;  %v1065_v63 = vadd.f32 %v1057_v28, %v1025_v58  ;;  %vm1663_vm7 = vcmask 1047559   ;;  %vm1618_vm8 = vcmp.gt.f32.partialorder %v2747_v51, 0.0 }
 0x1aa   : > { %v1392_v2 = vrot.slane %v1385_v62, %v2552_v13  ;;  %vm1382_vm10 = vcmp.ne.s32.totalorder %v1378_v59, 0  ;;  %vm1383_vm11 = vcmp.ne.s32.totalorder %v1379_v54, 0  ;;  %v1380_v31 = vcombine.high %v1378_v59, %v1378_v59 }
 0x1ab   : > { %v2261_v6 = vpop.eup %2260  ;;  %v1386_v39 = vsel %vm1382_vm10, 1, %v2372_v12  ;;  %v1387_v20 = vsel %vm1383_vm11, 1, %v2372_v12  ;;  %v1058_v28 = vrot.slane %v1050_v43, 1  ;;  %v1646_v26 = vadd.f32 %v1639_v9, %v2866_v25 }
 0x1ac   : > { %v1550_v52 = vmul.f32 %v2261_v6, %v1536_v46  ;;  %vm2890_vm12 = vcmp.eq.s32.totalorder %v1392_v2, 1  ;;  %v1396_v22 = vrot.slane %v1386_v39, %v2552_v13  ;;  %v1400_v55 = vrot.slane %v1387_v20, %v2552_v13 }
 0x1ad   : > { %v944_v18 = vpop.permute.xlu1 %943  ;;  %v1409_v35 = vsel %vm2890_vm12, %v2759_v38, 1e+30  ;;  %v1456_v46 = vsel %vm2890_vm12, %v2759_v38, -1e+30  ;;  %vm2908_vm13 = vcmp.ne.s32.totalorder %v1380_v31, 0  ;;  %v1640_v2 = vrot.slane %v2858_v10, 7 }
 0x1ae   : > { %v1611_v44 = vmul.f32 %v1600_v37, %v1550_v52  ;;  %v966_v59 = vadd.f32 %v944_v18, %v2805_v36  ;;  %v1413_v54 = vsel %vm1285_vm3, %v1409_v35, inf  ;;  %vm2915_vm14 = vcmp.eq.s32.totalorder %v1396_v22, 1 }
 0x1af   : > { %1414 = vmin.xlane.f32.xlu0 %v1413_v54  ;;  %v1410_v38 = vsel %vm2915_vm14, %v2788_v23, 1e+30  ;;  %vm2923_vm15 = vcmp.eq.s32.totalorder %v1400_v55, 1  ;;  %v1681_v39 = vrot.slane %v2858_v10, 1  ;;  %v1460_v52 = vsel %vm1285_vm3, %v1456_v46, -inf  ;;  %v1134_v54 = vpop.permute.xlu0 %1133 }
 0x1b0   : > { %1615 = vst [vmem:[%s2900_s20 + $0x4] sm:$0x7] %v1611_v44  ;;  %v2135_v36 = vmul.f32 -1.442695, %v966_v59  ;;  %v1629_v37 = vmul.f32 %v1622_v34, %v966_v59  ;;  %v1416_v6 = vsel %vm1285_vm3, %v1410_v38, inf  ;;  %v1388_v58 = vsel %vm2908_vm13, 1, %v2372_v12  ;;  %v2263_v34 = vpop.eup %2262 }
 0x1b1   : > { %1417 = vmin.xlane.f32.xlu1 %v1416_v6  ;;  %v958_v20 = vpop.permute.xlu1 %957  ;;  %v1411_v14 = vsel %vm2923_vm15, %v2778_v42, 1e+30  ;;  %v1457_v55 = vsel %vm2915_vm14, %v2788_v23, -1e+30  ;;  %v1404_v18 = vrot.slane %v1388_v58, %v2552_v13  ;;  %v1104_v46 = vadd.f32 %v1096_v47, %v1064_v57 }
 0x1b2   : > { %2264 = vpow2.f32 %v2135_v36  ;;  %v968_v22 = vadd.f32 %v958_v20, %v2649_v53  ;;  %v1645_v35 = vadd.f32 %v1638_v19, %v1629_v37  ;;  %v1105_v44 = vadd.f32 %v1097_v48, %v1065_v63 }
 0x1b3   : > { %1461 = vmax.xlane.f32.xlu0 %v1460_v52  ;;  %v1090_v12 = vmul.f32 %v1082_v0, %v2832_v61  ;;  %v1419_v43 = vsel %vm1285_vm3, %v1411_v14, inf  ;;  %vm2951_vm5 = vcmp.eq.s32.totalorder %v1404_v18, 1  ;;  %v1463_v57 = vsel %vm1285_vm3, %v1457_v55, -inf }
 0x1b4   : > { %v2137_v45 = vmul.f32 -1.442695, %v968_v22  ;;  %v1631_v53 = vmul.f32 %v1624_v4, %v968_v22  ;;  %v1412_v33 = vsel %vm2951_vm5, %v2807_v40, 1e+30  ;;  %v1458_v0 = vsel %vm2923_vm15, %v2778_v42, -1e+30 }
 0x1b5   : > { %1420 = vmin.xlane.f32.xlu1 %v1419_v43  ;;  %v1142_v47 = vpop.permute.xlu1 %1141  ;;  %v1066_v4 = vadd.f32 %v1058_v28, %v2880_v32  ;;  %v1023_v59 = vmul.f32 %v1006_v29, %v2832_v61  ;;  %v1653_v62 = vrot.slane %v1645_v35, 3  ;;  %v1047_v42 = vmul.f32 %v1030_v41, %v2832_v61 }
 0x1b6   : > { %2266 = vpow2.f32 %v2137_v45  ;;  %v1647_v48 = vadd.f32 %v1640_v2, %v1631_v53  ;;  %v1147_v19 = vrot.slane %v1142_v47, %v2552_v13  ;;  %v1087_v32 = vmul.f32 %v1070_v50, %v2832_v61 }
 0x1b7   : > { %1464 = vmax.xlane.f32.xlu0 %v1463_v57  ;;  %v1422_v38 = vsel %vm1285_vm3, %v1412_v33, inf  ;;  %v1098_v2 = vrot.slane %v1090_v12, 2  ;;  %v2982_v31 = vmul.f32 %v2263_v34, %v2847_v5  ;;  %v1055_v41 = vrot.slane %v1047_v42, 1 }
 0x1b8   : > { %v1165_v29 = vadd.f32 %v1147_v19, %v1104_v46  ;;  %v1658_v63 = vrot.slane %v1647_v48, 1  ;;  %v1095_v36 = vrot.slane %v1087_v32, 2  ;;  %v1654_v37 = vrot.slane %v1646_v26, 2 }
 0x1b9   : > { %1423 = vmin.xlane.f32.xlu1 %v1422_v38  ;;  %v1150_v27 = vpop.permute.xlu1 %1149  ;;  %v1139_v24 = vrot.slane %v1134_v54, %v2552_v13  ;;  %v1466_v61 = vsel %vm1285_vm3, %v1458_v0, -inf  ;;  %v1682_v5 = vrot.slane %v2858_v10, 2  ;;  %v1459_v25 = vsel %vm2951_vm5, %v2807_v40, -1e+30 }
 0x1ba   : > { %v1678_v16 = vmul.f32 %v1671_v15, %v1165_v29  ;;  %v1155_v50 = vrot.slane %v1150_v27, %v2552_v13  ;;  %v1063_v9 = vadd.f32 %v1055_v41, %v1023_v59  ;;  %v1655_v6 = vsel %vm1447_vm0, %v1654_v37, %v1653_v62 }
 0x1bb   : > { %1467 = vmax.xlane.f32.xlu0 %v1466_v61  ;;  %v1106_v14 = vadd.f32 %v1098_v2, %v1066_v4  ;;  %v1648_v15 = vadd.f32 %v2858_v10, %v2872_v56  ;;  %v1657_v58 = vsel %vm1656_vm1, %v1654_v37, %v1655_v6  ;;  %v1469_v46 = vsel %vm1285_vm3, %v1459_v25, -inf }
 0x1bc   : > { %v2265_v20 = vpop.eup %2264  ;;  %v1166_v52 = vadd.f32 %v1155_v50, %v1105_v44  ;;  %v1688_v34 = vadd.f32 %v1681_v39, %v1678_v16  ;;  %v1103_v55 = vadd.f32 %v1095_v36, %v1063_v9  ;;  %v1659_v40 = vsel %vm1449_vm2, %v1658_v63, %v1657_v58 }
 0x1bd   : > { %v982_v28 = vadd.f32 1.0, %v2265_v20  ;;  %v1158_v22 = vpop.permute.xlu1 %1157  ;;  %v1661_v44 = vsel %vm1660_vm4, %v1658_v63, %v1659_v40  ;;  %v1576_v56 = vcombine.high %v2663_v1, %v2663_v1  ;;  %v1683_v43 = vrot.slane %v2858_v10, 3 }
 0x1be   : > { %v1679_v18 = vmul.f32 %v1672_v7, %v1166_v52  ;;  %v1163_v35 = vrot.slane %v1158_v22, %v2552_v13  ;;  %v1164_v39 = vadd.f32 %v1139_v24, %v1103_v55  ;;  %v1662_v12 = vsel %vm1451_vm6, %v1648_v15, %v1661_v44 }
 0x1bf   : > { %2268 = vrcp.f32 %v982_v28  ;;  %1470 = vmax.xlane.f32.xlu0 %v1469_v46  ;;  %v1664_v23 = vsel %vm1663_vm7, %v1648_v15, %v1662_v12  ;;  %v1695_v57 = vrot.slane %v1688_v34, 7  ;;  %v1519_v4 = vrot.slane %v2765_v30, %v2659_v60 }
 0x1c0   : > { %v2267_v45 = vpop.eup %2266  ;;  %v1689_v53 = vadd.f32 %v1682_v5, %v1679_v18  ;;  %v1167_v7 = vadd.f32 %v1163_v35, %v1106_v14  ;;  %v1677_v33 = vmul.f32 %v2732_v17, %v1164_v39  ;;  %v1666_v0 = vsel %vm1618_vm8, %v1664_v23, -1000.0 }
 0x1c1   : > { %v984_v47 = vadd.f32 1.0, %v2267_v45  ;;  %1667 = vst [vmem:[%s3023_s3] sm:$0xf] %v1666_v0  ;;  %v1668_v54 = vrot.slane %v2747_v51, 4  ;;  %v1589_v62 = vrot.slane %v1576_v56, %v2552_v13  ;;  %v1527_v42 = vcombine.high %v1519_v4, %v1519_v4 }
 0x1c2   : > { %v1680_v1 = vmul.f32 %v1673_v49, %v1167_v7  ;;  %v1698_v48 = vrot.slane %v1689_v53, 6  ;;  %v1687_v19 = vadd.f32 %v1677_v33, %v2858_v10  ;;  %v1532_v60 = vrot.slane %v1519_v4, %v2552_v13 }
 0x1c3   : > { %2270 = vrcp.f32 %v984_v47  ;;  %vm1670_vm3 = vcmp.gt.f32.partialorder %v1668_v54, 0.0  ;;  %v1540_v29 = vrot.slane %v1527_v42, %v2552_v13  ;;  %v1577_v36 = vcombine.high %v2683_v21, %v2683_v21 }
 0x1c4   : > { %v1690_v59 = vadd.f32 %v1683_v43, %v1680_v1  ;;  %v1696_v17 = vsel %vm1447_vm0, %v1695_v57, %v1687_v19 }
 0x1c5   : > { %v1697_v30 = vsel %vm1656_vm1, %v1695_v57, %v1696_v17  ;;  %v1593_v24 = vrot.slane %v1577_v36, %v2552_v13 }
 0x1c6   : > { %v1701_v49 = vrot.slane %v1690_v59, 5  ;;  %v1699_v32 = vsel %vm1449_vm2, %v1698_v48, %v1697_v30 }
 0x1c7   : > { %v1700_v10 = vsel %vm1660_vm4, %v1698_v48, %v1699_v32 }
 0x1c8   : > { %v1702_v51 = vsel %vm1451_vm6, %v1701_v49, %v1700_v10 }
 0x1c9   : > { %v2269_v26 = vpop.eup %2268  ;;  %v1703_v2 = vsel %vm1663_vm7, %v1701_v49, %v1702_v51 }
 0x1ca   : > { %1603 = vperm.xlu1 %2246, %v1589_v62   ;;  %v1549_v38 = vmul.f32 %v2269_v26, %v1532_v60  ;;  %v1705_v63 = vsel %vm1670_vm3, %v1703_v2, -1000.0 }
 0x1cb   : > { %1706 = vst [vmem:[%s3040_s24] sm:$0xf] %v1705_v63 }
 0x1cc   : > { %v1610_v27 = vmul.f32 %v2740_v11, %v1549_v38 }
 0x1cd   : > { %v2271_v41 = vpop.eup %2270 }
 0x1ce   : > { %v3045_v37 = vmul.f32 %v2271_v41, %v1540_v29  ;;  %1614 = vst [vmem:[%s2900_s20] sm:$0x7] %v1610_v27 }
 0x1d5   : > { %1607 = vperm.xlu0 %2247, %v1593_v24  }
 0x1d6   : > { %2285 = shalt.err (!%p2282_p3)
}
 0x1d7   : > { %s2286_s3 = scalar_lea.hbm %s3055_s4, 64  ;;  %s2290_s7 = scalar_lea.hbm %s3203_s11, 128 }
 0x1d8   : > { %p2287_p4 = scmp.ne.s32.totalorder %s3055_s4, %s2286_s3  ;;  %p2291_p9 = scmp.lt.u32.totalorder %s3055_s4, %s3203_s11 }
 0x1d9   : > { %p2292_p10 = scmp.lt.u32.totalorder %s2290_s7, %s2286_s3  ;;  %p2294_p12 = scmp.lt.u32.totalorder %s2286_s3, %s3055_s4 }
 0x1da   : > { %p2288_p7 = pnand %p2287_p4, %p2514_p5 }
 0x1db   : > { %p2293_p11 = por %p2292_p10, %p2291_p9 }
 0x1dc   : > { %p2289_p8 = pneg %p2288_p7 }
 0x1dd   : > { %p2295_p13 = por %p2294_p12, %p2293_p11 }
 0x1df   : > { %p2296_p0 = pnand %p2295_p13, %p2289_p8 }
 0x1e1   : > { %2299 = shalt.err (!%p2296_p0)
}
 0x1e2   : > { %2175 = dma.vmem_to_hbm [thread:$0]  (%p2514_p5), %s1760_s21, 64, %s3055_s4, %s1713_s5  }
 0x1e3   : > { %s3204_s6 = sshll.u32 %s2497_s0, 6  ;;  %s1772_s19 = sshll.u32 %s3040_s24, 4  ;;  %s1773_s19 = int_to_ptr.vmem [resolvable:$true] %s1772_s19 }
 0x1e4   : > { %s3081_s26 = scalar_lea.hbm %s3157_s12, %s3204_s6  ;;  %s1718_s3 = scalar_lea.sflag [#allocation5], %s2985_s25 }
 0x1e5   : > { %s2300_s7 = scalar_lea.vmem %s1773_s19, 64  ;;  %s2380_s8 = smov [#allocation4]  }
 0x1e6   : > { %p2301_p1 = scmp.ne.s32.totalorder %s1773_s19, %s2300_s7  ;;  %s2304_s10 = sshll.u32 %s2380_s8, 4  ;;  %s2305_s10 = int_to_ptr.vmem [resolvable:$false] %s2304_s10 }
 0x1e7   : > { %s2306_s11 = scalar_lea.vmem %s2305_s10, 128  ;;  %p2307_p4 = scmp.lt.s32.totalorder %s1773_s19, %s2305_s10 }
 0x1e8   : > { %p2302_p2 = pnand %p2301_p1, %p2514_p5  ;;  %p2308_p7 = scmp.lt.s32.totalorder %s2306_s11, %s2300_s7 }
 0x1ea   : > { %p2303_p3 = pneg %p2302_p2  ;;  %p2309_p8 = por %p2308_p7, %p2307_p4 }
 0x1ec   : > { %p2310_p9 = pnand %p2309_p8, %p2303_p3 }
 0x1ee   : > { %2313 = shalt.err (!%p2310_p9)
}
 0x1ef   : > { %s2314_s5 = scalar_lea.hbm %s3081_s26, 64  ;;  %s2318_s24 = scalar_lea.hbm %s3157_s12, 128 }
 0x1f0   : > { %p2315_p10 = scmp.ne.s32.totalorder %s3081_s26, %s2314_s5  ;;  %p2319_p13 = scmp.lt.u32.totalorder %s3081_s26, %s3157_s12 }
 0x1f1   : > { %p2320_p0 = scmp.lt.u32.totalorder %s2318_s24, %s2314_s5  ;;  %p2322_p2 = scmp.lt.u32.totalorder %s2314_s5, %s3081_s26 }
 0x1f2   : > { %p2316_p11 = pnand %p2315_p10, %p2514_p5 }
 0x1f3   : > { %p2321_p1 = por %p2320_p0, %p2319_p13 }
 0x1f4   : > { %p2317_p12 = pneg %p2316_p11 }
 0x1f5   : > { %p2323_p3 = por %p2322_p2, %p2321_p1 }
 0x1f7   : > { %p2324_p4 = pnand %p2323_p3, %p2317_p12 }
 0x1f9   : > { %2327 = shalt.err (!%p2324_p4)
}
 0x1fa   : > { %2176 = dma.vmem_to_hbm [thread:$0]  (%p2514_p5), %s1773_s19, 64, %s3081_s26, %s1718_s3   ;;  %vm1501_vm9 = vcmask 3072   ;;  %v1430_v11 = vand.u32 127, %v849_v3  ;;  %vm1454_vm10 = vcmask 19456  }
 0x1fb   : > { %s749_s6 = scalar_lea.vmem %s3163_s18, %s2561_s29  ;;  %s741_s22 = scalar_lea.vmem %s3161_s16, %s2561_s29 }
 0x1fc   : > { %v1433_v61 = vsub.s32 %v1430_v11, %v2539_v8  ;;  %s745_s3 = scalar_lea.vmem %s3162_s17, %s2561_s29 }
 0x232   : > { %v1500_v13 = vpop.xlane.xlu1 %1499 }
 0x233   : > { %1502 = vst.msk [vmem:[%s749_s6] sm:$0xf] %vm1501_vm9, %v1500_v13 }
 0x23c   : > { %v1415_v21 = vpop.xlane.xlu0 %1414 }
 0x23d   : > { %v1434_v20 = vrot.slane %v1415_v21, %v1433_v61 }
 0x23e   : > { %v1418_v16 = vpop.xlane.xlu1 %1417 }
 0x23f   : > { %v1438_v25 = vrot.slane %v1418_v16, %v1433_v61 }
 0x240   : > { %v1462_v50 = vpop.xlane.xlu0 %1461 }
 0x241   : > { %v1448_v14 = vsel %vm1447_vm0, %v1438_v25, %v1434_v20  ;;  %v1479_v55 = vrot.slane %v1462_v50, %v1433_v61 }
 0x242   : > { %v1421_v5 = vpop.xlane.xlu1 %1420 }
 0x243   : > { %v1442_v9 = vrot.slane %v1421_v5, %v1433_v61 }
 0x244   : > { %v1465_v6 = vpop.xlane.xlu0 %1464 }
 0x245   : > { %v1450_v15 = vsel %vm1449_vm2, %v1442_v9, %v1448_v14  ;;  %v1483_v8 = vrot.slane %v1465_v6, %v1433_v61 }
 0x246   : > { %v1424_v52 = vpop.xlane.xlu1 %1423 }
 0x247   : > { %v1446_v3 = vrot.slane %v1424_v52, %v1433_v61  ;;  %v1492_v35 = vsel %vm1447_vm0, %v1483_v8, %v1479_v55 }
 0x248   : > { %v1468_v58 = vpop.xlane.xlu0 %1467 }
 0x249   : > { %v1452_v28 = vsel %vm1451_vm6, %v1446_v3, %v1450_v15  ;;  %v1487_v34 = vrot.slane %v1468_v58, %v1433_v61 }
 0x24a   : > { %1455 = vst.msk [vmem:[%s741_s22] sm:$0xf] %vm1454_vm10, %v1452_v28  ;;  %v1604_v22 = vpop.permute.xlu1 %1603 }
 0x24b   : > { %v1612_v40 = vmul.f32 %v1604_v22, %v3045_v37  ;;  %v1493_v44 = vsel %vm1449_vm2, %v1487_v34, %v1492_v35 }
 0x24c   : > { %v1471_v18 = vpop.xlane.xlu0 %1470 }
 0x24d   : > { %1616 = vst [vmem:[%s2900_s20 + $0x8] sm:$0x7] %v1612_v40  ;;  %v1491_v46 = vrot.slane %v1471_v18, %v1433_v61 }
 0x24f   : > { %v1494_v56 = vsel %vm1451_vm6, %v1491_v46, %v1493_v44 }
 0x250   : > { %1496 = vst.msk [vmem:[%s745_s3] sm:$0xf] %vm1454_vm10, %v1494_v56 }
 0x254   : > { %v1608_v39 = vpop.permute.xlu0 %1607 }
 0x255   : > { %v1613_v12 = vmul.f32 %v1608_v39, %v2982_v31 }
 0x257   : > { %1617 = vst [vmem:[%s2900_s20 + $0xc] sm:$0x7] %v1613_v12 }
 0x258 PF: > { %p2186_p5 = scmp.ge.s32.totalorder %s2366_s30, 2  ;;  %s1810_s7 = sand.u32 1, %s2354_s27  }
 0x259   : > { %s1811_s29 = scalar_lea.sflag [#allocation3], %s1810_s7 }
 0x25a   : > { %p2180_p7 = pnand %p2186_p5, %p2518_p6 }
 0x25c   : > { %2345 = dma.done.wait (!%p2180_p7), %s1811_s29, 64  }
 0x25d   : > { %2347 = vsyncadd (!%p2180_p7), %s1811_s29, 4294967232  ;;  %s1820_s8 = scalar_lea.sflag [#allocation5], %s1810_s7 }
 0x25e   : > { %2349 = dma.done.wait (!%p2180_p7), %s1820_s8, 64  }
 0x25f   : > { %2351 = vsyncadd (!%p2180_p7), %s1820_s8, 4294967232  ;;  %s3205_s5 = sld [smem:[#allocation8_spill]]  ;;  %s3206_s29 = sld [smem:[#allocation9_spill]] }
 0x260   : > { %p32_p8 = scmp.ge.s32.totalorder %s2501_s1, 4   ;;  %s3207_s27 = smov %s2358_s28 }
 0x261   : > { %s3209_s30 = smov %s2501_s1 }
 0x262   :  { %34 = sbr.rel (!%p32_p8) target bundleno = 18 (0x12), region = 211 }
 0x265   : > { %s3208_s28 = smov %s3205_s5 }
 0x269   :  { %1868 = vsyncpa [#allocation3], 1 }
 0x26a   :  { %1870 = vsyncpa [#allocation3 + $0x1], 1 }
 0x26b   :  { %1871 = vsyncpa [#allocation5], 1 }
 0x26c   :  { %1873 = vsyncpa [#allocation5 + $0x1], 1 }

</bundles_post_ra>
